<compile_context>
chip_gen: v7x
topology: tpu7x:2x2x1
jax: 0.10.0
libtpu: 0.0.40
codegen_flags: <defaults>
</compile_context>

<pallas_src>
import functools

import jax
import jax.numpy as jnp
from jax.experimental import pallas as pl
from jax.experimental.pallas import tpu as pltpu

_BN_EPS = 1e-5
_VMEM_LIMIT = 48 * 1024 * 1024  # fits v5e/v6e/v7x scoped budgets


def _pick_group(m, row_bytes, target_bytes=4 * 1024 * 1024):
    """Largest divisor g of m with g*row_bytes <= target and a grid of >= 2."""
    if m <= 1:
        return 1
    best = 1
    for g in range(1, m // 2 + 1):
        if m % g == 0 and g * row_bytes <= target_bytes:
            best = g
    return best


# ----------------------------------------------------------------------------
# Kernel 1: 3x3x3 "same" conv.
# Input is a zero-padded NDHWC tensor whose (H, W) plane is flattened to a row
# axis of length Mp = (H+3)*(W+2).  Grid = (N, D, 3): the last axis is the
# depth tap (reduction, f32 VMEM accumulator).  Inside the kernel the 9
# in-plane taps are contiguous slices slab[kh*(W+2)+kw : +Mo] (Mo = H*(W+2));
# rows with (r mod W+2) >= W are garbage and are masked out of the output and
# the BN statistics.  Optional prelude applies BN+ReLU of the previous layer
# to the loaded slab (halo re-zeroed with a mask input).
# ----------------------------------------------------------------------------
def _conv_kernel(xp_ref, w_ref, b_ref, sc_ref, sh_ref, im_ref, om_ref,
                 y_ref, s_ref, ssd_ref, acc_ref, *,
                 H, W, D, Cin, Cout, fold_k, apply_prelude):
    d = pl.program_id(1)
    kd = pl.program_id(2)
    Wp = W + 2
    Mo = H * Wp

    @pl.when(kd == 0)
    def _init():
        acc_ref[...] = jnp.zeros_like(acc_ref)

    dz = d + kd                                    # padded-depth index
    interior = jnp.logical_and(dz >= 1, dz <= D)   # skip pure-padding slices

    @pl.when(interior)
    def _accumulate():
        slab = xp_ref[0, 0].astype(jnp.float32)    # (Mp, Cin)
        if apply_prelude:
            slab = jnp.maximum(slab * sc_ref[...] + sh_ref[...], 0.0)
            slab = slab * im_ref[...]              # re-zero H/W halo rows
        if fold_k:
            # fold the 9 in-plane taps into K = 9*Cin (single MXU matmul)
            taps = [slab[kh * Wp + kw:kh * Wp + kw + Mo, :].astype(jnp.bfloat16)
                    for kh in range(3) for kw in range(3)]
            patches = jnp.concatenate(taps, axis=-1)       # (Mo, 9*Cin)
            wk = w_ref[kd]                                  # (9*Cin, Cout)
            acc_ref[...] += jnp.dot(patches, wk,
                                    preferred_element_type=jnp.float32)
        else:
            part = jnp.zeros((Mo, Cout), jnp.float32)
            t = 0
            for kh in range(3):
                for kw in range(3):
                    tap = slab[kh * Wp + kw:kh * Wp + kw + Mo, :]   # (Mo, Cin)
                    wt = w_ref[kd * 9 + t]                           # (Cin, Cout)
                    if Cin == 1:
                        part = part + tap * wt.astype(jnp.float32)
                    else:
                        part = part + jnp.dot(tap.astype(jnp.bfloat16), wt,
                                              preferred_element_type=jnp.float32)
                    t += 1
            acc_ref[...] += part

    @pl.when(kd == 2)
    def _finalize():
        om = om_ref[...]                                    # (Mo, 1) valid rows
        y = (acc_ref[...] + b_ref[...]) * om                # garbage rows -> 0
        n_valid = float(H * W)
        s = jnp.sum(y, axis=0, keepdims=True)               # (1, Cout)
        mu = s / n_valid
        dev = (y - mu) * om
        ssd = jnp.sum(dev * dev, axis=0, keepdims=True)     # shifted SS (stable)
        s_ref[0, 0] = jnp.broadcast_to(s, (8, Cout))
        ssd_ref[0, 0] = jnp.broadcast_to(ssd, (8, Cout))
        y_ref[0, 0] = y.astype(y_ref.dtype)                 # bf16 activation


def _conv3d_bn_stats(xp_flat, w, b, spatial, prelude=None):
    """xp_flat: (N, D+2, (H+3)*(W+2), Cin) bf16, zero halo (pre-activation if
    `prelude=(scale, shift)` is given).  Returns:
      y    : (N, D, H*(W+2), Cout) bf16, garbage columns zeroed
      mean : (Cout,) f32 batch mean of the valid outputs
      var  : (Cout,) f32 biased batch variance (training-mode BN)."""
    N = xp_flat.shape[0]
    Cin = xp_flat.shape[-1]
    D, H, W = spatial
    Wp = W + 2
    Mp = (H + 3) * Wp
    Mo = H * Wp
    Cout = w.shape[0]
    assert xp_flat.shape == (N, D + 2, Mp, Cin)
    fold_k = (Cin % 128 == 0)

    wt = jnp.transpose(w, (2, 3, 4, 1, 0)).astype(jnp.bfloat16)  # (kd,kh,kw,ci,co)
    w_mat = wt.reshape(3, 9 * Cin, Cout) if fold_k else wt.reshape(27, Cin, Cout)
    bias = b.reshape(1, Cout).astype(jnp.float32)

    if prelude is None:
        scale = jnp.ones((1, Cin), jnp.float32)
        shift = jnp.zeros((1, Cin), jnp.float32)
        apply_prelude = False
    else:
        scale = prelude[0].reshape(1, Cin).astype(jnp.float32)
        shift = prelude[1].reshape(1, Cin).astype(jnp.float32)
        apply_prelude = True

    # halo / garbage masks (tiny, passed as inputs to avoid in-kernel div/mod)
    rr_in = jnp.arange(Mp, dtype=jnp.int32)
    hh, ww = rr_in // Wp, rr_in % Wp
    in_mask = ((hh >= 1) & (hh <= H) & (ww >= 1) & (ww <= W))
    in_mask = in_mask.astype(jnp.float32).reshape(Mp, 1)
    rr_out = jnp.arange(Mo, dtype=jnp.int32)
    out_mask = ((rr_out % Wp) < W).astype(jnp.float32).reshape(Mo, 1)

    kernel = functools.partial(_conv_kernel, H=H, W=W, D=D, Cin=Cin, Cout=Cout,
                               fold_k=fold_k, apply_prelude=apply_prelude)

    y, s, ssd = pl.pallas_call(
        kernel,
        out_shape=(jax.ShapeDtypeStruct((N, D, Mo, Cout), jnp.bfloat16),
                   jax.ShapeDtypeStruct((N, D, 8, Cout), jnp.float32),
                   jax.ShapeDtypeStruct((N, D, 8, Cout), jnp.float32)),
        grid_spec=pltpu.PrefetchScalarGridSpec(
            num_scalar_prefetch=0,
            grid=(N, D, 3),
            in_specs=[
                pl.BlockSpec((1, 1, Mp, Cin), lambda n, d, kd: (n, d + kd, 0, 0)),
                pl.BlockSpec(w_mat.shape, lambda n, d, kd: (0, 0, 0)),  # resident
                pl.BlockSpec((1, Cout), lambda n, d, kd: (0, 0)),
                pl.BlockSpec((1, Cin), lambda n, d, kd: (0, 0)),
                pl.BlockSpec((1, Cin), lambda n, d, kd: (0, 0)),
                pl.BlockSpec((Mp, 1), lambda n, d, kd: (0, 0)),
                pl.BlockSpec((Mo, 1), lambda n, d, kd: (0, 0)),
            ],
            out_specs=[
                pl.BlockSpec((1, 1, Mo, Cout), lambda n, d, kd: (n, d, 0, 0)),
                pl.BlockSpec((1, 1, 8, Cout), lambda n, d, kd: (n, d, 0, 0)),
                pl.BlockSpec((1, 1, 8, Cout), lambda n, d, kd: (n, d, 0, 0)),
            ],
            scratch_shapes=[pltpu.VMEM((Mo, Cout), jnp.float32)],
        ),
        compiler_params=pltpu.CompilerParams(
            dimension_semantics=("parallel", "parallel", "arbitrary"),
            vmem_limit_bytes=_VMEM_LIMIT),
    )(xp_flat, w_mat, bias, scale, shift, in_mask, out_mask)

    # Combine per-(n, d) partial stats (parallel / Chan variance combination).
    cnt = float(H * W)
    total = float(N * D) * cnt
    s2 = s[:, :, 0, :].reshape(N * D, Cout)
    ssd2 = ssd[:, :, 0, :].reshape(N * D, Cout)
    mean = jnp.sum(s2, axis=0) / total
    mean_t = s2 / cnt
    var = (jnp.sum(ssd2, axis=0)
           + cnt * jnp.sum((mean_t - mean) ** 2, axis=0)) / total
    var = jnp.maximum(var, 0.0)
    return y, mean, var


# ----------------------------------------------------------------------------
# Kernel 2: fused BN2 + ReLU + MaxPool3d((2,2,2)).
# Input is the conv2 activation viewed (free bitcast reshapes only) as
# (N*Do, 2, H, (W+2)//2, 2*C): depth pairs on dim 1, width pairs folded into
# lane halves.  Emits the full-resolution skip (f32, padded-width layout) and
# the pooled tensor (bf16) in one read of the activation.
# ----------------------------------------------------------------------------
def _bn_relu_pool_kernel(x_ref, sc_ref, sh_ref, skip_ref, pool_ref, *, H, W, C):
    Ho, Wo = H // 2, W // 2
    x = x_ref[...].astype(jnp.float32)                      # (g, 2, H, Wph, 2C)
    y = jnp.maximum(x * sc_ref[...] + sh_ref[...], 0.0)
    skip_ref[...] = y.astype(skip_ref.dtype)
    v = y[:, :, :, :Wo, :]                                  # drop garbage w-pair
    v = jnp.maximum(v[:, 0], v[:, 1])                       # depth pairs
    g = v.shape[0]
    v = v.reshape(g, Ho, 2, Wo, 2 * C)                      # split leading dim
    v = jnp.maximum(v[:, :, 0], v[:, :, 1])                 # height pairs
    p = jnp.maximum(v[..., :C], v[..., C:])                 # width pairs (lanes)
    pool_ref[...] = p.astype(pool_ref.dtype)


def _bn_relu_pool(y_flat, spatial, gamma, beta, mean, var):
    """y_flat: (N, D, H*(W+2), C) bf16 from _conv3d_bn_stats.
    Returns (skip (N,C,D,H,W) f32, pooled (N,D/2,H/2,W/2,C) bf16)."""
    N, D, _, C = y_flat.shape
    Dsp, H, W = spatial
    assert D == Dsp
    assert D % 2 == 0 and H % 2 == 0 and W % 2 == 0, \
        "fused BN+ReLU+MaxPool requires even spatial dims"
    # TODO(synk): odd spatial dims (floor pooling) not handled by the fused path.
    Wp = W + 2
    Do, Ho, Wo = D // 2, H // 2, W // 2
    Wph = Wp // 2

    inv = jax.lax.rsqrt(var + _BN_EPS)
    scale = (gamma * inv).astype(jnp.float32)
    shift = (beta - mean * gamma * inv).astype(jnp.float32)
    scale2 = jnp.tile(scale, 2).reshape(1, 2 * C)
    shift2 = jnp.tile(shift, 2).reshape(1, 2 * C)

    M = N * Do
    x8 = y_flat.reshape(M, 2, H, Wph, 2 * C)                # free reshape

    row_bytes = 2 * H * Wph * 2 * C * (2 + 4) + Ho * Wo * C * 2
    g = _pick_group(M, row_bytes)

    kernel = functools.partial(_bn_relu_pool_kernel, H=H, W=W, C=C)
    skip8, pooled = pl.pallas_call(
        kernel,
        out_shape=(jax.ShapeDtypeStruct((M, 2, H, Wph, 2 * C), jnp.float32),
                   jax.ShapeDtypeStruct((M, Ho, Wo, C), jnp.bfloat16)),
        grid_spec=pltpu.PrefetchScalarGridSpec(
            num_scalar_prefetch=0,
            grid=(M // g,),
            in_specs=[
                pl.BlockSpec((g, 2, H, Wph, 2 * C), lambda i: (i, 0, 0, 0, 0)),
                pl.BlockSpec((1, 2 * C), lambda i: (0, 0)),
                pl.BlockSpec((1, 2 * C), lambda i: (0, 0)),
            ],
            out_specs=[
                pl.BlockSpec((g, 2, H, Wph, 2 * C), lambda i: (i, 0, 0, 0, 0)),
                pl.BlockSpec((g, Ho, Wo, C), lambda i: (i, 0, 0, 0)),
            ],
        ),
        compiler_params=pltpu.CompilerParams(
            dimension_semantics=("parallel",),
            vmem_limit_bytes=_VMEM_LIMIT),
    )(x8, scale2, shift2)

    skip = skip8.reshape(N, D, H, Wp, C)[:, :, :, :W, :]
    skip = jnp.transpose(skip, (0, 4, 1, 2, 3))             # NCDHW (boundary)
    pooled = pooled.reshape(N, Do, Ho, Wo, C)
    return skip, pooled


# ----------------------------------------------------------------------------
# Host-side plumbing (pads are single XLA copy passes; all reshapes are free
# row-major bitcasts).
# ----------------------------------------------------------------------------
def _pad_for_conv(x_ndhwc):
    """Zero-pad D/H/W by 1 (plus one extra junk H row so flat-row tap slices
    stay in bounds), cast to bf16, flatten (H, W): (N, D+2, (H+3)*(W+2), C)."""
    N, D, H, W, C = x_ndhwc.shape
    xp = jnp.pad(x_ndhwc.astype(jnp.bfloat16),
                 ((0, 0), (1, 1), (1, 2), (1, 1), (0, 0)))
    return xp.reshape(N, D + 2, (H + 3) * (W + 2), C)


def _encoder_block(xp_flat, spatial, p):
    D, H, W = spatial
    # conv1 (+ fused BN1 batch-stat epilogue); no load prelude
    y1, m1, v1 = _conv3d_bn_stats(xp_flat, p["conv1_w"], p["conv1_b"], spatial)
    # BN1 + ReLU are folded into conv2's load prelude
    inv1 = jax.lax.rsqrt(v1 + _BN_EPS)
    sc1 = p["bn1_gamma"] * inv1
    sh1 = p["bn1_beta"] - m1 * sc1
    C1 = y1.shape[-1]
    y1r = y1.reshape(y1.shape[0], D, H, W + 2, C1)[:, :, :, :W, :]
    xp2 = _pad_for_conv(y1r)
    y2, m2, v2 = _conv3d_bn_stats(xp2, p["conv2_w"], p["conv2_b"], spatial,
                                  prelude=(sc1, sh1))
    skip, pooled = _bn_relu_pool(y2, spatial, p["bn2_gamma"], p["bn2_beta"],
                                 m2, v2)
    return skip, pooled


def init_params(key, num_blocks):
    cfg = [(1, 32, 64)]
    for nb in range(1, num_blocks):
        cfg.append((2 ** (5 + nb), 2 ** (6 + nb), 2 ** (6 + nb)))
    params = []
    for cin, c1, c2 in cfg:
        blk = {}
        for name, (ci, co) in (("conv1", (cin, c1)), ("conv2", (c1, c2))):
            key, kw_key, kb_key = jax.random.split(key, 3)
            bound = 1.0 / float(ci * 27) ** 0.5
            blk[name + "_w"] = jax.random.uniform(kw_key, (co, ci, 3, 3, 3),
                                                  jnp.float32, -bound, bound)
            blk[name + "_b"] = jax.random.uniform(kb_key, (co,), jnp.float32,
                                                  -bound, bound)
        blk["bn1_gamma"] = jnp.ones((c1,), jnp.float32)
        blk["bn1_beta"] = jnp.zeros((c1,), jnp.float32)
        blk["bn2_gamma"] = jnp.ones((c2,), jnp.float32)
        blk["bn2_beta"] = jnp.zeros((c2,), jnp.float32)
        params.append(blk)
    return params


def unet_encoder3d(x_ncdhw, params):
    """x_ncdhw: (N, 1, D, H, W) f32.  Returns (x, list_skips) in NCDHW layout.
    BatchNorm runs in training mode (batch statistics) like the fresh PyTorch
    module; conv math uses bf16 operands with f32 accumulation."""
    # TODO(synk): running_mean / running_var buffer updates are not tracked.
    N, Cin, D, H, W = x_ncdhw.shape
    if Cin == 1:
        x = x_ncdhw.reshape(N, D, H, W, 1).astype(jnp.float32)  # free reshape
    else:
        x = jnp.transpose(x_ncdhw, (0, 2, 3, 4, 1)).astype(jnp.float32)
    spatial = (D, H, W)
    xp = _pad_for_conv(x)
    skips = []
    pooled = None
    for bi, p in enumerate(params):
        skip, pooled = _encoder_block(xp, spatial, p)
        skips.append(skip)
        spatial = tuple(s // 2 for s in spatial)
        if bi + 1 < len(params):
            xp = _pad_for_conv(pooled)
    x_out = jnp.transpose(pooled.astype(jnp.float32), (0, 4, 1, 2, 3))
    return x_out, skips


if __name__ == "__main__":
    num_blocks = 2
    N, D, H, W = 2, 8, 8, 8

    key = jax.random.PRNGKey(0)
    key, pkey, xkey = jax.random.split(key, 3)
    params = init_params(pkey, num_blocks)
    x = jax.random.normal(xkey, (N, 1, D, H, W), jnp.float32)

    fwd = jax.jit(unet_encoder3d)
    x_out, skips = fwd(x, params)
    x_out = jax.block_until_ready(x_out)
    skips = [jax.block_until_ready(s) for s in skips]

    assert x_out.shape == (N, 128, D // 4, H // 4, W // 4), x_out.shape
    assert skips[0].shape == (N, 64, D, H, W), skips[0].shape
    assert skips[1].shape == (N, 128, D // 2, H // 2, W // 2), skips[1].shape
    assert bool(jnp.all(jnp.isfinite(x_out)))
    assert all(bool(jnp.all(jnp.isfinite(s))) for s in skips)
    print("KERNEL_OK")
</pallas_src>

<mosaic_0001>
module attributes {stable_mosaic.version = 11 : i64} {
  func.func @_conv_kernel(%arg0: i32, %arg1: i32, %arg2: i32, %arg3: memref<1x1x110x1xbf16, #tpu.memory_space<vmem>>, %arg4: memref<27x1x32xbf16, #tpu.memory_space<vmem>>, %arg5: memref<1x32xf32, #tpu.memory_space<vmem>>, %arg6: memref<1x1xf32, #tpu.memory_space<vmem>>, %arg7: memref<1x1xf32, #tpu.memory_space<vmem>>, %arg8: memref<110x1xf32, #tpu.memory_space<vmem>>, %arg9: memref<80x1xf32, #tpu.memory_space<vmem>>, %arg10: memref<1x1x80x32xbf16, #tpu.memory_space<vmem>>, %arg11: memref<1x1x8x32xf32, #tpu.memory_space<vmem>>, %arg12: memref<1x1x8x32xf32, #tpu.memory_space<vmem>>, %arg13: memref<80x32xf32, #tpu.memory_space<vmem>>) attributes {dimension_semantics = [#tpu.dimension_semantics<parallel>, #tpu.dimension_semantics<parallel>, #tpu.dimension_semantics<arbitrary>], iteration_bounds = array<i64: 2, 8, 3>, scalar_prefetch = 0 : i64, scratch_operands = 1 : i64, tpu.core_type = #tpu.core_type<tc>, window_params = [{transform_indices = @transform_0, window_bounds = array<i64: 1, 1, 110, 1>}, {pipeline_mode = #tpu.pipeline_mode<synchronous>, transform_indices = @transform_1, window_bounds = array<i64: 27, 1, 32>}, {pipeline_mode = #tpu.pipeline_mode<synchronous>, transform_indices = @transform_2, window_bounds = array<i64: 1, 32>}, {pipeline_mode = #tpu.pipeline_mode<synchronous>, transform_indices = @transform_3, window_bounds = array<i64: 1, 1>}, {pipeline_mode = #tpu.pipeline_mode<synchronous>, transform_indices = @transform_4, window_bounds = array<i64: 1, 1>}, {pipeline_mode = #tpu.pipeline_mode<synchronous>, transform_indices = @transform_5, window_bounds = array<i64: 110, 1>}, {pipeline_mode = #tpu.pipeline_mode<synchronous>, transform_indices = @transform_6, window_bounds = array<i64: 80, 1>}, {transform_indices = @transform_7, window_bounds = array<i64: 1, 1, 80, 32>}, {transform_indices = @transform_8, window_bounds = array<i64: 1, 1, 8, 32>}, {transform_indices = @transform_9, window_bounds = array<i64: 1, 1, 8, 32>}]} {
    %c0_i32 = arith.constant 0 : i32
    %0 = arith.cmpi eq, %arg2, %c0_i32 : i32
    %1 = arith.extui %0 : i1 to i32
    %c0_i32_0 = arith.constant 0 : i32
    %2 = arith.cmpi ne, %1, %c0_i32_0 : i32
    scf.if %2 {
      %cst = arith.constant 0.000000e+00 : f32
      %12 = vector.broadcast %cst : f32 to vector<80x32xf32>
      %c0 = arith.constant 0 : index
      %c0_3 = arith.constant 0 : index
      %13 = vector.load %arg13[%c0, %c0_3] : memref<80x32xf32, #tpu.memory_space<vmem>>, vector<80x32xf32>
      tpu.vector_store %arg13[%c0, %c0_3], %12 {strides = array<i32>} : memref<80x32xf32, #tpu.memory_space<vmem>>, vector<80x32xf32>,
    } else {
    }
    %3 = arith.addi %arg1, %arg2 : i32
    %c1_i32 = arith.constant 1 : i32
    %4 = arith.cmpi sge, %3, %c1_i32 : i32
    %c8_i32 = arith.constant 8 : i32
    %5 = arith.cmpi sle, %3, %c8_i32 : i32
    %6 = arith.andi %4, %5 : i1
    %7 = arith.extui %6 : i1 to i32
    %c0_i32_1 = arith.constant 0 : i32
    %8 = arith.cmpi ne, %7, %c0_i32_1 : i32
    scf.if %8 {
      %c0 = arith.constant 0 : index
      %c0_3 = arith.constant 0 : index
      %c0_4 = arith.constant 0 : index
      %c0_5 = arith.constant 0 : index
      %12 = vector.load %arg3[%c0, %c0_3, %c0_4, %c0_5] : memref<1x1x110x1xbf16, #tpu.memory_space<vmem>>, vector<1x1x110x1xbf16>
      %13 = vector.shape_cast %12 : vector<1x1x110x1xbf16> to vector<110x1xbf16>
      %14 = arith.extf %13 : vector<110x1xbf16> to vector<110x1xf32>
      %cst = arith.constant 0.000000e+00 : f32
      %15 = vector.broadcast %cst : f32 to vector<80x32xf32>
      %16 = vector.extract_strided_slice %14 {offsets = [0, 0], sizes = [80, 1], strides = [1, 1]} : vector<110x1xf32> to vector<80x1xf32>
      %c9_i32 = arith.constant 9 : i32
      %17 = arith.muli %arg2, %c9_i32 : i32
      %c0_i32_6 = arith.constant 0 : i32
      %18 = arith.addi %17, %c0_i32_6 : i32
      %19 = arith.index_cast %18 : i32 to index
      %c0_7 = arith.constant 0 : index
      %c0_8 = arith.constant 0 : index
      %20 = vector.load %arg4[%19, %c0_7, %c0_8] : memref<27x1x32xbf16, #tpu.memory_space<vmem>>, vector<1x1x32xbf16>
      %21 = vector.shape_cast %20 : vector<1x1x32xbf16> to vector<1x32xbf16>
      %22 = arith.extf %21 : vector<1x32xbf16> to vector<1x32xf32>
      %23 = vector.broadcast %16 : vector<80x1xf32> to vector<80x32xf32>
      %24 = vector.broadcast %22 : vector<1x32xf32> to vector<80x32xf32>
      %25 = arith.mulf %23, %24 : vector<80x32xf32>
      %26 = arith.addf %15, %25 : vector<80x32xf32>
      %27 = vector.extract_strided_slice %14 {offsets = [1, 0], sizes = [80, 1], strides = [1, 1]} : vector<110x1xf32> to vector<80x1xf32>
      %c9_i32_9 = arith.constant 9 : i32
      %28 = arith.muli %arg2, %c9_i32_9 : i32
      %c1_i32_10 = arith.constant 1 : i32
      %29 = arith.addi %28, %c1_i32_10 : i32
      %30 = arith.index_cast %29 : i32 to index
      %c0_11 = arith.constant 0 : index
      %c0_12 = arith.constant 0 : index
      %31 = vector.load %arg4[%30, %c0_11, %c0_12] : memref<27x1x32xbf16, #tpu.memory_space<vmem>>, vector<1x1x32xbf16>
      %32 = vector.shape_cast %31 : vector<1x1x32xbf16> to vector<1x32xbf16>
      %33 = arith.extf %32 : vector<1x32xbf16> to vector<1x32xf32>
      %34 = vector.broadcast %27 : vector<80x1xf32> to vector<80x32xf32>
      %35 = vector.broadcast %33 : vector<1x32xf32> to vector<80x32xf32>
      %36 = arith.mulf %34, %35 : vector<80x32xf32>
      %37 = arith.addf %26, %36 : vector<80x32xf32>
      %38 = vector.extract_strided_slice %14 {offsets = [2, 0], sizes = [80, 1], strides = [1, 1]} : vector<110x1xf32> to vector<80x1xf32>
      %c9_i32_13 = arith.constant 9 : i32
      %39 = arith.muli %arg2, %c9_i32_13 : i32
      %c2_i32_14 = arith.constant 2 : i32
      %40 = arith.addi %39, %c2_i32_14 : i32
      %41 = arith.index_cast %40 : i32 to index
      %c0_15 = arith.constant 0 : index
      %c0_16 = arith.constant 0 : index
      %42 = vector.load %arg4[%41, %c0_15, %c0_16] : memref<27x1x32xbf16, #tpu.memory_space<vmem>>, vector<1x1x32xbf16>
      %43 = vector.shape_cast %42 : vector<1x1x32xbf16> to vector<1x32xbf16>
      %44 = arith.extf %43 : vector<1x32xbf16> to vector<1x32xf32>
      %45 = vector.broadcast %38 : vector<80x1xf32> to vector<80x32xf32>
      %46 = vector.broadcast %44 : vector<1x32xf32> to vector<80x32xf32>
      %47 = arith.mulf %45, %46 : vector<80x32xf32>
      %48 = arith.addf %37, %47 : vector<80x32xf32>
      %49 = vector.extract_strided_slice %14 {offsets = [10, 0], sizes = [80, 1], strides = [1, 1]} : vector<110x1xf32> to vector<80x1xf32>
      %c9_i32_17 = arith.constant 9 : i32
      %50 = arith.muli %arg2, %c9_i32_17 : i32
      %c3_i32 = arith.constant 3 : i32
      %51 = arith.addi %50, %c3_i32 : i32
      %52 = arith.index_cast %51 : i32 to index
      %c0_18 = arith.constant 0 : index
      %c0_19 = arith.constant 0 : index
      %53 = vector.load %arg4[%52, %c0_18, %c0_19] : memref<27x1x32xbf16, #tpu.memory_space<vmem>>, vector<1x1x32xbf16>
      %54 = vector.shape_cast %53 : vector<1x1x32xbf16> to vector<1x32xbf16>
      %55 = arith.extf %54 : vector<1x32xbf16> to vector<1x32xf32>
      %56 = vector.broadcast %49 : vector<80x1xf32> to vector<80x32xf32>
      %57 = vector.broadcast %55 : vector<1x32xf32> to vector<80x32xf32>
      %58 = arith.mulf %56, %57 : vector<80x32xf32>
      %59 = arith.addf %48, %58 : vector<80x32xf32>
      %60 = vector.extract_strided_slice %14 {offsets = [11, 0], sizes = [80, 1], strides = [1, 1]} : vector<110x1xf32> to vector<80x1xf32>
      %c9_i32_20 = arith.constant 9 : i32
      %61 = arith.muli %arg2, %c9_i32_20 : i32
      %c4_i32 = arith.constant 4 : i32
      %62 = arith.addi %61, %c4_i32 : i32
      %63 = arith.index_cast %62 : i32 to index
      %c0_21 = arith.constant 0 : index
      %c0_22 = arith.constant 0 : index
      %64 = vector.load %arg4[%63, %c0_21, %c0_22] : memref<27x1x32xbf16, #tpu.memory_space<vmem>>, vector<1x1x32xbf16>
      %65 = vector.shape_cast %64 : vector<1x1x32xbf16> to vector<1x32xbf16>
      %66 = arith.extf %65 : vector<1x32xbf16> to vector<1x32xf32>
      %67 = vector.broadcast %60 : vector<80x1xf32> to vector<80x32xf32>
      %68 = vector.broadcast %66 : vector<1x32xf32> to vector<80x32xf32>
      %69 = arith.mulf %67, %68 : vector<80x32xf32>
      %70 = arith.addf %59, %69 : vector<80x32xf32>
      %71 = vector.extract_strided_slice %14 {offsets = [12, 0], sizes = [80, 1], strides = [1, 1]} : vector<110x1xf32> to vector<80x1xf32>
      %c9_i32_23 = arith.constant 9 : i32
      %72 = arith.muli %arg2, %c9_i32_23 : i32
      %c5_i32 = arith.constant 5 : i32
      %73 = arith.addi %72, %c5_i32 : i32
      %74 = arith.index_cast %73 : i32 to index
      %c0_24 = arith.constant 0 : index
      %c0_25 = arith.constant 0 : index
      %75 = vector.load %arg4[%74, %c0_24, %c0_25] : memref<27x1x32xbf16, #tpu.memory_space<vmem>>, vector<1x1x32xbf16>
      %76 = vector.shape_cast %75 : vector<1x1x32xbf16> to vector<1x32xbf16>
      %77 = arith.extf %76 : vector<1x32xbf16> to vector<1x32xf32>
      %78 = vector.broadcast %71 : vector<80x1xf32> to vector<80x32xf32>
      %79 = vector.broadcast %77 : vector<1x32xf32> to vector<80x32xf32>
      %80 = arith.mulf %78, %79 : vector<80x32xf32>
      %81 = arith.addf %70, %80 : vector<80x32xf32>
      %82 = vector.extract_strided_slice %14 {offsets = [20, 0], sizes = [80, 1], strides = [1, 1]} : vector<110x1xf32> to vector<80x1xf32>
      %c9_i32_26 = arith.constant 9 : i32
      %83 = arith.muli %arg2, %c9_i32_26 : i32
      %c6_i32 = arith.constant 6 : i32
      %84 = arith.addi %83, %c6_i32 : i32
      %85 = arith.index_cast %84 : i32 to index
      %c0_27 = arith.constant 0 : index
      %c0_28 = arith.constant 0 : index
      %86 = vector.load %arg4[%85, %c0_27, %c0_28] : memref<27x1x32xbf16, #tpu.memory_space<vmem>>, vector<1x1x32xbf16>
      %87 = vector.shape_cast %86 : vector<1x1x32xbf16> to vector<1x32xbf16>
      %88 = arith.extf %87 : vector<1x32xbf16> to vector<1x32xf32>
      %89 = vector.broadcast %82 : vector<80x1xf32> to vector<80x32xf32>
      %90 = vector.broadcast %88 : vector<1x32xf32> to vector<80x32xf32>
      %91 = arith.mulf %89, %90 : vector<80x32xf32>
      %92 = arith.addf %81, %91 : vector<80x32xf32>
      %93 = vector.extract_strided_slice %14 {offsets = [21, 0], sizes = [80, 1], strides = [1, 1]} : vector<110x1xf32> to vector<80x1xf32>
      %c9_i32_29 = arith.constant 9 : i32
      %94 = arith.muli %arg2, %c9_i32_29 : i32
      %c7_i32 = arith.constant 7 : i32
      %95 = arith.addi %94, %c7_i32 : i32
      %96 = arith.index_cast %95 : i32 to index
      %c0_30 = arith.constant 0 : index
      %c0_31 = arith.constant 0 : index
      %97 = vector.load %arg4[%96, %c0_30, %c0_31] : memref<27x1x32xbf16, #tpu.memory_space<vmem>>, vector<1x1x32xbf16>
      %98 = vector.shape_cast %97 : vector<1x1x32xbf16> to vector<1x32xbf16>
      %99 = arith.extf %98 : vector<1x32xbf16> to vector<1x32xf32>
      %100 = vector.broadcast %93 : vector<80x1xf32> to vector<80x32xf32>
      %101 = vector.broadcast %99 : vector<1x32xf32> to vector<80x32xf32>
      %102 = arith.mulf %100, %101 : vector<80x32xf32>
      %103 = arith.addf %92, %102 : vector<80x32xf32>
      %104 = vector.extract_strided_slice %14 {offsets = [22, 0], sizes = [80, 1], strides = [1, 1]} : vector<110x1xf32> to vector<80x1xf32>
      %c9_i32_32 = arith.constant 9 : i32
      %105 = arith.muli %arg2, %c9_i32_32 : i32
      %c8_i32_33 = arith.constant 8 : i32
      %106 = arith.addi %105, %c8_i32_33 : i32
      %107 = arith.index_cast %106 : i32 to index
      %c0_34 = arith.constant 0 : index
      %c0_35 = arith.constant 0 : index
      %108 = vector.load %arg4[%107, %c0_34, %c0_35] : memref<27x1x32xbf16, #tpu.memory_space<vmem>>, vector<1x1x32xbf16>
      %109 = vector.shape_cast %108 : vector<1x1x32xbf16> to vector<1x32xbf16>
      %110 = arith.extf %109 : vector<1x32xbf16> to vector<1x32xf32>
      %111 = vector.broadcast %104 : vector<80x1xf32> to vector<80x32xf32>
      %112 = vector.broadcast %110 : vector<1x32xf32> to vector<80x32xf32>
      %113 = arith.mulf %111, %112 : vector<80x32xf32>
      %114 = arith.addf %103, %113 : vector<80x32xf32>
      %c0_36 = arith.constant 0 : index
      %c0_37 = arith.constant 0 : index
      %115 = vector.load %arg13[%c0_36, %c0_37] : memref<80x32xf32, #tpu.memory_space<vmem>>, vector<80x32xf32>
      %116 = arith.addf %115, %114 : vector<80x32xf32>
      %c0_38 = arith.constant 0 : index
      %c0_39 = arith.constant 0 : index
      %117 = vector.load %arg13[%c0_38, %c0_39] : memref<80x32xf32, #tpu.memory_space<vmem>>, vector<80x32xf32>
      tpu.vector_store %arg13[%c0_38, %c0_39], %116 {strides = array<i32>} : memref<80x32xf32, #tpu.memory_space<vmem>>, vector<80x32xf32>,
    } else {
    }
    %c2_i32 = arith.constant 2 : i32
    %9 = arith.cmpi eq, %arg2, %c2_i32 : i32
    %10 = arith.extui %9 : i1 to i32
    %c0_i32_2 = arith.constant 0 : i32
    %11 = arith.cmpi ne, %10, %c0_i32_2 : i32
    scf.if %11 {
      %c0 = arith.constant 0 : index
      %c0_3 = arith.constant 0 : index
      %12 = vector.load %arg9[%c0, %c0_3] : memref<80x1xf32, #tpu.memory_space<vmem>>, vector<80x1xf32>
      %c0_4 = arith.constant 0 : index
      %c0_5 = arith.constant 0 : index
      %13 = vector.load %arg13[%c0_4, %c0_5] : memref<80x32xf32, #tpu.memory_space<vmem>>, vector<80x32xf32>
      %c0_6 = arith.constant 0 : index
      %c0_7 = arith.constant 0 : index
      %14 = vector.load %arg5[%c0_6, %c0_7] : memref<1x32xf32, #tpu.memory_space<vmem>>, vector<1x32xf32>
      %15 = vector.broadcast %14 : vector<1x32xf32> to vector<80x32xf32>
      %16 = arith.addf %13, %15 : vector<80x32xf32>
      %17 = vector.broadcast %12 : vector<80x1xf32> to vector<80x32xf32>
      %18 = arith.mulf %16, %17 : vector<80x32xf32>
      %cst = arith.constant dense<0.000000e+00> : vector<32xf32>
      %19 = vector.multi_reduction <add>, %18, %cst [0] : vector<80x32xf32> to vector<32xf32>
      %20 = vector.shape_cast %19 : vector<32xf32> to vector<1x32xf32>
      %cst_8 = arith.constant 6.400000e+01 : f32
      %21 = vector.broadcast %cst_8 : f32 to vector<1x32xf32>
      %22 = arith.divf %20, %21 : vector<1x32xf32>
      %23 = vector.broadcast %22 : vector<1x32xf32> to vector<80x32xf32>
      %24 = arith.subf %18, %23 : vector<80x32xf32>
      %25 = vector.broadcast %12 : vector<80x1xf32> to vector<80x32xf32>
      %26 = arith.mulf %24, %25 : vector<80x32xf32>
      %27 = arith.mulf %26, %26 : vector<80x32xf32>
      %cst_9 = arith.constant dense<0.000000e+00> : vector<32xf32>
      %28 = vector.multi_reduction <add>, %27, %cst_9 [0] : vector<80x32xf32> to vector<32xf32>
      %29 = vector.shape_cast %28 : vector<32xf32> to vector<1x32xf32>
      %30 = vector.shape_cast %20 : vector<1x32xf32> to vector<1x32xf32>
      %31 = vector.broadcast %30 : vector<1x32xf32> to vector<8x32xf32>
      %c0_10 = arith.constant 0 : index
      %c0_11 = arith.constant 0 : index
      %c0_12 = arith.constant 0 : index
      %c0_13 = arith.constant 0 : index
      %32 = vector.load %arg11[%c0_10, %c0_11, %c0_12, %c0_13] : memref<1x1x8x32xf32, #tpu.memory_space<vmem>>, vector<1x1x8x32xf32>
      %33 = vector.shape_cast %32 : vector<1x1x8x32xf32> to vector<8x32xf32>
      %34 = vector.shape_cast %31 : vector<8x32xf32> to vector<1x1x8x32xf32>
      tpu.vector_store %arg11[%c0_10, %c0_11, %c0_12, %c0_13], %34 {strides = array<i32>} : memref<1x1x8x32xf32, #tpu.memory_space<vmem>>, vector<1x1x8x32xf32>,
      %35 = vector.shape_cast %29 : vector<1x32xf32> to vector<1x32xf32>
      %36 = vector.broadcast %35 : vector<1x32xf32> to vector<8x32xf32>
      %c0_14 = arith.constant 0 : index
      %c0_15 = arith.constant 0 : index
      %c0_16 = arith.constant 0 : index
      %c0_17 = arith.constant 0 : index
      %37 = vector.load %arg12[%c0_14, %c0_15, %c0_16, %c0_17] : memref<1x1x8x32xf32, #tpu.memory_space<vmem>>, vector<1x1x8x32xf32>
      %38 = vector.shape_cast %37 : vector<1x1x8x32xf32> to vector<8x32xf32>
      %39 = vector.shape_cast %36 : vector<8x32xf32> to vector<1x1x8x32xf32>
      tpu.vector_store %arg12[%c0_14, %c0_15, %c0_16, %c0_17], %39 {strides = array<i32>} : memref<1x1x8x32xf32, #tpu.memory_space<vmem>>, vector<1x1x8x32xf32>,
      %40 = arith.truncf %18 : vector<80x32xf32> to vector<80x32xbf16>
      %c0_18 = arith.constant 0 : index
      %c0_19 = arith.constant 0 : index
      %c0_20 = arith.constant 0 : index
      %c0_21 = arith.constant 0 : index
      %41 = vector.load %arg10[%c0_18, %c0_19, %c0_20, %c0_21] : memref<1x1x80x32xbf16, #tpu.memory_space<vmem>>, vector<1x1x80x32xbf16>
      %42 = vector.shape_cast %41 : vector<1x1x80x32xbf16> to vector<80x32xbf16>
      %43 = vector.shape_cast %40 : vector<80x32xbf16> to vector<1x1x80x32xbf16>
      tpu.vector_store %arg10[%c0_18, %c0_19, %c0_20, %c0_21], %43 {strides = array<i32>} : memref<1x1x80x32xbf16, #tpu.memory_space<vmem>>, vector<1x1x80x32xbf16>,
    } else {
    }
    return
  }
  func.func @transform_0(%arg0: i32, %arg1: i32, %arg2: i32) -> (i32, i32, i32, i32) {
    %0 = arith.addi %arg1, %arg2 : i32
    %c0_i32 = arith.constant 0 : i32
    %c0_i32_0 = arith.constant 0 : i32
    %c0_i32_1 = arith.constant 0 : i32
    return %arg0, %0, %c0_i32, %c0_i32_0 : i32, i32, i32, i32
  }
  func.func @transform_1(%arg0: i32, %arg1: i32, %arg2: i32) -> (i32, i32, i32) {
    %c0_i32 = arith.constant 0 : i32
    %c0_i32_0 = arith.constant 0 : i32
    %c0_i32_1 = arith.constant 0 : i32
    %c0_i32_2 = arith.constant 0 : i32
    return %c0_i32, %c0_i32_0, %c0_i32_1 : i32, i32, i32
  }
  func.func @transform_2(%arg0: i32, %arg1: i32, %arg2: i32) -> (i32, i32) {
    %c0_i32 = arith.constant 0 : i32
    %c0_i32_0 = arith.constant 0 : i32
    %c0_i32_1 = arith.constant 0 : i32
    return %c0_i32, %c0_i32_0 : i32, i32
  }
  func.func @transform_3(%arg0: i32, %arg1: i32, %arg2: i32) -> (i32, i32) {
    %c0_i32 = arith.constant 0 : i32
    %c0_i32_0 = arith.constant 0 : i32
    %c0_i32_1 = arith.constant 0 : i32
    return %c0_i32, %c0_i32_0 : i32, i32
  }
  func.func @transform_4(%arg0: i32, %arg1: i32, %arg2: i32) -> (i32, i32) {
    %c0_i32 = arith.constant 0 : i32
    %c0_i32_0 = arith.constant 0 : i32
    %c0_i32_1 = arith.constant 0 : i32
    return %c0_i32, %c0_i32_0 : i32, i32
  }
  func.func @transform_5(%arg0: i32, %arg1: i32, %arg2: i32) -> (i32, i32) {
    %c0_i32 = arith.constant 0 : i32
    %c0_i32_0 = arith.constant 0 : i32
    %c0_i32_1 = arith.constant 0 : i32
    return %c0_i32, %c0_i32_0 : i32, i32
  }
  func.func @transform_6(%arg0: i32, %arg1: i32, %arg2: i32) -> (i32, i32) {
    %c0_i32 = arith.constant 0 : i32
    %c0_i32_0 = arith.constant 0 : i32
    %c0_i32_1 = arith.constant 0 : i32
    return %c0_i32, %c0_i32_0 : i32, i32
  }
  func.func @transform_7(%arg0: i32, %arg1: i32, %arg2: i32) -> (i32, i32, i32, i32) {
    %c0_i32 = arith.constant 0 : i32
    %c0_i32_0 = arith.constant 0 : i32
    %c0_i32_1 = arith.constant 0 : i32
    return %arg0, %arg1, %c0_i32, %c0_i32_0 : i32, i32, i32, i32
  }
  func.func @transform_8(%arg0: i32, %arg1: i32, %arg2: i32) -> (i32, i32, i32, i32) {
    %c0_i32 = arith.constant 0 : i32
    %c0_i32_0 = arith.constant 0 : i32
    %c0_i32_1 = arith.constant 0 : i32
    return %arg0, %arg1, %c0_i32, %c0_i32_0 : i32, i32, i32, i32
  }
  func.func @transform_9(%arg0: i32, %arg1: i32, %arg2: i32) -> (i32, i32, i32, i32) {
    %c0_i32 = arith.constant 0 : i32
    %c0_i32_0 = arith.constant 0 : i32
    %c0_i32_1 = arith.constant 0 : i32
    return %arg0, %arg1, %c0_i32, %c0_i32_0 : i32, i32, i32, i32
  }
}

module attributes {stable_mosaic.version = 11 : i64} {
  func.func @_conv_kernel(%arg0: i32, %arg1: i32, %arg2: i32, %arg3: memref<1x1x110x32xbf16, #tpu.memory_space<vmem>>, %arg4: memref<27x32x64xbf16, #tpu.memory_space<vmem>>, %arg5: memref<1x64xf32, #tpu.memory_space<vmem>>, %arg6: memref<1x32xf32, #tpu.memory_space<vmem>>, %arg7: memref<1x32xf32, #tpu.memory_space<vmem>>, %arg8: memref<110x1xf32, #tpu.memory_space<vmem>>, %arg9: memref<80x1xf32, #tpu.memory_space<vmem>>, %arg10: memref<1x1x80x64xbf16, #tpu.memory_space<vmem>>, %arg11: memref<1x1x8x64xf32, #tpu.memory_space<vmem>>, %arg12: memref<1x1x8x64xf32, #tpu.memory_space<vmem>>, %arg13: memref<80x64xf32, #tpu.memory_space<vmem>>) attributes {dimension_semantics = [#tpu.dimension_semantics<parallel>, #tpu.dimension_semantics<parallel>, #tpu.dimension_semantics<arbitrary>], iteration_bounds = array<i64: 2, 8, 3>, scalar_prefetch = 0 : i64, scratch_operands = 1 : i64, tpu.core_type = #tpu.core_type<tc>, window_params = [{transform_indices = @transform_0, window_bounds = array<i64: 1, 1, 110, 32>}, {pipeline_mode = #tpu.pipeline_mode<synchronous>, transform_indices = @transform_1, window_bounds = array<i64: 27, 32, 64>}, {pipeline_mode = #tpu.pipeline_mode<synchronous>, transform_indices = @transform_2, window_bounds = array<i64: 1, 64>}, {pipeline_mode = #tpu.pipeline_mode<synchronous>, transform_indices = @transform_3, window_bounds = array<i64: 1, 32>}, {pipeline_mode = #tpu.pipeline_mode<synchronous>, transform_indices = @transform_4, window_bounds = array<i64: 1, 32>}, {pipeline_mode = #tpu.pipeline_mode<synchronous>, transform_indices = @transform_5, window_bounds = array<i64: 110, 1>}, {pipeline_mode = #tpu.pipeline_mode<synchronous>, transform_indices = @transform_6, window_bounds = array<i64: 80, 1>}, {transform_indices = @transform_7, window_bounds = array<i64: 1, 1, 80, 64>}, {transform_indices = @transform_8, window_bounds = array<i64: 1, 1, 8, 64>}, {transform_indices = @transform_9, window_bounds = array<i64: 1, 1, 8, 64>}]} {
    %c0_i32 = arith.constant 0 : i32
    %0 = arith.cmpi eq, %arg2, %c0_i32 : i32
    %1 = arith.extui %0 : i1 to i32
    %c0_i32_0 = arith.constant 0 : i32
    %2 = arith.cmpi ne, %1, %c0_i32_0 : i32
    scf.if %2 {
      %cst = arith.constant 0.000000e+00 : f32
      %12 = vector.broadcast %cst : f32 to vector<80x64xf32>
      %c0 = arith.constant 0 : index
      %c0_3 = arith.constant 0 : index
      %13 = vector.load %arg13[%c0, %c0_3] : memref<80x64xf32, #tpu.memory_space<vmem>>, vector<80x64xf32>
      tpu.vector_store %arg13[%c0, %c0_3], %12 {strides = array<i32>} : memref<80x64xf32, #tpu.memory_space<vmem>>, vector<80x64xf32>,
    } else {
    }
    %3 = arith.addi %arg1, %arg2 : i32
    %c1_i32 = arith.constant 1 : i32
    %4 = arith.cmpi sge, %3, %c1_i32 : i32
    %c8_i32 = arith.constant 8 : i32
    %5 = arith.cmpi sle, %3, %c8_i32 : i32
    %6 = arith.andi %4, %5 : i1
    %7 = arith.extui %6 : i1 to i32
    %c0_i32_1 = arith.constant 0 : i32
    %8 = arith.cmpi ne, %7, %c0_i32_1 : i32
    scf.if %8 {
      %c0 = arith.constant 0 : index
      %c0_3 = arith.constant 0 : index
      %c0_4 = arith.constant 0 : index
      %c0_5 = arith.constant 0 : index
      %12 = vector.load %arg3[%c0, %c0_3, %c0_4, %c0_5] : memref<1x1x110x32xbf16, #tpu.memory_space<vmem>>, vector<1x1x110x32xbf16>
      %13 = vector.shape_cast %12 : vector<1x1x110x32xbf16> to vector<110x32xbf16>
      %14 = arith.extf %13 : vector<110x32xbf16> to vector<110x32xf32>
      %c0_6 = arith.constant 0 : index
      %c0_7 = arith.constant 0 : index
      %15 = vector.load %arg6[%c0_6, %c0_7] : memref<1x32xf32, #tpu.memory_space<vmem>>, vector<1x32xf32>
      %16 = vector.broadcast %15 : vector<1x32xf32> to vector<110x32xf32>
      %17 = arith.mulf %14, %16 : vector<110x32xf32>
      %c0_8 = arith.constant 0 : index
      %c0_9 = arith.constant 0 : index
      %18 = vector.load %arg7[%c0_8, %c0_9] : memref<1x32xf32, #tpu.memory_space<vmem>>, vector<1x32xf32>
      %19 = vector.broadcast %18 : vector<1x32xf32> to vector<110x32xf32>
      %20 = arith.addf %17, %19 : vector<110x32xf32>
      %cst = arith.constant 0.000000e+00 : f32
      %21 = vector.broadcast %cst : f32 to vector<110x32xf32>
      %22 = arith.maximumf %20, %21 : vector<110x32xf32>
      %c0_10 = arith.constant 0 : index
      %c0_11 = arith.constant 0 : index
      %23 = vector.load %arg8[%c0_10, %c0_11] : memref<110x1xf32, #tpu.memory_space<vmem>>, vector<110x1xf32>
      %24 = vector.broadcast %23 : vector<110x1xf32> to vector<110x32xf32>
      %25 = arith.mulf %22, %24 : vector<110x32xf32>
      %cst_12 = arith.constant 0.000000e+00 : f32
      %26 = vector.broadcast %cst_12 : f32 to vector<80x64xf32>
      %27 = vector.extract_strided_slice %25 {offsets = [0, 0], sizes = [80, 32], strides = [1, 1]} : vector<110x32xf32> to vector<80x32xf32>
      %c9_i32 = arith.constant 9 : i32
      %28 = arith.muli %arg2, %c9_i32 : i32
      %c0_i32_13 = arith.constant 0 : i32
      %29 = arith.addi %28, %c0_i32_13 : i32
      %30 = arith.index_cast %29 : i32 to index
      %c0_14 = arith.constant 0 : index
      %c0_15 = arith.constant 0 : index
      %31 = vector.load %arg4[%30, %c0_14, %c0_15] : memref<27x32x64xbf16, #tpu.memory_space<vmem>>, vector<1x32x64xbf16>
      %32 = vector.shape_cast %31 : vector<1x32x64xbf16> to vector<32x64xbf16>
      %33 = arith.truncf %27 : vector<80x32xf32> to vector<80x32xbf16>
      %cst_16 = arith.constant dense<0.000000e+00> : vector<80x64xf32>
      %34 = tpu.matmul %33, %32, %cst_16 {dimension_numbers = #tpu.dot_dimension_numbers<[1], [0], [0], [1], [0, 0, 1, 1], [], []>} : vector<80x32xbf16>, vector<32x64xbf16>, vector<80x64xf32> -> vector<80x64xf32>
      %35 = arith.addf %26, %34 : vector<80x64xf32>
      %36 = vector.extract_strided_slice %25 {offsets = [1, 0], sizes = [80, 32], strides = [1, 1]} : vector<110x32xf32> to vector<80x32xf32>
      %c9_i32_17 = arith.constant 9 : i32
      %37 = arith.muli %arg2, %c9_i32_17 : i32
      %c1_i32_18 = arith.constant 1 : i32
      %38 = arith.addi %37, %c1_i32_18 : i32
      %39 = arith.index_cast %38 : i32 to index
      %c0_19 = arith.constant 0 : index
      %c0_20 = arith.constant 0 : index
      %40 = vector.load %arg4[%39, %c0_19, %c0_20] : memref<27x32x64xbf16, #tpu.memory_space<vmem>>, vector<1x32x64xbf16>
      %41 = vector.shape_cast %40 : vector<1x32x64xbf16> to vector<32x64xbf16>
      %42 = arith.truncf %36 : vector<80x32xf32> to vector<80x32xbf16>
      %cst_21 = arith.constant dense<0.000000e+00> : vector<80x64xf32>
      %43 = tpu.matmul %42, %41, %cst_21 {dimension_numbers = #tpu.dot_dimension_numbers<[1], [0], [0], [1], [0, 0, 1, 1], [], []>} : vector<80x32xbf16>, vector<32x64xbf16>, vector<80x64xf32> -> vector<80x64xf32>
      %44 = arith.addf %35, %43 : vector<80x64xf32>
      %45 = vector.extract_strided_slice %25 {offsets = [2, 0], sizes = [80, 32], strides = [1, 1]} : vector<110x32xf32> to vector<80x32xf32>
      %c9_i32_22 = arith.constant 9 : i32
      %46 = arith.muli %arg2, %c9_i32_22 : i32
      %c2_i32_23 = arith.constant 2 : i32
      %47 = arith.addi %46, %c2_i32_23 : i32
      %48 = arith.index_cast %47 : i32 to index
      %c0_24 = arith.constant 0 : index
      %c0_25 = arith.constant 0 : index
      %49 = vector.load %arg4[%48, %c0_24, %c0_25] : memref<27x32x64xbf16, #tpu.memory_space<vmem>>, vector<1x32x64xbf16>
      %50 = vector.shape_cast %49 : vector<1x32x64xbf16> to vector<32x64xbf16>
      %51 = arith.truncf %45 : vector<80x32xf32> to vector<80x32xbf16>
      %cst_26 = arith.constant dense<0.000000e+00> : vector<80x64xf32>
      %52 = tpu.matmul %51, %50, %cst_26 {dimension_numbers = #tpu.dot_dimension_numbers<[1], [0], [0], [1], [0, 0, 1, 1], [], []>} : vector<80x32xbf16>, vector<32x64xbf16>, vector<80x64xf32> -> vector<80x64xf32>
      %53 = arith.addf %44, %52 : vector<80x64xf32>
      %54 = vector.extract_strided_slice %25 {offsets = [10, 0], sizes = [80, 32], strides = [1, 1]} : vector<110x32xf32> to vector<80x32xf32>
      %c9_i32_27 = arith.constant 9 : i32
      %55 = arith.muli %arg2, %c9_i32_27 : i32
      %c3_i32 = arith.constant 3 : i32
      %56 = arith.addi %55, %c3_i32 : i32
      %57 = arith.index_cast %56 : i32 to index
      %c0_28 = arith.constant 0 : index
      %c0_29 = arith.constant 0 : index
      %58 = vector.load %arg4[%57, %c0_28, %c0_29] : memref<27x32x64xbf16, #tpu.memory_space<vmem>>, vector<1x32x64xbf16>
      %59 = vector.shape_cast %58 : vector<1x32x64xbf16> to vector<32x64xbf16>
      %60 = arith.truncf %54 : vector<80x32xf32> to vector<80x32xbf16>
      %cst_30 = arith.constant dense<0.000000e+00> : vector<80x64xf32>
      %61 = tpu.matmul %60, %59, %cst_30 {dimension_numbers = #tpu.dot_dimension_numbers<[1], [0], [0], [1], [0, 0, 1, 1], [], []>} : vector<80x32xbf16>, vector<32x64xbf16>, vector<80x64xf32> -> vector<80x64xf32>
      %62 = arith.addf %53, %61 : vector<80x64xf32>
      %63 = vector.extract_strided_slice %25 {offsets = [11, 0], sizes = [80, 32], strides = [1, 1]} : vector<110x32xf32> to vector<80x32xf32>
      %c9_i32_31 = arith.constant 9 : i32
      %64 = arith.muli %arg2, %c9_i32_31 : i32
      %c4_i32 = arith.constant 4 : i32
      %65 = arith.addi %64, %c4_i32 : i32
      %66 = arith.index_cast %65 : i32 to index
      %c0_32 = arith.constant 0 : index
      %c0_33 = arith.constant 0 : index
      %67 = vector.load %arg4[%66, %c0_32, %c0_33] : memref<27x32x64xbf16, #tpu.memory_space<vmem>>, vector<1x32x64xbf16>
      %68 = vector.shape_cast %67 : vector<1x32x64xbf16> to vector<32x64xbf16>
      %69 = arith.truncf %63 : vector<80x32xf32> to vector<80x32xbf16>
      %cst_34 = arith.constant dense<0.000000e+00> : vector<80x64xf32>
      %70 = tpu.matmul %69, %68, %cst_34 {dimension_numbers = #tpu.dot_dimension_numbers<[1], [0], [0], [1], [0, 0, 1, 1], [], []>} : vector<80x32xbf16>, vector<32x64xbf16>, vector<80x64xf32> -> vector<80x64xf32>
      %71 = arith.addf %62, %70 : vector<80x64xf32>
      %72 = vector.extract_strided_slice %25 {offsets = [12, 0], sizes = [80, 32], strides = [1, 1]} : vector<110x32xf32> to vector<80x32xf32>
      %c9_i32_35 = arith.constant 9 : i32
      %73 = arith.muli %arg2, %c9_i32_35 : i32
      %c5_i32 = arith.constant 5 : i32
      %74 = arith.addi %73, %c5_i32 : i32
      %75 = arith.index_cast %74 : i32 to index
      %c0_36 = arith.constant 0 : index
      %c0_37 = arith.constant 0 : index
      %76 = vector.load %arg4[%75, %c0_36, %c0_37] : memref<27x32x64xbf16, #tpu.memory_space<vmem>>, vector<1x32x64xbf16>
      %77 = vector.shape_cast %76 : vector<1x32x64xbf16> to vector<32x64xbf16>
      %78 = arith.truncf %72 : vector<80x32xf32> to vector<80x32xbf16>
      %cst_38 = arith.constant dense<0.000000e+00> : vector<80x64xf32>
      %79 = tpu.matmul %78, %77, %cst_38 {dimension_numbers = #tpu.dot_dimension_numbers<[1], [0], [0], [1], [0, 0, 1, 1], [], []>} : vector<80x32xbf16>, vector<32x64xbf16>, vector<80x64xf32> -> vector<80x64xf32>
      %80 = arith.addf %71, %79 : vector<80x64xf32>
      %81 = vector.extract_strided_slice %25 {offsets = [20, 0], sizes = [80, 32], strides = [1, 1]} : vector<110x32xf32> to vector<80x32xf32>
      %c9_i32_39 = arith.constant 9 : i32
      %82 = arith.muli %arg2, %c9_i32_39 : i32
      %c6_i32 = arith.constant 6 : i32
      %83 = arith.addi %82, %c6_i32 : i32
      %84 = arith.index_cast %83 : i32 to index
      %c0_40 = arith.constant 0 : index
      %c0_41 = arith.constant 0 : index
      %85 = vector.load %arg4[%84, %c0_40, %c0_41] : memref<27x32x64xbf16, #tpu.memory_space<vmem>>, vector<1x32x64xbf16>
      %86 = vector.shape_cast %85 : vector<1x32x64xbf16> to vector<32x64xbf16>
      %87 = arith.truncf %81 : vector<80x32xf32> to vector<80x32xbf16>
      %cst_42 = arith.constant dense<0.000000e+00> : vector<80x64xf32>
      %88 = tpu.matmul %87, %86, %cst_42 {dimension_numbers = #tpu.dot_dimension_numbers<[1], [0], [0], [1], [0, 0, 1, 1], [], []>} : vector<80x32xbf16>, vector<32x64xbf16>, vector<80x64xf32> -> vector<80x64xf32>
      %89 = arith.addf %80, %88 : vector<80x64xf32>
      %90 = vector.extract_strided_slice %25 {offsets = [21, 0], sizes = [80, 32], strides = [1, 1]} : vector<110x32xf32> to vector<80x32xf32>
      %c9_i32_43 = arith.constant 9 : i32
      %91 = arith.muli %arg2, %c9_i32_43 : i32
      %c7_i32 = arith.constant 7 : i32
      %92 = arith.addi %91, %c7_i32 : i32
      %93 = arith.index_cast %92 : i32 to index
      %c0_44 = arith.constant 0 : index
      %c0_45 = arith.constant 0 : index
      %94 = vector.load %arg4[%93, %c0_44, %c0_45] : memref<27x32x64xbf16, #tpu.memory_space<vmem>>, vector<1x32x64xbf16>
      %95 = vector.shape_cast %94 : vector<1x32x64xbf16> to vector<32x64xbf16>
      %96 = arith.truncf %90 : vector<80x32xf32> to vector<80x32xbf16>
      %cst_46 = arith.constant dense<0.000000e+00> : vector<80x64xf32>
      %97 = tpu.matmul %96, %95, %cst_46 {dimension_numbers = #tpu.dot_dimension_numbers<[1], [0], [0], [1], [0, 0, 1, 1], [], []>} : vector<80x32xbf16>, vector<32x64xbf16>, vector<80x64xf32> -> vector<80x64xf32>
      %98 = arith.addf %89, %97 : vector<80x64xf32>
      %99 = vector.extract_strided_slice %25 {offsets = [22, 0], sizes = [80, 32], strides = [1, 1]} : vector<110x32xf32> to vector<80x32xf32>
      %c9_i32_47 = arith.constant 9 : i32
      %100 = arith.muli %arg2, %c9_i32_47 : i32
      %c8_i32_48 = arith.constant 8 : i32
      %101 = arith.addi %100, %c8_i32_48 : i32
      %102 = arith.index_cast %101 : i32 to index
      %c0_49 = arith.constant 0 : index
      %c0_50 = arith.constant 0 : index
      %103 = vector.load %arg4[%102, %c0_49, %c0_50] : memref<27x32x64xbf16, #tpu.memory_space<vmem>>, vector<1x32x64xbf16>
      %104 = vector.shape_cast %103 : vector<1x32x64xbf16> to vector<32x64xbf16>
      %105 = arith.truncf %99 : vector<80x32xf32> to vector<80x32xbf16>
      %cst_51 = arith.constant dense<0.000000e+00> : vector<80x64xf32>
      %106 = tpu.matmul %105, %104, %cst_51 {dimension_numbers = #tpu.dot_dimension_numbers<[1], [0], [0], [1], [0, 0, 1, 1], [], []>} : vector<80x32xbf16>, vector<32x64xbf16>, vector<80x64xf32> -> vector<80x64xf32>
      %107 = arith.addf %98, %106 : vector<80x64xf32>
      %c0_52 = arith.constant 0 : index
      %c0_53 = arith.constant 0 : index
      %108 = vector.load %arg13[%c0_52, %c0_53] : memref<80x64xf32, #tpu.memory_space<vmem>>, vector<80x64xf32>
      %109 = arith.addf %108, %107 : vector<80x64xf32>
      %c0_54 = arith.constant 0 : index
      %c0_55 = arith.constant 0 : index
      %110 = vector.load %arg13[%c0_54, %c0_55] : memref<80x64xf32, #tpu.memory_space<vmem>>, vector<80x64xf32>
      tpu.vector_store %arg13[%c0_54, %c0_55], %109 {strides = array<i32>} : memref<80x64xf32, #tpu.memory_space<vmem>>, vector<80x64xf32>,
    } else {
    }
    %c2_i32 = arith.constant 2 : i32
    %9 = arith.cmpi eq, %arg2, %c2_i32 : i32
    %10 = arith.extui %9 : i1 to i32
    %c0_i32_2 = arith.constant 0 : i32
    %11 = arith.cmpi ne, %10, %c0_i32_2 : i32
    scf.if %11 {
      %c0 = arith.constant 0 : index
      %c0_3 = arith.constant 0 : index
      %12 = vector.load %arg9[%c0, %c0_3] : memref<80x1xf32, #tpu.memory_space<vmem>>, vector<80x1xf32>
      %c0_4 = arith.constant 0 : index
      %c0_5 = arith.constant 0 : index
      %13 = vector.load %arg13[%c0_4, %c0_5] : memref<80x64xf32, #tpu.memory_space<vmem>>, vector<80x64xf32>
      %c0_6 = arith.constant 0 : index
      %c0_7 = arith.constant 0 : index
      %14 = vector.load %arg5[%c0_6, %c0_7] : memref<1x64xf32, #tpu.memory_space<vmem>>, vector<1x64xf32>
      %15 = vector.broadcast %14 : vector<1x64xf32> to vector<80x64xf32>
      %16 = arith.addf %13, %15 : vector<80x64xf32>
      %17 = vector.broadcast %12 : vector<80x1xf32> to vector<80x64xf32>
      %18 = arith.mulf %16, %17 : vector<80x64xf32>
      %cst = arith.constant dense<0.000000e+00> : vector<64xf32>
      %19 = vector.multi_reduction <add>, %18, %cst [0] : vector<80x64xf32> to vector<64xf32>
      %20 = vector.shape_cast %19 : vector<64xf32> to vector<1x64xf32>
      %cst_8 = arith.constant 6.400000e+01 : f32
      %21 = vector.broadcast %cst_8 : f32 to vector<1x64xf32>
      %22 = arith.divf %20, %21 : vector<1x64xf32>
      %23 = vector.broadcast %22 : vector<1x64xf32> to vector<80x64xf32>
      %24 = arith.subf %18, %23 : vector<80x64xf32>
      %25 = vector.broadcast %12 : vector<80x1xf32> to vector<80x64xf32>
      %26 = arith.mulf %24, %25 : vector<80x64xf32>
      %27 = arith.mulf %26, %26 : vector<80x64xf32>
      %cst_9 = arith.constant dense<0.000000e+00> : vector<64xf32>
      %28 = vector.multi_reduction <add>, %27, %cst_9 [0] : vector<80x64xf32> to vector<64xf32>
      %29 = vector.shape_cast %28 : vector<64xf32> to vector<1x64xf32>
      %30 = vector.shape_cast %20 : vector<1x64xf32> to vector<1x64xf32>
      %31 = vector.broadcast %30 : vector<1x64xf32> to vector<8x64xf32>
      %c0_10 = arith.constant 0 : index
      %c0_11 = arith.constant 0 : index
      %c0_12 = arith.constant 0 : index
      %c0_13 = arith.constant 0 : index
      %32 = vector.load %arg11[%c0_10, %c0_11, %c0_12, %c0_13] : memref<1x1x8x64xf32, #tpu.memory_space<vmem>>, vector<1x1x8x64xf32>
      %33 = vector.shape_cast %32 : vector<1x1x8x64xf32> to vector<8x64xf32>
      %34 = vector.shape_cast %31 : vector<8x64xf32> to vector<1x1x8x64xf32>
      tpu.vector_store %arg11[%c0_10, %c0_11, %c0_12, %c0_13], %34 {strides = array<i32>} : memref<1x1x8x64xf32, #tpu.memory_space<vmem>>, vector<1x1x8x64xf32>,
      %35 = vector.shape_cast %29 : vector<1x64xf32> to vector<1x64xf32>
      %36 = vector.broadcast %35 : vector<1x64xf32> to vector<8x64xf32>
      %c0_14 = arith.constant 0 : index
      %c0_15 = arith.constant 0 : index
      %c0_16 = arith.constant 0 : index
      %c0_17 = arith.constant 0 : index
      %37 = vector.load %arg12[%c0_14, %c0_15, %c0_16, %c0_17] : memref<1x1x8x64xf32, #tpu.memory_space<vmem>>, vector<1x1x8x64xf32>
      %38 = vector.shape_cast %37 : vector<1x1x8x64xf32> to vector<8x64xf32>
      %39 = vector.shape_cast %36 : vector<8x64xf32> to vector<1x1x8x64xf32>
      tpu.vector_store %arg12[%c0_14, %c0_15, %c0_16, %c0_17], %39 {strides = array<i32>} : memref<1x1x8x64xf32, #tpu.memory_space<vmem>>, vector<1x1x8x64xf32>,
      %40 = arith.truncf %18 : vector<80x64xf32> to vector<80x64xbf16>
      %c0_18 = arith.constant 0 : index
      %c0_19 = arith.constant 0 : index
      %c0_20 = arith.constant 0 : index
      %c0_21 = arith.constant 0 : index
      %41 = vector.load %arg10[%c0_18, %c0_19, %c0_20, %c0_21] : memref<1x1x80x64xbf16, #tpu.memory_space<vmem>>, vector<1x1x80x64xbf16>
      %42 = vector.shape_cast %41 : vector<1x1x80x64xbf16> to vector<80x64xbf16>
      %43 = vector.shape_cast %40 : vector<80x64xbf16> to vector<1x1x80x64xbf16>
      tpu.vector_store %arg10[%c0_18, %c0_19, %c0_20, %c0_21], %43 {strides = array<i32>} : memref<1x1x80x64xbf16, #tpu.memory_space<vmem>>, vector<1x1x80x64xbf16>,
    } else {
    }
    return
  }
  func.func @transform_0(%arg0: i32, %arg1: i32, %arg2: i32) -> (i32, i32, i32, i32) {
    %0 = arith.addi %arg1, %arg2 : i32
    %c0_i32 = arith.constant 0 : i32
    %c0_i32_0 = arith.constant 0 : i32
    %c0_i32_1 = arith.constant 0 : i32
    return %arg0, %0, %c0_i32, %c0_i32_0 : i32, i32, i32, i32
  }
  func.func @transform_1(%arg0: i32, %arg1: i32, %arg2: i32) -> (i32, i32, i32) {
    %c0_i32 = arith.constant 0 : i32
    %c0_i32_0 = arith.constant 0 : i32
    %c0_i32_1 = arith.constant 0 : i32
    %c0_i32_2 = arith.constant 0 : i32
    return %c0_i32, %c0_i32_0, %c0_i32_1 : i32, i32, i32
  }
  func.func @transform_2(%arg0: i32, %arg1: i32, %arg2: i32) -> (i32, i32) {
    %c0_i32 = arith.constant 0 : i32
    %c0_i32_0 = arith.constant 0 : i32
    %c0_i32_1 = arith.constant 0 : i32
    return %c0_i32, %c0_i32_0 : i32, i32
  }
  func.func @transform_3(%arg0: i32, %arg1: i32, %arg2: i32) -> (i32, i32) {
    %c0_i32 = arith.constant 0 : i32
    %c0_i32_0 = arith.constant 0 : i32
    %c0_i32_1 = arith.constant 0 : i32
    return %c0_i32, %c0_i32_0 : i32, i32
  }
  func.func @transform_4(%arg0: i32, %arg1: i32, %arg2: i32) -> (i32, i32) {
    %c0_i32 = arith.constant 0 : i32
    %c0_i32_0 = arith.constant 0 : i32
    %c0_i32_1 = arith.constant 0 : i32
    return %c0_i32, %c0_i32_0 : i32, i32
  }
  func.func @transform_5(%arg0: i32, %arg1: i32, %arg2: i32) -> (i32, i32) {
    %c0_i32 = arith.constant 0 : i32
    %c0_i32_0 = arith.constant 0 : i32
    %c0_i32_1 = arith.constant 0 : i32
    return %c0_i32, %c0_i32_0 : i32, i32
  }
  func.func @transform_6(%arg0: i32, %arg1: i32, %arg2: i32) -> (i32, i32) {
    %c0_i32 = arith.constant 0 : i32
    %c0_i32_0 = arith.constant 0 : i32
    %c0_i32_1 = arith.constant 0 : i32
    return %c0_i32, %c0_i32_0 : i32, i32
  }
  func.func @transform_7(%arg0: i32, %arg1: i32, %arg2: i32) -> (i32, i32, i32, i32) {
    %c0_i32 = arith.constant 0 : i32
    %c0_i32_0 = arith.constant 0 : i32
    %c0_i32_1 = arith.constant 0 : i32
    return %arg0, %arg1, %c0_i32, %c0_i32_0 : i32, i32, i32, i32
  }
  func.func @transform_8(%arg0: i32, %arg1: i32, %arg2: i32) -> (i32, i32, i32, i32) {
    %c0_i32 = arith.constant 0 : i32
    %c0_i32_0 = arith.constant 0 : i32
    %c0_i32_1 = arith.constant 0 : i32
    return %arg0, %arg1, %c0_i32, %c0_i32_0 : i32, i32, i32, i32
  }
  func.func @transform_9(%arg0: i32, %arg1: i32, %arg2: i32) -> (i32, i32, i32, i32) {
    %c0_i32 = arith.constant 0 : i32
    %c0_i32_0 = arith.constant 0 : i32
    %c0_i32_1 = arith.constant 0 : i32
    return %arg0, %arg1, %c0_i32, %c0_i32_0 : i32, i32, i32, i32
  }
}

module attributes {stable_mosaic.version = 11 : i64} {
  func.func @_bn_relu_pool_kernel(%arg0: i32, %arg1: memref<4x2x8x5x128xbf16, #tpu.memory_space<vmem>>, %arg2: memref<1x128xf32, #tpu.memory_space<vmem>>, %arg3: memref<1x128xf32, #tpu.memory_space<vmem>>, %arg4: memref<4x2x8x5x128xf32, #tpu.memory_space<vmem>>, %arg5: memref<4x4x4x64xbf16, #tpu.memory_space<vmem>>) attributes {dimension_semantics = [#tpu.dimension_semantics<parallel>], iteration_bounds = array<i64: 2>, scalar_prefetch = 0 : i64, scratch_operands = 0 : i64, tpu.core_type = #tpu.core_type<tc>, window_params = [{transform_indices = @transform_0, window_bounds = array<i64: 4, 2, 8, 5, 128>}, {pipeline_mode = #tpu.pipeline_mode<synchronous>, transform_indices = @transform_1, window_bounds = array<i64: 1, 128>}, {pipeline_mode = #tpu.pipeline_mode<synchronous>, transform_indices = @transform_2, window_bounds = array<i64: 1, 128>}, {transform_indices = @transform_3, window_bounds = array<i64: 4, 2, 8, 5, 128>}, {transform_indices = @transform_4, window_bounds = array<i64: 4, 4, 4, 64>}]} {
    %c0 = arith.constant 0 : index
    %c0_0 = arith.constant 0 : index
    %c0_1 = arith.constant 0 : index
    %c0_2 = arith.constant 0 : index
    %c0_3 = arith.constant 0 : index
    %0 = vector.load %arg1[%c0, %c0_0, %c0_1, %c0_2, %c0_3] : memref<4x2x8x5x128xbf16, #tpu.memory_space<vmem>>, vector<4x2x8x5x128xbf16>
    %1 = arith.extf %0 : vector<4x2x8x5x128xbf16> to vector<4x2x8x5x128xf32>
    %c0_4 = arith.constant 0 : index
    %c0_5 = arith.constant 0 : index
    %2 = vector.load %arg2[%c0_4, %c0_5] : memref<1x128xf32, #tpu.memory_space<vmem>>, vector<1x128xf32>
    %3 = vector.shape_cast %2 : vector<1x128xf32> to vector<1x1x1x1x128xf32>
    %4 = vector.broadcast %3 : vector<1x1x1x1x128xf32> to vector<4x2x8x5x128xf32>
    %5 = arith.mulf %1, %4 : vector<4x2x8x5x128xf32>
    %c0_6 = arith.constant 0 : index
    %c0_7 = arith.constant 0 : index
    %6 = vector.load %arg3[%c0_6, %c0_7] : memref<1x128xf32, #tpu.memory_space<vmem>>, vector<1x128xf32>
    %7 = vector.shape_cast %6 : vector<1x128xf32> to vector<1x1x1x1x128xf32>
    %8 = vector.broadcast %7 : vector<1x1x1x1x128xf32> to vector<4x2x8x5x128xf32>
    %9 = arith.addf %5, %8 : vector<4x2x8x5x128xf32>
    %cst = arith.constant 0.000000e+00 : f32
    %10 = vector.broadcast %cst : f32 to vector<4x2x8x5x128xf32>
    %11 = arith.maximumf %9, %10 : vector<4x2x8x5x128xf32>
    %c0_8 = arith.constant 0 : index
    %c0_9 = arith.constant 0 : index
    %c0_10 = arith.constant 0 : index
    %c0_11 = arith.constant 0 : index
    %c0_12 = arith.constant 0 : index
    %12 = vector.load %arg4[%c0_8, %c0_9, %c0_10, %c0_11, %c0_12] : memref<4x2x8x5x128xf32, #tpu.memory_space<vmem>>, vector<4x2x8x5x128xf32>
    tpu.vector_store %arg4[%c0_8, %c0_9, %c0_10, %c0_11, %c0_12], %11 {strides = array<i32>} : memref<4x2x8x5x128xf32, #tpu.memory_space<vmem>>, vector<4x2x8x5x128xf32>,
    %13 = vector.extract_strided_slice %11 {offsets = [0, 0, 0, 0, 0], sizes = [4, 2, 8, 4, 128], strides = [1, 1, 1, 1, 1]} : vector<4x2x8x5x128xf32> to vector<4x2x8x4x128xf32>
    %14 = vector.extract_strided_slice %13 {offsets = [0, 0, 0, 0, 0], sizes = [4, 1, 8, 4, 128], strides = [1, 1, 1, 1, 1]} : vector<4x2x8x4x128xf32> to vector<4x1x8x4x128xf32>
    %15 = vector.shape_cast %14 : vector<4x1x8x4x128xf32> to vector<4x8x4x128xf32>
    %16 = vector.extract_strided_slice %13 {offsets = [0, 1, 0, 0, 0], sizes = [4, 1, 8, 4, 128], strides = [1, 1, 1, 1, 1]} : vector<4x2x8x4x128xf32> to vector<4x1x8x4x128xf32>
    %17 = vector.shape_cast %16 : vector<4x1x8x4x128xf32> to vector<4x8x4x128xf32>
    %18 = arith.maximumf %15, %17 : vector<4x8x4x128xf32>
    %19 = vector.shape_cast %18 : vector<4x8x4x128xf32> to vector<4x4x2x4x128xf32>
    %20 = vector.extract_strided_slice %19 {offsets = [0, 0, 0, 0, 0], sizes = [4, 4, 1, 4, 128], strides = [1, 1, 1, 1, 1]} : vector<4x4x2x4x128xf32> to vector<4x4x1x4x128xf32>
    %21 = vector.shape_cast %20 : vector<4x4x1x4x128xf32> to vector<4x4x4x128xf32>
    %22 = vector.extract_strided_slice %19 {offsets = [0, 0, 1, 0, 0], sizes = [4, 4, 1, 4, 128], strides = [1, 1, 1, 1, 1]} : vector<4x4x2x4x128xf32> to vector<4x4x1x4x128xf32>
    %23 = vector.shape_cast %22 : vector<4x4x1x4x128xf32> to vector<4x4x4x128xf32>
    %24 = arith.maximumf %21, %23 : vector<4x4x4x128xf32>
    %25 = vector.extract_strided_slice %24 {offsets = [0, 0, 0, 0], sizes = [4, 4, 4, 64], strides = [1, 1, 1, 1]} : vector<4x4x4x128xf32> to vector<4x4x4x64xf32>
    %26 = vector.extract_strided_slice %24 {offsets = [0, 0, 0, 64], sizes = [4, 4, 4, 64], strides = [1, 1, 1, 1]} : vector<4x4x4x128xf32> to vector<4x4x4x64xf32>
    %27 = arith.maximumf %25, %26 : vector<4x4x4x64xf32>
    %28 = arith.truncf %27 : vector<4x4x4x64xf32> to vector<4x4x4x64xbf16>
    %c0_13 = arith.constant 0 : index
    %c0_14 = arith.constant 0 : index
    %c0_15 = arith.constant 0 : index
    %c0_16 = arith.constant 0 : index
    %29 = vector.load %arg5[%c0_13, %c0_14, %c0_15, %c0_16] : memref<4x4x4x64xbf16, #tpu.memory_space<vmem>>, vector<4x4x4x64xbf16>
    tpu.vector_store %arg5[%c0_13, %c0_14, %c0_15, %c0_16], %28 {strides = array<i32>} : memref<4x4x4x64xbf16, #tpu.memory_space<vmem>>, vector<4x4x4x64xbf16>,
    return
  }
  func.func @transform_0(%arg0: i32) -> (i32, i32, i32, i32, i32) {
    %c0_i32 = arith.constant 0 : i32
    %c0_i32_0 = arith.constant 0 : i32
    %c0_i32_1 = arith.constant 0 : i32
    %c0_i32_2 = arith.constant 0 : i32
    %c0_i32_3 = arith.constant 0 : i32
    return %arg0, %c0_i32, %c0_i32_0, %c0_i32_1, %c0_i32_2 : i32, i32, i32, i32, i32
  }
  func.func @transform_1(%arg0: i32) -> (i32, i32) {
    %c0_i32 = arith.constant 0 : i32
    %c0_i32_0 = arith.constant 0 : i32
    %c0_i32_1 = arith.constant 0 : i32
    return %c0_i32, %c0_i32_0 : i32, i32
  }
  func.func @transform_2(%arg0: i32) -> (i32, i32) {
    %c0_i32 = arith.constant 0 : i32
    %c0_i32_0 = arith.constant 0 : i32
    %c0_i32_1 = arith.constant 0 : i32
    return %c0_i32, %c0_i32_0 : i32, i32
  }
  func.func @transform_3(%arg0: i32) -> (i32, i32, i32, i32, i32) {
    %c0_i32 = arith.constant 0 : i32
    %c0_i32_0 = arith.constant 0 : i32
    %c0_i32_1 = arith.constant 0 : i32
    %c0_i32_2 = arith.constant 0 : i32
    %c0_i32_3 = arith.constant 0 : i32
    return %arg0, %c0_i32, %c0_i32_0, %c0_i32_1, %c0_i32_2 : i32, i32, i32, i32, i32
  }
  func.func @transform_4(%arg0: i32) -> (i32, i32, i32, i32) {
    %c0_i32 = arith.constant 0 : i32
    %c0_i32_0 = arith.constant 0 : i32
    %c0_i32_1 = arith.constant 0 : i32
    %c0_i32_2 = arith.constant 0 : i32
    return %arg0, %c0_i32, %c0_i32_0, %c0_i32_1 : i32, i32, i32, i32
  }
}

module attributes {stable_mosaic.version = 11 : i64} {
  func.func @_conv_kernel(%arg0: i32, %arg1: i32, %arg2: i32, %arg3: memref<1x1x42x64xbf16, #tpu.memory_space<vmem>>, %arg4: memref<27x64x128xbf16, #tpu.memory_space<vmem>>, %arg5: memref<1x128xf32, #tpu.memory_space<vmem>>, %arg6: memref<1x64xf32, #tpu.memory_space<vmem>>, %arg7: memref<1x64xf32, #tpu.memory_space<vmem>>, %arg8: memref<42x1xf32, #tpu.memory_space<vmem>>, %arg9: memref<24x1xf32, #tpu.memory_space<vmem>>, %arg10: memref<1x1x24x128xbf16, #tpu.memory_space<vmem>>, %arg11: memref<1x1x8x128xf32, #tpu.memory_space<vmem>>, %arg12: memref<1x1x8x128xf32, #tpu.memory_space<vmem>>, %arg13: memref<24x128xf32, #tpu.memory_space<vmem>>) attributes {dimension_semantics = [#tpu.dimension_semantics<parallel>, #tpu.dimension_semantics<parallel>, #tpu.dimension_semantics<arbitrary>], iteration_bounds = array<i64: 2, 4, 3>, scalar_prefetch = 0 : i64, scratch_operands = 1 : i64, tpu.core_type = #tpu.core_type<tc>, window_params = [{transform_indices = @transform_0, window_bounds = array<i64: 1, 1, 42, 64>}, {pipeline_mode = #tpu.pipeline_mode<synchronous>, transform_indices = @transform_1, window_bounds = array<i64: 27, 64, 128>}, {pipeline_mode = #tpu.pipeline_mode<synchronous>, transform_indices = @transform_2, window_bounds = array<i64: 1, 128>}, {pipeline_mode = #tpu.pipeline_mode<synchronous>, transform_indices = @transform_3, window_bounds = array<i64: 1, 64>}, {pipeline_mode = #tpu.pipeline_mode<synchronous>, transform_indices = @transform_4, window_bounds = array<i64: 1, 64>}, {pipeline_mode = #tpu.pipeline_mode<synchronous>, transform_indices = @transform_5, window_bounds = array<i64: 42, 1>}, {pipeline_mode = #tpu.pipeline_mode<synchronous>, transform_indices = @transform_6, window_bounds = array<i64: 24, 1>}, {transform_indices = @transform_7, window_bounds = array<i64: 1, 1, 24, 128>}, {transform_indices = @transform_8, window_bounds = array<i64: 1, 1, 8, 128>}, {transform_indices = @transform_9, window_bounds = array<i64: 1, 1, 8, 128>}]} {
    %c0_i32 = arith.constant 0 : i32
    %0 = arith.cmpi eq, %arg2, %c0_i32 : i32
    %1 = arith.extui %0 : i1 to i32
    %c0_i32_0 = arith.constant 0 : i32
    %2 = arith.cmpi ne, %1, %c0_i32_0 : i32
    scf.if %2 {
      %cst = arith.constant 0.000000e+00 : f32
      %12 = vector.broadcast %cst : f32 to vector<24x128xf32>
      %c0 = arith.constant 0 : index
      %c0_3 = arith.constant 0 : index
      %13 = vector.load %arg13[%c0, %c0_3] : memref<24x128xf32, #tpu.memory_space<vmem>>, vector<24x128xf32>
      tpu.vector_store %arg13[%c0, %c0_3], %12 {strides = array<i32>} : memref<24x128xf32, #tpu.memory_space<vmem>>, vector<24x128xf32>,
    } else {
    }
    %3 = arith.addi %arg1, %arg2 : i32
    %c1_i32 = arith.constant 1 : i32
    %4 = arith.cmpi sge, %3, %c1_i32 : i32
    %c4_i32 = arith.constant 4 : i32
    %5 = arith.cmpi sle, %3, %c4_i32 : i32
    %6 = arith.andi %4, %5 : i1
    %7 = arith.extui %6 : i1 to i32
    %c0_i32_1 = arith.constant 0 : i32
    %8 = arith.cmpi ne, %7, %c0_i32_1 : i32
    scf.if %8 {
      %c0 = arith.constant 0 : index
      %c0_3 = arith.constant 0 : index
      %c0_4 = arith.constant 0 : index
      %c0_5 = arith.constant 0 : index
      %12 = vector.load %arg3[%c0, %c0_3, %c0_4, %c0_5] : memref<1x1x42x64xbf16, #tpu.memory_space<vmem>>, vector<1x1x42x64xbf16>
      %13 = vector.shape_cast %12 : vector<1x1x42x64xbf16> to vector<42x64xbf16>
      %14 = arith.extf %13 : vector<42x64xbf16> to vector<42x64xf32>
      %cst = arith.constant 0.000000e+00 : f32
      %15 = vector.broadcast %cst : f32 to vector<24x128xf32>
      %16 = vector.extract_strided_slice %14 {offsets = [0, 0], sizes = [24, 64], strides = [1, 1]} : vector<42x64xf32> to vector<24x64xf32>
      %c9_i32 = arith.constant 9 : i32
      %17 = arith.muli %arg2, %c9_i32 : i32
      %c0_i32_6 = arith.constant 0 : i32
      %18 = arith.addi %17, %c0_i32_6 : i32
      %19 = arith.index_cast %18 : i32 to index
      %c0_7 = arith.constant 0 : index
      %c0_8 = arith.constant 0 : index
      %20 = vector.load %arg4[%19, %c0_7, %c0_8] : memref<27x64x128xbf16, #tpu.memory_space<vmem>>, vector<1x64x128xbf16>
      %21 = vector.shape_cast %20 : vector<1x64x128xbf16> to vector<64x128xbf16>
      %22 = arith.truncf %16 : vector<24x64xf32> to vector<24x64xbf16>
      %cst_9 = arith.constant dense<0.000000e+00> : vector<24x128xf32>
      %23 = tpu.matmul %22, %21, %cst_9 {dimension_numbers = #tpu.dot_dimension_numbers<[1], [0], [0], [1], [0, 0, 1, 1], [], []>} : vector<24x64xbf16>, vector<64x128xbf16>, vector<24x128xf32> -> vector<24x128xf32>
      %24 = arith.addf %15, %23 : vector<24x128xf32>
      %25 = vector.extract_strided_slice %14 {offsets = [1, 0], sizes = [24, 64], strides = [1, 1]} : vector<42x64xf32> to vector<24x64xf32>
      %c9_i32_10 = arith.constant 9 : i32
      %26 = arith.muli %arg2, %c9_i32_10 : i32
      %c1_i32_11 = arith.constant 1 : i32
      %27 = arith.addi %26, %c1_i32_11 : i32
      %28 = arith.index_cast %27 : i32 to index
      %c0_12 = arith.constant 0 : index
      %c0_13 = arith.constant 0 : index
      %29 = vector.load %arg4[%28, %c0_12, %c0_13] : memref<27x64x128xbf16, #tpu.memory_space<vmem>>, vector<1x64x128xbf16>
      %30 = vector.shape_cast %29 : vector<1x64x128xbf16> to vector<64x128xbf16>
      %31 = arith.truncf %25 : vector<24x64xf32> to vector<24x64xbf16>
      %cst_14 = arith.constant dense<0.000000e+00> : vector<24x128xf32>
      %32 = tpu.matmul %31, %30, %cst_14 {dimension_numbers = #tpu.dot_dimension_numbers<[1], [0], [0], [1], [0, 0, 1, 1], [], []>} : vector<24x64xbf16>, vector<64x128xbf16>, vector<24x128xf32> -> vector<24x128xf32>
      %33 = arith.addf %24, %32 : vector<24x128xf32>
      %34 = vector.extract_strided_slice %14 {offsets = [2, 0], sizes = [24, 64], strides = [1, 1]} : vector<42x64xf32> to vector<24x64xf32>
      %c9_i32_15 = arith.constant 9 : i32
      %35 = arith.muli %arg2, %c9_i32_15 : i32
      %c2_i32_16 = arith.constant 2 : i32
      %36 = arith.addi %35, %c2_i32_16 : i32
      %37 = arith.index_cast %36 : i32 to index
      %c0_17 = arith.constant 0 : index
      %c0_18 = arith.constant 0 : index
      %38 = vector.load %arg4[%37, %c0_17, %c0_18] : memref<27x64x128xbf16, #tpu.memory_space<vmem>>, vector<1x64x128xbf16>
      %39 = vector.shape_cast %38 : vector<1x64x128xbf16> to vector<64x128xbf16>
      %40 = arith.truncf %34 : vector<24x64xf32> to vector<24x64xbf16>
      %cst_19 = arith.constant dense<0.000000e+00> : vector<24x128xf32>
      %41 = tpu.matmul %40, %39, %cst_19 {dimension_numbers = #tpu.dot_dimension_numbers<[1], [0], [0], [1], [0, 0, 1, 1], [], []>} : vector<24x64xbf16>, vector<64x128xbf16>, vector<24x128xf32> -> vector<24x128xf32>
      %42 = arith.addf %33, %41 : vector<24x128xf32>
      %43 = vector.extract_strided_slice %14 {offsets = [6, 0], sizes = [24, 64], strides = [1, 1]} : vector<42x64xf32> to vector<24x64xf32>
      %c9_i32_20 = arith.constant 9 : i32
      %44 = arith.muli %arg2, %c9_i32_20 : i32
      %c3_i32 = arith.constant 3 : i32
      %45 = arith.addi %44, %c3_i32 : i32
      %46 = arith.index_cast %45 : i32 to index
      %c0_21 = arith.constant 0 : index
      %c0_22 = arith.constant 0 : index
      %47 = vector.load %arg4[%46, %c0_21, %c0_22] : memref<27x64x128xbf16, #tpu.memory_space<vmem>>, vector<1x64x128xbf16>
      %48 = vector.shape_cast %47 : vector<1x64x128xbf16> to vector<64x128xbf16>
      %49 = arith.truncf %43 : vector<24x64xf32> to vector<24x64xbf16>
      %cst_23 = arith.constant dense<0.000000e+00> : vector<24x128xf32>
      %50 = tpu.matmul %49, %48, %cst_23 {dimension_numbers = #tpu.dot_dimension_numbers<[1], [0], [0], [1], [0, 0, 1, 1], [], []>} : vector<24x64xbf16>, vector<64x128xbf16>, vector<24x128xf32> -> vector<24x128xf32>
      %51 = arith.addf %42, %50 : vector<24x128xf32>
      %52 = vector.extract_strided_slice %14 {offsets = [7, 0], sizes = [24, 64], strides = [1, 1]} : vector<42x64xf32> to vector<24x64xf32>
      %c9_i32_24 = arith.constant 9 : i32
      %53 = arith.muli %arg2, %c9_i32_24 : i32
      %c4_i32_25 = arith.constant 4 : i32
      %54 = arith.addi %53, %c4_i32_25 : i32
      %55 = arith.index_cast %54 : i32 to index
      %c0_26 = arith.constant 0 : index
      %c0_27 = arith.constant 0 : index
      %56 = vector.load %arg4[%55, %c0_26, %c0_27] : memref<27x64x128xbf16, #tpu.memory_space<vmem>>, vector<1x64x128xbf16>
      %57 = vector.shape_cast %56 : vector<1x64x128xbf16> to vector<64x128xbf16>
      %58 = arith.truncf %52 : vector<24x64xf32> to vector<24x64xbf16>
      %cst_28 = arith.constant dense<0.000000e+00> : vector<24x128xf32>
      %59 = tpu.matmul %58, %57, %cst_28 {dimension_numbers = #tpu.dot_dimension_numbers<[1], [0], [0], [1], [0, 0, 1, 1], [], []>} : vector<24x64xbf16>, vector<64x128xbf16>, vector<24x128xf32> -> vector<24x128xf32>
      %60 = arith.addf %51, %59 : vector<24x128xf32>
      %61 = vector.extract_strided_slice %14 {offsets = [8, 0], sizes = [24, 64], strides = [1, 1]} : vector<42x64xf32> to vector<24x64xf32>
      %c9_i32_29 = arith.constant 9 : i32
      %62 = arith.muli %arg2, %c9_i32_29 : i32
      %c5_i32 = arith.constant 5 : i32
      %63 = arith.addi %62, %c5_i32 : i32
      %64 = arith.index_cast %63 : i32 to index
      %c0_30 = arith.constant 0 : index
      %c0_31 = arith.constant 0 : index
      %65 = vector.load %arg4[%64, %c0_30, %c0_31] : memref<27x64x128xbf16, #tpu.memory_space<vmem>>, vector<1x64x128xbf16>
      %66 = vector.shape_cast %65 : vector<1x64x128xbf16> to vector<64x128xbf16>
      %67 = arith.truncf %61 : vector<24x64xf32> to vector<24x64xbf16>
      %cst_32 = arith.constant dense<0.000000e+00> : vector<24x128xf32>
      %68 = tpu.matmul %67, %66, %cst_32 {dimension_numbers = #tpu.dot_dimension_numbers<[1], [0], [0], [1], [0, 0, 1, 1], [], []>} : vector<24x64xbf16>, vector<64x128xbf16>, vector<24x128xf32> -> vector<24x128xf32>
      %69 = arith.addf %60, %68 : vector<24x128xf32>
      %70 = vector.extract_strided_slice %14 {offsets = [12, 0], sizes = [24, 64], strides = [1, 1]} : vector<42x64xf32> to vector<24x64xf32>
      %c9_i32_33 = arith.constant 9 : i32
      %71 = arith.muli %arg2, %c9_i32_33 : i32
      %c6_i32 = arith.constant 6 : i32
      %72 = arith.addi %71, %c6_i32 : i32
      %73 = arith.index_cast %72 : i32 to index
      %c0_34 = arith.constant 0 : index
      %c0_35 = arith.constant 0 : index
      %74 = vector.load %arg4[%73, %c0_34, %c0_35] : memref<27x64x128xbf16, #tpu.memory_space<vmem>>, vector<1x64x128xbf16>
      %75 = vector.shape_cast %74 : vector<1x64x128xbf16> to vector<64x128xbf16>
      %76 = arith.truncf %70 : vector<24x64xf32> to vector<24x64xbf16>
      %cst_36 = arith.constant dense<0.000000e+00> : vector<24x128xf32>
      %77 = tpu.matmul %76, %75, %cst_36 {dimension_numbers = #tpu.dot_dimension_numbers<[1], [0], [0], [1], [0, 0, 1, 1], [], []>} : vector<24x64xbf16>, vector<64x128xbf16>, vector<24x128xf32> -> vector<24x128xf32>
      %78 = arith.addf %69, %77 : vector<24x128xf32>
      %79 = vector.extract_strided_slice %14 {offsets = [13, 0], sizes = [24, 64], strides = [1, 1]} : vector<42x64xf32> to vector<24x64xf32>
      %c9_i32_37 = arith.constant 9 : i32
      %80 = arith.muli %arg2, %c9_i32_37 : i32
      %c7_i32 = arith.constant 7 : i32
      %81 = arith.addi %80, %c7_i32 : i32
      %82 = arith.index_cast %81 : i32 to index
      %c0_38 = arith.constant 0 : index
      %c0_39 = arith.constant 0 : index
      %83 = vector.load %arg4[%82, %c0_38, %c0_39] : memref<27x64x128xbf16, #tpu.memory_space<vmem>>, vector<1x64x128xbf16>
      %84 = vector.shape_cast %83 : vector<1x64x128xbf16> to vector<64x128xbf16>
      %85 = arith.truncf %79 : vector<24x64xf32> to vector<24x64xbf16>
      %cst_40 = arith.constant dense<0.000000e+00> : vector<24x128xf32>
      %86 = tpu.matmul %85, %84, %cst_40 {dimension_numbers = #tpu.dot_dimension_numbers<[1], [0], [0], [1], [0, 0, 1, 1], [], []>} : vector<24x64xbf16>, vector<64x128xbf16>, vector<24x128xf32> -> vector<24x128xf32>
      %87 = arith.addf %78, %86 : vector<24x128xf32>
      %88 = vector.extract_strided_slice %14 {offsets = [14, 0], sizes = [24, 64], strides = [1, 1]} : vector<42x64xf32> to vector<24x64xf32>
      %c9_i32_41 = arith.constant 9 : i32
      %89 = arith.muli %arg2, %c9_i32_41 : i32
      %c8_i32 = arith.constant 8 : i32
      %90 = arith.addi %89, %c8_i32 : i32
      %91 = arith.index_cast %90 : i32 to index
      %c0_42 = arith.constant 0 : index
      %c0_43 = arith.constant 0 : index
      %92 = vector.load %arg4[%91, %c0_42, %c0_43] : memref<27x64x128xbf16, #tpu.memory_space<vmem>>, vector<1x64x128xbf16>
      %93 = vector.shape_cast %92 : vector<1x64x128xbf16> to vector<64x128xbf16>
      %94 = arith.truncf %88 : vector<24x64xf32> to vector<24x64xbf16>
      %cst_44 = arith.constant dense<0.000000e+00> : vector<24x128xf32>
      %95 = tpu.matmul %94, %93, %cst_44 {dimension_numbers = #tpu.dot_dimension_numbers<[1], [0], [0], [1], [0, 0, 1, 1], [], []>} : vector<24x64xbf16>, vector<64x128xbf16>, vector<24x128xf32> -> vector<24x128xf32>
      %96 = arith.addf %87, %95 : vector<24x128xf32>
      %c0_45 = arith.constant 0 : index
      %c0_46 = arith.constant 0 : index
      %97 = vector.load %arg13[%c0_45, %c0_46] : memref<24x128xf32, #tpu.memory_space<vmem>>, vector<24x128xf32>
      %98 = arith.addf %97, %96 : vector<24x128xf32>
      %c0_47 = arith.constant 0 : index
      %c0_48 = arith.constant 0 : index
      %99 = vector.load %arg13[%c0_47, %c0_48] : memref<24x128xf32, #tpu.memory_space<vmem>>, vector<24x128xf32>
      tpu.vector_store %arg13[%c0_47, %c0_48], %98 {strides = array<i32>} : memref<24x128xf32, #tpu.memory_space<vmem>>, vector<24x128xf32>,
    } else {
    }
    %c2_i32 = arith.constant 2 : i32
    %9 = arith.cmpi eq, %arg2, %c2_i32 : i32
    %10 = arith.extui %9 : i1 to i32
    %c0_i32_2 = arith.constant 0 : i32
    %11 = arith.cmpi ne, %10, %c0_i32_2 : i32
    scf.if %11 {
      %c0 = arith.constant 0 : index
      %c0_3 = arith.constant 0 : index
      %12 = vector.load %arg9[%c0, %c0_3] : memref<24x1xf32, #tpu.memory_space<vmem>>, vector<24x1xf32>
      %c0_4 = arith.constant 0 : index
      %c0_5 = arith.constant 0 : index
      %13 = vector.load %arg13[%c0_4, %c0_5] : memref<24x128xf32, #tpu.memory_space<vmem>>, vector<24x128xf32>
      %c0_6 = arith.constant 0 : index
      %c0_7 = arith.constant 0 : index
      %14 = vector.load %arg5[%c0_6, %c0_7] : memref<1x128xf32, #tpu.memory_space<vmem>>, vector<1x128xf32>
      %15 = vector.broadcast %14 : vector<1x128xf32> to vector<24x128xf32>
      %16 = arith.addf %13, %15 : vector<24x128xf32>
      %17 = vector.broadcast %12 : vector<24x1xf32> to vector<24x128xf32>
      %18 = arith.mulf %16, %17 : vector<24x128xf32>
      %cst = arith.constant dense<0.000000e+00> : vector<128xf32>
      %19 = vector.multi_reduction <add>, %18, %cst [0] : vector<24x128xf32> to vector<128xf32>
      %20 = vector.shape_cast %19 : vector<128xf32> to vector<1x128xf32>
      %cst_8 = arith.constant 1.600000e+01 : f32
      %21 = vector.broadcast %cst_8 : f32 to vector<1x128xf32>
      %22 = arith.divf %20, %21 : vector<1x128xf32>
      %23 = vector.broadcast %22 : vector<1x128xf32> to vector<24x128xf32>
      %24 = arith.subf %18, %23 : vector<24x128xf32>
      %25 = vector.broadcast %12 : vector<24x1xf32> to vector<24x128xf32>
      %26 = arith.mulf %24, %25 : vector<24x128xf32>
      %27 = arith.mulf %26, %26 : vector<24x128xf32>
      %cst_9 = arith.constant dense<0.000000e+00> : vector<128xf32>
      %28 = vector.multi_reduction <add>, %27, %cst_9 [0] : vector<24x128xf32> to vector<128xf32>
      %29 = vector.shape_cast %28 : vector<128xf32> to vector<1x128xf32>
      %30 = vector.shape_cast %20 : vector<1x128xf32> to vector<1x128xf32>
      %31 = vector.broadcast %30 : vector<1x128xf32> to vector<8x128xf32>
      %c0_10 = arith.constant 0 : index
      %c0_11 = arith.constant 0 : index
      %c0_12 = arith.constant 0 : index
      %c0_13 = arith.constant 0 : index
      %32 = vector.load %arg11[%c0_10, %c0_11, %c0_12, %c0_13] : memref<1x1x8x128xf32, #tpu.memory_space<vmem>>, vector<1x1x8x128xf32>
      %33 = vector.shape_cast %32 : vector<1x1x8x128xf32> to vector<8x128xf32>
      %34 = vector.shape_cast %31 : vector<8x128xf32> to vector<1x1x8x128xf32>
      tpu.vector_store %arg11[%c0_10, %c0_11, %c0_12, %c0_13], %34 {strides = array<i32>} : memref<1x1x8x128xf32, #tpu.memory_space<vmem>>, vector<1x1x8x128xf32>,
      %35 = vector.shape_cast %29 : vector<1x128xf32> to vector<1x128xf32>
      %36 = vector.broadcast %35 : vector<1x128xf32> to vector<8x128xf32>
      %c0_14 = arith.constant 0 : index
      %c0_15 = arith.constant 0 : index
      %c0_16 = arith.constant 0 : index
      %c0_17 = arith.constant 0 : index
      %37 = vector.load %arg12[%c0_14, %c0_15, %c0_16, %c0_17] : memref<1x1x8x128xf32, #tpu.memory_space<vmem>>, vector<1x1x8x128xf32>
      %38 = vector.shape_cast %37 : vector<1x1x8x128xf32> to vector<8x128xf32>
      %39 = vector.shape_cast %36 : vector<8x128xf32> to vector<1x1x8x128xf32>
      tpu.vector_store %arg12[%c0_14, %c0_15, %c0_16, %c0_17], %39 {strides = array<i32>} : memref<1x1x8x128xf32, #tpu.memory_space<vmem>>, vector<1x1x8x128xf32>,
      %40 = arith.truncf %18 : vector<24x128xf32> to vector<24x128xbf16>
      %c0_18 = arith.constant 0 : index
      %c0_19 = arith.constant 0 : index
      %c0_20 = arith.constant 0 : index
      %c0_21 = arith.constant 0 : index
      %41 = vector.load %arg10[%c0_18, %c0_19, %c0_20, %c0_21] : memref<1x1x24x128xbf16, #tpu.memory_space<vmem>>, vector<1x1x24x128xbf16>
      %42 = vector.shape_cast %41 : vector<1x1x24x128xbf16> to vector<24x128xbf16>
      %43 = vector.shape_cast %40 : vector<24x128xbf16> to vector<1x1x24x128xbf16>
      tpu.vector_store %arg10[%c0_18, %c0_19, %c0_20, %c0_21], %43 {strides = array<i32>} : memref<1x1x24x128xbf16, #tpu.memory_space<vmem>>, vector<1x1x24x128xbf16>,
    } else {
    }
    return
  }
  func.func @transform_0(%arg0: i32, %arg1: i32, %arg2: i32) -> (i32, i32, i32, i32) {
    %0 = arith.addi %arg1, %arg2 : i32
    %c0_i32 = arith.constant 0 : i32
    %c0_i32_0 = arith.constant 0 : i32
    %c0_i32_1 = arith.constant 0 : i32
    return %arg0, %0, %c0_i32, %c0_i32_0 : i32, i32, i32, i32
  }
  func.func @transform_1(%arg0: i32, %arg1: i32, %arg2: i32) -> (i32, i32, i32) {
    %c0_i32 = arith.constant 0 : i32
    %c0_i32_0 = arith.constant 0 : i32
    %c0_i32_1 = arith.constant 0 : i32
    %c0_i32_2 = arith.constant 0 : i32
    return %c0_i32, %c0_i32_0, %c0_i32_1 : i32, i32, i32
  }
  func.func @transform_2(%arg0: i32, %arg1: i32, %arg2: i32) -> (i32, i32) {
    %c0_i32 = arith.constant 0 : i32
    %c0_i32_0 = arith.constant 0 : i32
    %c0_i32_1 = arith.constant 0 : i32
    return %c0_i32, %c0_i32_0 : i32, i32
  }
  func.func @transform_3(%arg0: i32, %arg1: i32, %arg2: i32) -> (i32, i32) {
    %c0_i32 = arith.constant 0 : i32
    %c0_i32_0 = arith.constant 0 : i32
    %c0_i32_1 = arith.constant 0 : i32
    return %c0_i32, %c0_i32_0 : i32, i32
  }
  func.func @transform_4(%arg0: i32, %arg1: i32, %arg2: i32) -> (i32, i32) {
    %c0_i32 = arith.constant 0 : i32
    %c0_i32_0 = arith.constant 0 : i32
    %c0_i32_1 = arith.constant 0 : i32
    return %c0_i32, %c0_i32_0 : i32, i32
  }
  func.func @transform_5(%arg0: i32, %arg1: i32, %arg2: i32) -> (i32, i32) {
    %c0_i32 = arith.constant 0 : i32
    %c0_i32_0 = arith.constant 0 : i32
    %c0_i32_1 = arith.constant 0 : i32
    return %c0_i32, %c0_i32_0 : i32, i32
  }
  func.func @transform_6(%arg0: i32, %arg1: i32, %arg2: i32) -> (i32, i32) {
    %c0_i32 = arith.constant 0 : i32
    %c0_i32_0 = arith.constant 0 : i32
    %c0_i32_1 = arith.constant 0 : i32
    return %c0_i32, %c0_i32_0 : i32, i32
  }
  func.func @transform_7(%arg0: i32, %arg1: i32, %arg2: i32) -> (i32, i32, i32, i32) {
    %c0_i32 = arith.constant 0 : i32
    %c0_i32_0 = arith.constant 0 : i32
    %c0_i32_1 = arith.constant 0 : i32
    return %arg0, %arg1, %c0_i32, %c0_i32_0 : i32, i32, i32, i32
  }
  func.func @transform_8(%arg0: i32, %arg1: i32, %arg2: i32) -> (i32, i32, i32, i32) {
    %c0_i32 = arith.constant 0 : i32
    %c0_i32_0 = arith.constant 0 : i32
    %c0_i32_1 = arith.constant 0 : i32
    return %arg0, %arg1, %c0_i32, %c0_i32_0 : i32, i32, i32, i32
  }
  func.func @transform_9(%arg0: i32, %arg1: i32, %arg2: i32) -> (i32, i32, i32, i32) {
    %c0_i32 = arith.constant 0 : i32
    %c0_i32_0 = arith.constant 0 : i32
    %c0_i32_1 = arith.constant 0 : i32
    return %arg0, %arg1, %c0_i32, %c0_i32_0 : i32, i32, i32, i32
  }
}

module attributes {stable_mosaic.version = 11 : i64} {
  func.func @_conv_kernel(%arg0: i32, %arg1: i32, %arg2: i32, %arg3: memref<1x1x42x128xbf16, #tpu.memory_space<vmem>>, %arg4: memref<3x1152x128xbf16, #tpu.memory_space<vmem>>, %arg5: memref<1x128xf32, #tpu.memory_space<vmem>>, %arg6: memref<1x128xf32, #tpu.memory_space<vmem>>, %arg7: memref<1x128xf32, #tpu.memory_space<vmem>>, %arg8: memref<42x1xf32, #tpu.memory_space<vmem>>, %arg9: memref<24x1xf32, #tpu.memory_space<vmem>>, %arg10: memref<1x1x24x128xbf16, #tpu.memory_space<vmem>>, %arg11: memref<1x1x8x128xf32, #tpu.memory_space<vmem>>, %arg12: memref<1x1x8x128xf32, #tpu.memory_space<vmem>>, %arg13: memref<24x128xf32, #tpu.memory_space<vmem>>) attributes {dimension_semantics = [#tpu.dimension_semantics<parallel>, #tpu.dimension_semantics<parallel>, #tpu.dimension_semantics<arbitrary>], iteration_bounds = array<i64: 2, 4, 3>, scalar_prefetch = 0 : i64, scratch_operands = 1 : i64, tpu.core_type = #tpu.core_type<tc>, window_params = [{transform_indices = @transform_0, window_bounds = array<i64: 1, 1, 42, 128>}, {pipeline_mode = #tpu.pipeline_mode<synchronous>, transform_indices = @transform_1, window_bounds = array<i64: 3, 1152, 128>}, {pipeline_mode = #tpu.pipeline_mode<synchronous>, transform_indices = @transform_2, window_bounds = array<i64: 1, 128>}, {pipeline_mode = #tpu.pipeline_mode<synchronous>, transform_indices = @transform_3, window_bounds = array<i64: 1, 128>}, {pipeline_mode = #tpu.pipeline_mode<synchronous>, transform_indices = @transform_4, window_bounds = array<i64: 1, 128>}, {pipeline_mode = #tpu.pipeline_mode<synchronous>, transform_indices = @transform_5, window_bounds = array<i64: 42, 1>}, {pipeline_mode = #tpu.pipeline_mode<synchronous>, transform_indices = @transform_6, window_bounds = array<i64: 24, 1>}, {transform_indices = @transform_7, window_bounds = array<i64: 1, 1, 24, 128>}, {transform_indices = @transform_8, window_bounds = array<i64: 1, 1, 8, 128>}, {transform_indices = @transform_9, window_bounds = array<i64: 1, 1, 8, 128>}]} {
    %c0_i32 = arith.constant 0 : i32
    %0 = arith.cmpi eq, %arg2, %c0_i32 : i32
    %1 = arith.extui %0 : i1 to i32
    %c0_i32_0 = arith.constant 0 : i32
    %2 = arith.cmpi ne, %1, %c0_i32_0 : i32
    scf.if %2 {
      %cst = arith.constant 0.000000e+00 : f32
      %12 = vector.broadcast %cst : f32 to vector<24x128xf32>
      %c0 = arith.constant 0 : index
      %c0_3 = arith.constant 0 : index
      %13 = vector.load %arg13[%c0, %c0_3] : memref<24x128xf32, #tpu.memory_space<vmem>>, vector<24x128xf32>
      tpu.vector_store %arg13[%c0, %c0_3], %12 {strides = array<i32>} : memref<24x128xf32, #tpu.memory_space<vmem>>, vector<24x128xf32>,
    } else {
    }
    %3 = arith.addi %arg1, %arg2 : i32
    %c1_i32 = arith.constant 1 : i32
    %4 = arith.cmpi sge, %3, %c1_i32 : i32
    %c4_i32 = arith.constant 4 : i32
    %5 = arith.cmpi sle, %3, %c4_i32 : i32
    %6 = arith.andi %4, %5 : i1
    %7 = arith.extui %6 : i1 to i32
    %c0_i32_1 = arith.constant 0 : i32
    %8 = arith.cmpi ne, %7, %c0_i32_1 : i32
    scf.if %8 {
      %c0 = arith.constant 0 : index
      %c0_3 = arith.constant 0 : index
      %c0_4 = arith.constant 0 : index
      %c0_5 = arith.constant 0 : index
      %12 = vector.load %arg3[%c0, %c0_3, %c0_4, %c0_5] : memref<1x1x42x128xbf16, #tpu.memory_space<vmem>>, vector<1x1x42x128xbf16>
      %13 = vector.shape_cast %12 : vector<1x1x42x128xbf16> to vector<42x128xbf16>
      %14 = arith.extf %13 : vector<42x128xbf16> to vector<42x128xf32>
      %c0_6 = arith.constant 0 : index
      %c0_7 = arith.constant 0 : index
      %15 = vector.load %arg6[%c0_6, %c0_7] : memref<1x128xf32, #tpu.memory_space<vmem>>, vector<1x128xf32>
      %16 = vector.broadcast %15 : vector<1x128xf32> to vector<42x128xf32>
      %17 = arith.mulf %14, %16 : vector<42x128xf32>
      %c0_8 = arith.constant 0 : index
      %c0_9 = arith.constant 0 : index
      %18 = vector.load %arg7[%c0_8, %c0_9] : memref<1x128xf32, #tpu.memory_space<vmem>>, vector<1x128xf32>
      %19 = vector.broadcast %18 : vector<1x128xf32> to vector<42x128xf32>
      %20 = arith.addf %17, %19 : vector<42x128xf32>
      %cst = arith.constant 0.000000e+00 : f32
      %21 = vector.broadcast %cst : f32 to vector<42x128xf32>
      %22 = arith.maximumf %20, %21 : vector<42x128xf32>
      %c0_10 = arith.constant 0 : index
      %c0_11 = arith.constant 0 : index
      %23 = vector.load %arg8[%c0_10, %c0_11] : memref<42x1xf32, #tpu.memory_space<vmem>>, vector<42x1xf32>
      %24 = vector.broadcast %23 : vector<42x1xf32> to vector<42x128xf32>
      %25 = arith.mulf %22, %24 : vector<42x128xf32>
      %26 = vector.extract_strided_slice %25 {offsets = [0, 0], sizes = [24, 128], strides = [1, 1]} : vector<42x128xf32> to vector<24x128xf32>
      %27 = arith.truncf %26 : vector<24x128xf32> to vector<24x128xbf16>
      %28 = vector.extract_strided_slice %25 {offsets = [1, 0], sizes = [24, 128], strides = [1, 1]} : vector<42x128xf32> to vector<24x128xf32>
      %29 = arith.truncf %28 : vector<24x128xf32> to vector<24x128xbf16>
      %30 = vector.extract_strided_slice %25 {offsets = [2, 0], sizes = [24, 128], strides = [1, 1]} : vector<42x128xf32> to vector<24x128xf32>
      %31 = arith.truncf %30 : vector<24x128xf32> to vector<24x128xbf16>
      %32 = vector.extract_strided_slice %25 {offsets = [6, 0], sizes = [24, 128], strides = [1, 1]} : vector<42x128xf32> to vector<24x128xf32>
      %33 = arith.truncf %32 : vector<24x128xf32> to vector<24x128xbf16>
      %34 = vector.extract_strided_slice %25 {offsets = [7, 0], sizes = [24, 128], strides = [1, 1]} : vector<42x128xf32> to vector<24x128xf32>
      %35 = arith.truncf %34 : vector<24x128xf32> to vector<24x128xbf16>
      %36 = vector.extract_strided_slice %25 {offsets = [8, 0], sizes = [24, 128], strides = [1, 1]} : vector<42x128xf32> to vector<24x128xf32>
      %37 = arith.truncf %36 : vector<24x128xf32> to vector<24x128xbf16>
      %38 = vector.extract_strided_slice %25 {offsets = [12, 0], sizes = [24, 128], strides = [1, 1]} : vector<42x128xf32> to vector<24x128xf32>
      %39 = arith.truncf %38 : vector<24x128xf32> to vector<24x128xbf16>
      %40 = vector.extract_strided_slice %25 {offsets = [13, 0], sizes = [24, 128], strides = [1, 1]} : vector<42x128xf32> to vector<24x128xf32>
      %41 = arith.truncf %40 : vector<24x128xf32> to vector<24x128xbf16>
      %42 = vector.extract_strided_slice %25 {offsets = [14, 0], sizes = [24, 128], strides = [1, 1]} : vector<42x128xf32> to vector<24x128xf32>
      %43 = arith.truncf %42 : vector<24x128xf32> to vector<24x128xbf16>
      %44 = tpu.concatenate %27, %29, %31, %33, %35, %37, %39, %41, %43 in 1 : vector<24x128xbf16>, vector<24x128xbf16>, vector<24x128xbf16>, vector<24x128xbf16>, vector<24x128xbf16>, vector<24x128xbf16>, vector<24x128xbf16>, vector<24x128xbf16>, vector<24x128xbf16> -> vector<24x1152xbf16>
      %45 = arith.index_cast %arg2 : i32 to index
      %c0_12 = arith.constant 0 : index
      %c0_13 = arith.constant 0 : index
      %46 = vector.load %arg4[%45, %c0_12, %c0_13] : memref<3x1152x128xbf16, #tpu.memory_space<vmem>>, vector<1x1152x128xbf16>
      %47 = vector.shape_cast %46 : vector<1x1152x128xbf16> to vector<1152x128xbf16>
      %c0_14 = arith.constant 0 : index
      %c0_15 = arith.constant 0 : index
      %48 = vector.load %arg13[%c0_14, %c0_15] : memref<24x128xf32, #tpu.memory_space<vmem>>, vector<24x128xf32>
      %cst_16 = arith.constant dense<0.000000e+00> : vector<24x128xf32>
      %49 = tpu.matmul %44, %47, %cst_16 {dimension_numbers = #tpu.dot_dimension_numbers<[1], [0], [0], [1], [0, 0, 1, 1], [], []>} : vector<24x1152xbf16>, vector<1152x128xbf16>, vector<24x128xf32> -> vector<24x128xf32>
      %50 = arith.addf %48, %49 : vector<24x128xf32>
      %c0_17 = arith.constant 0 : index
      %c0_18 = arith.constant 0 : index
      %51 = vector.load %arg13[%c0_17, %c0_18] : memref<24x128xf32, #tpu.memory_space<vmem>>, vector<24x128xf32>
      tpu.vector_store %arg13[%c0_17, %c0_18], %50 {strides = array<i32>} : memref<24x128xf32, #tpu.memory_space<vmem>>, vector<24x128xf32>,
    } else {
    }
    %c2_i32 = arith.constant 2 : i32
    %9 = arith.cmpi eq, %arg2, %c2_i32 : i32
    %10 = arith.extui %9 : i1 to i32
    %c0_i32_2 = arith.constant 0 : i32
    %11 = arith.cmpi ne, %10, %c0_i32_2 : i32
    scf.if %11 {
      %c0 = arith.constant 0 : index
      %c0_3 = arith.constant 0 : index
      %12 = vector.load %arg9[%c0, %c0_3] : memref<24x1xf32, #tpu.memory_space<vmem>>, vector<24x1xf32>
      %c0_4 = arith.constant 0 : index
      %c0_5 = arith.constant 0 : index
      %13 = vector.load %arg13[%c0_4, %c0_5] : memref<24x128xf32, #tpu.memory_space<vmem>>, vector<24x128xf32>
      %c0_6 = arith.constant 0 : index
      %c0_7 = arith.constant 0 : index
      %14 = vector.load %arg5[%c0_6, %c0_7] : memref<1x128xf32, #tpu.memory_space<vmem>>, vector<1x128xf32>
      %15 = vector.broadcast %14 : vector<1x128xf32> to vector<24x128xf32>
      %16 = arith.addf %13, %15 : vector<24x128xf32>
      %17 = vector.broadcast %12 : vector<24x1xf32> to vector<24x128xf32>
      %18 = arith.mulf %16, %17 : vector<24x128xf32>
      %cst = arith.constant dense<0.000000e+00> : vector<128xf32>
      %19 = vector.multi_reduction <add>, %18, %cst [0] : vector<24x128xf32> to vector<128xf32>
      %20 = vector.shape_cast %19 : vector<128xf32> to vector<1x128xf32>
      %cst_8 = arith.constant 1.600000e+01 : f32
      %21 = vector.broadcast %cst_8 : f32 to vector<1x128xf32>
      %22 = arith.divf %20, %21 : vector<1x128xf32>
      %23 = vector.broadcast %22 : vector<1x128xf32> to vector<24x128xf32>
      %24 = arith.subf %18, %23 : vector<24x128xf32>
      %25 = vector.broadcast %12 : vector<24x1xf32> to vector<24x128xf32>
      %26 = arith.mulf %24, %25 : vector<24x128xf32>
      %27 = arith.mulf %26, %26 : vector<24x128xf32>
      %cst_9 = arith.constant dense<0.000000e+00> : vector<128xf32>
      %28 = vector.multi_reduction <add>, %27, %cst_9 [0] : vector<24x128xf32> to vector<128xf32>
      %29 = vector.shape_cast %28 : vector<128xf32> to vector<1x128xf32>
      %30 = vector.shape_cast %20 : vector<1x128xf32> to vector<1x128xf32>
      %31 = vector.broadcast %30 : vector<1x128xf32> to vector<8x128xf32>
      %c0_10 = arith.constant 0 : index
      %c0_11 = arith.constant 0 : index
      %c0_12 = arith.constant 0 : index
      %c0_13 = arith.constant 0 : index
      %32 = vector.load %arg11[%c0_10, %c0_11, %c0_12, %c0_13] : memref<1x1x8x128xf32, #tpu.memory_space<vmem>>, vector<1x1x8x128xf32>
      %33 = vector.shape_cast %32 : vector<1x1x8x128xf32> to vector<8x128xf32>
      %34 = vector.shape_cast %31 : vector<8x128xf32> to vector<1x1x8x128xf32>
      tpu.vector_store %arg11[%c0_10, %c0_11, %c0_12, %c0_13], %34 {strides = array<i32>} : memref<1x1x8x128xf32, #tpu.memory_space<vmem>>, vector<1x1x8x128xf32>,
      %35 = vector.shape_cast %29 : vector<1x128xf32> to vector<1x128xf32>
      %36 = vector.broadcast %35 : vector<1x128xf32> to vector<8x128xf32>
      %c0_14 = arith.constant 0 : index
      %c0_15 = arith.constant 0 : index
      %c0_16 = arith.constant 0 : index
      %c0_17 = arith.constant 0 : index
      %37 = vector.load %arg12[%c0_14, %c0_15, %c0_16, %c0_17] : memref<1x1x8x128xf32, #tpu.memory_space<vmem>>, vector<1x1x8x128xf32>
      %38 = vector.shape_cast %37 : vector<1x1x8x128xf32> to vector<8x128xf32>
      %39 = vector.shape_cast %36 : vector<8x128xf32> to vector<1x1x8x128xf32>
      tpu.vector_store %arg12[%c0_14, %c0_15, %c0_16, %c0_17], %39 {strides = array<i32>} : memref<1x1x8x128xf32, #tpu.memory_space<vmem>>, vector<1x1x8x128xf32>,
      %40 = arith.truncf %18 : vector<24x128xf32> to vector<24x128xbf16>
      %c0_18 = arith.constant 0 : index
      %c0_19 = arith.constant 0 : index
      %c0_20 = arith.constant 0 : index
      %c0_21 = arith.constant 0 : index
      %41 = vector.load %arg10[%c0_18, %c0_19, %c0_20, %c0_21] : memref<1x1x24x128xbf16, #tpu.memory_space<vmem>>, vector<1x1x24x128xbf16>
      %42 = vector.shape_cast %41 : vector<1x1x24x128xbf16> to vector<24x128xbf16>
      %43 = vector.shape_cast %40 : vector<24x128xbf16> to vector<1x1x24x128xbf16>
      tpu.vector_store %arg10[%c0_18, %c0_19, %c0_20, %c0_21], %43 {strides = array<i32>} : memref<1x1x24x128xbf16, #tpu.memory_space<vmem>>, vector<1x1x24x128xbf16>,
    } else {
    }
    return
  }
  func.func @transform_0(%arg0: i32, %arg1: i32, %arg2: i32) -> (i32, i32, i32, i32) {
    %0 = arith.addi %arg1, %arg2 : i32
    %c0_i32 = arith.constant 0 : i32
    %c0_i32_0 = arith.constant 0 : i32
    %c0_i32_1 = arith.constant 0 : i32
    return %arg0, %0, %c0_i32, %c0_i32_0 : i32, i32, i32, i32
  }
  func.func @transform_1(%arg0: i32, %arg1: i32, %arg2: i32) -> (i32, i32, i32) {
    %c0_i32 = arith.constant 0 : i32
    %c0_i32_0 = arith.constant 0 : i32
    %c0_i32_1 = arith.constant 0 : i32
    %c0_i32_2 = arith.constant 0 : i32
    return %c0_i32, %c0_i32_0, %c0_i32_1 : i32, i32, i32
  }
  func.func @transform_2(%arg0: i32, %arg1: i32, %arg2: i32) -> (i32, i32) {
    %c0_i32 = arith.constant 0 : i32
    %c0_i32_0 = arith.constant 0 : i32
    %c0_i32_1 = arith.constant 0 : i32
    return %c0_i32, %c0_i32_0 : i32, i32
  }
  func.func @transform_3(%arg0: i32, %arg1: i32, %arg2: i32) -> (i32, i32) {
    %c0_i32 = arith.constant 0 : i32
    %c0_i32_0 = arith.constant 0 : i32
    %c0_i32_1 = arith.constant 0 : i32
    return %c0_i32, %c0_i32_0 : i32, i32
  }
  func.func @transform_4(%arg0: i32, %arg1: i32, %arg2: i32) -> (i32, i32) {
    %c0_i32 = arith.constant 0 : i32
    %c0_i32_0 = arith.constant 0 : i32
    %c0_i32_1 = arith.constant 0 : i32
    return %c0_i32, %c0_i32_0 : i32, i32
  }
  func.func @transform_5(%arg0: i32, %arg1: i32, %arg2: i32) -> (i32, i32) {
    %c0_i32 = arith.constant 0 : i32
    %c0_i32_0 = arith.constant 0 : i32
    %c0_i32_1 = arith.constant 0 : i32
    return %c0_i32, %c0_i32_0 : i32, i32
  }
  func.func @transform_6(%arg0: i32, %arg1: i32, %arg2: i32) -> (i32, i32) {
    %c0_i32 = arith.constant 0 : i32
    %c0_i32_0 = arith.constant 0 : i32
    %c0_i32_1 = arith.constant 0 : i32
    return %c0_i32, %c0_i32_0 : i32, i32
  }
  func.func @transform_7(%arg0: i32, %arg1: i32, %arg2: i32) -> (i32, i32, i32, i32) {
    %c0_i32 = arith.constant 0 : i32
    %c0_i32_0 = arith.constant 0 : i32
    %c0_i32_1 = arith.constant 0 : i32
    return %arg0, %arg1, %c0_i32, %c0_i32_0 : i32, i32, i32, i32
  }
  func.func @transform_8(%arg0: i32, %arg1: i32, %arg2: i32) -> (i32, i32, i32, i32) {
    %c0_i32 = arith.constant 0 : i32
    %c0_i32_0 = arith.constant 0 : i32
    %c0_i32_1 = arith.constant 0 : i32
    return %arg0, %arg1, %c0_i32, %c0_i32_0 : i32, i32, i32, i32
  }
  func.func @transform_9(%arg0: i32, %arg1: i32, %arg2: i32) -> (i32, i32, i32, i32) {
    %c0_i32 = arith.constant 0 : i32
    %c0_i32_0 = arith.constant 0 : i32
    %c0_i32_1 = arith.constant 0 : i32
    return %arg0, %arg1, %c0_i32, %c0_i32_0 : i32, i32, i32, i32
  }
}

module attributes {stable_mosaic.version = 11 : i64} {
  func.func @_bn_relu_pool_kernel(%arg0: i32, %arg1: memref<2x2x4x3x256xbf16, #tpu.memory_space<vmem>>, %arg2: memref<1x256xf32, #tpu.memory_space<vmem>>, %arg3: memref<1x256xf32, #tpu.memory_space<vmem>>, %arg4: memref<2x2x4x3x256xf32, #tpu.memory_space<vmem>>, %arg5: memref<2x2x2x128xbf16, #tpu.memory_space<vmem>>) attributes {dimension_semantics = [#tpu.dimension_semantics<parallel>], iteration_bounds = array<i64: 2>, scalar_prefetch = 0 : i64, scratch_operands = 0 : i64, tpu.core_type = #tpu.core_type<tc>, window_params = [{transform_indices = @transform_0, window_bounds = array<i64: 2, 2, 4, 3, 256>}, {pipeline_mode = #tpu.pipeline_mode<synchronous>, transform_indices = @transform_1, window_bounds = array<i64: 1, 256>}, {pipeline_mode = #tpu.pipeline_mode<synchronous>, transform_indices = @transform_2, window_bounds = array<i64: 1, 256>}, {transform_indices = @transform_3, window_bounds = array<i64: 2, 2, 4, 3, 256>}, {transform_indices = @transform_4, window_bounds = array<i64: 2, 2, 2, 128>}]} {
    %c0 = arith.constant 0 : index
    %c0_0 = arith.constant 0 : index
    %c0_1 = arith.constant 0 : index
    %c0_2 = arith.constant 0 : index
    %c0_3 = arith.constant 0 : index
    %0 = vector.load %arg1[%c0, %c0_0, %c0_1, %c0_2, %c0_3] : memref<2x2x4x3x256xbf16, #tpu.memory_space<vmem>>, vector<2x2x4x3x256xbf16>
    %1 = arith.extf %0 : vector<2x2x4x3x256xbf16> to vector<2x2x4x3x256xf32>
    %c0_4 = arith.constant 0 : index
    %c0_5 = arith.constant 0 : index
    %2 = vector.load %arg2[%c0_4, %c0_5] : memref<1x256xf32, #tpu.memory_space<vmem>>, vector<1x256xf32>
    %3 = vector.shape_cast %2 : vector<1x256xf32> to vector<1x1x1x1x256xf32>
    %4 = vector.broadcast %3 : vector<1x1x1x1x256xf32> to vector<2x2x4x3x256xf32>
    %5 = arith.mulf %1, %4 : vector<2x2x4x3x256xf32>
    %c0_6 = arith.constant 0 : index
    %c0_7 = arith.constant 0 : index
    %6 = vector.load %arg3[%c0_6, %c0_7] : memref<1x256xf32, #tpu.memory_space<vmem>>, vector<1x256xf32>
    %7 = vector.shape_cast %6 : vector<1x256xf32> to vector<1x1x1x1x256xf32>
    %8 = vector.broadcast %7 : vector<1x1x1x1x256xf32> to vector<2x2x4x3x256xf32>
    %9 = arith.addf %5, %8 : vector<2x2x4x3x256xf32>
    %cst = arith.constant 0.000000e+00 : f32
    %10 = vector.broadcast %cst : f32 to vector<2x2x4x3x256xf32>
    %11 = arith.maximumf %9, %10 : vector<2x2x4x3x256xf32>
    %c0_8 = arith.constant 0 : index
    %c0_9 = arith.constant 0 : index
    %c0_10 = arith.constant 0 : index
    %c0_11 = arith.constant 0 : index
    %c0_12 = arith.constant 0 : index
    %12 = vector.load %arg4[%c0_8, %c0_9, %c0_10, %c0_11, %c0_12] : memref<2x2x4x3x256xf32, #tpu.memory_space<vmem>>, vector<2x2x4x3x256xf32>
    tpu.vector_store %arg4[%c0_8, %c0_9, %c0_10, %c0_11, %c0_12], %11 {strides = array<i32>} : memref<2x2x4x3x256xf32, #tpu.memory_space<vmem>>, vector<2x2x4x3x256xf32>,
    %13 = vector.extract_strided_slice %11 {offsets = [0, 0, 0, 0, 0], sizes = [2, 2, 4, 2, 256], strides = [1, 1, 1, 1, 1]} : vector<2x2x4x3x256xf32> to vector<2x2x4x2x256xf32>
    %14 = vector.extract_strided_slice %13 {offsets = [0, 0, 0, 0, 0], sizes = [2, 1, 4, 2, 256], strides = [1, 1, 1, 1, 1]} : vector<2x2x4x2x256xf32> to vector<2x1x4x2x256xf32>
    %15 = vector.shape_cast %14 : vector<2x1x4x2x256xf32> to vector<2x4x2x256xf32>
    %16 = vector.extract_strided_slice %13 {offsets = [0, 1, 0, 0, 0], sizes = [2, 1, 4, 2, 256], strides = [1, 1, 1, 1, 1]} : vector<2x2x4x2x256xf32> to vector<2x1x4x2x256xf32>
    %17 = vector.shape_cast %16 : vector<2x1x4x2x256xf32> to vector<2x4x2x256xf32>
    %18 = arith.maximumf %15, %17 : vector<2x4x2x256xf32>
    %19 = vector.shape_cast %18 : vector<2x4x2x256xf32> to vector<2x2x2x2x256xf32>
    %20 = vector.extract_strided_slice %19 {offsets = [0, 0, 0, 0, 0], sizes = [2, 2, 1, 2, 256], strides = [1, 1, 1, 1, 1]} : vector<2x2x2x2x256xf32> to vector<2x2x1x2x256xf32>
    %21 = vector.shape_cast %20 : vector<2x2x1x2x256xf32> to vector<2x2x2x256xf32>
    %22 = vector.extract_strided_slice %19 {offsets = [0, 0, 1, 0, 0], sizes = [2, 2, 1, 2, 256], strides = [1, 1, 1, 1, 1]} : vector<2x2x2x2x256xf32> to vector<2x2x1x2x256xf32>
    %23 = vector.shape_cast %22 : vector<2x2x1x2x256xf32> to vector<2x2x2x256xf32>
    %24 = arith.maximumf %21, %23 : vector<2x2x2x256xf32>
    %25 = vector.extract_strided_slice %24 {offsets = [0, 0, 0, 0], sizes = [2, 2, 2, 128], strides = [1, 1, 1, 1]} : vector<2x2x2x256xf32> to vector<2x2x2x128xf32>
    %26 = vector.extract_strided_slice %24 {offsets = [0, 0, 0, 128], sizes = [2, 2, 2, 128], strides = [1, 1, 1, 1]} : vector<2x2x2x256xf32> to vector<2x2x2x128xf32>
    %27 = arith.maximumf %25, %26 : vector<2x2x2x128xf32>
    %28 = arith.truncf %27 : vector<2x2x2x128xf32> to vector<2x2x2x128xbf16>
    %c0_13 = arith.constant 0 : index
    %c0_14 = arith.constant 0 : index
    %c0_15 = arith.constant 0 : index
    %c0_16 = arith.constant 0 : index
    %29 = vector.load %arg5[%c0_13, %c0_14, %c0_15, %c0_16] : memref<2x2x2x128xbf16, #tpu.memory_space<vmem>>, vector<2x2x2x128xbf16>
    tpu.vector_store %arg5[%c0_13, %c0_14, %c0_15, %c0_16], %28 {strides = array<i32>} : memref<2x2x2x128xbf16, #tpu.memory_space<vmem>>, vector<2x2x2x128xbf16>,
    return
  }
  func.func @transform_0(%arg0: i32) -> (i32, i32, i32, i32, i32) {
    %c0_i32 = arith.constant 0 : i32
    %c0_i32_0 = arith.constant 0 : i32
    %c0_i32_1 = arith.constant 0 : i32
    %c0_i32_2 = arith.constant 0 : i32
    %c0_i32_3 = arith.constant 0 : i32
    return %arg0, %c0_i32, %c0_i32_0, %c0_i32_1, %c0_i32_2 : i32, i32, i32, i32, i32
  }
  func.func @transform_1(%arg0: i32) -> (i32, i32) {
    %c0_i32 = arith.constant 0 : i32
    %c0_i32_0 = arith.constant 0 : i32
    %c0_i32_1 = arith.constant 0 : i32
    return %c0_i32, %c0_i32_0 : i32, i32
  }
  func.func @transform_2(%arg0: i32) -> (i32, i32) {
    %c0_i32 = arith.constant 0 : i32
    %c0_i32_0 = arith.constant 0 : i32
    %c0_i32_1 = arith.constant 0 : i32
    return %c0_i32, %c0_i32_0 : i32, i32
  }
  func.func @transform_3(%arg0: i32) -> (i32, i32, i32, i32, i32) {
    %c0_i32 = arith.constant 0 : i32
    %c0_i32_0 = arith.constant 0 : i32
    %c0_i32_1 = arith.constant 0 : i32
    %c0_i32_2 = arith.constant 0 : i32
    %c0_i32_3 = arith.constant 0 : i32
    return %arg0, %c0_i32, %c0_i32_0, %c0_i32_1, %c0_i32_2 : i32, i32, i32, i32, i32
  }
  func.func @transform_4(%arg0: i32) -> (i32, i32, i32, i32) {
    %c0_i32 = arith.constant 0 : i32
    %c0_i32_0 = arith.constant 0 : i32
    %c0_i32_1 = arith.constant 0 : i32
    %c0_i32_2 = arith.constant 0 : i32
    return %arg0, %c0_i32, %c0_i32_0, %c0_i32_1 : i32, i32, i32, i32
  }
}

</mosaic_0001>

<bundles_post_ra>
// kernel: unet_encoder3d.6
= control target key start
LH: loop header
LB: loop body
LE: loop exit
PB: predicated region body
PF: predicated region fallthrough
CT: control target
= control target key end

     0   :  { %s1906_s30 = smov 0   ;;  %s1908_s3 = smov 0   ;;  %s2846_s0 = inlined_call_operand.vmem [shape: bf16[2,10,110,1], index: 0, kind: input, shape index: {}]   ;;  %s2847_s1 = inlined_call_operand.vmem [shape: bf16[27,1,32], index: 1, kind: input, shape index: {}]   ;;  %s2848_s2 = inlined_call_operand.vmem [shape: f32[1,32], index: 2, kind: input, shape index: {}]   ;;  %s2849_s3 = inlined_call_operand.<no memory space> [shape: f32[1,1], index: 3, kind: input, shape index: {}]   ;;  %s2850_s5 = inlined_call_operand.vmem [shape: f32[110,1], index: 5, kind: input, shape index: {}]   ;;  %s2851_s6 = inlined_call_operand.vmem [shape: f32[80,1], index: 6, kind: input, shape index: {}]   ;;  %s2852_s7 = inlined_call_operand.vmem [shape: bf16[2,8,80,32], index: 7, kind: output, shape index: {0}]   ;;  %s2853_s8 = inlined_call_operand.vmem [shape: f32[2,8,8,32], index: 8, kind: output, shape index: {1}]   ;;  %s2854_s9 = inlined_call_operand.vmem [shape: f32[2,8,8,32], index: 9, kind: output, shape index: {2}]   ;;  %s2855_s4 = inlined_call_operand.<no memory space> [shape: f32[1,1], index: 4, kind: input, shape index: {}]  }
   0x1   :  { %s1910_s5 = smov 0   ;;  %s1912_s10 = smov 0  }
   0x2   :  { %s1914_s11 = smov 0   ;;  %s1916_s12 = smov 0  }
   0x3   :  { %s1918_s13 = smov 0  }
   0x4 LB: > { %2885 = sst [smem:[#allocation5_spill]] %s1839_s10  ;;  %s36_s4 = sadd.s32 1, %s1839_s10  ;;  %s1851_s13 = sphi %s1918_s13, %s24_s13   ;;  %s1847_s12 = sphi %s1916_s12, %s3000_s12   ;;  %s1843_s11 = sphi %s1914_s11, %s2999_s11   ;;  %s1839_s10 = sphi %s1912_s10, %s2998_s10   ;;  %s1835_s5 = sphi %s1910_s5, %s2997_s5   ;;  %s1831_s3 = sphi %s1908_s3, %s2996_s3   ;;  %s1827_s30 = sphi %s1906_s30, %s2995_s30  }
   0x5   : > { %2886 = sst [smem:[#allocation6_spill]] %s1843_s11  ;;  %p37_p0 = scmp.ge.s32.totalorder %s36_s4, 3 }
   0x6   : > { %2887 = sst [smem:[#allocation7_spill]] %s1847_s12  ;;  %s39_s14 = sadd.s32 1, %s1843_s11 }
   0x7   : > { %p1636_p1 = scmp.ge.s32.totalorder %s1851_s13, 1  ;;  %p331_p2 = scmp.lt.s32.totalorder %s1851_s13, 49 }
   0x8   : > { %s3002_s4 = smov (%p37_p0, %s36_s4), 0  ;;  %s3004_s14 = smov (!%p37_p0, %s39_s14), %s1843_s11 }
   0x9   : > { %2888 = sst [smem:[#allocation8_spill]] %s3002_s4  ;;  %p332_p3 = pnand %p1636_p1, %p331_p2 }
   0xa   : > { %p41_p4 = scmp.ge.s32.totalorder %s3004_s14, 8  ;;  %s43_s15 = sadd.s32 1, %s1847_s12 }
   0xb   : > { %335 = sbr.rel (%p332_p3) target bundleno = 493 (0x1ed), region = 48  ;;  %s1954_s16 = sadd.s32 (!%p332_p3), %s1827_s30, %s1831_s3 }
   0xc   : > { %s3006_s14 = smov (%p41_p4, %s3004_s14), 0  ;;  %s3008_s15 = smov (!%p41_p4, %s43_s15), %s1847_s12 }
   0xd   : > { %2889 = sst [smem:[#allocation9_spill]] %s3006_s14  ;;  %p45_p5 = scmp.ge.s32.totalorder %s3008_s15, 2 }
   0xe   : > { %p393_p6 = scmp.lt.s32.totalorder (!%p332_p3), %s1835_s5, 1  ;;  %p395_p7 = scmp.lt.s32.totalorder (!%p332_p3), %s1954_s16, 9 }
   0xf   : > { %s3010_s15 = smov (%p45_p5, %s3008_s15), 0  ;;  %p405_p8 = scmp.lt.s32.totalorder (!%p332_p3), %s1831_s3, 7 }
  0x10   : > { %2890 = sst [smem:[#allocation10_spill]] %s3010_s15  ;;  %p1643_p9 = scmp.ne.s32.totalorder (!%p332_p3), %s1827_s30, 0 }
  0x12   : > { %s3012_s5 = smov (!%p393_p6, %s1835_s5), 1  ;;  %s3014_s3 = smov (!%p405_p8, %s1831_s3), 7 }
  0x13   : > { %s396_s17 = scalar_select %p395_p7, %s1954_s16, 9 }
  0x14   : > { %s1706_s18 = smul.u32 140, %s3012_s5  ;;  %s1639_s20 = sshll.u32 %s3012_s5, 3  ;;  %vm432_vm0 = vcmask (!%p1643_p9), 261120   ;;  %v1853_v0 = vmov (!%p1643_p9), 0.0  }
  0x15   : > { %s1705_s19 = smul.u32 14, %s396_s17  ;;  %s417_s28 = sadd.s32 %s1639_s20, %s3014_s3  ;;  %433 = vst.msk [vmem:[#allocation2] sm:$0xff] (!%p1643_p9), %vm432_vm0, %v1853_v0  ;;  %434 = vst.msk [vmem:[#allocation2 + $0x8] sm:$0xff] (!%p1643_p9), %vm432_vm0, %v1853_v0 }
  0x16   : > { %s1708_s22 = smul.u32 80, %s3012_s5  ;;  %s1640_s15 = sshll.u32 %s417_s28, 3  ;;  %435 = vst.msk [vmem:[#allocation2 + $0x10] sm:$0xff] (!%p1643_p9), %vm432_vm0, %v1853_v0  ;;  %436 = vst.msk [vmem:[#allocation2 + $0x18] sm:$0xff] (!%p1643_p9), %vm432_vm0, %v1853_v0 }
  0x17   : > { %s399_s21 = sadd.s32 %s1706_s18, %s1705_s19  ;;  %s1707_s24 = smul.u32 10, %s3014_s3  ;;  %437 = vst.msk [vmem:[#allocation2 + $0x20] sm:$0xff] (!%p1643_p9), %vm432_vm0, %v1853_v0  ;;  %438 = vst.msk [vmem:[#allocation2 + $0x28] sm:$0xff] (!%p1643_p9), %vm432_vm0, %v1853_v0 }
  0x18   : > { %s1637_s23 = sshll.u32 %s399_s21, 2  ;;  %s1968_s11 = scalar_lea.vmem %s2853_s8, %s1640_s15  ;;  %439 = vst.msk [vmem:[#allocation2 + $0x30] sm:$0xff] (!%p1643_p9), %vm432_vm0, %v1853_v0  ;;  %440 = vst.msk [vmem:[#allocation2 + $0x38] sm:$0xff] (!%p1643_p9), %vm432_vm0, %v1853_v0 }
  0x19   : > { %s1963_s27 = scalar_lea.vmem %s2846_s0, %s1637_s23  ;;  %s409_s29 = sadd.s32 %s1708_s22, %s1707_s24  ;;  %441 = vst.msk [vmem:[#allocation2 + $0x40] sm:$0xff] (!%p1643_p9), %vm432_vm0, %v1853_v0  ;;  %442 = vst.msk [vmem:[#allocation2 + $0x48] sm:$0xff] (!%p1643_p9), %vm432_vm0, %v1853_v0 }
  0x1a   : > { %s1638_s14 = sshll.u32 %s409_s29, 2  ;;  %s1978_s21 = scalar_lea.vmem %s2854_s9, %s1640_s15 }
  0x1b   : > { %s1973_s5 = scalar_lea.vmem %s2852_s7, %s1638_s14  ;;  %431 = sbr.rel (%p1643_p9) target bundleno = 34 (0x22), region = 52 }
  0x22 PF: > { %p444_p10 = scmp.ge.s32.totalorder %s1954_s16, 1  ;;  %p445_p11 = scmp.le.s32.totalorder %s1954_s16, 8 }
  0x24   : > { %p446_p12 = pnand %p445_p11, %p444_p10 }
  0x26   : > { %449 = sbr.rel (%p446_p12) target bundleno = 285 (0x11d), region = 56 }
  0x2d   : > { %v1701_v1 = vld [vmem:[%s1963_s27 + $0x10] sm:$0xff]   ;;  %v1677_v2 = vld [vmem:[%s1963_s27] sm:$0xff]   ;;  %v1702_v3 = vld [vmem:[%s1963_s27 + $0x18] sm:$0xff]   ;;  %v1854_v4 = vmov 0   ;;  %s476_s3 = smul.u32 9, %s1827_s30  ;;  %v530_v27 = vlaneseq  ;;  %vm881_vm1 = vcmask 1043456  }
  0x2e   : > { %1779 = vset.pattern.permute.xlu1 %v1854_v4  ;;  %1768 = vset.pattern.permute.xlu0 %v1854_v4  ;;  %v1686_v5 = vunpack.c.l.bf16 %v1701_v1  ;;  %v1687_v6 = vunpack.c.h.bf16 %v1701_v1  ;;  %v1678_v7 = vunpack.c.l.bf16 %v1677_v2  ;;  %v1679_v8 = vunpack.c.h.bf16 %v1677_v2  ;;  %v1700_v9 = vld [vmem:[%s1963_s27 + $0x8] sm:$0xff]   ;;  %v1703_v14 = vld [vmem:[%s1963_s27 + $0x20] sm:$0xff]   ;;  %v462_v24 = vld [vmem:[%s1963_s27 + $0x30] sm:$0xf] }
  0x2f   : > { %v1690_v10 = vunpack.c.l.bf16 %v1702_v3  ;;  %v1691_v11 = vunpack.c.h.bf16 %v1702_v3  ;;  %v1682_v12 = vunpack.c.l.bf16 %v1700_v9  ;;  %v1683_v13 = vunpack.c.h.bf16 %v1700_v9  ;;  %v1704_v21 = vld [vmem:[%s1963_s27 + $0x28] sm:$0xff]   ;;  %s477_s4 = scalar_lea.vmem %s2847_s1, %s476_s3 }
  0x30   : > { %v1780_v15 = vpack.i.bf16 %v1687_v6, %v1686_v5  ;;  %v1769_v16 = vpack.i.bf16 %v1679_v8, %v1678_v7  ;;  %v1694_v19 = vunpack.c.l.bf16 %v1703_v14  ;;  %v1695_v20 = vunpack.c.h.bf16 %v1703_v14  ;;  %v478_v29 = vld [vmem:[%s477_s4] sm:$0x1]  ;;  %v1644_v30 = vld [vmem:[%s477_s4 + $0x1] sm:$0x1]  ;;  %v1645_v31 = vld [vmem:[%s477_s4 + $0x2] sm:$0x1] }
  0x31   : > { %v1785_v17 = vpack.i.bf16 %v1691_v11, %v1690_v10  ;;  %v1774_v18 = vpack.i.bf16 %v1683_v13, %v1682_v12  ;;  %v1698_v22 = vunpack.c.l.bf16 %v1704_v21  ;;  %v475_v25 = vunpack.c.l.bf16 %v462_v24  ;;  %v1649_v32 = vld [vmem:[%s477_s4 + $0x6] sm:$0x1]  ;;  %v1650_v33 = vld [vmem:[%s477_s4 + $0x7] sm:$0x1]  ;;  %v1646_v34 = vld [vmem:[%s477_s4 + $0x3] sm:$0x1] }
  0x32   : > { %1781 = vperm.xlu1 %1779, %v1780_v15   ;;  %1770 = vperm.xlu0 %1768, %v1769_v16   ;;  %v1790_v23 = vpack.i.bf16 %v1695_v20, %v1694_v19  ;;  %v1699_v26 = vunpack.c.h.bf16 %v1704_v21  ;;  %v531_v28 = vshrl.u32 %v530_v27, 7  ;;  %v1647_v35 = vld [vmem:[%s477_s4 + $0x4] sm:$0x1]  ;;  %v1648_v36 = vld [vmem:[%s477_s4 + $0x5] sm:$0x1]  ;;  %v557_v38 = vunpack.c.l.bf16 %v1644_v30 }
  0x33   : > { %v1651_v39 = vld [vmem:[%s477_s4 + $0x8] sm:$0x1]  ;;  %v479_v40 = vunpack.c.l.bf16 %v478_v29  ;;  %v634_v41 = vunpack.c.l.bf16 %v1645_v31  ;;  %v926_v42 = vunpack.c.l.bf16 %v1649_v32  ;;  %v1002_v43 = vunpack.c.l.bf16 %v1650_v33 }
  0x34   : > { %v532_v37 = vsub.s32 0, %v531_v28  ;;  %v706_v44 = vunpack.c.l.bf16 %v1646_v34  ;;  %v782_v45 = vunpack.c.l.bf16 %v1647_v35  ;;  %v854_v46 = vunpack.c.l.bf16 %v1648_v36 }
  0x35   : > { %v1074_v47 = vunpack.c.l.bf16 %v1651_v39  ;;  %vm661_vm2 = vcmask 1045504   ;;  %vm589_vm3 = vcmask 1046528   ;;  %vm809_vm4 = vcmask 1044480  }
  0x36   : > { %1786 = vperm.xlu1 %1779, %v1785_v17   ;;  %1775 = vperm.xlu0 %1768, %v1774_v18   ;;  %v1994_v48 = vrot.slane %v557_v38, %v532_v37  ;;  %v1996_v49 = vrot.slane %v479_v40, %v532_v37  ;;  %v1998_v50 = vrot.slane %v634_v41, %v532_v37  ;;  %vm1029_vm5 = vcmask 1042432  }
  0x37   : > { %v2000_v51 = vrot.slane %v926_v42, %v532_v37  ;;  %v2002_v52 = vrot.slane %v1002_v43, %v532_v37  ;;  %v2004_v55 = vrot.slane %v706_v44, %v532_v37  ;;  %v2006_v56 = vrot.slane %v782_v45, %v532_v37 }
  0x38   : > { %v2008_v57 = vrot.slane %v854_v46, %v532_v37  ;;  %v2010_v59 = vrot.slane %v1074_v47, %v532_v37  ;;  %vm1101_vm6 = vcmask 1041408   ;;  %vm1163_vm7 = vcmask 261120  }
  0x3a   : > { %560 = vperm.xlu1 %1779, %v1698_v22   ;;  %1791 = vperm.xlu0 %1768, %v1790_v23  }
  0x3e   : > { %929 = vperm.xlu1 %1779, %v475_v25   ;;  %709 = vperm.xlu0 %1768, %v1699_v26  }
  0xb1   : > { %v1782_v53 = vpop.permute.xlu1 %1781  ;;  %v1771_v54 = vpop.permute.xlu0 %1770 }
  0xb2   : > { %v1784_v58 = vunpack.i.h.bf16 %v1782_v53  ;;  %v1783_v60 = vunpack.i.l.bf16 %v1782_v53  ;;  %v1773_v61 = vunpack.i.h.bf16 %v1771_v54  ;;  %v1772_v1 = vunpack.i.l.bf16 %v1771_v54 }
  0xb4   : > { %v2013_v62 = vmul.f32 %v1784_v58, %v1994_v48  ;;  %v2016_v63 = vmul.f32 %v1784_v58, %v1998_v50  ;;  %v2019_v0 = vmul.f32 %v1784_v58, %v2004_v55  ;;  %v2022_v2 = vmul.f32 %v1784_v58, %v2006_v56 }
  0xb5   : > { %v2025_v3 = vmul.f32 %v1784_v58, %v2008_v57  ;;  %v2028_v4 = vmul.f32 %v1784_v58, %v2000_v51  ;;  %v2031_v5 = vmul.f32 %v1784_v58, %v2002_v52  ;;  %v2034_v6 = vmul.f32 %v1784_v58, %v1996_v49  ;;  %v1787_v42 = vpop.permute.xlu1 %1786  ;;  %v1776_v47 = vpop.permute.xlu0 %1775 }
  0xb6   : > { %v599_v7 = vrot.slane %v2013_v62, 1  ;;  %v671_v8 = vrot.slane %v2016_v63, 2  ;;  %v2868_v9 = vrot.slane %v2019_v0, 2  ;;  %v2043_v13 = vmul.f32 %v1784_v58, %v2010_v59 }
  0xb7   : > { %v2867_v11 = vrot.slane %v2025_v3, 4  ;;  %v2866_v12 = vrot.slane %v2028_v4, 4  ;;  %v538_v15 = vmul.f32 %v1783_v60, %v1996_v49  ;;  %v2048_v16 = vmul.f32 %v1783_v60, %v1994_v48 }
  0xb8   : > { %v2051_v17 = vmul.f32 %v1783_v60, %v1998_v50  ;;  %v2054_v18 = vmul.f32 %v1783_v60, %v2004_v55  ;;  %v2057_v19 = vmul.f32 %v1783_v60, %v2006_v56  ;;  %v2060_v20 = vmul.f32 %v1783_v60, %v2008_v57 }
  0xb9   : > { %v2063_v21 = vmul.f32 %v1783_v60, %v2000_v51  ;;  %v2865_v22 = vrot.slane %v2048_v16, 1  ;;  %v2068_v24 = vmul.f32 %v1783_v60, %v2002_v52  ;;  %v2071_v25 = vmul.f32 %v1783_v60, %v2010_v59 }
  0xba   : > { %v2864_v23 = vrot.slane %v2051_v17, 2  ;;  %v2862_v27 = vrot.slane %v2054_v18, 2  ;;  %v2861_v28 = vrot.slane %v2060_v20, 4  ;;  %v2112_v39 = vmul.f32 %v1773_v61, %v1994_v48 }
  0xbb   : > { %2891 = vst [vmem:[#allocation11_spill] sm:$0xff] %v2071_v25  ;;  %v2860_v29 = vrot.slane %v2063_v21, 4  ;;  %v600_v33 = vsel %vm589_vm3, %v2865_v22, %v599_v7  ;;  %v2115_v40 = vmul.f32 %v1773_v61, %v1998_v50  ;;  %v2118_v41 = vmul.f32 %v1773_v61, %v2004_v55 }
  0xbc   : > { %v672_v30 = vsel %vm661_vm2, %v2864_v23, %v671_v8  ;;  %v2094_v34 = vsel %vm661_vm2, %v2862_v27, %v2868_v9  ;;  %v2101_v35 = vsel %vm881_vm1, %v2861_v28, %v2867_v11  ;;  %v625_v37 = vadd.f32 %v600_v33, %v538_v15 }
  0xbd   : > { %2892 = vst [vmem:[#allocation12_spill] sm:$0xff] %v2101_v35  ;;  %v2109_v38 = vsel %vm881_vm1, %v2860_v29, %v2866_v12  ;;  %v2121_v44 = vmul.f32 %v1773_v61, %v1996_v49  ;;  %v2124_v45 = vmul.f32 %v1773_v61, %v2006_v56  ;;  %v2127_v46 = vmul.f32 %v1773_v61, %v2008_v57 }
  0xbe   : > { %2893 = vst [vmem:[#allocation13_spill] sm:$0xff] %v2109_v38  ;;  %v697_v43 = vadd.f32 %v672_v30, %v625_v37  ;;  %v2859_v53 = vrot.slane %v2112_v39, 1  ;;  %v2863_v54 = vrot.slane %v2115_v40, 2  ;;  %v534_v58 = vmul.f32 %v1772_v1, %v1996_v49 }
  0xbf   : > { %2894 = vst [vmem:[#allocation14_spill] sm:$0xff] %v2124_v45  ;;  %v567_v60 = vmul.f32 %v1772_v1, %v1994_v48  ;;  %v639_v33 = vmul.f32 %v1772_v1, %v1998_v50  ;;  %v2136_v37 = vunpack.i.h.bf16 %v1787_v42  ;;  %v1788_v26 = vunpack.i.l.bf16 %v1787_v42 }
  0xc0   : > { %v1778_v32 = vunpack.i.h.bf16 %v1776_v47  ;;  %v2147_v15 = vunpack.i.l.bf16 %v1776_v47 }
  0xc1   : > { %v590_v36 = vrot.slane %v567_v60, 1  ;;  %v662_v14 = vrot.slane %v639_v33, 2  ;;  %v2141_v31 = vmul.f32 %v2136_v37, %v2004_v55  ;;  %v2145_v10 = vmul.f32 %v2136_v37, %v2000_v51 }
  0xc2   : > { %v2154_v60 = vmul.f32 %v2136_v37, %v2006_v56  ;;  %v2158_v42 = vmul.f32 %v2136_v37, %v2002_v52  ;;  %v2162_v33 = vmul.f32 %v2136_v37, %v2010_v59  ;;  %v2174_v28 = vmul.f32 %v1788_v26, %v1994_v48 }
  0xc3   : > { %2895 = vst [vmem:[#allocation15_spill] sm:$0xff] %v2141_v31  ;;  %2896 = vst [vmem:[#allocation16_spill] sm:$0xff] %v2145_v10  ;;  %v592_v1 = vsel %vm589_vm3, %v590_v36, %v2859_v53  ;;  %v664_v47 = vsel %vm661_vm2, %v662_v14, %v2863_v54  ;;  %v2169_v36 = vmul.f32 %v1788_v26, %v1996_v49  ;;  %v2899_v35 = vrot.slane %v2141_v31, 2 }
  0xc4   : > { %2897 = vst [vmem:[#allocation17_spill] sm:$0xff] %v2162_v33  ;;  %v621_v30 = vadd.f32 %v592_v1, %v534_v58  ;;  %v2177_v27 = vmul.f32 %v1788_v26, %v1998_v50  ;;  %v721_v1 = vmul.f32 %v1788_v26, %v2004_v55  ;;  %v2182_v14 = vmul.f32 %v1788_v26, %v2006_v56 }
  0xc5   : > { %v2185_v54 = vmul.f32 %v1788_v26, %v2008_v57  ;;  %v2869_v23 = vrot.slane %v2174_v28, 1  ;;  %v940_v22 = vmul.f32 %v1788_v26, %v2000_v51  ;;  %v2191_v53 = vmul.f32 %v1788_v26, %v2002_v52 }
  0xc6   : > { %v2870_v29 = vrot.slane %v2177_v27, 2  ;;  %v2193_v12 = vadd.f32 %v664_v47, %v621_v30  ;;  %v747_v58 = vrot.slane %v721_v1, 2  ;;  %v2197_v61 = vmul.f32 %v1788_v26, %v2010_v59 }
  0xc7   : > { %v602_v9 = vsel %vm589_vm3, %v599_v7, %v2869_v23  ;;  %v965_v47 = vrot.slane %v940_v22, 4  ;;  %v2898_v26 = vrot.slane %v2019_v0, 2  ;;  %v2900_v63 = vrot.slane %v2185_v54, 4 }
  0xc8   : > { %v674_v38 = vsel %vm661_vm2, %v671_v8, %v2870_v29  ;;  %v626_v1 = vadd.f32 %v602_v9, %v2034_v6  ;;  %v2217_v62 = vsel %vm661_vm2, %v747_v58, %v2899_v35  ;;  %v2901_v8 = vrot.slane %v2025_v3, 4 }
  0xc9   : > { %v748_v11 = vsel %vm661_vm2, %v2898_v26, %v747_v58  ;;  %v2902_v0 = vrot.slane %v2028_v4, 4  ;;  %v2904_v9 = vrot.slane %v2145_v10, 4  ;;  %v642_v3 = vmul.f32 %v1778_v32, %v1998_v50 }
  0xca   : > { %v2220_v23 = vadd.f32 %v748_v11, %v697_v43  ;;  %v2227_v22 = vsel %vm881_vm1, %v2901_v8, %v2900_v63  ;;  %v2239_v58 = vadd.f32 %v674_v38, %v626_v1  ;;  %v570_v43 = vmul.f32 %v1778_v32, %v1994_v48 }
  0xcb   : > { %v2232_v6 = vsel %vm881_vm1, %v2902_v0, %v965_v47  ;;  %v2237_v35 = vsel %vm881_vm1, %v965_v47, %v2904_v9  ;;  %v718_v26 = vmul.f32 %v1778_v32, %v2004_v55  ;;  %v2246_v4 = vmul.f32 %v1778_v32, %v2006_v56 }
  0xcc   : > { %2903 = vst [vmem:[#allocation18_spill] sm:$0xff] %v2232_v6  ;;  %v861_v63 = vmul.f32 %v1778_v32, %v2008_v57  ;;  %v937_v8 = vmul.f32 %v1778_v32, %v2000_v51  ;;  %v595_v0 = vrot.slane %v570_v43, 1  ;;  %v667_v47 = vrot.slane %v642_v3, 2 }
  0xcd   : > { %v2251_v38 = vmul.f32 %v1778_v32, %v2002_v52  ;;  %v2254_v1 = vmul.f32 %v1778_v32, %v2010_v59  ;;  %v537_v9 = vmul.f32 %v1778_v32, %v1996_v49  ;;  %v741_v11 = vrot.slane %v718_v26, 2 }
  0xce   : > { %v885_v7 = vrot.slane %v861_v63, 4  ;;  %v959_v29 = vrot.slane %v937_v8, 4  ;;  %v2907_v30 = vrot.slane %v2048_v16, 1  ;;  %v2908_v10 = vrot.slane %v2051_v17, 2 }
  0xcf   : > { %2905 = vst [vmem:[#allocation19_spill] sm:$0xff] %v2251_v38  ;;  %2906 = vst [vmem:[#allocation20_spill] sm:$0xff] %v2254_v1  ;;  %v2909_v33 = vrot.slane %v2054_v18, 2  ;;  %v2910_v26 = vrot.slane %v2060_v20, 4  ;;  %v2912_v17 = vrot.slane %v2063_v21, 4  ;;  %v641_v18 = vmul.f32 %v2147_v15, %v1998_v50  ;;  %v2285_v20 = vpop.permute.xlu1 %560 }
  0xd0   : > { %v598_v6 = vsel %vm589_vm3, %v595_v0, %v2907_v30  ;;  %v670_v43 = vsel %vm661_vm2, %v667_v47, %v2908_v10  ;;  %v569_v30 = vmul.f32 %v2147_v15, %v1994_v48  ;;  %v2289_v8 = vmul.f32 %v2147_v15, %v2006_v56 }
  0xd1   : > { %v624_v31 = vadd.f32 %v598_v6, %v537_v9  ;;  %v744_v32 = vsel %vm661_vm2, %v741_v11, %v2909_v33  ;;  %v2271_v63 = vsel %vm881_vm1, %v885_v7, %v2910_v26  ;;  %v2277_v10 = vsel %vm881_vm1, %v959_v29, %v2912_v17 }
  0xd2   : > { %2911 = vst [vmem:[#allocation21_spill] sm:$0xff] %v2271_v63  ;;  %2913 = vst [vmem:[#allocation22_spill] sm:$0xff] %v2277_v10  ;;  %v717_v33 = vmul.f32 %v2147_v15, %v2004_v55  ;;  %v860_v21 = vmul.f32 %v2147_v15, %v2008_v57  ;;  %v936_v9 = vmul.f32 %v2147_v15, %v2000_v51  ;;  %v593_v17 = vrot.slane %v569_v30, 1 }
  0xd3   : > { %v696_v6 = vadd.f32 %v670_v43, %v624_v31  ;;  %v536_v26 = vmul.f32 %v2147_v15, %v1996_v49  ;;  %v665_v16 = vrot.slane %v641_v18, 2  ;;  %v2302_v1 = vmul.f32 %v2147_v15, %v2002_v52 }
  0xd4   : > { %v739_v45 = vrot.slane %v717_v33, 2  ;;  %v883_v31 = vrot.slane %v860_v21, 4  ;;  %v958_v43 = vrot.slane %v936_v9, 4  ;;  %v2915_v38 = vrot.slane %v2112_v39, 1  ;;  %v1792_v39 = vpop.permute.xlu0 %1791 }
  0xd5   : > { %v2298_v3 = vadd.f32 %v2094_v34, %v696_v6  ;;  %v596_v63 = vsel %vm589_vm3, %v593_v17, %v595_v0  ;;  %v2916_v30 = vrot.slane %v2115_v40, 2  ;;  %v668_v21 = vsel %vm661_vm2, %v665_v16, %v667_v47 }
  0xd6   : > { %v594_v10 = vsel %vm589_vm3, %v2915_v38, %v593_v17  ;;  %v623_v6 = vadd.f32 %v596_v63, %v536_v26  ;;  %v2917_v9 = vrot.slane %v2118_v41, 2  ;;  %v742_v38 = vsel %vm661_vm2, %v739_v45, %v741_v11  ;;  %v930_v63 = vpop.permute.xlu1 %929 }
  0xd7   : > { %2914 = vst [vmem:[#allocation23_spill] sm:$0xff] %v2298_v3  ;;  %v666_v18 = vsel %vm661_vm2, %v2916_v30, %v665_v16  ;;  %v622_v33 = vadd.f32 %v594_v10, %v2121_v44  ;;  %v2918_v40 = vrot.slane %v2127_v46, 4  ;;  %v2327_v44 = vsel %vm881_vm1, %v883_v31, %v885_v7 }
  0xd8   : > { %v740_v3 = vsel %vm661_vm2, %v2917_v9, %v739_v45  ;;  %v695_v16 = vadd.f32 %v668_v21, %v623_v6  ;;  %v2330_v41 = vsel %vm881_vm1, %v958_v43, %v959_v29  ;;  %v2334_v45 = vmul.f32 %v2147_v15, %v2010_v59 }
  0xd9   : > { %v2319_v0 = vadd.f32 %v740_v3, %v2193_v12  ;;  %v2324_v17 = vsel %vm881_vm1, %v2918_v40, %v883_v31  ;;  %v694_v47 = vadd.f32 %v666_v18, %v622_v33  ;;  %v2339_v46 = vmul.f32 %v1994_v48, %v2285_v20 }
  0xda   : > { %v2343_v7 = vmul.f32 %v1998_v50, %v2285_v20  ;;  %v2345_v11 = vunpack.i.h.bf16 %v1792_v39  ;;  %v2349_v29 = vadd.f32 %v744_v32, %v695_v16  ;;  %v2351_v10 = vunpack.i.l.bf16 %v1792_v39 }
  0xdb   : > { %v2347_v3 = vadd.f32 %v742_v38, %v694_v47  ;;  %v2354_v15 = vmul.f32 %v2000_v51, %v930_v63  ;;  %v2359_v43 = vmul.f32 %v2002_v52, %v930_v63  ;;  %v2362_v30 = vmul.f32 %v2010_v59, %v930_v63 }
  0xdc   : > { %v2368_v33 = vmul.f32 %v2136_v37, %v1994_v48  ;;  %v2372_v6 = vmul.f32 %v2136_v37, %v1998_v50  ;;  %v2378_v39 = vmul.f32 %v2136_v37, %v1996_v49  ;;  %v2382_v38 = vmul.f32 %v2004_v55, %v2285_v20 }
  0xdd   : > { %2919 = vst [vmem:[#allocation24_spill] sm:$0xff] %v2362_v30  ;;  %v774_v47 = vadd.f32 %v2217_v62, %v2239_v58  ;;  %v2390_v16 = vmul.f32 %v2006_v56, %v2285_v20  ;;  %v2920_v9 = vrot.slane %v2022_v2, 3  ;;  %v2921_v26 = vrot.slane %v2057_v19, 3 }
  0xde   : > { %v603_v40 = vrot.slane %v2368_v33, 1  ;;  %v2882_v63 = vrot.slane %v2372_v6, 2  ;;  %v2922_v12 = vrot.slane %v2182_v14, 3  ;;  %v2880_v34 = vrot.slane %v2154_v60, 3 }
  0xdf   : > { %v2397_v21 = vsel %vm809_vm4, %v2921_v26, %v2920_v9  ;;  %v2923_v33 = vmov %v2920_v9  ;;  %v2407_v62 = vmul.f32 %v2136_v37, %v2008_v57  ;;  %v2924_v58 = vrot.slane %v2174_v28, 1 }
  0xe0   : > { %v820_v32 = vsel %vm809_vm4, %v2923_v33, %v2922_v12  ;;  %v2925_v26 = vrot.slane %v2177_v27, 2  ;;  %v2926_v37 = vrot.slane %v2182_v14, 3 }
  0xe1   : > { %v604_v18 = vsel %vm589_vm3, %v2924_v58, %v603_v40  ;;  %v845_v12 = vadd.f32 %v820_v32, %v2220_v23  ;;  %v2427_v58 = vmul.f32 %v2008_v57, %v2285_v20  ;;  %v2881_v27 = vrot.slane %v2407_v62, 4 }
  0xe2   : > { %v676_v9 = vsel %vm661_vm2, %v2925_v26, %v2882_v63  ;;  %v627_v33 = vadd.f32 %v604_v18, %v2169_v36  ;;  %v822_v28 = vsel %vm809_vm4, %v2926_v37, %v2880_v34  ;;  %v2433_v23 = vmul.f32 %v2000_v51, %v2285_v20 }
  0xe3   : > { %v846_v26 = vadd.f32 %v822_v28, %v774_v47  ;;  %v917_v2 = vadd.f32 %v2227_v22, %v845_v12  ;;  %v2437_v36 = vmul.f32 %v2002_v52, %v2285_v20  ;;  %v2927_v32 = vrot.slane %v2185_v54, 4  ;;  %v1147_v47 = vld [vmem:[#allocation2 + $0x20] sm:$0xff] }
  0xe4   : > { %v699_v14 = vadd.f32 %v676_v9, %v627_v33  ;;  %v2928_v34 = vrot.slane %v2031_v5, 5  ;;  %v2929_v9 = vrot.slane %v2068_v24, 5  ;;  %v2930_v18 = vrot.slane %v2191_v53, 5 }
  0xe5   : > { %v894_v37 = vsel %vm881_vm1, %v2927_v32, %v2881_v27  ;;  %v993_v28 = vadd.f32 %v2237_v35, %v917_v2  ;;  %v2472_v12 = vmul.f32 %v2010_v59, %v2285_v20  ;;  %v2935_v5 = vrot.slane %v2071_v25, 6 }
  0xe6   : > { %v2446_v22 = vadd.f32 %v894_v37, %v846_v26  ;;  %v2455_v33 = vsel %vm1029_vm5, %v2929_v9, %v2928_v34  ;;  %v2931_v54 = vmov %v2928_v34  ;;  %v2932_v26 = vrot.slane %v2158_v42, 5 }
  0xe7   : > { %v2462_v32 = vsel %vm1029_vm5, %v2931_v54, %v2930_v18  ;;  %v2933_v37 = vmov %v2930_v18  ;;  %v2934_v9 = vrot.slane %v2043_v13, 6  ;;  %v2937_v54 = vrot.slane %v2197_v61, 6 }
  0xe8   : > { %v1040_v35 = vsel %vm1029_vm5, %v2933_v37, %v2932_v26  ;;  %v2940_v37 = vld [vmem:[#allocation17_spill] sm:$0xff]  ;;  %v575_v13 = vmul.f32 %v2351_v10, %v1994_v48  ;;  %v647_v61 = vmul.f32 %v2351_v10, %v1998_v50 }
  0xe9   : > { %v1065_v34 = vadd.f32 %v1040_v35, %v993_v28  ;;  %v2479_v18 = vsel %vm1101_vm6, %v2935_v5, %v2934_v9  ;;  %v2938_v53 = vmov %v2934_v9  ;;  %v2941_v2 = vrot.slane %v2940_v37, 6  ;;  %v2493_v35 = vpop.permute.xlu0 %709 }
  0xea   : > { %2936 = vst [vmem:[#allocation25_spill] sm:$0xff] %v2479_v18  ;;  %v2486_v26 = vsel %vm1101_vm6, %v2938_v53, %v2937_v54  ;;  %v2942_v20 = vmov %v2937_v54  ;;  %v542_v9 = vmul.f32 %v2351_v10, %v1996_v49  ;;  %v543_v5 = vmul.f32 %v2345_v11, %v1996_v49 }
  0xeb   : > { %2939 = vst [vmem:[#allocation26_spill] sm:$0xff] %v2486_v26  ;;  %v1112_v28 = vsel %vm1101_vm6, %v2942_v20, %v2941_v2  ;;  %v576_v54 = vmul.f32 %v2345_v11, %v1994_v48  ;;  %v648_v2 = vmul.f32 %v2345_v11, %v1998_v50  ;;  %v723_v20 = vmul.f32 %v2351_v10, %v2004_v55 }
  0xec   : > { %v1137_v53 = vadd.f32 %v1112_v28, %v1065_v34  ;;  %v605_v27 = vrot.slane %v575_v13, 1  ;;  %v724_v49 = vmul.f32 %v2345_v11, %v2004_v55  ;;  %v726_v31 = vmul.f32 %v2004_v55, %v2493_v35 }
  0xed   : > { %v607_v63 = vrot.slane %v576_v54, 1  ;;  %v677_v48 = vrot.slane %v647_v61, 2  ;;  %v679_v34 = vrot.slane %v648_v2, 2  ;;  %v751_v28 = vrot.slane %v723_v20, 2 }
  0xee   : > { %v1157_v30 = vadd.f32 %v1147_v47, %v1137_v53  ;;  %v606_v37 = vsel %vm589_vm3, %v603_v40, %v605_v27  ;;  %v2943_v50 = vrot.slane %v2339_v46, 1  ;;  %v753_v13 = vrot.slane %v724_v49, 2 }
  0xef   : > { %v608_v26 = vsel %vm589_vm3, %v605_v27, %v607_v63  ;;  %v1117_v54 = vrot.slane %v2472_v12, 6  ;;  %v628_v25 = vadd.f32 %v606_v37, %v2378_v39  ;;  %v2944_v53 = vrot.slane %v2372_v6, 2 }
  0xf0   : > { %v610_v18 = vsel %vm589_vm3, %v607_v63, %v2943_v50  ;;  %1168 = vst.msk [vmem:[#allocation2 + $0x20] sm:$0xff] %vm1163_vm7, %v1157_v30  ;;  %v629_v55 = vadd.f32 %v608_v26, %v542_v9  ;;  %v680_v40 = vsel %vm661_vm2, %v677_v48, %v679_v34  ;;  %v2945_v27 = vrot.slane %v2343_v7, 2  ;;  %v2946_v63 = vld [vmem:[#allocation15_spill] sm:$0xff] }
  0xf1   : > { %v630_v47 = vadd.f32 %v610_v18, %v543_v5  ;;  %v678_v61 = vsel %vm661_vm2, %v2944_v53, %v677_v48  ;;  %v2947_v2 = vrot.slane %v2946_v63, 2  ;;  %v754_v39 = vsel %vm661_vm2, %v751_v28, %v753_v13 }
  0xf2   : > { %v682_v46 = vsel %vm661_vm2, %v679_v34, %v2945_v27  ;;  %v700_v49 = vadd.f32 %v678_v61, %v628_v25  ;;  %v701_v30 = vadd.f32 %v680_v40, %v629_v55  ;;  %v2948_v18 = vrot.slane %v2382_v38, 2 }
  0xf3   : > { %v752_v20 = vsel %vm661_vm2, %v2947_v2, %v751_v28  ;;  %v702_v50 = vadd.f32 %v682_v46, %v630_v47  ;;  %v757_v26 = vrot.slane %v726_v31, 2  ;;  %v794_v37 = vmul.f32 %v2351_v10, %v2006_v56 }
  0xf4   : > { %v756_v6 = vsel %vm661_vm2, %v753_v13, %v2948_v18  ;;  %v795_v7 = vmul.f32 %v2345_v11, %v2006_v56  ;;  %v775_v9 = vadd.f32 %v752_v20, %v699_v14  ;;  %v776_v5 = vadd.f32 %v754_v39, %v700_v49  ;;  %v2951_v13 = vld [vmem:[#allocation14_spill] sm:$0xff] }
  0xf5   : > { %v777_v48 = vadd.f32 %v756_v6, %v701_v30  ;;  %v797_v25 = vmul.f32 %v2006_v56, %v2493_v35  ;;  %v2949_v34 = vmov %v2948_v18  ;;  %v2950_v55 = vrot.slane %v2289_v8, 3 }
  0xf6   : > { %v758_v28 = vsel %vm661_vm2, %v2949_v34, %v757_v26  ;;  %v2952_v31 = vrot.slane %v2951_v13, 3  ;;  %v2953_v53 = vrot.slane %v2246_v4, 3  ;;  %v823_v40 = vrot.slane %v794_v37, 3  ;;  %v2961_v13 = vld [vmem:[#allocation21_spill] sm:$0xff] }
  0xf7   : > { %v2954_v61 = vmov %v2950_v55  ;;  %v2955_v27 = vrot.slane %v2057_v19, 3  ;;  %v825_v46 = vrot.slane %v795_v7, 3  ;;  %v829_v63 = vrot.slane %v797_v25, 3 }
  0xf8   : > { %v812_v47 = vsel %vm809_vm4, %v2952_v31, %v2950_v55  ;;  %v814_v14 = vsel %vm809_vm4, %v2954_v61, %v2953_v53  ;;  %v2956_v56 = vmov %v2953_v53  ;;  %v778_v20 = vadd.f32 %v758_v28, %v702_v50 }
  0xf9   : > { %v816_v38 = vsel %vm809_vm4, %v2956_v56, %v2955_v27  ;;  %v841_v2 = vadd.f32 %v812_v47, %v2319_v0  ;;  %v2957_v49 = vrot.slane %v2154_v60, 3  ;;  %v842_v8 = vadd.f32 %v814_v14, %v2347_v3  ;;  %v2960_v0 = vld [vmem:[#allocation23_spill] sm:$0xff] }
  0xfa   : > { %v843_v39 = vadd.f32 %v816_v38, %v2349_v29  ;;  %v826_v18 = vsel %vm809_vm4, %v823_v40, %v825_v46  ;;  %v2958_v19 = vrot.slane %v2390_v16, 3  ;;  %v844_v50 = vadd.f32 %v2397_v21, %v2960_v0 }
  0xfb   : > { %v824_v30 = vsel %vm809_vm4, %v2957_v49, %v823_v40  ;;  %v848_v37 = vadd.f32 %v826_v18, %v776_v5  ;;  %v866_v3 = vmul.f32 %v2351_v10, %v2008_v57  ;;  %v867_v29 = vmul.f32 %v2345_v11, %v2008_v57 }
  0xfc   : > { %v828_v4 = vsel %vm809_vm4, %v825_v46, %v2958_v19  ;;  %v2959_v6 = vmov %v2958_v19  ;;  %v847_v60 = vadd.f32 %v824_v30, %v775_v9  ;;  %v869_v25 = vmul.f32 %v2008_v57, %v2493_v35  ;;  %v2967_v30 = vld [vmem:[#allocation16_spill] sm:$0xff]  ;;  %v2969_v19 = vld [vmem:[#allocation13_spill] sm:$0xff] }
  0xfd   : > { %v830_v26 = vsel %vm809_vm4, %v2959_v6, %v829_v63  ;;  %v849_v7 = vadd.f32 %v828_v4, %v777_v48  ;;  %v913_v34 = vadd.f32 %v2324_v17, %v841_v2  ;;  %v914_v16 = vadd.f32 %v2327_v44, %v842_v8  ;;  %v2963_v44 = vld [vmem:[#allocation12_spill] sm:$0xff]  ;;  %v2970_v6 = vld [vmem:[#allocation18_spill] sm:$0xff] }
  0xfe   : > { %v850_v28 = vadd.f32 %v830_v26, %v778_v20  ;;  %v895_v55 = vrot.slane %v866_v3, 4  ;;  %v915_v21 = vadd.f32 %v2961_v13, %v843_v39  ;;  %v942_v9 = vmul.f32 %v2351_v10, %v2000_v51 }
  0xff   : > { %v897_v5 = vrot.slane %v867_v29, 4  ;;  %v901_v48 = vrot.slane %v869_v25, 4  ;;  %v943_v31 = vmul.f32 %v2345_v11, %v2000_v51  ;;  %v945_v47 = vmul.f32 %v2000_v51, %v2493_v35  ;;  %v2966_v51 = vld [vmem:[#allocation22_spill] sm:$0xff] }
 0x100   : > { %v2962_v57 = vrot.slane %v2407_v62, 4  ;;  %v916_v53 = vadd.f32 %v2963_v44, %v844_v50  ;;  %v969_v61 = vrot.slane %v942_v9, 4  ;;  %v989_v14 = vadd.f32 %v2330_v41, %v913_v34 }
 0x101   : > { %v898_v40 = vsel %vm881_vm1, %v895_v55, %v897_v5  ;;  %v2964_v27 = vrot.slane %v2427_v58, 4  ;;  %v990_v63 = vadd.f32 %v2966_v51, %v914_v16  ;;  %v2968_v8 = vrot.slane %v2967_v30, 4  ;;  %v1144_v30 = vld [vmem:[#allocation2 + $0x8] sm:$0xff] }
 0x102   : > { %v896_v17 = vsel %vm881_vm1, %v2962_v57, %v895_v55  ;;  %v920_v2 = vadd.f32 %v898_v40, %v848_v37  ;;  %v971_v39 = vrot.slane %v943_v31, 4  ;;  %v975_v18 = vrot.slane %v945_v47, 4 }
 0x103   : > { %v900_v56 = vsel %vm881_vm1, %v897_v5, %v2964_v27  ;;  %v2965_v38 = vmov %v2964_v27  ;;  %v919_v62 = vadd.f32 %v896_v17, %v847_v60  ;;  %v970_v41 = vsel %vm881_vm1, %v2968_v8, %v969_v61  ;;  %v2983_v8 = vld [vmem:[#allocation20_spill] sm:$0xff] }
 0x104   : > { %v902_v46 = vsel %vm881_vm1, %v2965_v38, %v901_v48  ;;  %v921_v20 = vadd.f32 %v900_v56, %v849_v7  ;;  %v991_v4 = vadd.f32 %v2969_v19, %v915_v21  ;;  %v992_v26 = vadd.f32 %v2970_v6, %v916_v53 }
 0x105   : > { %v922_v49 = vadd.f32 %v902_v46, %v850_v28  ;;  %v1013_v58 = vmul.f32 %v2351_v10, %v2002_v52  ;;  %v1014_v0 = vmul.f32 %v2345_v11, %v2002_v52  ;;  %v1016_v50 = vmul.f32 %v2002_v52, %v2493_v35  ;;  %v2974_v52 = vld [vmem:[#allocation19_spill] sm:$0xff] }
 0x106   : > { %v972_v60 = vsel %vm881_vm1, %v969_v61, %v971_v39  ;;  %v2971_v37 = vrot.slane %v2433_v23, 4  ;;  %v994_v25 = vadd.f32 %v970_v41, %v2446_v22  ;;  %v2973_v34 = vrot.slane %v2354_v15, 4 }
 0x107   : > { %v995_v28 = vadd.f32 %v972_v60, %v919_v62  ;;  %v2975_v21 = vrot.slane %v2974_v52, 5  ;;  %v2976_v9 = vrot.slane %v2302_v1, 5  ;;  %v2977_v48 = vrot.slane %v2068_v24, 5  ;;  %v1151_v52 = vld [vmem:[#allocation2 + $0x40] sm:$0xff] }
 0x108   : > { %v974_v7 = vsel %vm881_vm1, %v971_v39, %v2971_v37  ;;  %v2972_v3 = vmov %v2971_v37  ;;  %v978_v16 = vsel %vm881_vm1, %v975_v18, %v2973_v34  ;;  %v1041_v22 = vrot.slane %v1013_v58, 5 }
 0x109   : > { %v976_v29 = vsel %vm881_vm1, %v2972_v3, %v975_v18  ;;  %v996_v55 = vadd.f32 %v974_v7, %v920_v2  ;;  %v1032_v5 = vsel %vm1029_vm5, %v2976_v9, %v2975_v21  ;;  %v2978_v23 = vmov %v2975_v21  ;;  %v2986_v18 = vld [vmem:[#allocation11_spill] sm:$0xff]  ;;  %v1146_v7 = vld [vmem:[#allocation2 + $0x18] sm:$0xff]  ;;  %v2991_v3 = vld [vmem:[#allocation17_spill] sm:$0xff] }
 0x10a   : > { %v997_v13 = vadd.f32 %v976_v29, %v921_v20  ;;  %v1034_v31 = vsel %vm1029_vm5, %v2978_v23, %v2977_v48  ;;  %v1043_v47 = vrot.slane %v1014_v0, 5  ;;  %v998_v15 = vadd.f32 %v978_v16, %v922_v49  ;;  %v1143_v49 = vld [vmem:[#allocation2] sm:$0xff]  ;;  %v2993_v48 = vld [vmem:[#allocation24_spill] sm:$0xff] }
 0x10b   : > { %v1047_v57 = vrot.slane %v1016_v50, 5  ;;  %v1061_v17 = vadd.f32 %v1032_v5, %v989_v14  ;;  %v1062_v44 = vadd.f32 %v1034_v31, %v990_v63  ;;  %v2979_v53 = vrot.slane %v2158_v42, 5  ;;  %v2989_v0 = vld [vmem:[#allocation25_spill] sm:$0xff] }
 0x10c   : > { %v1044_v1 = vsel %vm1029_vm5, %v1041_v22, %v1043_v47  ;;  %v2980_v40 = vrot.slane %v2437_v36, 5  ;;  %v1063_v27 = vadd.f32 %v2455_v33, %v991_v4  ;;  %v2982_v46 = vrot.slane %v2359_v43, 5  ;;  %v1145_v33 = vld [vmem:[#allocation2 + $0x10] sm:$0xff] }
 0x10d   : > { %v1042_v61 = vsel %vm1029_vm5, %v2979_v53, %v1041_v22  ;;  %v1064_v42 = vadd.f32 %v2462_v32, %v992_v26  ;;  %v1067_v63 = vadd.f32 %v1044_v1, %v995_v28  ;;  %v1085_v20 = vmul.f32 %v2351_v10, %v2010_v59  ;;  %v1152_v22 = vld [vmem:[#allocation2 + $0x48] sm:$0xff] }
 0x10e   : > { %v1046_v24 = vsel %vm1029_vm5, %v1043_v47, %v2980_v40  ;;  %v2981_v56 = vmov %v2980_v40  ;;  %v1050_v14 = vsel %vm1029_vm5, %v1047_v57, %v2982_v46  ;;  %v1066_v51 = vadd.f32 %v1042_v61, %v994_v25 }
 0x10f   : > { %v1048_v38 = vsel %vm1029_vm5, %v2981_v56, %v1047_v57  ;;  %v1068_v62 = vadd.f32 %v1046_v24, %v996_v55  ;;  %v1086_v36 = vmul.f32 %v2345_v11, %v2010_v59  ;;  %v1088_v43 = vmul.f32 %v2010_v59, %v2493_v35  ;;  %v2990_v35 = vld [vmem:[#allocation26_spill] sm:$0xff]  ;;  %v1149_v55 = vld [vmem:[#allocation2 + $0x30] sm:$0xff] }
 0x110   : > { %v1069_v2 = vadd.f32 %v1048_v38, %v997_v13  ;;  %v2984_v41 = vrot.slane %v2983_v8, 6  ;;  %v2985_v32 = vrot.slane %v2334_v45, 6  ;;  %v2987_v19 = vrot.slane %v2986_v18, 6  ;;  %v1148_v45 = vld [vmem:[#allocation2 + $0x28] sm:$0xff]  ;;  %v1150_v13 = vld [vmem:[#allocation2 + $0x38] sm:$0xff] }
 0x111   : > { %v1113_v6 = vrot.slane %v1085_v20, 6  ;;  %v1135_v11 = vadd.f32 %v2989_v0, %v1063_v27  ;;  %v1070_v50 = vadd.f32 %v1050_v14, %v998_v15  ;;  %v1115_v60 = vrot.slane %v1086_v36, 6 }
 0x112   : > { %v1104_v39 = vsel %vm1101_vm6, %v2985_v32, %v2984_v41  ;;  %v2988_v4 = vmov %v2984_v41  ;;  %v1119_v59 = vrot.slane %v1088_v43, 6  ;;  %v1136_v37 = vadd.f32 %v2990_v35, %v1064_v42 }
 0x113   : > { %v1106_v10 = vsel %vm1101_vm6, %v2988_v4, %v2987_v19  ;;  %v1133_v26 = vadd.f32 %v1104_v39, %v1061_v17  ;;  %v2992_v29 = vrot.slane %v2991_v3, 6  ;;  %v1155_v28 = vadd.f32 %v1145_v33, %v1135_v11 }
 0x114   : > { %v1134_v58 = vadd.f32 %v1106_v10, %v1062_v44  ;;  %v1116_v21 = vsel %vm1101_vm6, %v1113_v6, %v1115_v60  ;;  %v1118_v9 = vsel %vm1101_vm6, %v1115_v60, %v1117_v54  ;;  %v1120_v5 = vsel %vm1101_vm6, %v1117_v54, %v1119_v59 }
 0x115   : > { %v1114_v25 = vsel %vm1101_vm6, %v2992_v29, %v1113_v6  ;;  %v1153_v34 = vadd.f32 %v1143_v49, %v1133_v26  ;;  %v2994_v23 = vrot.slane %v2993_v48, 6  ;;  %v1139_v15 = vadd.f32 %v1116_v21, %v1067_v63  ;;  %1166 = vst.msk [vmem:[#allocation2 + $0x10] sm:$0xff] %vm1163_vm7, %v1155_v28 }
 0x116   : > { %v1154_v16 = vadd.f32 %v1144_v30, %v1134_v58  ;;  %v1138_v47 = vadd.f32 %v1114_v25, %v1066_v51  ;;  %v1140_v57 = vadd.f32 %v1118_v9, %v1068_v62  ;;  %v1141_v17 = vadd.f32 %v1120_v5, %v1069_v2 }
 0x117   : > { %v1122_v31 = vsel %vm1101_vm6, %v1119_v59, %v2994_v23  ;;  %1164 = vst.msk [vmem:[#allocation2] sm:$0xff] %vm1163_vm7, %v1153_v34  ;;  %v1156_v53 = vadd.f32 %v1146_v7, %v1136_v37  ;;  %v1159_v61 = vadd.f32 %v1149_v55, %v1139_v15 }
 0x118   : > { %1165 = vst.msk [vmem:[#allocation2 + $0x8] sm:$0xff] %vm1163_vm7, %v1154_v16  ;;  %v1142_v44 = vadd.f32 %v1122_v31, %v1070_v50  ;;  %v1158_v12 = vadd.f32 %v1148_v45, %v1138_v47  ;;  %v1160_v54 = vadd.f32 %v1150_v13, %v1140_v57  ;;  %v1161_v1 = vadd.f32 %v1151_v52, %v1141_v17 }
 0x119   : > { %1167 = vst.msk [vmem:[#allocation2 + $0x18] sm:$0xff] %vm1163_vm7, %v1156_v53  ;;  %1170 = vst.msk [vmem:[#allocation2 + $0x30] sm:$0xff] %vm1163_vm7, %v1159_v61 }
 0x11a   : > { %v1162_v40 = vadd.f32 %v1152_v22, %v1142_v44  ;;  %1169 = vst.msk [vmem:[#allocation2 + $0x28] sm:$0xff] %vm1163_vm7, %v1158_v12  ;;  %1171 = vst.msk [vmem:[#allocation2 + $0x38] sm:$0xff] %vm1163_vm7, %v1160_v54 }
 0x11b   : > { %1172 = vst.msk [vmem:[#allocation2 + $0x40] sm:$0xff] %vm1163_vm7, %v1161_v1 }
 0x11c   : > { %1173 = vst.msk [vmem:[#allocation2 + $0x48] sm:$0xff] %vm1163_vm7, %v1162_v40 }
 0x11d PF: > { %p1652_p13 = scmp.ne.s32.totalorder %s1827_s30, 2 }
 0x11e   : > { %v1180_v24 = vld [vmem:[%s2851_s6 + $0x10] sm:$0xff] (!%p1652_p13)  ;;  %v1178_v27 = vld [vmem:[%s2851_s6] sm:$0xff] (!%p1652_p13)  ;;  %v1855_v56 = vmov (!%p1652_p13), 0   ;;  %v1181_v38 = vld [vmem:[%s2851_s6 + $0x18] sm:$0xff] (!%p1652_p13)  ;;  %vm1400_vm8 = vcmask (!%p1652_p13), 257024   ;;  %vm1275_vm9 = vcmask (!%p1652_p13), 261120  }
 0x11f   : > { %1177 = sbr.rel (%p1652_p13) target bundleno = 493 (0x1ed), region = 60  ;;  %1796 = vset.pattern.permute.xlu1 (!%p1652_p13), %v1855_v56  ;;  %1795 = vset.pattern.permute.xlu0 (!%p1652_p13), %v1855_v56  ;;  %v1179_v46 = vld [vmem:[%s2851_s6 + $0x8] sm:$0xff] (!%p1652_p13)  ;;  %v1182_v42 = vld [vmem:[%s2851_s6 + $0x20] sm:$0xff] (!%p1652_p13)  ;;  %v1185_v51 = vld [vmem:[%s2851_s6 + $0x38] sm:$0xff] (!%p1652_p13) }
 0x120   : > { %1227 = vperm.xlu1 (!%p1652_p13), %1796, %v1180_v24   ;;  %1217 = vperm.xlu0 (!%p1652_p13), %1795, %v1178_v27   ;;  %v1183_v14 = vld [vmem:[%s2851_s6 + $0x28] sm:$0xff] (!%p1652_p13)  ;;  %v1184_v63 = vld [vmem:[%s2851_s6 + $0x30] sm:$0xff] (!%p1652_p13)  ;;  %v1186_v2 = vld [vmem:[%s2851_s6 + $0x40] sm:$0xff] (!%p1652_p13) }
 0x121   : > { %v1187_v62 = vld [vmem:[%s2851_s6 + $0x48] sm:$0xff] (!%p1652_p13)  ;;  %v1190_v20 = vld [vmem:[#allocation2 + $0x10] sm:$0xff] (!%p1652_p13)  ;;  %v1653_v49 = vld [vmem:[%s2848_s2] ss:$0 sm:$0xff] (!%p1652_p13) }
 0x122   : > { %v1188_v30 = vld [vmem:[#allocation2] sm:$0xff] (!%p1652_p13)  ;;  %v1207_v33 = vadd.f32 (!%p1652_p13), %v1653_v49, %v1190_v20  ;;  %v1191_v43 = vld [vmem:[#allocation2 + $0x18] sm:$0xff] (!%p1652_p13)  ;;  %v1189_v8 = vld [vmem:[#allocation2 + $0x8] sm:$0xff] (!%p1652_p13) }
 0x123   : > { %v1205_v36 = vadd.f32 (!%p1652_p13), %v1653_v49, %v1188_v30  ;;  %v1208_v19 = vadd.f32 (!%p1652_p13), %v1653_v49, %v1191_v43  ;;  %v1206_v4 = vadd.f32 (!%p1652_p13), %v1653_v49, %v1189_v8  ;;  %v1193_v10 = vld [vmem:[#allocation2 + $0x28] sm:$0xff] (!%p1652_p13)  ;;  %v1192_v6 = vld [vmem:[#allocation2 + $0x20] sm:$0xff] (!%p1652_p13)  ;;  %v1195_v37 = vld [vmem:[#allocation2 + $0x38] sm:$0xff] (!%p1652_p13) }
 0x124   : > { %1232 = vperm.xlu1 (!%p1652_p13), %1796, %v1181_v38   ;;  %1222 = vperm.xlu0 (!%p1652_p13), %1795, %v1179_v46   ;;  %v1210_v59 = vadd.f32 (!%p1652_p13), %v1653_v49, %v1193_v10  ;;  %v1209_v35 = vadd.f32 (!%p1652_p13), %v1653_v49, %v1192_v6  ;;  %v1194_v7 = vld [vmem:[#allocation2 + $0x30] sm:$0xff] (!%p1652_p13)  ;;  %v1212_v55 = vadd.f32 (!%p1652_p13), %v1653_v49, %v1195_v37  ;;  %v1197_v5 = vld [vmem:[#allocation2 + $0x48] sm:$0xff] (!%p1652_p13)  ;;  %v1196_v23 = vld [vmem:[#allocation2 + $0x40] sm:$0xff] (!%p1652_p13) }
 0x125   : > { %v1211_v9 = vadd.f32 (!%p1652_p13), %v1653_v49, %v1194_v7  ;;  %v1214_v44 = vadd.f32 (!%p1652_p13), %v1653_v49, %v1197_v5  ;;  %v1213_v54 = vadd.f32 (!%p1652_p13), %v1653_v49, %v1196_v23 }
 0x128   : > { %1242 = vperm.xlu1 %1796, %v1183_v14   ;;  %1237 = vperm.xlu0 %1795, %v1182_v42  }
 0x12c   : > { %1252 = vperm.xlu1 %1796, %v1185_v51   ;;  %1247 = vperm.xlu0 %1795, %v1184_v63  }
 0x130   : > { %1262 = vperm.xlu1 %1796, %v1187_v62   ;;  %1257 = vperm.xlu0 %1795, %v1186_v2  }
 0x19f   : > { %v2723_v41 = vpop.permute.xlu1 %1227  ;;  %v2725_v32 = vpop.permute.xlu0 %1217 }
 0x1a0   : > { %v2728_v39 = vmul.f32 %v2723_v41, %v1207_v33  ;;  %v2731_v18 = vmul.f32 %v2725_v32, %v1205_v36 }
 0x1a2   : > { %v1668_v26 = vpack.c.bf16 %v2728_v39, %v2728_v39  ;;  %v1666_v58 = vpack.c.bf16 %v2731_v18, %v2731_v18  ;;  %v1276_v45 = vsel %vm1275_vm9, %v2731_v18, 0.0  ;;  %v1279_v13 = vsel %vm1275_vm9, %v2728_v39, 0.0 }
 0x1a3   : > { %v2737_v0 = vpop.permute.xlu1 %1232  ;;  %v2739_v11 = vpop.permute.xlu0 %1222 }
 0x1a4   : > { %1403 = vst.msk [vmem:[%s1973_s5 + $0x8] sm:$0xf] %vm1400_vm8, %v1668_v26  ;;  %1401 = vst.msk [vmem:[%s1973_s5] sm:$0xf] %vm1400_vm8, %v1666_v58  ;;  %v2746_v50 = vmul.f32 %v2737_v0, %v1208_v19  ;;  %v2749_v60 = vmul.f32 %v2739_v11, %v1206_v4 }
 0x1a6   : > { %v1669_v3 = vpack.c.bf16 %v2746_v50, %v2746_v50  ;;  %v1277_v29 = vsel %vm1275_vm9, %v2749_v60, 0.0  ;;  %v1667_v25 = vpack.c.bf16 %v2749_v60, %v2749_v60  ;;  %v1281_v31 = vsel %vm1275_vm9, %v2746_v50, 0.0 }
 0x1a7   : > { %v1278_v34 = vadd.f32 %v1277_v29, %v1276_v45  ;;  %v2759_v16 = vpop.permute.xlu1 %1242  ;;  %v2761_v28 = vpop.permute.xlu0 %1237 }
 0x1a8   : > { %1404 = vst.msk [vmem:[%s1973_s5 + $0xc] sm:$0xf] %vm1400_vm8, %v1669_v3  ;;  %1402 = vst.msk [vmem:[%s1973_s5 + $0x4] sm:$0xf] %vm1400_vm8, %v1667_v25  ;;  %v2770_v52 = vmul.f32 %v2759_v16, %v1210_v59  ;;  %v1269_v21 = vmul.f32 %v2761_v28, %v1209_v35 }
 0x1a9   : > { %v1280_v48 = vadd.f32 %v1279_v13, %v1278_v34 }
 0x1aa   : > { %v1671_v22 = vpack.c.bf16 %v2770_v52, %v2770_v52  ;;  %v1670_v47 = vpack.c.bf16 %v1269_v21, %v1269_v21  ;;  %v1283_v53 = vsel %vm1275_vm9, %v1269_v21, 0.0  ;;  %v1285_v40 = vsel %vm1275_vm9, %v2770_v52, 0.0 }
 0x1ab   : > { %v1282_v15 = vadd.f32 %v1281_v31, %v1280_v48  ;;  %v2777_v57 = vpop.permute.xlu1 %1252  ;;  %v1248_v17 = vpop.permute.xlu0 %1247 }
 0x1ac   : > { %1406 = vst.msk [vmem:[%s1973_s5 + $0x14] sm:$0xf] %vm1400_vm8, %v1671_v22  ;;  %1405 = vst.msk [vmem:[%s1973_s5 + $0x10] sm:$0xf] %vm1400_vm8, %v1670_v47  ;;  %v1272_v12 = vmul.f32 %v2777_v57, %v1212_v55  ;;  %v1271_v61 = vmul.f32 %v1248_v17, %v1211_v9 }
 0x1ad   : > { %v1284_v1 = vadd.f32 %v1283_v53, %v1282_v15 }
 0x1ae   : > { %v1673_v24 = vpack.c.bf16 %v1272_v12, %v1272_v12  ;;  %v1672_v27 = vpack.c.bf16 %v1271_v61, %v1271_v61  ;;  %v1287_v14 = vsel %vm1275_vm9, %v1271_v61, 0.0  ;;  %v1289_v62 = vsel %vm1275_vm9, %v1272_v12, 0.0 }
 0x1af   : > { %v1286_v56 = vadd.f32 %v1285_v40, %v1284_v1  ;;  %v1263_v38 = vpop.permute.xlu1 %1262  ;;  %v1258_v46 = vpop.permute.xlu0 %1257 }
 0x1b0   : > { %1408 = vst.msk [vmem:[%s1973_s5 + $0x1c] sm:$0xf] %vm1400_vm8, %v1673_v24  ;;  %1407 = vst.msk [vmem:[%s1973_s5 + $0x18] sm:$0xf] %vm1400_vm8, %v1672_v27  ;;  %v1274_v42 = vmul.f32 %v1263_v38, %v1214_v44  ;;  %v1273_v51 = vmul.f32 %v1258_v46, %v1213_v54 }
 0x1b1   : > { %v1288_v63 = vadd.f32 %v1287_v14, %v1286_v56 }
 0x1b2   : > { %v1675_v2 = vpack.c.bf16 %v1274_v42, %v1274_v42  ;;  %v1674_v20 = vpack.c.bf16 %v1273_v51, %v1273_v51  ;;  %v1291_v30 = vsel %vm1275_vm9, %v1273_v51, 0.0  ;;  %v1293_v36 = vsel %vm1275_vm9, %v1274_v42, 0.0 }
 0x1b3   : > { %v1290_v49 = vadd.f32 %v1289_v62, %v1288_v63 }
 0x1b4   : > { %1410 = vst.msk [vmem:[%s1973_s5 + $0x24] sm:$0xf] %vm1400_vm8, %v1675_v2  ;;  %1409 = vst.msk [vmem:[%s1973_s5 + $0x20] sm:$0xf] %vm1400_vm8, %v1674_v20 }
 0x1b5   : > { %v1292_v33 = vadd.f32 %v1291_v30, %v1290_v49 }
 0x1b7   : > { %v1294_v43 = vadd.f32 %v1293_v36, %v1292_v33 }
 0x1b9   : > { %v1295_v8 = vrot.slane %v1294_v43, 4 }
 0x1bb   : > { %v1296_v19 = vadd.f32 %v1295_v8, %v1294_v43 }
 0x1bd   : > { %v1297_v4 = vrot.slane %v1296_v19, 2 }
 0x1bf   : > { %v1298_v10 = vadd.f32 %v1297_v4, %v1296_v19 }
 0x1c1   : > { %v1299_v6 = vrot.slane %v1298_v10, 1 }
 0x1c3   : > { %v1300_v26 = vadd.f32 %v1299_v6, %v1298_v10 }
 0x1c5   : > { %v1302_v58 = vmul.f32 0.015625, %v1300_v26  ;;  %1358 = vst.msk [vmem:[%s1968_s11] sm:$0xff] %vm1275_vm9, %v1300_v26 }
 0x1c7   : > { %v1303_v59 = vsub.f32 %v2731_v18, %v1302_v58  ;;  %v1304_v35 = vsub.f32 %v2749_v60, %v1302_v58  ;;  %v1305_v37 = vsub.f32 %v2728_v39, %v1302_v58  ;;  %v1306_v7 = vsub.f32 %v2746_v50, %v1302_v58 }
 0x1c8   : > { %v1307_v45 = vsub.f32 %v1269_v21, %v1302_v58  ;;  %v1308_v25 = vsub.f32 %v2770_v52, %v1302_v58  ;;  %v1309_v13 = vsub.f32 %v1271_v61, %v1302_v58  ;;  %v1310_v39 = vsub.f32 %v1272_v12, %v1302_v58 }
 0x1c9   : > { %v1313_v3 = vmul.f32 %v1303_v59, %v2725_v32  ;;  %v1314_v29 = vmul.f32 %v1304_v35, %v2739_v11  ;;  %v1315_v34 = vmul.f32 %v1305_v37, %v2723_v41  ;;  %v1316_v55 = vmul.f32 %v1306_v7, %v2737_v0 }
 0x1ca   : > { %v1317_v18 = vmul.f32 %v1307_v45, %v2761_v28  ;;  %v1318_v50 = vmul.f32 %v1308_v25, %v2759_v16  ;;  %v1311_v52 = vsub.f32 %v1273_v51, %v1302_v58  ;;  %v1319_v23 = vmul.f32 %v1309_v13, %v1248_v17 }
 0x1cb   : > { %v1323_v9 = vmul.f32 %v1313_v3, %v1313_v3  ;;  %v1324_v60 = vmul.f32 %v1314_v29, %v1314_v29  ;;  %v1325_v5 = vmul.f32 %v1315_v34, %v1315_v34  ;;  %v1326_v21 = vmul.f32 %v1316_v55, %v1316_v55 }
 0x1cc   : > { %v1327_v41 = vmul.f32 %v1317_v18, %v1317_v18  ;;  %v1312_v22 = vsub.f32 %v1274_v42, %v1302_v58  ;;  %v1320_v28 = vmul.f32 %v1310_v39, %v2777_v57  ;;  %v1328_v47 = vmul.f32 %v1318_v50, %v1318_v50 }
 0x1cd   : > { %v1333_v32 = vsel %vm1275_vm9, %v1323_v9, 0.0  ;;  %v1334_v11 = vsel %vm1275_vm9, %v1324_v60, 0.0  ;;  %v1336_v0 = vsel %vm1275_vm9, %v1325_v5, 0.0  ;;  %v1338_v15 = vsel %vm1275_vm9, %v1326_v21, 0.0 }
 0x1ce   : > { %v1335_v48 = vadd.f32 %v1334_v11, %v1333_v32  ;;  %v1321_v16 = vmul.f32 %v1311_v52, %v1258_v46  ;;  %v1329_v53 = vmul.f32 %v1319_v23, %v1319_v23  ;;  %v1340_v12 = vsel %vm1275_vm9, %v1327_v41, 0.0 }
 0x1cf   : > { %v1322_v54 = vmul.f32 %v1312_v22, %v1263_v38  ;;  %v1330_v1 = vmul.f32 %v1320_v28, %v1320_v28  ;;  %v1342_v17 = vsel %vm1275_vm9, %v1328_v47, 0.0 }
 0x1d0   : > { %v1337_v31 = vadd.f32 %v1336_v0, %v1335_v48  ;;  %v1331_v24 = vmul.f32 %v1321_v16, %v1321_v16  ;;  %v1344_v27 = vsel %vm1275_vm9, %v1329_v53, 0.0 }
 0x1d1   : > { %v1332_v57 = vmul.f32 %v1322_v54, %v1322_v54  ;;  %v1346_v14 = vsel %vm1275_vm9, %v1330_v1, 0.0 }
 0x1d2   : > { %v1339_v44 = vadd.f32 %v1338_v15, %v1337_v31  ;;  %v1348_v46 = vsel %vm1275_vm9, %v1331_v24, 0.0 }
 0x1d3   : > { %v1350_v63 = vsel %vm1275_vm9, %v1332_v57, 0.0 }
 0x1d4   : > { %v1341_v61 = vadd.f32 %v1340_v12, %v1339_v44 }
 0x1d6   : > { %v1343_v40 = vadd.f32 %v1342_v17, %v1341_v61 }
 0x1d8   : > { %v1345_v56 = vadd.f32 %v1344_v27, %v1343_v40 }
 0x1da   : > { %v1347_v42 = vadd.f32 %v1346_v14, %v1345_v56 }
 0x1dc   : > { %v1349_v51 = vadd.f32 %v1348_v46, %v1347_v42 }
 0x1de   : > { %v1351_v62 = vadd.f32 %v1350_v63, %v1349_v51 }
 0x1e0   : > { %v1352_v38 = vrot.slane %v1351_v62, 4 }
 0x1e2   : > { %v1353_v2 = vadd.f32 %v1352_v38, %v1351_v62 }
 0x1e4   : > { %v1354_v20 = vrot.slane %v1353_v2, 2 }
 0x1e6   : > { %v1355_v49 = vadd.f32 %v1354_v20, %v1353_v2 }
 0x1e8   : > { %v1356_v30 = vrot.slane %v1355_v49, 1 }
 0x1ea   : > { %v1357_v33 = vadd.f32 %v1356_v30, %v1355_v49 }
 0x1ec   : > { %1359 = vst.msk [vmem:[%s1978_s21] sm:$0xff] %vm1275_vm9, %v1357_v33 }
 0x1ed PF: > { %s24_s13 = sadd.s32 1, %s1851_s13   ;;  %s2995_s30 = sld [smem:[#allocation5_spill]] }
 0x1ee   : > { %p21_p0 = scmp.ge.s32.totalorder %s24_s13, 50   ;;  %s2996_s3 = sld [smem:[#allocation6_spill]] }
 0x1ef   : > { %s2997_s5 = sld [smem:[#allocation7_spill]]  ;;  %s2998_s10 = sld [smem:[#allocation8_spill]] }
 0x1f0   : > { %s2999_s11 = sld [smem:[#allocation9_spill]]  ;;  %s3000_s12 = sld [smem:[#allocation10_spill]] }
 0x1f1   :  { %23 = sbr.rel (!%p21_p0) target bundleno = 4 (0x4), region = 123 }

// kernel: tile.28
= control target key start
LH: loop header
LB: loop body
LE: loop exit
PB: predicated region body
PF: predicated region fallthrough
CT: control target
= control target key end

     0   :  { %s22_s0 = inlined_call_operand.vmem [shape: f32[64], index: 0, kind: input, shape index: {}]   ;;  %s23_s1 = inlined_call_operand.vmem [shape: f32[2,64], index: 1, kind: output, shape index: {}]  }
   0x1   :  { %v4_v0 = vld [vmem:[%s22_s0] ss:$0 sm:$0xff] }
   0x2   :  { %5 = vst [vmem:[%s23_s1] sm:$0x3] %v4_v0 }

// kernel: tile.29
= control target key start
LH: loop header
LB: loop body
LE: loop exit
PB: predicated region body
PF: predicated region fallthrough
CT: control target
= control target key end

     0   :  { %vm7_vm0 = vcmask 523264   ;;  %vm13_vm1 = vcmask 1048064   ;;  %s39_s0 = inlined_call_operand.vmem [shape: f32[2,64], index: 0, kind: input, shape index: {}]   ;;  %s40_s1 = inlined_call_operand.vmem [shape: f32[1,128], index: 1, kind: output, shape index: {}]  }
   0x1   :  { %v4_v0 = vld [vmem:[%s39_s0] sm:$0x3]  ;;  %s22_s0 = smov 64  }
   0x2   :  { %5 = vst [vmem:[#allocation1] sm:$0x3] %v4_v0 }
   0x9   :  { %v10_v1 = vld [vmem:[#allocation1 + $0x1] sm:$0x1]   ;;  %v6_v2 = vld [vmem:[#allocation1] sm:$0x1]  }
   0xa   :  { %11 = vrot.lane.b32.xlu0 %v10_v1, %s22_s0  ;;  %8 = vst.msk [vmem:[#allocation0] sm:$0x1] %vm7_vm0, %v6_v2  }
  0x7c   :  { %v12_v3 = vpop.permute.xlu0 %11  }
  0x7d   :  { %14 = vst.msk [vmem:[#allocation0] sm:$0x1] %vm13_vm1, %v12_v3  }
  0x84   :  { %v18_v4 = vld [vmem:[#allocation0] sm:$0x1] }
  0x85   :  { %20 = vst [vmem:[%s40_s1] sm:$0x1] %v18_v4 }

// kernel: unet_encoder3d.7
= control target key start
LH: loop header
LB: loop body
LE: loop exit
PB: predicated region body
PF: predicated region fallthrough
CT: control target
= control target key end

     0   :  { %s3025_s30 = smov 0   ;;  %s3027_s10 = smov 0   ;;  %s3837_s0 = inlined_call_operand.vmem [shape: bf16[2,10,110,32], index: 0, kind: input, shape index: {}]   ;;  %s3838_s1 = inlined_call_operand.vmem [shape: bf16[27,32,64], index: 1, kind: input, shape index: {}]   ;;  %s3839_s2 = inlined_call_operand.vmem [shape: f32[1,64], index: 2, kind: input, shape index: {}]   ;;  %s3840_s3 = inlined_call_operand.vmem [shape: f32[1,32], index: 3, kind: input, shape index: {}]   ;;  %s3841_s4 = inlined_call_operand.vmem [shape: f32[1,32], index: 4, kind: input, shape index: {}]   ;;  %s3842_s5 = inlined_call_operand.vmem [shape: f32[110,1], index: 5, kind: input, shape index: {}]   ;;  %s3843_s6 = inlined_call_operand.vmem [shape: f32[80,1], index: 6, kind: input, shape index: {}]   ;;  %s3844_s7 = inlined_call_operand.vmem [shape: bf16[2,8,80,64], index: 7, kind: output, shape index: {0}]   ;;  %s3845_s8 = inlined_call_operand.vmem [shape: f32[2,8,8,64], index: 8, kind: output, shape index: {1}]   ;;  %s3846_s9 = inlined_call_operand.vmem [shape: f32[2,8,8,64], index: 9, kind: output, shape index: {2}]  }
   0x1   :  { %3852 = sst [smem:[#allocation10_spill]] %s3839_s2  ;;  %s3029_s11 = smov 0  }
   0x2   :  { %3853 = sst [smem:[#allocation11_spill]] %s3843_s6  ;;  %s3031_s12 = smov 0  }
   0x3   :  { %s3033_s13 = smov 0   ;;  %s3035_s14 = smov 0  }
   0x4   :  { %s3037_s15 = smov 0  }
   0x5 LB: > { %3854 = sst [smem:[#allocation3_spill]] %s2956_s12  ;;  %s32_s16 = sadd.s32 1, %s2956_s12  ;;  %s2968_s15 = sphi %s3037_s15, %s20_s15   ;;  %s2964_s14 = sphi %s3035_s14, %s3869_s14   ;;  %s2960_s13 = sphi %s3033_s13, %s3868_s13   ;;  %s2956_s12 = sphi %s3031_s12, %s3867_s12   ;;  %s2952_s11 = sphi %s3029_s11, %s3866_s11   ;;  %s2948_s10 = sphi %s3027_s10, %s3865_s10   ;;  %s2944_s30 = sphi %s3025_s30, %s3864_s30  }
   0x6   : > { %3855 = sst [smem:[#allocation4_spill]] %s2960_s13  ;;  %p33_p0 = scmp.ge.s32.totalorder %s32_s16, 3 }
   0x7   : > { %3856 = sst [smem:[#allocation5_spill]] %s2964_s14  ;;  %s35_s17 = sadd.s32 1, %s2960_s13 }
   0x8   : > { %3857 = sst [smem:[#allocation6_spill]] %s2968_s15  ;;  %p2375_p1 = scmp.ge.s32.totalorder %s2968_s15, 1 }
   0x9   : > { %p327_p2 = scmp.lt.s32.totalorder %s2968_s15, 49  ;;  %s3871_s16 = smov (%p33_p0, %s32_s16), 0 }
   0xa   : > { %3858 = sst [smem:[#allocation7_spill]] %s3871_s16  ;;  %s3873_s17 = smov (!%p33_p0, %s35_s17), %s2960_s13 }
   0xb   : > { %p328_p3 = pnand %p2375_p1, %p327_p2  ;;  %p37_p4 = scmp.ge.s32.totalorder %s3873_s17, 8 }
   0xc   : > { %s39_s18 = sadd.s32 1, %s2964_s14  ;;  %s3073_s19 = sadd.s32 (!%p328_p3), %s2944_s30, %s2948_s10 }
   0xd   : > { %s3875_s17 = smov (%p37_p4, %s3873_s17), 0  ;;  %s3877_s18 = smov (!%p37_p4, %s39_s18), %s2964_s14 }
   0xe   : > { %3859 = sst [smem:[#allocation8_spill]] %s3875_s17  ;;  %p41_p5 = scmp.ge.s32.totalorder %s3877_s18, 2 }
   0xf   : > { %331 = sbr.rel (%p328_p3) target bundleno = 797 (0x31d), region = 48  ;;  %p389_p6 = scmp.lt.s32.totalorder (!%p328_p3), %s2952_s11, 1 }
  0x10   : > { %s3879_s18 = smov (%p41_p5, %s3877_s18), 0  ;;  %p391_p7 = scmp.lt.s32.totalorder (!%p328_p3), %s3073_s19, 9 }
  0x11   : > { %3860 = sst [smem:[#allocation9_spill]] %s3879_s18  ;;  %p401_p8 = scmp.lt.s32.totalorder (!%p328_p3), %s2948_s10, 7 }
  0x12   : > { %p2382_p9 = scmp.ne.s32.totalorder (!%p328_p3), %s2944_s30, 0 }
  0x16   : > { %s3881_s11 = smov (!%p389_p6, %s2952_s11), 1  ;;  %s3883_s10 = smov (!%p401_p8, %s2948_s10), 7 }
  0x17   : > { %s392_s20 = scalar_select %p391_p7, %s3073_s19, 9 }
  0x18   : > { %s2828_s21 = smul.u32 140, %s3881_s11  ;;  %s2378_s23 = sshll.u32 %s3881_s11, 3  ;;  %vm429_vm0 = vcmask (!%p2382_p9), 523264   ;;  %v2970_v0 = vmov (!%p2382_p9), 0.0  }
  0x19   : > { %s2827_s22 = smul.u32 14, %s392_s20  ;;  %s413_s17 = sadd.s32 %s2378_s23, %s3883_s10  ;;  %430 = vst.msk [vmem:[#allocation2] sm:$0xff] (!%p2382_p9), %vm429_vm0, %v2970_v0  ;;  %431 = vst.msk [vmem:[#allocation2 + $0x8] sm:$0xff] (!%p2382_p9), %vm429_vm0, %v2970_v0 }
  0x1a   : > { %s2830_s25 = smul.u32 80, %s3881_s11  ;;  %s2379_s14 = sshll.u32 %s413_s17, 3  ;;  %432 = vst.msk [vmem:[#allocation2 + $0x10] sm:$0xff] (!%p2382_p9), %vm429_vm0, %v2970_v0  ;;  %433 = vst.msk [vmem:[#allocation2 + $0x18] sm:$0xff] (!%p2382_p9), %vm429_vm0, %v2970_v0 }
  0x1b   : > { %s395_s24 = sadd.s32 %s2828_s21, %s2827_s22  ;;  %s2829_s27 = smul.u32 10, %s3883_s10  ;;  %434 = vst.msk [vmem:[#allocation2 + $0x20] sm:$0xff] (!%p2382_p9), %vm429_vm0, %v2970_v0  ;;  %435 = vst.msk [vmem:[#allocation2 + $0x28] sm:$0xff] (!%p2382_p9), %vm429_vm0, %v2970_v0 }
  0x1c   : > { %s2376_s26 = sshll.u32 %s395_s24, 2  ;;  %s3087_s2 = scalar_lea.vmem %s3845_s8, %s2379_s14  ;;  %436 = vst.msk [vmem:[#allocation2 + $0x30] sm:$0xff] (!%p2382_p9), %vm429_vm0, %v2970_v0  ;;  %437 = vst.msk [vmem:[#allocation2 + $0x38] sm:$0xff] (!%p2382_p9), %vm429_vm0, %v2970_v0 }
  0x1d   : > { %s3082_s18 = scalar_lea.vmem %s3837_s0, %s2376_s26  ;;  %s405_s16 = sadd.s32 %s2830_s25, %s2829_s27  ;;  %438 = vst.msk [vmem:[#allocation2 + $0x40] sm:$0xff] (!%p2382_p9), %vm429_vm0, %v2970_v0  ;;  %439 = vst.msk [vmem:[#allocation2 + $0x48] sm:$0xff] (!%p2382_p9), %vm429_vm0, %v2970_v0 }
  0x1e   : > { %s2377_s13 = sshll.u32 %s405_s16, 2  ;;  %s3097_s24 = scalar_lea.vmem %s3846_s9, %s2379_s14 }
  0x1f   : > { %s3092_s11 = scalar_lea.vmem %s3844_s7, %s2377_s13  ;;  %428 = sbr.rel (%p2382_p9) target bundleno = 38 (0x26), region = 52 }
  0x26 PF: > { %p441_p10 = scmp.ge.s32.totalorder %s3073_s19, 1  ;;  %p442_p11 = scmp.le.s32.totalorder %s3073_s19, 8 }
  0x28   : > { %p443_p12 = pnand %p442_p11, %p441_p10 }
  0x29   : > { %v528_v1 = vld [vmem:[%s3842_s5 + $0x10] sm:$0xff] (!%p443_p12)  ;;  %v526_v2 = vld [vmem:[%s3842_s5] sm:$0xff] (!%p443_p12)  ;;  %v2971_v3 = vmov (!%p443_p12), 0   ;;  %v529_v4 = vld [vmem:[%s3842_s5 + $0x18] sm:$0xff] (!%p443_p12)  ;;  %s2504_s19 = smul.u32 (!%p443_p12), 144, %s2944_s30  ;;  %v2972_v11 = vmov (!%p443_p12), 0.0  }
  0x2a   : > { %446 = sbr.rel (%p443_p12) target bundleno = 584 (0x248), region = 56  ;;  %2893 = vset.pattern.permute.xlu1 (!%p443_p12), %v2971_v3  ;;  %2892 = vset.pattern.permute.xlu0 (!%p443_p12), %v2971_v3  ;;  %v527_v5 = vld [vmem:[%s3842_s5 + $0x8] sm:$0xff] (!%p443_p12)  ;;  %v533_v6 = vld [vmem:[%s3842_s5 + $0x38] sm:$0xff] (!%p443_p12)  ;;  %v532_v7 = vld [vmem:[%s3842_s5 + $0x30] sm:$0xff] (!%p443_p12)  ;;  %vm2973_vm1 = vmmov (!%p443_p12), 0   ;;  %vm696_vm3 = vcmask (!%p443_p12), 261120  }
  0x2b   : > { %551 = vperm.xlu1 (!%p443_p12), %2893, %v528_v1   ;;  %541 = vperm.xlu0 (!%p443_p12), %2892, %v526_v2   ;;  %s3124_s20 = scalar_lea.vmem (!%p443_p12), %s3838_s1, %s2504_s19  ;;  %v535_v9 = vld [vmem:[%s3842_s5 + $0x48] sm:$0xff] (!%p443_p12)  ;;  %v534_v10 = vld [vmem:[%s3842_s5 + $0x40] sm:$0xff] (!%p443_p12)  ;;  %v537_v16 = vld [vmem:[%s3842_s5 + $0x58] sm:$0xff] (!%p443_p12)  ;;  %vm639_vm2 = vsmask.f32 (!%p443_p12), 7424  ;;  %vm894_vm4 = vcmask (!%p443_p12), 1046528  }
  0x2c   : > { %v2894_v8 = vld [vmem:[%s3124_s20 + $0x10] sm:$0xff] (!%p443_p12)   ;;  %2607 = vmatprep.subr.bf16.mxu0 (!%p443_p12), %v2972_v11  ;;  %2823 = vmatprep.subr.bf16.mxu1 (!%p443_p12), %v2972_v11  ;;  %v531_v12 = vld [vmem:[%s3842_s5 + $0x28] sm:$0xff] (!%p443_p12)  ;;  %v530_v13 = vld [vmem:[%s3842_s5 + $0x20] sm:$0xff] (!%p443_p12)  ;;  %vm1165_vm5 = vsmask.f32 (!%p443_p12), 6400  ;;  %vm1337_vm6 = vcmask (!%p443_p12), 1045504  }
  0x2d   : > { %2608 = vmatpush3.bf16.msra.mxu0 (!%p443_p12), %v2894_v8  ;;  %2825 = vmatpush3.bf16.msra.mxu1 (!%p443_p12), %v2894_v8  ;;  %v2895_v14 = vld [vmem:[%s3124_s20 + $0x18] sm:$0xff] (!%p443_p12)   ;;  %v2543_v15 = vld [vmem:[%s3082_s18 + $0x28] sm:$0xff] (!%p443_p12)   ;;  %v536_v17 = vld [vmem:[%s3842_s5 + $0x50] sm:$0xff] (!%p443_p12)  ;;  %vm1600_vm7 = vsmask.f32 (!%p443_p12), 5376  ;;  %vm1752_vm8 = vcmask (!%p443_p12), 1044480  }
  0x2e   : > { %2609 = vmatprep.subr.bf16.mxu0 (!%p443_p12), %v2972_v11  ;;  %2824 = vmatprep.subr.bf16.mxu1 (!%p443_p12), %v2972_v11  ;;  %v2538_v18 = vunpack.c.h.bf16 (!%p443_p12), %v2543_v15  ;;  %v2383_v19 = vld [vmem:[%s3840_s3] ss:$0 sm:$0xff] (!%p443_p12)  ;;  %v459_v22 = vld [vmem:[%s3082_s18 + $0x30] sm:$0xf] (!%p443_p12)  ;;  %v2539_v28 = vld [vmem:[%s3082_s18 + $0x8] sm:$0xff] (!%p443_p12)   ;;  %v2537_v53 = vunpack.c.l.bf16 (!%p443_p12), %v2543_v15  ;;  %vm1894_vm9 = vcmask (!%p443_p12), 523264  }
  0x2f   : > { %556 = vperm.xlu1 (!%p443_p12), %2893, %v529_v4   ;;  %546 = vperm.xlu0 (!%p443_p12), %2892, %v527_v5   ;;  %v3160_v20 = vld [vmem:[%s3841_s4] ss:$0 sm:$0xff] (!%p443_p12)  ;;  %v472_v24 = vunpack.c.l.bf16 (!%p443_p12), %v459_v22  ;;  %v2521_v30 = vunpack.c.l.bf16 (!%p443_p12), %v2539_v28  ;;  %v2522_v32 = vunpack.c.h.bf16 (!%p443_p12), %v2539_v28  ;;  %v2541_v34 = vld [vmem:[%s3082_s18 + $0x18] sm:$0xff] (!%p443_p12)   ;;  %v2540_v40 = vld [vmem:[%s3082_s18 + $0x10] sm:$0xff] (!%p443_p12)  }
  0x30   : > { %2611 = vmatprep.mubr.msk.bf16.mxu0 (!%p443_p12), %vm2973_vm1, %v2972_v11  ;;  %v491_v21 = vmul.f32 (!%p443_p12), %v2538_v18, %v2383_v19  ;;  %2623 = vmatprep.mubr.msk.bf16.mxu1 (!%p443_p12), %vm2973_vm1, %v2972_v11  ;;  %v538_v25 = vld [vmem:[%s3842_s5 + $0x60] sm:$0xff] (!%p443_p12)  ;;  %v2530_v41 = vunpack.c.h.bf16 (!%p443_p12), %v2541_v34  ;;  %v2529_v42 = vunpack.c.l.bf16 (!%p443_p12), %v2541_v34  ;;  %v2526_v45 = vunpack.c.h.bf16 (!%p443_p12), %v2540_v40 }
  0x31   : > { %2610 = vmatpush3.bf16.msra.mxu0 %v2895_v14  ;;  %2826 = vmatpush3.bf16.msra.mxu1 %v2895_v14  ;;  %v492_v26 = vmul.f32 %v2383_v19, %v472_v24  ;;  %v2516_v29 = vld [vmem:[%s3082_s18] sm:$0xff]   ;;  %v482_v35 = vmul.f32 %v2521_v30, %v2383_v19  ;;  %v483_v37 = vmul.f32 %v2522_v32, %v2383_v19  ;;  %v2525_v46 = vunpack.c.l.bf16 %v2540_v40 }
  0x32   : > { %2655 = vmatprep.subr.bf16.mxu0 %v2972_v11  ;;  %2631 = vmatprep.subr.bf16.mxu1 %v2972_v11  ;;  %v3167_v23 = vadd.f32 %v3160_v20, %v491_v21  ;;  %v2517_v31 = vunpack.c.l.bf16 %v2516_v29  ;;  %v2518_v33 = vunpack.c.h.bf16 %v2516_v29  ;;  %v2542_v39 = vld [vmem:[%s3082_s18 + $0x20] sm:$0xff]   ;;  %v487_v51 = vmul.f32 %v2530_v41, %v2383_v19 }
  0x33   : > { %576 = vperm.xlu1 %2893, %v533_v6   ;;  %571 = vperm.xlu0 %2892, %v532_v7   ;;  %v3173_v27 = vadd.f32 %v3160_v20, %v492_v26  ;;  %v2534_v43 = vunpack.c.h.bf16 %v2542_v39  ;;  %v2533_v44 = vunpack.c.l.bf16 %v2542_v39  ;;  %v502_v47 = vadd.f32 %v3160_v20, %v482_v35 }
  0x34   : > { %v480_v36 = vmul.f32 %v2517_v31, %v2383_v19  ;;  %v481_v38 = vmul.f32 %v2518_v33, %v2383_v19  ;;  %v503_v49 = vadd.f32 %v3160_v20, %v483_v37  ;;  %v486_v52 = vmul.f32 %v2529_v42, %v2383_v19 }
  0x35   : > { %v489_v56 = vmul.f32 %v2534_v43, %v2383_v19  ;;  %v488_v57 = vmul.f32 %v2533_v44, %v2383_v19  ;;  %v485_v58 = vmul.f32 %v2526_v45, %v2383_v19  ;;  %v484_v59 = vmul.f32 %v2525_v46, %v2383_v19 }
  0x36   : > { %v500_v48 = vadd.f32 %v3160_v20, %v480_v36  ;;  %v501_v50 = vadd.f32 %v3160_v20, %v481_v38  ;;  %v515_v60 = vmax.f32 %v502_v47, 0.0  ;;  %v516_v62 = vmax.f32 %v503_v49, 0.0 }
  0x37   : > { %586 = vperm.xlu1 %2893, %v535_v9   ;;  %581 = vperm.xlu0 %2892, %v534_v10   ;;  %v507_v0 = vadd.f32 %v3160_v20, %v487_v51  ;;  %v506_v1 = vadd.f32 %v3160_v20, %v486_v52  ;;  %v490_v2 = vmul.f32 %v2537_v53, %v2383_v19  ;;  %v525_v35 = vmax.f32 %v3173_v27, 0.0  ;;  %v2896_v52 = vld [vmem:[%s3124_s20 + $0x20] sm:$0xff]  }
  0x38   : > { %v513_v61 = vmax.f32 %v500_v48, 0.0  ;;  %v514_v63 = vmax.f32 %v501_v50, 0.0  ;;  %v509_v5 = vadd.f32 %v3160_v20, %v489_v56  ;;  %v508_v6 = vadd.f32 %v3160_v20, %v488_v57 }
  0x39   : > { %v505_v7 = vadd.f32 %v3160_v20, %v485_v58  ;;  %v504_v8 = vadd.f32 %v3160_v20, %v484_v59  ;;  %v520_v14 = vmax.f32 %v507_v0, 0.0  ;;  %v519_v15 = vmax.f32 %v506_v1, 0.0 }
  0x3a   : > { %v522_v24 = vmax.f32 %v509_v5, 0.0 }
  0x3b   : > { %566 = vperm.xlu1 %2893, %v531_v12   ;;  %561 = vperm.xlu0 %2892, %v530_v13   ;;  %v518_v26 = vmax.f32 %v505_v7, 0.0  ;;  %v517_v28 = vmax.f32 %v504_v8, 0.0  ;;  %v2898_v7 = vld [vmem:[%s3124_s20 + $0x28] sm:$0xff]  }
  0x3f   : > { %596 = vperm.xlu1 %2893, %v537_v16   ;;  %591 = vperm.xlu0 %2892, %v536_v17   ;;  %v3191_v16 = vadd.f32 %v3160_v20, %v490_v2  ;;  %v524_v20 = vmax.f32 %v3167_v23, 0.0 }
  0x41   : > { %v523_v31 = vmax.f32 %v3191_v16, 0.0 }
  0x43   : > { %601 = vperm.xlu0 %2892, %v538_v25   ;;  %v521_v25 = vmax.f32 %v508_v6, 0.0 }
  0xaa   : > { %v552_v54 = vpop.permute.xlu1 %551  ;;  %v542_v55 = vpop.permute.xlu0 %541 }
  0xab   : > { %v606_v9 = vmul.f32 %v552_v54, %v515_v60  ;;  %v604_v10 = vmul.f32 %v542_v55, %v513_v61 }
  0xae   : > { %v557_v3 = vpop.permute.xlu1 %556  ;;  %v547_v4 = vpop.permute.xlu0 %546 }
  0xaf   : > { %v607_v12 = vmul.f32 %v557_v3, %v516_v62  ;;  %v605_v13 = vmul.f32 %v547_v4, %v514_v63 }
  0xb1   : > { %v3193_v17 = vpack.c.bf16 %v607_v12, %v606_v9  ;;  %v3195_v18 = vpack.c.bf16 %v605_v13, %v604_v10  ;;  %v3197_v19 = vpack.c.bf16 %v606_v9, %v605_v13  ;;  %v2897_v13 = vld [vmem:[%s3124_s20] sm:$0xff]  }
  0xb2   : > { %v577_v21 = vpop.permute.xlu1 %576  ;;  %v572_v22 = vpop.permute.xlu0 %571 }
  0xb3   : > { %v611_v29 = vmul.f32 %v577_v21, %v520_v14  ;;  %v610_v30 = vmul.f32 %v572_v22, %v519_v15  ;;  %v895_v32 = vrot.slane %v3195_v18, 1  ;;  %v643_v33 = vshll.u32 %v3195_v18, 16 }
  0xb4   : > { %v648_v34 = vshll.u32 %v3193_v17, 16  ;;  %v1036_v36 = vrot.slane %v3197_v19, 1  ;;  %v1167_v37 = vshrl.u32 %v3197_v19, 16  ;;  %v1170_v38 = vshll.u32 %v3197_v19, 16 }
  0xb5   : > { %v3208_v39 = vpack.c.bf16 %v611_v29, %v610_v30  ;;  %v641_v43 = vshrl.u32 %v3195_v18, 16  ;;  %v645_v44 = vrot.slane %v643_v33, 1  ;;  %v1338_v45 = vrot.slane %v3197_v19, 2 }
  0xb6   : > { %v587_v23 = vpop.permute.xlu1 %586  ;;  %v582_v40 = vpop.permute.xlu0 %581  ;;  %v650_v46 = vrot.slane %v648_v34, 1  ;;  %v652_v48 = vshrl.u32 %v3193_v17, 16  ;;  %v896_v53 = vrot.slane %v3193_v17, 1  ;;  %v3220_v54 = vrot.slane %v1167_v37, 1 }
  0xb7   : > { %v613_v41 = vmul.f32 %v587_v23, %v522_v24  ;;  %v612_v42 = vmul.f32 %v582_v40, %v521_v25  ;;  %v664_v47 = vshll.u32 %v3208_v39, 16  ;;  %v646_v51 = vor.u32 %v645_v44, %v641_v43 }
  0xb8   : > { %v3222_v55 = vrot.slane %v1170_v38, 2  ;;  %v1471_v59 = vrot.slane %v3193_v17, 2  ;;  %v3232_v0 = vrot.slane %v648_v34, 3  ;;  %v668_v1 = vshrl.u32 %v3208_v39, 16 }
  0xb9   : > { %v3214_v49 = vpack.c.bf16 %v613_v41, %v612_v42  ;;  %v3216_v50 = vpack.c.bf16 %v612_v42, %v611_v29  ;;  %v3226_v58 = vrot.slane %v664_v47, 1  ;;  %v651_v62 = vsel %vm639_vm2, %v646_v51, %v650_v46 }
  0xba   : > { %v567_v56 = vpop.permute.xlu1 %566  ;;  %v562_v57 = vpop.permute.xlu0 %561  ;;  %2612 = vmatmul.mubr.msk.bf16.vlgmr.msra.gmra.mrb[0].mxu0 %vm696_vm3, %v651_v62  ;;  %v654_v2 = vor.u32 %v652_v48, %v650_v46  ;;  %v3235_v3 = vrot.slane %v652_v48, 2  ;;  %v3249_v8 = vsel %vm894_vm4, %v895_v32, %v896_v53  ;;  %v1173_v15 = vor.u32 %v3222_v55, %v3220_v54 }
  0xbb   : > { %v609_v60 = vmul.f32 %v567_v56, %v518_v26  ;;  %v608_v61 = vmul.f32 %v562_v57, %v517_v28  ;;  %v672_v63 = vshll.u32 %v3214_v49, 16  ;;  %2656 = vmatpush3.bf16.msra.mxu0 %v2896_v52  ;;  %2615 = vmatprep.mubr.msk.bf16.mxu0 %vm2973_vm1, %v2972_v11  ;;  %v676_v14 = vshrl.u32 %v3214_v49, 16 }
  0xbc   : > { %2657 = vmatprep.subr.bf16.mxu0 %v2972_v11  ;;  %v1041_v16 = vrot.slane %v3216_v50, 1  ;;  %v1196_v37 = vshll.u32 %v3216_v50, 16 }
  0xbd   : > { %v3237_v4 = vpack.c.bf16 %v609_v60, %v608_v61  ;;  %v3239_v5 = vpack.c.bf16 %v608_v61, %v607_v12  ;;  %v674_v6 = vrot.slane %v672_v63, 1  ;;  %v670_v12 = vor.u32 %v668_v1, %v3226_v58 }
  0xbe   : > { %v597_v9 = vpop.permute.xlu1 %596  ;;  %v592_v10 = vpop.permute.xlu0 %591  ;;  %v3260_v21 = vpack.c.bf16 %v610_v30, %v609_v60  ;;  %v1193_v30 = vshrl.u32 %v3216_v50, 16 }
  0xbf   : > { %v1037_v22 = vrot.slane %v3239_v5, 1  ;;  %v1175_v24 = vshrl.u32 %v3239_v5, 16  ;;  %v1178_v25 = vshll.u32 %v3239_v5, 16  ;;  %v615_v26 = vmul.f32 %v597_v9, %v524_v20  ;;  %2658 = vmatpush3.bf16.msra.mxu0 %v2898_v7 }
  0xc0   : > { %v614_v28 = vmul.f32 %v592_v10, %v523_v31  ;;  %v675_v29 = vsel %vm639_vm2, %v670_v12, %v674_v6  ;;  %v656_v32 = vshll.u32 %v3237_v4, 16  ;;  %v2899_v31 = vld [vmem:[%s3124_s20 + $0x8] sm:$0xff]   ;;  %v660_v42 = vshrl.u32 %v3237_v4, 16  ;;  %2703 = vmatprep.subr.bf16.mxu0 %v2972_v11 }
  0xc1   : > { %v1177_v33 = vrot.slane %v1175_v24, 1  ;;  %v1180_v34 = vrot.slane %v1178_v25, 2  ;;  %2624 = vmatmul.mubr.msk.bf16.vlgmr.msra.gmra.mrb[0].mxu1 %vm696_vm3, %v675_v29  ;;  %v1339_v43 = vrot.slane %v3239_v5, 2  ;;  %v3285_v48 = vpack.c.bf16 %v615_v26, %v615_v26 }
  0xc2   : > { %v3270_v38 = vpack.c.bf16 %v614_v28, %v614_v28  ;;  %v3272_v23 = vpack.c.bf16 %v614_v28, %v613_v41  ;;  %v3274_v40 = vpack.c.bf16 %v615_v26, %v614_v28  ;;  %v602_v20 = vpop.permute.xlu0 %601  ;;  %2632 = vmatpush3.bf16.msra.mxu1 %v2897_v13  ;;  %v658_v46 = vrot.slane %v656_v32, 1  ;;  %2627 = vmatprep.mubr.msk.bf16.mxu1 %vm2973_vm1, %v2972_v11 }
  0xc3   : > { %v616_v44 = vmul.f32 %v602_v20, %v525_v35  ;;  %2633 = vmatprep.subr.bf16.mxu1 %v2972_v11  ;;  %v1474_v41 = vrot.slane %v3208_v39, 2  ;;  %v678_v52 = vor.u32 %v676_v14, %v674_v6  ;;  %v3294_v27 = vsel %vm894_vm4, %v1036_v36, %v1037_v22 }
  0xc4   : > { %v680_v51 = vshll.u32 %v3270_v38, 16  ;;  %v659_v54 = vsel %vm639_vm2, %v654_v2, %v658_v46  ;;  %v662_v55 = vor.u32 %v660_v42, %v658_v46  ;;  %v1181_v56 = vor.u32 %v1180_v34, %v1177_v33 }
  0xc5   : > { %v3296_v35 = vpack.c.bf16 %v616_v44, %v616_v44  ;;  %2616 = vmatmul.mubr.msk.bf16.gmra.mrb[4].mxu0 %vm696_vm3, %v659_v54  ;;  %v3300_v60 = vrot.slane %v656_v32, 3  ;;  %v3302_v61 = vrot.slane %v660_v42, 2  ;;  %v898_v62 = vrot.slane %v3237_v4, 1  ;;  %v2900_v54 = vld [vmem:[%s3124_s20 + $0x30] sm:$0xff]  }
  0xc6   : > { %v682_v57 = vrot.slane %v680_v51, 1  ;;  %2634 = vmatpush3.bf16.msra.mxu1 %v2899_v31  ;;  %2619 = vmatprep.mubr.msk.bf16.mxu0 %vm2973_vm1, %v2972_v11  ;;  %v667_v2 = vsel %vm639_vm2, %v662_v55, %v3226_v58  ;;  %v3313_v7 = vsel %vm1165_vm5, %v1173_v15, %v1181_v56  ;;  %v1039_v10 = vrot.slane %v3260_v21, 1 }
  0xc7   : > { %v1626_v36 = vshrl.u32 %v3296_v35, 16  ;;  %v1629_v6 = vshll.u32 %v3296_v35, 16  ;;  %2679 = vmatprep.subr.bf16.mxu1 %v2972_v11  ;;  %v1184_v12 = vshrl.u32 %v3260_v21, 16  ;;  %v1187_v13 = vshll.u32 %v3260_v21, 16 }
  0xc8   : > { %v683_v9 = vsel %vm639_vm2, %v678_v52, %v682_v57  ;;  %v1195_v58 = vrot.slane %v1193_v30, 1  ;;  %v1198_v26 = vrot.slane %v1196_v37, 2  ;;  %v3327_v15 = vsel %vm894_vm4, %v1037_v22, %v1039_v10 }
  0xc9   : > { %v3319_v24 = vrot.slane %v1626_v36, 2  ;;  %v3321_v25 = vrot.slane %v1629_v6, 3  ;;  %2628 = vmatmul.mubr.msk.bf16.gmra.mrb[4].mxu1 %vm696_vm3, %v683_v9  ;;  %v1186_v28 = vrot.slane %v1184_v12, 1  ;;  %v1189_v29 = vrot.slane %v1187_v13, 2 }
  0xca   : > { %2635 = vmatprep.mubr.msk.bf16.mxu1 %vm2973_vm1, %v2972_v11  ;;  %v3332_v32 = vsel %vm894_vm4, %v1039_v10, %v1041_v16  ;;  %v1199_v33 = vor.u32 %v1198_v26, %v1195_v58  ;;  %v1043_v34 = vrot.slane %v3272_v23, 1  ;;  %v1202_v30 = vshrl.u32 %v3272_v23, 16 }
  0xcb   : > { %v1205_v37 = vshll.u32 %v3272_v23, 16  ;;  %v1190_v20 = vor.u32 %v1189_v29, %v1186_v28  ;;  %v1045_v31 = vrot.slane %v3285_v48, 1  ;;  %v1211_v22 = vshrl.u32 %v3285_v48, 16 }
  0xcc   : > { %v1214_v42 = vshll.u32 %v3285_v48, 16  ;;  %v3343_v44 = vsel %vm894_vm4, %v1041_v16, %v1043_v34  ;;  %v1204_v46 = vrot.slane %v1202_v30, 1  ;;  %v3350_v52 = vsel %vm1337_vm6, %v1338_v45, %v1339_v43 }
  0xcd   : > { %v1207_v51 = vrot.slane %v1205_v37, 2  ;;  %2620 = vmatmul.mubr.msk.bf16.gmra.mrb[8].mxu0 %vm696_vm3, %v667_v2  ;;  %v3355_v55 = vsel %vm1165_vm5, %v1181_v56, %v1190_v20  ;;  %v3358_v57 = vsel %vm1165_vm5, %v1190_v20, %v1199_v33  ;;  %v3361_v16 = vsel %vm894_vm4, %v1043_v34, %v1045_v31 }
  0xce   : > { %v1213_v36 = vrot.slane %v1211_v22, 1  ;;  %2659 = vmatprep.mubr.msk.bf16.mxu0 %vm2973_vm1, %v2972_v11  ;;  %v1216_v45 = vrot.slane %v1214_v42, 2  ;;  %v1472_v6 = vrot.slane %v3237_v4, 2  ;;  %v1341_v2 = vrot.slane %v3260_v21, 2 }
  0xcf   : > { %v1208_v19 = vor.u32 %v1207_v51, %v1204_v46  ;;  %v1343_v56 = vrot.slane %v3216_v50, 2  ;;  %v1476_v9 = vrot.slane %v3214_v49, 2  ;;  %v1345_v10 = vrot.slane %v3272_v23, 2  ;;  %v2902_v23 = vld [vmem:[%s3124_s20 + $0x38] sm:$0xff]  }
  0xd0   : > { %v1478_v12 = vrot.slane %v3274_v40, 2  ;;  %v1217_v58 = vor.u32 %v1216_v45, %v1213_v36  ;;  %v3379_v21 = vsel %vm1337_vm6, %v1471_v59, %v1472_v6  ;;  %v3384_v50 = vsel %vm1337_vm6, %v1339_v43, %v1341_v2  ;;  %v2901_v43 = vld [vmem:[%s3124_s20 + $0x40] sm:$0xff]  }
  0xd1   : > { %2636 = vmatmul.mubr.msk.bf16.vlgmr.msra.gmra.mrb[8].mxu1 %vm696_vm3, %v3195_v18  ;;  %v3374_v13 = vsel %vm1165_vm5, %v1199_v33, %v1208_v19  ;;  %v3392_v18 = vsel %vm1337_vm6, %v1472_v6, %v1474_v41  ;;  %v3395_v26 = vsel %vm1337_vm6, %v1341_v2, %v1343_v56  ;;  %v3400_v59 = vsel %vm1337_vm6, %v1474_v41, %v1476_v9 }
  0xd2   : > { %2680 = vmatpush3.bf16.msra.mxu1 %v2900_v54  ;;  %2639 = vmatprep.mubr.msk.bf16.mxu1 %vm2973_vm1, %v2972_v11  ;;  %v1347_v5 = vrot.slane %v3285_v48, 2  ;;  %v3406_v28 = vsel %vm1165_vm5, %v1208_v19, %v1217_v58  ;;  %v3409_v29 = vsel %vm1337_vm6, %v1343_v56, %v1345_v10  ;;  %v3412_v33 = vsel %vm1337_vm6, %v1476_v9, %v1478_v12 }
  0xd3   : > { %2681 = vmatprep.subr.bf16.mxu1 %v2972_v11  ;;  %v1480_v34 = vrot.slane %v3296_v35, 2  ;;  %v1603_v41 = vor.u32 %v3232_v0, %v3235_v3  ;;  %v1606_v48 = vor.u32 %v3300_v60, %v3302_v61  ;;  %v1753_v37 = vrot.slane %v3193_v17, 3 }
  0xd4   : > { %v3416_v30 = vsel %vm1337_vm6, %v1345_v10, %v1347_v5  ;;  %v1754_v31 = vrot.slane %v3237_v4, 3  ;;  %v1608_v22 = vrot.slane %v668_v1, 2  ;;  %v1609_v42 = vrot.slane %v664_v47, 3  ;;  %v2903_v47 = vld [vmem:[%s3124_s20 + $0x48] sm:$0xff]  }
  0xd5   : > { %v3424_v20 = vsel %vm1337_vm6, %v1478_v12, %v1480_v34  ;;  %2660 = vmatmul.mubr.msk.bf16.vlgmr.msra.gmra.mrb[12].mxu0 %vm696_vm3, %v3249_v8  ;;  %v3434_v0 = vsel %vm1600_vm7, %v1603_v41, %v1606_v48  ;;  %v1756_v3 = vrot.slane %v3208_v39, 3  ;;  %v1612_v60 = vrot.slane %v676_v14, 2 }
  0xd6   : > { %2682 = vmatpush3.bf16.msra.mxu1 %v2902_v23  ;;  %v1613_v61 = vrot.slane %v672_v63, 3  ;;  %2704 = vmatpush3.bf16.msra.mxu0 %v2901_v43  ;;  %v3445_v1 = vsel %vm1752_vm8, %v1753_v37, %v1754_v31  ;;  %v1610_v8 = vor.u32 %v1609_v42, %v1608_v22  ;;  %v1758_v46 = vrot.slane %v3214_v49, 3  ;;  %v2907_v43 = vld [vmem:[%s3124_s20 + $0x68] sm:$0xff]  }
  0xd7   : > { %2663 = vmatprep.mubr.msk.bf16.mxu0 %vm2973_vm1, %v2972_v11  ;;  %v1617_v51 = vshrl.u32 %v3274_v40, 16  ;;  %2705 = vmatprep.subr.bf16.mxu0 %v2972_v11  ;;  %v3452_v14 = vsel %vm1752_vm8, %v1754_v31, %v1756_v3  ;;  %v1620_v54 = vshll.u32 %v3274_v40, 16  ;;  %v1760_v36 = vrot.slane %v3274_v40, 3 }
  0xd8   : > { %2727 = vmatprep.subr.bf16.mxu1 %v2972_v11  ;;  %v1614_v63 = vor.u32 %v1613_v61, %v1612_v60  ;;  %v3459_v19 = vsel %vm1600_vm7, %v1606_v48, %v1610_v8  ;;  %v3462_v45 = vsel %vm1752_vm8, %v1756_v3, %v1758_v46  ;;  %v1632_v2 = vor.u32 %v3321_v25, %v3319_v24 }
  0xd9   : > { %2640 = vmatmul.mubr.msk.bf16.gmra.mrb[12].mxu1 %vm696_vm3, %v3193_v17  ;;  %v1619_v6 = vrot.slane %v1617_v51, 2  ;;  %v1622_v40 = vrot.slane %v1620_v54, 3  ;;  %v3472_v9 = vsel %vm1752_vm8, %v1758_v46, %v1760_v36  ;;  %v1762_v10 = vrot.slane %v3296_v35, 3 }
  0xda   : > { %2643 = vmatprep.mubr.msk.bf16.mxu1 %vm2973_vm1, %v2972_v11  ;;  %v3469_v56 = vsel %vm1600_vm7, %v1610_v8, %v1614_v63  ;;  %2706 = vmatpush3.bf16.msra.mxu0 %v2903_v47  ;;  %v899_v24 = vsel %vm894_vm4, %v896_v53, %v898_v62  ;;  %v900_v17 = vrot.slane %v3208_v39, 1  ;;  %v902_v23 = vrot.slane %v3214_v49, 1 }
  0xdb   : > { %2751 = vmatprep.subr.bf16.mxu0 %v2972_v11  ;;  %v1623_v12 = vor.u32 %v1622_v40, %v1619_v6  ;;  %v3477_v58 = vsel %vm1752_vm8, %v1760_v36, %v1762_v10 }
  0xdc   : > { %v901_v53 = vsel %vm894_vm4, %v898_v62, %v900_v17  ;;  %v903_v5 = vsel %vm894_vm4, %v900_v17, %v902_v23  ;;  %v2904_v62 = vld [vmem:[%s3124_s20 + $0x50] sm:$0xff]  }
  0xdd   : > { %2664 = vmatmul.mubr.msk.bf16.gmra.mrb[16].mxu0 %vm696_vm3, %v899_v24  ;;  %v3486_v25 = vsel %vm1600_vm7, %v1614_v63, %v1623_v12  ;;  %v3489_v35 = vsel %vm1600_vm7, %v1623_v12, %v1632_v2 }
  0xde   : > { %2667 = vmatprep.mubr.msk.bf16.mxu0 %vm2973_vm1, %v2972_v11 }
  0xe1   : > { %2644 = vmatmul.mubr.msk.bf16.gmra.mrb[16].mxu1 %vm696_vm3, %v3237_v4  ;;  %v904_v4 = vrot.slane %v3270_v38, 1  ;;  %v2905_v38 = vld [vmem:[%s3124_s20 + $0x60] sm:$0xff]  }
  0xe2   : > { %2647 = vmatprep.mubr.msk.bf16.mxu1 %vm2973_vm1, %v2972_v11 }
  0xe5   : > { %2668 = vmatmul.mubr.msk.bf16.gmra.mrb[20].mxu0 %vm696_vm3, %v901_v53 }
  0xe6   : > { %2671 = vmatprep.mubr.msk.bf16.mxu0 %vm2973_vm1, %v2972_v11 }
  0xe9   : > { %2648 = vmatmul.mubr.msk.bf16.gmra.mrb[20].mxu1 %vm696_vm3, %v3208_v39  ;;  %v905_v39 = vsel %vm894_vm4, %v902_v23, %v904_v4 }
  0xea   : > { %2651 = vmatprep.mubr.msk.bf16.mxu1 %vm2973_vm1, %v2972_v11 }
  0xed   : > { %2672 = vmatmul.mubr.msk.bf16.gmra.mrb[24].mxu0 %vm696_vm3, %v903_v5 }
  0xee   : > { %2675 = vmatprep.mubr.msk.bf16.mxu0 %vm2973_vm1, %v2972_v11 }
  0xf1   : > { %2652 = vmatmul.mubr.msk.bf16.gmra.mrb[24].mxu1 %vm696_vm3, %v3214_v49  ;;  %v2906_v49 = vld [vmem:[%s3124_s20 + $0x58] sm:$0xff]  }
  0xf2   : > { %2683 = vmatprep.mubr.msk.bf16.mxu1 %vm2973_vm1, %v2972_v11 }
  0xf5   : > { %2676 = vmatmul.mubr.msk.bf16.gmra.mrb[28].mxu0 %vm696_vm3, %v905_v39 }
  0xf6   : > { %2707 = vmatprep.mubr.msk.bf16.mxu0 %vm2973_vm1, %v2972_v11 }
  0xf9   : > { %2684 = vmatmul.mubr.msk.bf16.vlgmr.msra.gmra.mrb[28].mxu1 %vm696_vm3, %v3294_v27  ;;  %v2908_v27 = vld [vmem:[%s3124_s20 + $0x70] sm:$0xff]  }
  0xfa   : > { %2728 = vmatpush3.bf16.msra.mxu1 %v2904_v62  ;;  %2687 = vmatprep.mubr.msk.bf16.mxu1 %vm2973_vm1, %v2972_v11 }
  0xfb   : > { %2729 = vmatprep.subr.bf16.mxu1 %v2972_v11 }
  0xfd   : > { %2708 = vmatmul.mubr.msk.bf16.vlgmr.msra.gmra.mrb[32].mxu0 %vm696_vm3, %v3313_v7  ;;  %v2910_v7 = vld [vmem:[%s3124_s20 + $0x78] sm:$0xff]  }
  0xfe   : > { %2730 = vmatpush3.bf16.msra.mxu1 %v2906_v49  ;;  %2752 = vmatpush3.bf16.msra.mxu0 %v2905_v38 }
  0xff   : > { %2711 = vmatprep.mubr.msk.bf16.mxu0 %vm2973_vm1, %v2972_v11  ;;  %2753 = vmatprep.subr.bf16.mxu0 %v2972_v11 }
 0x100   : > { %2775 = vmatprep.subr.bf16.mxu1 %v2972_v11 }
 0x101   : > { %2688 = vmatmul.mubr.msk.bf16.gmra.mrb[32].mxu1 %vm696_vm3, %v3327_v15  ;;  %v2909_v15 = vld [vmem:[%s3124_s20 + $0x80] sm:$0xff]  }
 0x102   : > { %2691 = vmatprep.mubr.msk.bf16.mxu1 %vm2973_vm1, %v2972_v11  ;;  %2754 = vmatpush3.bf16.msra.mxu0 %v2907_v43 }
 0x103   : > { %2799 = vmatprep.subr.bf16.mxu0 %v2972_v11 }
 0x105   : > { %2712 = vmatmul.mubr.msk.bf16.gmra.mrb[36].mxu0 %vm696_vm3, %v3355_v55 }
 0x106   : > { %2715 = vmatprep.mubr.msk.bf16.mxu0 %vm2973_vm1, %v2972_v11 }
 0x109   : > { %2692 = vmatmul.mubr.msk.bf16.gmra.mrb[36].mxu1 %vm696_vm3, %v3332_v32  ;;  %v2911_v32 = vld [vmem:[%s3124_s20 + $0x88] sm:$0xff]  }
 0x10a   : > { %2695 = vmatprep.mubr.msk.bf16.mxu1 %vm2973_vm1, %v2972_v11 }
 0x10d   : > { %2716 = vmatmul.mubr.msk.bf16.gmra.mrb[40].mxu0 %vm696_vm3, %v3358_v57 }
 0x10e   : > { %2719 = vmatprep.mubr.msk.bf16.mxu0 %vm2973_vm1, %v2972_v11 }
 0x111   : > { %2696 = vmatmul.mubr.msk.bf16.gmra.mrb[40].mxu1 %vm696_vm3, %v3343_v44 }
 0x112   : > { %2699 = vmatprep.mubr.msk.bf16.mxu1 %vm2973_vm1, %v2972_v11 }
 0x115   : > { %2720 = vmatmul.mubr.msk.bf16.gmra.mrb[44].mxu0 %vm696_vm3, %v3374_v13 }
 0x116   : > { %2723 = vmatprep.mubr.msk.bf16.mxu0 %vm2973_vm1, %v2972_v11 }
 0x119   : > { %2700 = vmatmul.mubr.msk.bf16.gmra.mrb[44].mxu1 %vm696_vm3, %v3361_v16 }
 0x11a   : > { %2731 = vmatprep.mubr.msk.bf16.mxu1 %vm2973_vm1, %v2972_v11 }
 0x11d   : > { %2724 = vmatmul.mubr.msk.bf16.gmra.mrb[48].mxu0 %vm696_vm3, %v3406_v28 }
 0x11e   : > { %2755 = vmatprep.mubr.msk.bf16.mxu0 %vm2973_vm1, %v2972_v11 }
 0x121   : > { %2732 = vmatmul.mubr.msk.bf16.vlgmr.msra.gmra.mrb[48].mxu1 %vm696_vm3, %v3350_v52 }
 0x122   : > { %2776 = vmatpush3.bf16.msra.mxu1 %v2908_v27  ;;  %2735 = vmatprep.mubr.msk.bf16.mxu1 %vm2973_vm1, %v2972_v11 }
 0x123   : > { %2777 = vmatprep.subr.bf16.mxu1 %v2972_v11 }
 0x125   : > { %2756 = vmatmul.mubr.msk.bf16.vlgmr.msra.gmra.mrb[52].mxu0 %vm696_vm3, %v3379_v21 }
 0x126   : > { %2778 = vmatpush3.bf16.msra.mxu1 %v2910_v7  ;;  %2800 = vmatpush3.bf16.msra.mxu0 %v2909_v15 }
 0x127   : > { %2759 = vmatprep.mubr.msk.bf16.mxu0 %vm2973_vm1, %v2972_v11  ;;  %2801 = vmatprep.subr.bf16.mxu0 %v2972_v11 }
 0x129   : > { %2736 = vmatmul.mubr.msk.bf16.gmra.mrb[52].mxu1 %vm696_vm3, %v3384_v50 }
 0x12a   : > { %2739 = vmatprep.mubr.msk.bf16.mxu1 %vm2973_vm1, %v2972_v11  ;;  %2802 = vmatpush3.bf16.msra.mxu0 %v2911_v32 }
 0x12d   : > { %2760 = vmatmul.mubr.msk.bf16.gmra.mrb[56].mxu0 %vm696_vm3, %v3392_v18 }
 0x12e   : > { %2763 = vmatprep.mubr.msk.bf16.mxu0 %vm2973_vm1, %v2972_v11 }
 0x131   : > { %2740 = vmatmul.mubr.msk.bf16.gmra.mrb[56].mxu1 %vm696_vm3, %v3395_v26 }
 0x132   : > { %2743 = vmatprep.mubr.msk.bf16.mxu1 %vm2973_vm1, %v2972_v11 }
 0x135   : > { %2764 = vmatmul.mubr.msk.bf16.gmra.mrb[60].mxu0 %vm696_vm3, %v3400_v59 }
 0x136   : > { %2767 = vmatprep.mubr.msk.bf16.mxu0 %vm2973_vm1, %v2972_v11 }
 0x139   : > { %2744 = vmatmul.mubr.msk.bf16.gmra.mrb[60].mxu1 %vm696_vm3, %v3409_v29 }
 0x13a   : > { %2747 = vmatprep.mubr.msk.bf16.mxu1 %vm2973_vm1, %v2972_v11 }
 0x13d   : > { %2768 = vmatmul.mubr.msk.bf16.gmra.mrb[64].mxu0 %vm696_vm3, %v3412_v33 }
 0x13e   : > { %2771 = vmatprep.mubr.msk.bf16.mxu0 %vm2973_vm1, %v2972_v11 }
 0x141   : > { %2748 = vmatmul.mubr.msk.bf16.gmra.mrb[64].mxu1 %vm696_vm3, %v3416_v30 }
 0x142   : > { %2779 = vmatprep.mubr.msk.bf16.mxu1 %vm2973_vm1, %v2972_v11 }
 0x145   : > { %2772 = vmatmul.mubr.msk.bf16.gmra.mrb[68].mxu0 %vm696_vm3, %v3424_v20 }
 0x146   : > { %2803 = vmatprep.mubr.msk.bf16.mxu0 %vm2973_vm1, %v2972_v11 }
 0x149   : > { %2780 = vmatmul.mubr.msk.bf16.vlgmr.msra.gmra.mrb[68].mxu1 %vm696_vm3, %v3434_v0 }
 0x14a   : > { %2783 = vmatprep.mubr.msk.bf16.mxu1 %vm2973_vm1, %v2972_v11 }
 0x14d   : > { %2804 = vmatmul.mubr.msk.bf16.vlgmr.msra.gmra.mrb[72].mxu0 %vm696_vm3, %v3445_v1 }
 0x14e   : > { %2807 = vmatprep.mubr.msk.bf16.mxu0 %vm2973_vm1, %v2972_v11 }
 0x151   : > { %2784 = vmatmul.mubr.msk.bf16.gmra.mrb[72].mxu1 %vm696_vm3, %v3459_v19 }
 0x152   : > { %2787 = vmatprep.mubr.msk.bf16.mxu1 %vm2973_vm1, %v2972_v11 }
 0x155   : > { %2808 = vmatmul.mubr.msk.bf16.gmra.mrb[76].mxu0 %vm696_vm3, %v3452_v14 }
 0x156   : > { %2811 = vmatprep.mubr.msk.bf16.mxu0 %vm2973_vm1, %v2972_v11 }
 0x159   : > { %2788 = vmatmul.mubr.msk.bf16.gmra.mrb[76].mxu1 %vm696_vm3, %v3469_v56 }
 0x15a   : > { %2791 = vmatprep.mubr.msk.bf16.mxu1 %vm2973_vm1, %v2972_v11 }
 0x15d   : > { %2812 = vmatmul.mubr.msk.bf16.gmra.mrb[80].mxu0 %vm696_vm3, %v3462_v45 }
 0x15e   : > { %2815 = vmatprep.mubr.msk.bf16.mxu0 %vm2973_vm1, %v2972_v11 }
 0x161   : > { %2792 = vmatmul.mubr.msk.bf16.gmra.mrb[80].mxu1 %vm696_vm3, %v3486_v25 }
 0x162   : > { %2795 = vmatprep.mubr.msk.bf16.mxu1 %vm2973_vm1, %v2972_v11 }
 0x165   : > { %2816 = vmatmul.mubr.msk.bf16.gmra.mrb[84].mxu0 %vm696_vm3, %v3472_v9 }
 0x166   : > { %2819 = vmatprep.mubr.msk.bf16.mxu0 %vm2973_vm1, %v2972_v11 }
 0x169   : > { %2796 = vmatmul.mubr.msk.bf16.gmra.mrb[84].mxu1 %vm696_vm3, %v3489_v35 }
 0x16d   : > { %2820 = vmatmul.mubr.msk.bf16.gmra.mrb[88].mxu0 %vm696_vm3, %v3477_v58 }
 0x18d   : > { %v746_v44 = vpop.f32.mrb[0].mxu0 }
 0x18e   : > { %v2613_v52 = vpop.f32.mrb[1].mxu0 }
 0x18f   : > { %v749_v55 = vpop.f32.mrb[2].mxu0 }
 0x190   : > { %v2614_v57 = vpop.f32.mrb[3].mxu0 }
 0x194   : > { %v770_v16 = vpop.f32.mrb[0].mxu1 }
 0x195   : > { %v2625_v13 = vpop.f32.mrb[1].mxu1 }
 0x196   : > { %v773_v21 = vpop.f32.mrb[2].mxu1 }
 0x197   : > { %v2626_v50 = vpop.f32.mrb[3].mxu1 }
 0x198   : > { %v754_v18 = vpop.f32.mrb[4].mxu0 }
 0x199   : > { %v2617_v26 = vpop.f32.mrb[5].mxu0 }
 0x19a   : > { %v757_v59 = vpop.f32.mrb[6].mxu0 }
 0x19b   : > { %v2618_v28 = vpop.f32.mrb[7].mxu0 }
 0x19c   : > { %v778_v29 = vpop.f32.mrb[4].mxu1 }
 0x19d   : > { %v2629_v11 = vpop.f32.mrb[5].mxu1 }
 0x19e   : > { %v781_v33 = vpop.f32.mrb[6].mxu1 }
 0x19f   : > { %v2630_v34 = vpop.f32.mrb[7].mxu1 }
 0x1a0   : > { %v762_v30 = vpop.f32.mrb[8].mxu0 }
 0x1a1   : > { %v2621_v41 = vpop.f32.mrb[9].mxu0 }
 0x1a2   : > { %v765_v48 = vpop.f32.mrb[10].mxu0 }
 0x1a3   : > { %v2622_v37 = vpop.f32.mrb[11].mxu0 }
 0x1a4   : > { %v841_v20 = vpop.f32.mrb[8].mxu1 }
 0x1a5   : > { %v842_v31 = vadd.f32 %v841_v20, %v746_v44  ;;  %v2637_v22 = vpop.f32.mrb[9].mxu1 }
 0x1a6   : > { %v844_v42 = vpop.f32.mrb[10].mxu1 }
 0x1a7   : > { %v845_v0 = vadd.f32 %v844_v42, %v749_v55  ;;  %v2638_v3 = vpop.f32.mrb[11].mxu1 }
 0x1a8   : > { %v967_v60 = vpop.f32.mrb[12].mxu0 }
 0x1a9   : > { %v1006_v61 = vadd.f32 %v967_v60, %v842_v31  ;;  %v2661_v47 = vpop.f32.mrb[13].mxu0 }
 0x1aa   : > { %v970_v1 = vpop.f32.mrb[14].mxu0 }
 0x1ab   : > { %v1007_v8 = vadd.f32 %v970_v1, %v845_v0  ;;  %v2662_v46 = vpop.f32.mrb[15].mxu0 }
 0x1ac   : > { %v849_v51 = vpop.f32.mrb[12].mxu1 }
 0x1ad   : > { %v850_v14 = vadd.f32 %v849_v51, %v754_v18  ;;  %v2641_v63 = vpop.f32.mrb[13].mxu1 }
 0x1ae   : > { %v852_v54 = vpop.f32.mrb[14].mxu1 }
 0x1af   : > { %v853_v36 = vadd.f32 %v852_v54, %v757_v59  ;;  %v2642_v19 = vpop.f32.mrb[15].mxu1 }
 0x1b0   : > { %v975_v45 = vpop.f32.mrb[16].mxu0 }
 0x1b1   : > { %v1008_v6 = vadd.f32 %v975_v45, %v850_v14  ;;  %v2665_v2 = vpop.f32.mrb[17].mxu0 }
 0x1b2   : > { %v978_v56 = vpop.f32.mrb[18].mxu0 }
 0x1b3   : > { %v1009_v40 = vadd.f32 %v978_v56, %v853_v36  ;;  %v2666_v9 = vpop.f32.mrb[19].mxu0 }
 0x1b4   : > { %v857_v10 = vpop.f32.mrb[16].mxu1 }
 0x1b5   : > { %v858_v12 = vadd.f32 %v857_v10, %v762_v30  ;;  %v2645_v58 = vpop.f32.mrb[17].mxu1 }
 0x1b6   : > { %v860_v24 = vpop.f32.mrb[18].mxu1 }
 0x1b7   : > { %v861_v25 = vadd.f32 %v860_v24, %v765_v48  ;;  %v2646_v35 = vpop.f32.mrb[19].mxu1 }
 0x1b8   : > { %v983_v17 = vpop.f32.mrb[20].mxu0 }
 0x1b9   : > { %v1010_v53 = vadd.f32 %v983_v17, %v858_v12  ;;  %v2669_v23 = vpop.f32.mrb[21].mxu0 }
 0x1ba   : > { %v986_v5 = vpop.f32.mrb[22].mxu0 }
 0x1bb   : > { %v1011_v4 = vadd.f32 %v986_v5, %v861_v25  ;;  %v2670_v39 = vpop.f32.mrb[23].mxu0 }
 0x1bc   : > { %v865_v62 = vpop.f32.mrb[20].mxu1 }
 0x1bd   : > { %v866_v49 = vadd.f32 %v865_v62, %v770_v16  ;;  %v2649_v38 = vpop.f32.mrb[21].mxu1 }
 0x1be   : > { %v868_v43 = vpop.f32.mrb[22].mxu1 }
 0x1bf   : > { %v869_v27 = vadd.f32 %v868_v43, %v773_v21  ;;  %v2650_v7 = vpop.f32.mrb[23].mxu1 }
 0x1c0   : > { %v991_v15 = vpop.f32.mrb[24].mxu0 }
 0x1c1   : > { %v1012_v32 = vadd.f32 %v991_v15, %v866_v49  ;;  %v2673_v44 = vpop.f32.mrb[25].mxu0 }
 0x1c2   : > { %v994_v52 = vpop.f32.mrb[26].mxu0 }
 0x1c3   : > { %v1013_v55 = vadd.f32 %v994_v52, %v869_v27  ;;  %v2674_v57 = vpop.f32.mrb[27].mxu0 }
 0x1c4   : > { %v873_v13 = vpop.f32.mrb[24].mxu1 }
 0x1c5   : > { %v874_v50 = vadd.f32 %v873_v13, %v778_v29  ;;  %v2653_v18 = vpop.f32.mrb[25].mxu1 }
 0x1c6   : > { %v876_v26 = vpop.f32.mrb[26].mxu1 }
 0x1c7   : > { %v877_v59 = vadd.f32 %v876_v26, %v781_v33  ;;  %v2654_v28 = vpop.f32.mrb[27].mxu1 }
 0x1c8   : > { %v999_v11 = vpop.f32.mrb[28].mxu0 }
 0x1c9   : > { %v1014_v34 = vadd.f32 %v999_v11, %v874_v50  ;;  %v2677_v30 = vpop.f32.mrb[29].mxu0 }
 0x1ca   : > { %v1002_v16 = vpop.f32.mrb[30].mxu0 }
 0x1cb   : > { %v1015_v41 = vadd.f32 %v1002_v16, %v877_v59  ;;  %v2678_v48 = vpop.f32.mrb[31].mxu0 }
 0x1cc   : > { %v1108_v21 = vpop.f32.mrb[28].mxu1 }
 0x1cd   : > { %v1147_v37 = vadd.f32 %v1108_v21, %v1006_v61  ;;  %v2685_v20 = vpop.f32.mrb[29].mxu1 }
 0x1ce   : > { %v1111_v31 = vpop.f32.mrb[30].mxu1 }
 0x1cf   : > { %v1148_v22 = vadd.f32 %v1111_v31, %v1007_v8  ;;  %v2686_v42 = vpop.f32.mrb[31].mxu1 }
 0x1d0   : > { %v1280_v0 = vpop.f32.mrb[32].mxu0 }
 0x1d1   : > { %v1319_v3 = vadd.f32 %v1280_v0, %v1147_v37  ;;  %v2709_v60 = vpop.f32.mrb[33].mxu0 }
 0x1d2   : > { %v1283_v29 = vpop.f32.mrb[34].mxu0 }
 0x1d3   : > { %v1320_v47 = vadd.f32 %v1283_v29, %v1148_v22  ;;  %v2710_v1 = vpop.f32.mrb[35].mxu0 }
 0x1d4   : > { %v1116_v33 = vpop.f32.mrb[32].mxu1 }
 0x1d5   : > { %v1149_v46 = vadd.f32 %v1116_v33, %v1008_v6  ;;  %v2689_v51 = vpop.f32.mrb[33].mxu1 }
 0x1d6   : > { %v1119_v14 = vpop.f32.mrb[34].mxu1 }
 0x1d7   : > { %v1150_v63 = vadd.f32 %v1119_v14, %v1009_v40  ;;  %v2690_v54 = vpop.f32.mrb[35].mxu1 }
 0x1d8   : > { %v1288_v36 = vpop.f32.mrb[36].mxu0 }
 0x1d9   : > { %v1321_v19 = vadd.f32 %v1288_v36, %v1149_v46  ;;  %v2713_v45 = vpop.f32.mrb[37].mxu0 }
 0x1da   : > { %v1291_v61 = vpop.f32.mrb[38].mxu0 }
 0x1db   : > { %v1322_v2 = vadd.f32 %v1291_v61, %v1150_v63  ;;  %v2714_v56 = vpop.f32.mrb[39].mxu0 }
 0x1dc   : > { %v1124_v8 = vpop.f32.mrb[36].mxu1 }
 0x1dd   : > { %v1151_v9 = vadd.f32 %v1124_v8, %v1010_v53  ;;  %v2693_v10 = vpop.f32.mrb[37].mxu1 }
 0x1de   : > { %v1127_v12 = vpop.f32.mrb[38].mxu1 }
 0x1df   : > { %v1152_v58 = vadd.f32 %v1127_v12, %v1011_v4  ;;  %v2694_v24 = vpop.f32.mrb[39].mxu1 }
 0x1e0   : > { %v1296_v25 = vpop.f32.mrb[40].mxu0 }
 0x1e1   : > { %v1323_v35 = vadd.f32 %v1296_v25, %v1151_v9  ;;  %v2717_v17 = vpop.f32.mrb[41].mxu0 }
 0x1e2   : > { %v1299_v6 = vpop.f32.mrb[42].mxu0 }
 0x1e3   : > { %v1324_v23 = vadd.f32 %v1299_v6, %v1152_v58  ;;  %v2718_v5 = vpop.f32.mrb[43].mxu0 }
 0x1e4   : > { %v1132_v40 = vpop.f32.mrb[40].mxu1 }
 0x1e5   : > { %v1153_v39 = vadd.f32 %v1132_v40, %v1012_v32  ;;  %v2697_v62 = vpop.f32.mrb[41].mxu1 }
 0x1e6   : > { %v1135_v49 = vpop.f32.mrb[42].mxu1 }
 0x1e7   : > { %v1154_v38 = vadd.f32 %v1135_v49, %v1013_v55  ;;  %v2698_v43 = vpop.f32.mrb[43].mxu1 }
 0x1e8   : > { %v1304_v27 = vpop.f32.mrb[44].mxu0 }
 0x1e9   : > { %v1325_v7 = vadd.f32 %v1304_v27, %v1153_v39  ;;  %v2721_v15 = vpop.f32.mrb[45].mxu0 }
 0x1ea   : > { %v1307_v53 = vpop.f32.mrb[46].mxu0 }
 0x1eb   : > { %v1326_v44 = vadd.f32 %v1307_v53, %v1154_v38  ;;  %v2722_v52 = vpop.f32.mrb[47].mxu0 }
 0x1ec   : > { %v1140_v4 = vpop.f32.mrb[44].mxu1 }
 0x1ed   : > { %v1155_v57 = vadd.f32 %v1140_v4, %v1014_v34  ;;  %v2701_v13 = vpop.f32.mrb[45].mxu1 }
 0x1ee   : > { %v1143_v50 = vpop.f32.mrb[46].mxu1 }
 0x1ef   : > { %v1156_v18 = vadd.f32 %v1143_v50, %v1015_v41  ;;  %v2702_v26 = vpop.f32.mrb[47].mxu1 }
 0x1f0   : > { %v1312_v59 = vpop.f32.mrb[48].mxu0 }
 0x1f1   : > { %v1327_v28 = vadd.f32 %v1312_v59, %v1155_v57  ;;  %v2725_v11 = vpop.f32.mrb[49].mxu0 }
 0x1f2   : > { %v1315_v32 = vpop.f32.mrb[50].mxu0 }
 0x1f3   : > { %v1328_v30 = vadd.f32 %v1315_v32, %v1156_v18  ;;  %v2726_v16 = vpop.f32.mrb[51].mxu0 }
 0x1f4   : > { %v1410_v55 = vpop.f32.mrb[48].mxu1 }
 0x1f5   : > { %v1449_v48 = vadd.f32 %v1410_v55, %v1319_v3  ;;  %v2733_v21 = vpop.f32.mrb[49].mxu1 }
 0x1f6   : > { %v1413_v37 = vpop.f32.mrb[50].mxu1 }
 0x1f7   : > { %v1450_v20 = vadd.f32 %v1413_v37, %v1320_v47  ;;  %v2734_v31 = vpop.f32.mrb[51].mxu1 }
 0x1f8   : > { %v1543_v22 = vpop.f32.mrb[52].mxu0 }
 0x1f9   : > { %v1582_v42 = vadd.f32 %v1543_v22, %v1449_v48  ;;  %v2757_v0 = vpop.f32.mrb[53].mxu0 }
 0x1fa   : > { %v1546_v34 = vpop.f32.mrb[54].mxu0  ;;  %v1875_v0 = vld [vmem:[#allocation2 + $0x8] sm:$0xff] }
 0x1fb   : > { %v1583_v60 = vadd.f32 %v1546_v34, %v1450_v20  ;;  %v2758_v29 = vpop.f32.mrb[55].mxu0 }
 0x1fc   : > { %v1418_v41 = vpop.f32.mrb[52].mxu1 }
 0x1fd   : > { %v1451_v1 = vadd.f32 %v1418_v41, %v1321_v19  ;;  %v2737_v33 = vpop.f32.mrb[53].mxu1 }
 0x1fe   : > { %v1421_v46 = vpop.f32.mrb[54].mxu1 }
 0x1ff   : > { %v1452_v51 = vadd.f32 %v1421_v46, %v1322_v2  ;;  %v2738_v14 = vpop.f32.mrb[55].mxu1 }
 0x200   : > { %v1551_v63 = vpop.f32.mrb[56].mxu0 }
 0x201   : > { %v1584_v54 = vadd.f32 %v1551_v63, %v1451_v1  ;;  %v2761_v36 = vpop.f32.mrb[57].mxu0 }
 0x202   : > { %v1554_v3 = vpop.f32.mrb[58].mxu0  ;;  %v1876_v36 = vld [vmem:[#allocation2 + $0x10] sm:$0xff] }
 0x203   : > { %v1585_v45 = vadd.f32 %v1554_v3, %v1452_v51  ;;  %v2762_v61 = vpop.f32.mrb[59].mxu0 }
 0x204   : > { %v1426_v47 = vpop.f32.mrb[56].mxu1 }
 0x205   : > { %v1453_v56 = vadd.f32 %v1426_v47, %v1323_v35  ;;  %v2741_v8 = vpop.f32.mrb[57].mxu1 }
 0x206   : > { %v1429_v9 = vpop.f32.mrb[58].mxu1 }
 0x207   : > { %v1454_v10 = vadd.f32 %v1429_v9, %v1324_v23  ;;  %v2742_v12 = vpop.f32.mrb[59].mxu1 }
 0x208   : > { %v1559_v58 = vpop.f32.mrb[60].mxu0 }
 0x209   : > { %v3652_v24 = vadd.f32 %v1559_v58, %v1453_v56  ;;  %v2765_v19 = vpop.f32.mrb[61].mxu0  ;;  %v1877_v56 = vld [vmem:[#allocation2 + $0x18] sm:$0xff] }
 0x20a   : > { %v1562_v25 = vpop.f32.mrb[62].mxu0 }
 0x20b   : > { %v3654_v17 = vadd.f32 %v1562_v25, %v1454_v10  ;;  %v2766_v2 = vpop.f32.mrb[63].mxu0 }
 0x20c   : > { %v1434_v6 = vpop.f32.mrb[60].mxu1 }
 0x20d   : > { %v1455_v5 = vadd.f32 %v1434_v6, %v1325_v7  ;;  %v2745_v40 = vpop.f32.mrb[61].mxu1 }
 0x20e   : > { %v1437_v39 = vpop.f32.mrb[62].mxu1 }
 0x20f   : > { %v1456_v62 = vadd.f32 %v1437_v39, %v1326_v44  ;;  %v2746_v49 = vpop.f32.mrb[63].mxu1 }
 0x210   : > { %v1567_v38 = vpop.f32.mrb[64].mxu0  ;;  %v1879_v49 = vld [vmem:[#allocation2 + $0x28] sm:$0xff] }
 0x211   : > { %v3656_v35 = vadd.f32 %v1567_v38, %v1455_v5  ;;  %v2769_v43 = vpop.f32.mrb[65].mxu0  ;;  %v1878_v5 = vld [vmem:[#allocation2 + $0x20] sm:$0xff] }
 0x212   : > { %v1570_v23 = vpop.f32.mrb[66].mxu0 }
 0x213   : > { %v3658_v27 = vadd.f32 %v1570_v23, %v1456_v62  ;;  %v2770_v15 = vpop.f32.mrb[67].mxu0 }
 0x214   : > { %v1442_v53 = vpop.f32.mrb[64].mxu1 }
 0x215   : > { %v1457_v52 = vadd.f32 %v1442_v53, %v1327_v28  ;;  %v2749_v4 = vpop.f32.mrb[65].mxu1  ;;  %v1874_v28 = vld [vmem:[#allocation2] sm:$0xff] }
 0x216   : > { %v1445_v57 = vpop.f32.mrb[66].mxu1 }
 0x217   : > { %v1458_v13 = vadd.f32 %v1445_v57, %v1328_v30  ;;  %v2750_v50 = vpop.f32.mrb[67].mxu1 }
 0x218   : > { %v1575_v18 = vpop.f32.mrb[68].mxu0  ;;  %v1880_v50 = vld [vmem:[#allocation2 + $0x30] sm:$0xff] }
 0x219   : > { %v3660_v7 = vadd.f32 %v1575_v18, %v1457_v52  ;;  %v2773_v26 = vpop.f32.mrb[69].mxu0 }
 0x21a   : > { %v1578_v44 = vpop.f32.mrb[70].mxu0 }
 0x21b   : > { %v3662_v59 = vadd.f32 %v1578_v44, %v1458_v13  ;;  %v2774_v11 = vpop.f32.mrb[71].mxu0 }
 0x21c   : > { %v1695_v32 = vpop.f32.mrb[68].mxu1  ;;  %v1881_v11 = vld [vmem:[#allocation2 + $0x38] sm:$0xff] }
 0x21d   : > { %v1734_v16 = vadd.f32 %v1695_v32, %v1582_v42  ;;  %v2781_v55 = vpop.f32.mrb[69].mxu1 }
 0x21e   : > { %v1698_v48 = vpop.f32.mrb[70].mxu1 }
 0x21f   : > { %v1735_v21 = vadd.f32 %v1698_v48, %v1583_v60  ;;  %v2782_v37 = vpop.f32.mrb[71].mxu1 }
 0x220   : > { %v1825_v20 = vpop.f32.mrb[72].mxu0 }
 0x221   : > { %v1864_v31 = vadd.f32 %v1825_v20, %v1734_v16  ;;  %v2805_v22 = vpop.f32.mrb[73].mxu0 }
 0x222   : > { %v1828_v30 = vpop.f32.mrb[74].mxu0  ;;  %v1882_v22 = vld [vmem:[#allocation2 + $0x40] sm:$0xff] }
 0x223   : > { %v1884_v34 = vadd.f32 %v1874_v28, %v1864_v31  ;;  %v1865_v29 = vadd.f32 %v1828_v30, %v1735_v21  ;;  %v2806_v41 = vpop.f32.mrb[75].mxu0 }
 0x224   : > { %v1703_v1 = vpop.f32.mrb[72].mxu1 }
 0x225   : > { %v1736_v33 = vadd.f32 %v1703_v1, %v1584_v54  ;;  %v2785_v46 = vpop.f32.mrb[73].mxu1  ;;  %1895 = vst.msk [vmem:[#allocation2] sm:$0xff] %vm1894_vm9, %v1884_v34  ;;  %v1885_v42 = vadd.f32 %v1875_v0, %v1865_v29  ;;  %v1883_v29 = vld [vmem:[#allocation2 + $0x48] sm:$0xff] }
 0x226   : > { %v1706_v51 = vpop.f32.mrb[74].mxu1 }
 0x227   : > { %v1737_v14 = vadd.f32 %v1706_v51, %v1585_v45  ;;  %v2786_v60 = vpop.f32.mrb[75].mxu1  ;;  %1896 = vst.msk [vmem:[#allocation2 + $0x8] sm:$0xff] %vm1894_vm9, %v1885_v42 }
 0x228   : > { %v1833_v63 = vpop.f32.mrb[76].mxu0 }
 0x229   : > { %v1866_v3 = vadd.f32 %v1833_v63, %v1736_v33  ;;  %v2809_v61 = vpop.f32.mrb[77].mxu0 }
 0x22a   : > { %v1836_v47 = vpop.f32.mrb[78].mxu0 }
 0x22b   : > { %v1886_v8 = vadd.f32 %v1876_v36, %v1866_v3  ;;  %v1867_v9 = vadd.f32 %v1836_v47, %v1737_v14  ;;  %v2810_v10 = vpop.f32.mrb[79].mxu0 }
 0x22c   : > { %v1711_v12 = vpop.f32.mrb[76].mxu1 }
 0x22d   : > { %v1738_v54 = vadd.f32 %v1711_v12, %v3652_v24  ;;  %v2789_v58 = vpop.f32.mrb[77].mxu1  ;;  %1897 = vst.msk [vmem:[#allocation2 + $0x10] sm:$0xff] %vm1894_vm9, %v1886_v8  ;;  %v1887_v19 = vadd.f32 %v1877_v56, %v1867_v9 }
 0x22e   : > { %v1714_v45 = vpop.f32.mrb[78].mxu1 }
 0x22f   : > { %v1739_v25 = vadd.f32 %v1714_v45, %v3654_v17  ;;  %v2790_v2 = vpop.f32.mrb[79].mxu1  ;;  %1898 = vst.msk [vmem:[#allocation2 + $0x18] sm:$0xff] %vm1894_vm9, %v1887_v19 }
 0x230   : > { %v1841_v6 = vpop.f32.mrb[80].mxu0 }
 0x231   : > { %v1868_v40 = vadd.f32 %v1841_v6, %v1738_v54  ;;  %v2813_v39 = vpop.f32.mrb[81].mxu0 }
 0x232   : > { %v1844_v62 = vpop.f32.mrb[82].mxu0 }
 0x233   : > { %v1888_v38 = vadd.f32 %v1878_v5, %v1868_v40  ;;  %v1869_v43 = vadd.f32 %v1844_v62, %v1739_v25  ;;  %v2814_v23 = vpop.f32.mrb[83].mxu0 }
 0x234   : > { %v1719_v24 = vpop.f32.mrb[80].mxu1 }
 0x235   : > { %v1740_v15 = vadd.f32 %v1719_v24, %v3656_v35  ;;  %v2793_v53 = vpop.f32.mrb[81].mxu1  ;;  %1899 = vst.msk [vmem:[#allocation2 + $0x20] sm:$0xff] %vm1894_vm9, %v1888_v38  ;;  %v1889_v52 = vadd.f32 %v1879_v49, %v1869_v43 }
 0x236   : > { %v1722_v17 = vpop.f32.mrb[82].mxu1 }
 0x237   : > { %v1741_v4 = vadd.f32 %v1722_v17, %v3658_v27  ;;  %v2794_v57 = vpop.f32.mrb[83].mxu1  ;;  %1900 = vst.msk [vmem:[#allocation2 + $0x28] sm:$0xff] %vm1894_vm9, %v1889_v52 }
 0x238   : > { %v1849_v13 = vpop.f32.mrb[84].mxu0 }
 0x239   : > { %v1870_v18 = vadd.f32 %v1849_v13, %v1740_v15  ;;  %v2817_v26 = vpop.f32.mrb[85].mxu0 }
 0x23a   : > { %v1852_v44 = vpop.f32.mrb[86].mxu0 }
 0x23b   : > { %v1890_v32 = vadd.f32 %v1880_v50, %v1870_v18  ;;  %v1871_v16 = vadd.f32 %v1852_v44, %v1741_v4  ;;  %v2818_v55 = vpop.f32.mrb[87].mxu0 }
 0x23c   : > { %v1727_v35 = vpop.f32.mrb[84].mxu1 }
 0x23d   : > { %v1742_v48 = vadd.f32 %v1727_v35, %v3660_v7  ;;  %v2797_v21 = vpop.f32.mrb[85].mxu1  ;;  %1901 = vst.msk [vmem:[#allocation2 + $0x30] sm:$0xff] %vm1894_vm9, %v1890_v32  ;;  %v1891_v37 = vadd.f32 %v1881_v11, %v1871_v16 }
 0x23e   : > { %v1730_v27 = vpop.f32.mrb[86].mxu1 }
 0x23f   : > { %v1743_v20 = vadd.f32 %v1730_v27, %v3662_v59  ;;  %v2798_v28 = vpop.f32.mrb[87].mxu1  ;;  %1902 = vst.msk [vmem:[#allocation2 + $0x38] sm:$0xff] %vm1894_vm9, %v1891_v37 }
 0x240   : > { %v1857_v31 = vpop.f32.mrb[88].mxu0 }
 0x241   : > { %v1872_v30 = vadd.f32 %v1857_v31, %v1742_v48  ;;  %v2821_v0 = vpop.f32.mrb[89].mxu0 }
 0x242   : > { %v1860_v34 = vpop.f32.mrb[90].mxu0 }
 0x243   : > { %v1892_v41 = vadd.f32 %v1882_v22, %v1872_v30  ;;  %v1873_v1 = vadd.f32 %v1860_v34, %v1743_v20  ;;  %v2822_v33 = vpop.f32.mrb[91].mxu0 }
 0x245   : > { %1903 = vst.msk [vmem:[#allocation2 + $0x40] sm:$0xff] %vm1894_vm9, %v1892_v41  ;;  %v1893_v7 = vadd.f32 %v1883_v29, %v1873_v1 }
 0x247   : > { %1904 = vst.msk [vmem:[#allocation2 + $0x48] sm:$0xff] %vm1894_vm9, %v1893_v7 }
 0x248 PF: > { %p2490_p13 = scmp.ne.s32.totalorder %s2944_s30, 2 }
 0x249   : > { %s3861_s22 = sld [smem:[#allocation11_spill]] (!%p2490_p13)  ;;  %v2974_v42 = vmov (!%p2490_p13), 0   ;;  %v1921_v56 = vld [vmem:[#allocation2 + $0x10] sm:$0xff] (!%p2490_p13)  ;;  %s3862_s10 = sld [smem:[#allocation10_spill]] (!%p2490_p13)  ;;  %v1919_v9 = vld [vmem:[#allocation2] sm:$0xff] (!%p2490_p13)  ;;  %v1922_v54 = vld [vmem:[#allocation2 + $0x18] sm:$0xff] (!%p2490_p13) }
 0x24a   : > { %1908 = sbr.rel (%p2490_p13) target bundleno = 797 (0x31d), region = 60  ;;  %2913 = vset.pattern.permute.xlu1 (!%p2490_p13), %v2974_v42  ;;  %2912 = vset.pattern.permute.xlu0 (!%p2490_p13), %v2974_v42  ;;  %v1920_v58 = vld [vmem:[#allocation2 + $0x8] sm:$0xff] (!%p2490_p13)  ;;  %vm2131_vm10 = vcmask (!%p2490_p13), 519168   ;;  %v1923_v39 = vld [vmem:[#allocation2 + $0x20] sm:$0xff] (!%p2490_p13)  ;;  %vm2006_vm11 = vcmask (!%p2490_p13), 523264   ;;  %v1926_v52 = vld [vmem:[#allocation2 + $0x38] sm:$0xff] (!%p2490_p13) }
 0x24b   : > { %v1924_v40 = vld [vmem:[#allocation2 + $0x28] sm:$0xff] (!%p2490_p13)  ;;  %v1925_v17 = vld [vmem:[#allocation2 + $0x30] sm:$0xff] (!%p2490_p13) }
 0x24c   : > { %v1927_v37 = vld [vmem:[#allocation2 + $0x40] sm:$0xff] (!%p2490_p13) }
 0x24e   : > { %v1928_v48 = vld [vmem:[#allocation2 + $0x48] sm:$0xff] (!%p2490_p13) }
 0x24f   : > { %v1911_v59 = vld [vmem:[%s3861_s22 + $0x10] sm:$0xff] (!%p2490_p13)  ;;  %v1909_v46 = vld [vmem:[%s3861_s22] sm:$0xff] (!%p2490_p13)  ;;  %v1912_v51 = vld [vmem:[%s3861_s22 + $0x18] sm:$0xff] (!%p2490_p13) }
 0x250   : > { %1958 = vperm.xlu1 (!%p2490_p13), %2913, %v1911_v59   ;;  %1948 = vperm.xlu0 (!%p2490_p13), %2912, %v1909_v46   ;;  %v1910_v14 = vld [vmem:[%s3861_s22 + $0x8] sm:$0xff] (!%p2490_p13)  ;;  %v1913_v63 = vld [vmem:[%s3861_s22 + $0x20] sm:$0xff] (!%p2490_p13)  ;;  %v1916_v36 = vld [vmem:[%s3861_s22 + $0x38] sm:$0xff] (!%p2490_p13) }
 0x251   : > { %v1914_v60 = vld [vmem:[%s3861_s22 + $0x28] sm:$0xff]  ;;  %v1915_v3 = vld [vmem:[%s3861_s22 + $0x30] sm:$0xff]  ;;  %v1917_v47 = vld [vmem:[%s3861_s22 + $0x40] sm:$0xff] }
 0x252   : > { %v1918_v61 = vld [vmem:[%s3861_s22 + $0x48] sm:$0xff]  ;;  %v2491_v8 = vld [vmem:[%s3862_s10] ss:$0 sm:$0xff] }
 0x253   : > { %v1938_v10 = vadd.f32 %v2491_v8, %v1921_v56  ;;  %v1936_v12 = vadd.f32 %v2491_v8, %v1919_v9  ;;  %v1939_v6 = vadd.f32 %v2491_v8, %v1922_v54  ;;  %v1937_v5 = vadd.f32 %v2491_v8, %v1920_v58 }
 0x254   : > { %1963 = vperm.xlu1 %2913, %v1912_v51   ;;  %1953 = vperm.xlu0 %2912, %v1910_v14   ;;  %v1941_v15 = vadd.f32 %v2491_v8, %v1924_v40  ;;  %v1940_v53 = vadd.f32 %v2491_v8, %v1923_v39  ;;  %v1943_v11 = vadd.f32 %v2491_v8, %v1926_v52 }
 0x255   : > { %v1942_v35 = vadd.f32 %v2491_v8, %v1925_v17  ;;  %v1945_v0 = vadd.f32 %v2491_v8, %v1928_v48  ;;  %v1944_v1 = vadd.f32 %v2491_v8, %v1927_v37 }
 0x258   : > { %1973 = vperm.xlu1 %2913, %v1914_v60   ;;  %1968 = vperm.xlu0 %2912, %v1913_v63  }
 0x25c   : > { %1983 = vperm.xlu1 %2913, %v1916_v36   ;;  %1978 = vperm.xlu0 %2912, %v1915_v3  }
 0x260   : > { %1993 = vperm.xlu1 %2913, %v1918_v61   ;;  %1988 = vperm.xlu0 %2912, %v1917_v47  }
 0x2cf   : > { %v3714_v19 = vpop.permute.xlu1 %1958  ;;  %v3716_v45 = vpop.permute.xlu0 %1948 }
 0x2d0   : > { %v3719_v25 = vmul.f32 %v3714_v19, %v1938_v10  ;;  %v3722_v2 = vmul.f32 %v3716_v45, %v1936_v12 }
 0x2d2   : > { %v2507_v62 = vpack.c.bf16 %v3719_v25, %v3719_v25  ;;  %v2505_v49 = vpack.c.bf16 %v3722_v2, %v3722_v2  ;;  %v2007_v4 = vsel %vm2006_vm11, %v3722_v2, 0.0  ;;  %v2010_v32 = vsel %vm2006_vm11, %v3719_v25, 0.0 }
 0x2d3   : > { %v3728_v38 = vpop.permute.xlu1 %1963  ;;  %v3730_v43 = vpop.permute.xlu0 %1953 }
 0x2d4   : > { %2134 = vst.msk [vmem:[%s3092_s11 + $0x8] sm:$0xf] %vm2131_vm10, %v2507_v62  ;;  %2132 = vst.msk [vmem:[%s3092_s11] sm:$0xf] %vm2131_vm10, %v2505_v49  ;;  %v3737_v23 = vmul.f32 %v3728_v38, %v1939_v6  ;;  %v3740_v24 = vmul.f32 %v3730_v43, %v1937_v5 }
 0x2d6   : > { %v2508_v57 = vpack.c.bf16 %v3737_v23, %v3737_v23  ;;  %v2008_v13 = vsel %vm2006_vm11, %v3740_v24, 0.0  ;;  %v2506_v50 = vpack.c.bf16 %v3740_v24, %v3740_v24  ;;  %v2012_v27 = vsel %vm2006_vm11, %v3737_v23, 0.0 }
 0x2d7   : > { %v2009_v18 = vadd.f32 %v2008_v13, %v2007_v4  ;;  %v3750_v26 = vpop.permute.xlu1 %1973  ;;  %v3752_v44 = vpop.permute.xlu0 %1968 }
 0x2d8   : > { %2135 = vst.msk [vmem:[%s3092_s11 + $0xc] sm:$0xf] %vm2131_vm10, %v2508_v57  ;;  %2133 = vst.msk [vmem:[%s3092_s11 + $0x4] sm:$0xf] %vm2131_vm10, %v2506_v50  ;;  %v3761_v16 = vmul.f32 %v3750_v26, %v1941_v15  ;;  %v2000_v55 = vmul.f32 %v3752_v44, %v1940_v53 }
 0x2d9   : > { %v2011_v21 = vadd.f32 %v2010_v32, %v2009_v18 }
 0x2da   : > { %v2510_v20 = vpack.c.bf16 %v3761_v16, %v3761_v16  ;;  %v2509_v28 = vpack.c.bf16 %v2000_v55, %v2000_v55  ;;  %v2014_v34 = vsel %vm2006_vm11, %v2000_v55, 0.0  ;;  %v2016_v7 = vsel %vm2006_vm11, %v3761_v16, 0.0 }
 0x2db   : > { %v2013_v31 = vadd.f32 %v2012_v27, %v2011_v21  ;;  %v3768_v22 = vpop.permute.xlu1 %1983  ;;  %v1979_v30 = vpop.permute.xlu0 %1978 }
 0x2dc   : > { %2137 = vst.msk [vmem:[%s3092_s11 + $0x14] sm:$0xf] %vm2131_vm10, %v2510_v20  ;;  %2136 = vst.msk [vmem:[%s3092_s11 + $0x10] sm:$0xf] %vm2131_vm10, %v2509_v28  ;;  %v2003_v29 = vmul.f32 %v3768_v22, %v1943_v11  ;;  %v2002_v41 = vmul.f32 %v1979_v30, %v1942_v35 }
 0x2dd   : > { %v2015_v33 = vadd.f32 %v2014_v34, %v2013_v31 }
 0x2de   : > { %v2512_v59 = vpack.c.bf16 %v2003_v29, %v2003_v29  ;;  %v2511_v46 = vpack.c.bf16 %v2002_v41, %v2002_v41  ;;  %v2018_v60 = vsel %vm2006_vm11, %v2002_v41, 0.0  ;;  %v2020_v61 = vsel %vm2006_vm11, %v2003_v29, 0.0 }
 0x2df   : > { %v2017_v42 = vadd.f32 %v2016_v7, %v2015_v33  ;;  %v1994_v51 = vpop.permute.xlu1 %1993  ;;  %v1989_v14 = vpop.permute.xlu0 %1988 }
 0x2e0   : > { %2139 = vst.msk [vmem:[%s3092_s11 + $0x1c] sm:$0xf] %vm2131_vm10, %v2512_v59  ;;  %2138 = vst.msk [vmem:[%s3092_s11 + $0x18] sm:$0xf] %vm2131_vm10, %v2511_v46  ;;  %v2005_v63 = vmul.f32 %v1994_v51, %v1945_v0  ;;  %v2004_v36 = vmul.f32 %v1989_v14, %v1944_v1 }
 0x2e1   : > { %v2019_v3 = vadd.f32 %v2018_v60, %v2017_v42 }
 0x2e2   : > { %v2514_v47 = vpack.c.bf16 %v2005_v63, %v2005_v63  ;;  %v2513_v56 = vpack.c.bf16 %v2004_v36, %v2004_v36  ;;  %v2022_v9 = vsel %vm2006_vm11, %v2004_v36, 0.0  ;;  %v2024_v12 = vsel %vm2006_vm11, %v2005_v63, 0.0 }
 0x2e3   : > { %v2021_v8 = vadd.f32 %v2020_v61, %v2019_v3 }
 0x2e4   : > { %2141 = vst.msk [vmem:[%s3092_s11 + $0x24] sm:$0xf] %vm2131_vm10, %v2514_v47  ;;  %2140 = vst.msk [vmem:[%s3092_s11 + $0x20] sm:$0xf] %vm2131_vm10, %v2513_v56 }
 0x2e5   : > { %v2023_v10 = vadd.f32 %v2022_v9, %v2021_v8 }
 0x2e7   : > { %v2025_v54 = vadd.f32 %v2024_v12, %v2023_v10 }
 0x2e9   : > { %v2026_v58 = vrot.slane %v2025_v54, 4 }
 0x2eb   : > { %v2027_v6 = vadd.f32 %v2026_v58, %v2025_v54 }
 0x2ed   : > { %v2028_v5 = vrot.slane %v2027_v6, 2 }
 0x2ef   : > { %v2029_v40 = vadd.f32 %v2028_v5, %v2027_v6 }
 0x2f1   : > { %v2030_v39 = vrot.slane %v2029_v40, 1 }
 0x2f3   : > { %v2031_v62 = vadd.f32 %v2030_v39, %v2029_v40 }
 0x2f5   : > { %v2033_v49 = vmul.f32 0.015625, %v2031_v62  ;;  %2089 = vst.msk [vmem:[%s3087_s2] sm:$0xff] %vm2006_vm11, %v2031_v62 }
 0x2f7   : > { %v2034_v15 = vsub.f32 %v3722_v2, %v2033_v49  ;;  %v2035_v53 = vsub.f32 %v3740_v24, %v2033_v49  ;;  %v2036_v52 = vsub.f32 %v3719_v25, %v2033_v49  ;;  %v2037_v17 = vsub.f32 %v3737_v23, %v2033_v49 }
 0x2f8   : > { %v2038_v4 = vsub.f32 %v2000_v55, %v2033_v49  ;;  %v2039_v50 = vsub.f32 %v3761_v16, %v2033_v49  ;;  %v2040_v32 = vsub.f32 %v2002_v41, %v2033_v49  ;;  %v2041_v25 = vsub.f32 %v2003_v29, %v2033_v49 }
 0x2f9   : > { %v2044_v57 = vmul.f32 %v2034_v15, %v3716_v45  ;;  %v2045_v13 = vmul.f32 %v2035_v53, %v3730_v43  ;;  %v2046_v18 = vmul.f32 %v2036_v52, %v3714_v19  ;;  %v2047_v11 = vmul.f32 %v2037_v17, %v3728_v38 }
 0x2fa   : > { %v2048_v2 = vmul.f32 %v2038_v4, %v3752_v44  ;;  %v2049_v23 = vmul.f32 %v2039_v50, %v3750_v26  ;;  %v2042_v16 = vsub.f32 %v2004_v36, %v2033_v49  ;;  %v2050_v37 = vmul.f32 %v2040_v32, %v1979_v30 }
 0x2fb   : > { %v2054_v35 = vmul.f32 %v2044_v57, %v2044_v57  ;;  %v2055_v24 = vmul.f32 %v2045_v13, %v2045_v13  ;;  %v2056_v48 = vmul.f32 %v2046_v18, %v2046_v18  ;;  %v2057_v55 = vmul.f32 %v2047_v11, %v2047_v11 }
 0x2fc   : > { %v2058_v19 = vmul.f32 %v2048_v2, %v2048_v2  ;;  %v2043_v20 = vsub.f32 %v2005_v63, %v2033_v49  ;;  %v2051_v44 = vmul.f32 %v2041_v25, %v3768_v22  ;;  %v2059_v28 = vmul.f32 %v2049_v23, %v2049_v23 }
 0x2fd   : > { %v2064_v45 = vsel %vm2006_vm11, %v2054_v35, 0.0  ;;  %v2065_v43 = vsel %vm2006_vm11, %v2055_v24, 0.0  ;;  %v2067_v38 = vsel %vm2006_vm11, %v2056_v48, 0.0  ;;  %v2069_v31 = vsel %vm2006_vm11, %v2057_v55, 0.0 }
 0x2fe   : > { %v2066_v21 = vadd.f32 %v2065_v43, %v2064_v45  ;;  %v2052_v26 = vmul.f32 %v2042_v16, %v1989_v14  ;;  %v2060_v34 = vmul.f32 %v2050_v37, %v2050_v37  ;;  %v2071_v29 = vsel %vm2006_vm11, %v2058_v19, 0.0 }
 0x2ff   : > { %v2053_v1 = vmul.f32 %v2043_v20, %v1994_v51  ;;  %v2061_v33 = vmul.f32 %v2051_v44, %v2051_v44  ;;  %v2073_v30 = vsel %vm2006_vm11, %v2059_v28, 0.0 }
 0x300   : > { %v2068_v27 = vadd.f32 %v2067_v38, %v2066_v21  ;;  %v2062_v59 = vmul.f32 %v2052_v26, %v2052_v26  ;;  %v2075_v46 = vsel %vm2006_vm11, %v2060_v34, 0.0 }
 0x301   : > { %v2063_v22 = vmul.f32 %v2053_v1, %v2053_v1  ;;  %v2077_v60 = vsel %vm2006_vm11, %v2061_v33, 0.0 }
 0x302   : > { %v2070_v0 = vadd.f32 %v2069_v31, %v2068_v27  ;;  %v2079_v14 = vsel %vm2006_vm11, %v2062_v59, 0.0 }
 0x303   : > { %v2081_v3 = vsel %vm2006_vm11, %v2063_v22, 0.0 }
 0x304   : > { %v2072_v41 = vadd.f32 %v2071_v29, %v2070_v0 }
 0x306   : > { %v2074_v7 = vadd.f32 %v2073_v30, %v2072_v41 }
 0x308   : > { %v2076_v42 = vadd.f32 %v2075_v46, %v2074_v7 }
 0x30a   : > { %v2078_v63 = vadd.f32 %v2077_v60, %v2076_v42 }
 0x30c   : > { %v2080_v36 = vadd.f32 %v2079_v14, %v2078_v63 }
 0x30e   : > { %v2082_v61 = vadd.f32 %v2081_v3, %v2080_v36 }
 0x310   : > { %v2083_v51 = vrot.slane %v2082_v61, 4 }
 0x312   : > { %v2084_v47 = vadd.f32 %v2083_v51, %v2082_v61 }
 0x314   : > { %v2085_v56 = vrot.slane %v2084_v47, 2 }
 0x316   : > { %v2086_v8 = vadd.f32 %v2085_v56, %v2084_v47 }
 0x318   : > { %v2087_v9 = vrot.slane %v2086_v8, 1 }
 0x31a   : > { %v2088_v10 = vadd.f32 %v2087_v9, %v2086_v8 }
 0x31c   : > { %2090 = vst.msk [vmem:[%s3097_s24] sm:$0xff] %vm2006_vm11, %v2088_v10 }
 0x31d PF: > { %s3863_s2 = sld [smem:[#allocation6_spill]]  ;;  %s3864_s30 = sld [smem:[#allocation3_spill]] }
 0x31e   : > { %s3865_s10 = sld [smem:[#allocation4_spill]]  ;;  %s3866_s11 = sld [smem:[#allocation5_spill]] }
 0x31f   : > { %s3867_s12 = sld [smem:[#allocation7_spill]]  ;;  %s3868_s13 = sld [smem:[#allocation8_spill]] }
 0x320   : > { %s3869_s14 = sld [smem:[#allocation9_spill]] }
 0x323   : > { %s20_s15 = sadd.s32 1, %s3863_s2  }
 0x324   : > { %p17_p0 = scmp.ge.s32.totalorder %s20_s15, 50  }
 0x326   :  { %19 = sbr.rel (!%p17_p0) target bundleno = 5 (0x5), region = 123 }

// kernel: unet_encoder3d.8
= control target key start
LH: loop header
LB: loop body
LE: loop exit
PB: predicated region body
PF: predicated region fallthrough
CT: control target
= control target key end

     0   :  { %s979_s15 = smov 0   ;;  %s1492_s0 = inlined_call_operand.vmem [shape: bf16[8,2,8,5,128], index: 0, kind: input, shape index: {}]   ;;  %s1493_s1 = inlined_call_operand.vmem [shape: f32[1,128], index: 1, kind: input, shape index: {}]   ;;  %s1494_s2 = inlined_call_operand.vmem [shape: f32[1,128], index: 2, kind: input, shape index: {}]   ;;  %s1495_s3 = inlined_call_operand.vmem [shape: f32[8,2,8,5,128], index: 3, kind: output, shape index: {0}]   ;;  %s1496_s4 = inlined_call_operand.vmem [shape: bf16[8,4,4,64], index: 4, kind: output, shape index: {1}]  }
   0x1 LB: > { %s875_s16 = sadd.s32 4294967295, %s951_s15   ;;  %p879_p0 = scmp.ge.s32.totalorder %s951_s15, 1  ;;  %s951_s15 = sphi %s979_s15, %s15_s15  }
   0x2   : > { %p167_p1 = scmp.lt.s32.totalorder %s951_s15, 3 }
   0x4   : > { %p168_p2 = pnand %p879_p0, %p167_p1 }
   0x5   : > { %s880_s17 = sshll.u32 (!%p168_p2), %s875_s16, 2  ;;  %v998_v0 = vld [vmem:[%s1493_s1] ss:$0 sm:$0xff] (!%p168_p2)  ;;  %s953_s30 = smov (!%p168_p2), 64   ;;  %vm764_vm0 = vcmask (!%p168_p2), 517120  }
   0x6   : > { %171 = sbr.rel (%p168_p2) target bundleno = 224 (0xe0), region = 32  ;;  %p202_p3 = scmp.lt.s32.totalorder (!%p168_p2), %s880_s17, 7  ;;  %v1011_v15 = vld [vmem:[%s1494_s2] ss:$0 sm:$0xff] (!%p168_p2) }
   0xd   : > { %s1498_s17 = smov (!%p202_p3, %s880_s17), 7 }
   0xe   : > { %s893_s18 = sshll.u32 %s1498_s17, 6  ;;  %s894_s26 = sshll.u32 %s1498_s17, 7 }
   0xf   : > { %s993_s21 = scalar_lea.vmem %s1492_s0, %s893_s18  ;;  %s1100_s29 = scalar_lea.vmem %s1495_s3, %s894_s26 }
  0x10   : > { %v238_v1 = vld [vmem:[%s993_s21 + $0x40] sm:$0x7]  ;;  %v239_v2 = vld [vmem:[%s993_s21 + $0x44] sm:$0x7]  ;;  %v240_v3 = vld [vmem:[%s993_s21 + $0x48] sm:$0x7] }
  0x11   : > { %v241_v4 = vld [vmem:[%s993_s21 + $0x4c] sm:$0x7]  ;;  %v246_v5 = vld [vmem:[%s993_s21 + $0x60] sm:$0x7]  ;;  %v247_v6 = vld [vmem:[%s993_s21 + $0x64] sm:$0x7]  ;;  %v302_v7 = vunpack.c.l.bf16 %v238_v1  ;;  %v303_v8 = vunpack.c.l.bf16 %v239_v2  ;;  %v304_v9 = vunpack.c.l.bf16 %v240_v3 }
  0x12   : > { %v248_v10 = vld [vmem:[%s993_s21 + $0x68] sm:$0x7]  ;;  %v249_v11 = vld [vmem:[%s993_s21 + $0x6c] sm:$0x7]  ;;  %v305_v12 = vunpack.c.l.bf16 %v241_v4  ;;  %v310_v13 = vunpack.c.l.bf16 %v246_v5  ;;  %v311_v14 = vunpack.c.l.bf16 %v247_v6  ;;  %v222_v32 = vld [vmem:[%s993_s21] sm:$0x7] }
  0x13   : > { %v312_v16 = vunpack.c.l.bf16 %v248_v10  ;;  %v313_v17 = vunpack.c.l.bf16 %v249_v11  ;;  %v373_v18 = vmul.f32 %v998_v0, %v302_v7  ;;  %v374_v19 = vmul.f32 %v998_v0, %v303_v8  ;;  %v223_v33 = vld [vmem:[%s993_s21 + $0x4] sm:$0x7]  ;;  %v224_v34 = vld [vmem:[%s993_s21 + $0x8] sm:$0x7]  ;;  %v225_v39 = vld [vmem:[%s993_s21 + $0xc] sm:$0x7] }
  0x14   : > { %v375_v20 = vmul.f32 %v998_v0, %v304_v9  ;;  %v376_v21 = vmul.f32 %v998_v0, %v305_v12  ;;  %v381_v22 = vmul.f32 %v998_v0, %v310_v13  ;;  %v382_v23 = vmul.f32 %v998_v0, %v311_v14  ;;  %v230_v40 = vld [vmem:[%s993_s21 + $0x20] sm:$0x7]  ;;  %v231_v45 = vld [vmem:[%s993_s21 + $0x24] sm:$0x7]  ;;  %v232_v48 = vld [vmem:[%s993_s21 + $0x28] sm:$0x7] }
  0x15   : > { %v383_v24 = vmul.f32 %v998_v0, %v312_v16  ;;  %v384_v25 = vmul.f32 %v998_v0, %v313_v17  ;;  %v1022_v26 = vadd.f32 %v1011_v15, %v373_v18  ;;  %v1025_v27 = vadd.f32 %v1011_v15, %v374_v19  ;;  %v233_v49 = vld [vmem:[%s993_s21 + $0x2c] sm:$0x7]  ;;  %v242_v13 = vld [vmem:[%s993_s21 + $0x50] sm:$0x7]  ;;  %v243_v14 = vld [vmem:[%s993_s21 + $0x54] sm:$0x7] }
  0x16   : > { %v1028_v28 = vadd.f32 %v1011_v15, %v375_v20  ;;  %v1031_v29 = vadd.f32 %v1011_v15, %v376_v21  ;;  %v1034_v30 = vadd.f32 %v1011_v15, %v381_v22  ;;  %v1037_v31 = vadd.f32 %v1011_v15, %v382_v23  ;;  %v244_v20 = vld [vmem:[%s993_s21 + $0x58] sm:$0x7]  ;;  %v245_v21 = vld [vmem:[%s993_s21 + $0x5c] sm:$0x7]  ;;  %v250_v22 = vld [vmem:[%s993_s21 + $0x70] sm:$0x7] }
  0x17   : > { %v1043_v35 = vadd.f32 %v1011_v15, %v383_v24  ;;  %v1046_v36 = vadd.f32 %v1011_v15, %v384_v25  ;;  %v508_v37 = vmax.f32 %v1022_v26, 0.0  ;;  %v509_v38 = vmax.f32 %v1025_v27, 0.0  ;;  %s895_s5 = sshll.u32 %s1498_s17, 3 }
  0x18   : > { %v510_v41 = vmax.f32 %v1028_v28, 0.0  ;;  %v511_v42 = vmax.f32 %v1031_v29, 0.0  ;;  %v516_v43 = vmax.f32 %v1034_v30, 0.0  ;;  %v517_v44 = vmax.f32 %v1037_v31, 0.0  ;;  %s1443_s8 = scalar_lea.vmem %s1496_s4, %s895_s5 }
  0x19   : > { %v518_v46 = vmax.f32 %v1043_v35, 0.0  ;;  %v519_v47 = vmax.f32 %v1046_v36, 0.0  ;;  %v286_v50 = vunpack.c.l.bf16 %v222_v32  ;;  %v287_v51 = vunpack.c.l.bf16 %v223_v33  ;;  %v251_v33 = vld [vmem:[%s993_s21 + $0x74] sm:$0x7]  ;;  %573 = vst [vmem:[%s1100_s29 + $0x88] sm:$0x1f] %v509_v38 }
  0x1a   : > { %v628_v52 = vmax.f32 %v508_v37, %v516_v43  ;;  %v629_v53 = vmax.f32 %v509_v38, %v517_v44  ;;  %v288_v54 = vunpack.c.l.bf16 %v224_v34  ;;  %v289_v55 = vunpack.c.l.bf16 %v225_v39  ;;  %574 = vst [vmem:[%s1100_s29 + $0x90] sm:$0x1f] %v510_v41  ;;  %572 = vst [vmem:[%s1100_s29 + $0x80] sm:$0x1f] %v508_v37 }
  0x1b   : > { %v630_v56 = vmax.f32 %v510_v41, %v518_v46  ;;  %v631_v57 = vmax.f32 %v511_v42, %v519_v47  ;;  %v294_v58 = vunpack.c.l.bf16 %v230_v40  ;;  %v295_v59 = vunpack.c.l.bf16 %v231_v45  ;;  %575 = vst [vmem:[%s1100_s29 + $0x98] sm:$0x1f] %v511_v42  ;;  %580 = vst [vmem:[%s1100_s29 + $0xc0] sm:$0x1f] %v516_v43 }
  0x1c   : > { %v1077_v60 = vmax.f32 %v628_v52, %v629_v53  ;;  %v296_v61 = vunpack.c.l.bf16 %v232_v48  ;;  %v297_v62 = vunpack.c.l.bf16 %v233_v49  ;;  %v357_v63 = vmul.f32 %v998_v0, %v286_v50  ;;  %v252_v48 = vld [vmem:[%s993_s21 + $0x78] sm:$0x7]  ;;  %v253_v50 = vld [vmem:[%s993_s21 + $0x7c] sm:$0x7]  ;;  %581 = vst [vmem:[%s1100_s29 + $0xc8] sm:$0x1f] %v517_v44 }
  0x1d   : > { %v1080_v1 = vmax.f32 %v630_v56, %v631_v57  ;;  %v358_v2 = vmul.f32 %v998_v0, %v287_v51  ;;  %v359_v3 = vmul.f32 %v998_v0, %v288_v54  ;;  %v360_v4 = vmul.f32 %v998_v0, %v289_v55  ;;  %582 = vst [vmem:[%s1100_s29 + $0xd0] sm:$0x1f] %v518_v46 }
  0x1e   : > { %v365_v5 = vmul.f32 %v998_v0, %v294_v58  ;;  %v366_v6 = vmul.f32 %v998_v0, %v295_v59  ;;  %v367_v7 = vmul.f32 %v998_v0, %v296_v61  ;;  %v368_v8 = vmul.f32 %v998_v0, %v297_v62  ;;  %583 = vst [vmem:[%s1100_s29 + $0xd8] sm:$0x1f] %v519_v47 }
  0x1f   : > { %v915_v9 = vpack.i.bf16 %v1080_v1, %v1077_v60  ;;  %v428_v10 = vadd.f32 %v1011_v15, %v357_v63  ;;  %v429_v11 = vadd.f32 %v1011_v15, %v358_v2  ;;  %v430_v12 = vadd.f32 %v1011_v15, %v359_v3  ;;  %v226_v63 = vld [vmem:[%s993_s21 + $0x10] sm:$0x7]  ;;  %v227_v2 = vld [vmem:[%s993_s21 + $0x14] sm:$0x7]  ;;  %v228_v3 = vld [vmem:[%s993_s21 + $0x18] sm:$0x7] }
  0x20   : > { %v431_v16 = vadd.f32 %v1011_v15, %v360_v4  ;;  %v436_v17 = vadd.f32 %v1011_v15, %v365_v5  ;;  %v437_v18 = vadd.f32 %v1011_v15, %v366_v6  ;;  %v438_v19 = vadd.f32 %v1011_v15, %v367_v7 }
  0x21   : > { %916 = vrot.lane.b32.xlu1 %v915_v9, %s953_s30  ;;  %v439_v23 = vadd.f32 %v1011_v15, %v368_v8  ;;  %v492_v24 = vmax.f32 %v428_v10, 0.0  ;;  %v493_v25 = vmax.f32 %v429_v11, 0.0  ;;  %v494_v32 = vmax.f32 %v430_v12, 0.0  ;;  %v229_v8 = vld [vmem:[%s993_s21 + $0x1c] sm:$0x7] }
  0x22   : > { %v495_v34 = vmax.f32 %v431_v16, 0.0  ;;  %v500_v39 = vmax.f32 %v436_v17, 0.0  ;;  %v501_v40 = vmax.f32 %v437_v18, 0.0  ;;  %v502_v45 = vmax.f32 %v438_v19, 0.0  ;;  %v234_v9 = vld [vmem:[%s993_s21 + $0x30] sm:$0x7] }
  0x23   : > { %v503_v49 = vmax.f32 %v439_v23, 0.0  ;;  %557 = vst [vmem:[%s1100_s29 + $0x8] sm:$0x1f] %v493_v25  ;;  %558 = vst [vmem:[%s1100_s29 + $0x10] sm:$0x1f] %v494_v32  ;;  %v306_v51 = vunpack.c.l.bf16 %v242_v13  ;;  %v307_v52 = vunpack.c.l.bf16 %v243_v14  ;;  %v308_v53 = vunpack.c.l.bf16 %v244_v20 }
  0x24   : > { %556 = vst [vmem:[%s1100_s29] sm:$0x1f] %v492_v24  ;;  %559 = vst [vmem:[%s1100_s29 + $0x18] sm:$0x1f] %v495_v34  ;;  %v620_v54 = vmax.f32 %v492_v24, %v500_v39  ;;  %v621_v55 = vmax.f32 %v493_v25, %v501_v40  ;;  %v622_v56 = vmax.f32 %v494_v32, %v502_v45  ;;  %v309_v57 = vunpack.c.l.bf16 %v245_v21  ;;  %v235_v10 = vld [vmem:[%s993_s21 + $0x34] sm:$0x7] }
  0x25   : > { %564 = vst [vmem:[%s1100_s29 + $0x40] sm:$0x1f] %v500_v39  ;;  %565 = vst [vmem:[%s1100_s29 + $0x48] sm:$0x1f] %v501_v40  ;;  %v623_v27 = vmax.f32 %v495_v34, %v503_v49  ;;  %v314_v28 = vunpack.c.l.bf16 %v250_v22  ;;  %v315_v38 = vunpack.c.l.bf16 %v251_v33  ;;  %v316_v41 = vunpack.c.l.bf16 %v252_v48  ;;  %v236_v16 = vld [vmem:[%s993_s21 + $0x38] sm:$0x7] }
  0x26   : > { %566 = vst [vmem:[%s1100_s29 + $0x50] sm:$0x1f] %v502_v45  ;;  %567 = vst [vmem:[%s1100_s29 + $0x58] sm:$0x1f] %v503_v49  ;;  %v1146_v26 = vmax.f32 %v620_v54, %v621_v55  ;;  %v317_v29 = vunpack.c.l.bf16 %v253_v50  ;;  %v377_v30 = vmul.f32 %v998_v0, %v306_v51  ;;  %v378_v31 = vmul.f32 %v998_v0, %v307_v52  ;;  %v237_v21 = vld [vmem:[%s993_s21 + $0x3c] sm:$0x7] }
  0x27   : > { %v1150_v37 = vmax.f32 %v622_v56, %v623_v27  ;;  %v379_v35 = vmul.f32 %v998_v0, %v308_v53  ;;  %v380_v42 = vmul.f32 %v998_v0, %v309_v57  ;;  %v385_v43 = vmul.f32 %v998_v0, %v314_v28 }
  0x28   : > { %v386_v36 = vmul.f32 %v998_v0, %v315_v38  ;;  %v387_v44 = vmul.f32 %v998_v0, %v316_v41  ;;  %v388_v46 = vmul.f32 %v998_v0, %v317_v29  ;;  %v1159_v47 = vadd.f32 %v1011_v15, %v377_v30  ;;  %v258_v29 = vld [vmem:[%s993_s21 + $0x90] sm:$0x7] }
  0x29   : > { %v905_v58 = vpack.i.bf16 %v1150_v37, %v1146_v26  ;;  %v1164_v59 = vadd.f32 %v1011_v15, %v378_v31  ;;  %v1167_v61 = vadd.f32 %v1011_v15, %v379_v35  ;;  %v1170_v62 = vadd.f32 %v1011_v15, %v380_v42 }
  0x2a   : > { %v1176_v4 = vadd.f32 %v1011_v15, %v385_v43  ;;  %v1179_v5 = vadd.f32 %v1011_v15, %v386_v36  ;;  %v1182_v6 = vadd.f32 %v1011_v15, %v387_v44  ;;  %v1185_v7 = vadd.f32 %v1011_v15, %v388_v46  ;;  %v259_v43 = vld [vmem:[%s993_s21 + $0x94] sm:$0x7]  ;;  %v260_v36 = vld [vmem:[%s993_s21 + $0x98] sm:$0x7]  ;;  %v261_v44 = vld [vmem:[%s993_s21 + $0x9c] sm:$0x7] }
  0x2b   : > { %906 = vrot.lane.b32.xlu0 %v905_v58, %s953_s30  ;;  %v512_v11 = vmax.f32 %v1159_v47, 0.0  ;;  %v513_v12 = vmax.f32 %v1164_v59, 0.0  ;;  %v514_v13 = vmax.f32 %v1167_v61, 0.0  ;;  %v515_v14 = vmax.f32 %v1170_v62, 0.0 }
  0x2c   : > { %v520_v17 = vmax.f32 %v1176_v4, 0.0  ;;  %v521_v18 = vmax.f32 %v1179_v5, 0.0  ;;  %v522_v19 = vmax.f32 %v1182_v6, 0.0  ;;  %v523_v20 = vmax.f32 %v1185_v7, 0.0 }
  0x2d   : > { %v290_v22 = vunpack.c.l.bf16 %v226_v63  ;;  %v291_v23 = vunpack.c.l.bf16 %v227_v2  ;;  %v292_v24 = vunpack.c.l.bf16 %v228_v3  ;;  %v293_v25 = vunpack.c.l.bf16 %v229_v8  ;;  %v266_v3 = vld [vmem:[%s993_s21 + $0xb0] sm:$0x7]  ;;  %v267_v8 = vld [vmem:[%s993_s21 + $0xb4] sm:$0x7]  ;;  %576 = vst [vmem:[%s1100_s29 + $0xa0] sm:$0x1f] %v512_v11 }
  0x2e   : > { %v632_v32 = vmax.f32 %v512_v11, %v520_v17  ;;  %v633_v33 = vmax.f32 %v513_v12, %v521_v18  ;;  %v634_v34 = vmax.f32 %v514_v13, %v522_v19  ;;  %v635_v39 = vmax.f32 %v515_v14, %v523_v20  ;;  %577 = vst [vmem:[%s1100_s29 + $0xa8] sm:$0x1f] %v513_v12 }
  0x2f   : > { %v298_v40 = vunpack.c.l.bf16 %v234_v9  ;;  %v299_v45 = vunpack.c.l.bf16 %v235_v10  ;;  %v300_v48 = vunpack.c.l.bf16 %v236_v16  ;;  %v301_v49 = vunpack.c.l.bf16 %v237_v21  ;;  %578 = vst [vmem:[%s1100_s29 + $0xb0] sm:$0x1f] %v514_v13  ;;  %579 = vst [vmem:[%s1100_s29 + $0xb8] sm:$0x1f] %v515_v14 }
  0x30   : > { %v1217_v50 = vmax.f32 %v632_v32, %v633_v33  ;;  %v1219_v51 = vmax.f32 %v634_v34, %v635_v39  ;;  %v361_v52 = vmul.f32 %v998_v0, %v290_v22  ;;  %v362_v53 = vmul.f32 %v998_v0, %v291_v23  ;;  %v268_v22 = vld [vmem:[%s993_s21 + $0xb8] sm:$0x7]  ;;  %v269_v32 = vld [vmem:[%s993_s21 + $0xbc] sm:$0x7]  ;;  %584 = vst [vmem:[%s1100_s29 + $0xe0] sm:$0x1f] %v520_v17 }
  0x31   : > { %v363_v54 = vmul.f32 %v998_v0, %v292_v24  ;;  %v364_v55 = vmul.f32 %v998_v0, %v293_v25  ;;  %v369_v56 = vmul.f32 %v998_v0, %v298_v40  ;;  %v370_v57 = vmul.f32 %v998_v0, %v299_v45  ;;  %585 = vst [vmem:[%s1100_s29 + $0xe8] sm:$0x1f] %v521_v18 }
  0x32   : > { %v920_v27 = vpack.i.bf16 %v1219_v51, %v1217_v50  ;;  %v371_v28 = vmul.f32 %v998_v0, %v300_v48  ;;  %v372_v38 = vmul.f32 %v998_v0, %v301_v49  ;;  %v432_v41 = vadd.f32 %v1011_v15, %v361_v52  ;;  %586 = vst [vmem:[%s1100_s29 + $0xf0] sm:$0x1f] %v522_v19 }
  0x33   : > { %v433_v30 = vadd.f32 %v1011_v15, %v362_v53  ;;  %v434_v31 = vadd.f32 %v1011_v15, %v363_v54  ;;  %v435_v35 = vadd.f32 %v1011_v15, %v364_v55  ;;  %v440_v42 = vadd.f32 %v1011_v15, %v369_v56  ;;  %587 = vst [vmem:[%s1100_s29 + $0xf8] sm:$0x1f] %v523_v20 }
  0x34   : > { %921 = vrot.lane.b32.xlu1 %v920_v27, %s953_s30  ;;  %v441_v46 = vadd.f32 %v1011_v15, %v370_v57  ;;  %v442_v58 = vadd.f32 %v1011_v15, %v371_v28  ;;  %v443_v63 = vadd.f32 %v1011_v15, %v372_v38  ;;  %v496_v2 = vmax.f32 %v432_v41, 0.0  ;;  %v254_v27 = vld [vmem:[%s993_s21 + $0x80] sm:$0x7]  ;;  %v255_v28 = vld [vmem:[%s993_s21 + $0x84] sm:$0x7] }
  0x35   : > { %v497_v9 = vmax.f32 %v433_v30, 0.0  ;;  %v498_v10 = vmax.f32 %v434_v31, 0.0  ;;  %v499_v16 = vmax.f32 %v435_v35, 0.0  ;;  %v504_v21 = vmax.f32 %v440_v42, 0.0  ;;  %v256_v38 = vld [vmem:[%s993_s21 + $0x88] sm:$0x7] }
  0x36   : > { %v505_v23 = vmax.f32 %v441_v46, 0.0  ;;  %v506_v24 = vmax.f32 %v442_v58, 0.0  ;;  %v507_v25 = vmax.f32 %v443_v63, 0.0  ;;  %560 = vst [vmem:[%s1100_s29 + $0x20] sm:$0x1f] %v496_v2  ;;  %v322_v33 = vunpack.c.l.bf16 %v258_v29 }
  0x37   : > { %561 = vst [vmem:[%s1100_s29 + $0x28] sm:$0x1f] %v497_v9  ;;  %562 = vst [vmem:[%s1100_s29 + $0x30] sm:$0x1f] %v498_v10  ;;  %v624_v34 = vmax.f32 %v496_v2, %v504_v21  ;;  %v323_v39 = vunpack.c.l.bf16 %v259_v43  ;;  %v324_v40 = vunpack.c.l.bf16 %v260_v36  ;;  %v325_v45 = vunpack.c.l.bf16 %v261_v44  ;;  %v257_v35 = vld [vmem:[%s993_s21 + $0x8c] sm:$0x7] }
  0x38   : > { %563 = vst [vmem:[%s1100_s29 + $0x38] sm:$0x1f] %v499_v16  ;;  %568 = vst [vmem:[%s1100_s29 + $0x60] sm:$0x1f] %v504_v21  ;;  %v625_v47 = vmax.f32 %v497_v9, %v505_v23  ;;  %v626_v11 = vmax.f32 %v498_v10, %v506_v24  ;;  %v627_v48 = vmax.f32 %v499_v16, %v507_v25  ;;  %v330_v49 = vunpack.c.l.bf16 %v266_v3  ;;  %v262_v42 = vld [vmem:[%s993_s21 + $0xa0] sm:$0x7] }
  0x39   : > { %569 = vst [vmem:[%s1100_s29 + $0x68] sm:$0x1f] %v505_v23  ;;  %570 = vst [vmem:[%s1100_s29 + $0x70] sm:$0x1f] %v506_v24  ;;  %v331_v59 = vunpack.c.l.bf16 %v267_v8  ;;  %v332_v61 = vunpack.c.l.bf16 %v268_v22  ;;  %v333_v62 = vunpack.c.l.bf16 %v269_v32  ;;  %v393_v12 = vmul.f32 %v998_v0, %v322_v33  ;;  %v263_v58 = vld [vmem:[%s993_s21 + $0xa4] sm:$0x7] }
  0x3a   : > { %571 = vst [vmem:[%s1100_s29 + $0x78] sm:$0x1f] %v507_v25  ;;  %v1281_v4 = vmax.f32 %v624_v34, %v625_v47  ;;  %v1283_v13 = vmax.f32 %v626_v11, %v627_v48  ;;  %v394_v5 = vmul.f32 %v998_v0, %v323_v39  ;;  %v395_v6 = vmul.f32 %v998_v0, %v324_v40  ;;  %v264_v3 = vld [vmem:[%s993_s21 + $0xa8] sm:$0x7]  ;;  %v265_v8 = vld [vmem:[%s993_s21 + $0xac] sm:$0x7] }
  0x3b   : > { %v396_v14 = vmul.f32 %v998_v0, %v325_v45  ;;  %v401_v7 = vmul.f32 %v998_v0, %v330_v49  ;;  %v402_v17 = vmul.f32 %v998_v0, %v331_v59  ;;  %v403_v18 = vmul.f32 %v998_v0, %v332_v61 }
  0x3c   : > { %v910_v19 = vpack.i.bf16 %v1283_v13, %v1281_v4  ;;  %v404_v20 = vmul.f32 %v998_v0, %v333_v62  ;;  %v464_v52 = vadd.f32 %v1011_v15, %v393_v12  ;;  %v465_v53 = vadd.f32 %v1011_v15, %v394_v5 }
  0x3d   : > { %v466_v54 = vadd.f32 %v1011_v15, %v395_v6  ;;  %v467_v55 = vadd.f32 %v1011_v15, %v396_v14  ;;  %v472_v56 = vadd.f32 %v1011_v15, %v401_v7  ;;  %v473_v57 = vadd.f32 %v1011_v15, %v402_v17  ;;  %v274_v17 = vld [vmem:[%s993_s21 + $0xd0] sm:$0x7] }
  0x3e   : > { %911 = vrot.lane.b32.xlu0 %v910_v19, %s953_s30  ;;  %v474_v41 = vadd.f32 %v1011_v15, %v403_v18  ;;  %v475_v29 = vadd.f32 %v1011_v15, %v404_v20  ;;  %v528_v30 = vmax.f32 %v464_v52, 0.0  ;;  %v529_v31 = vmax.f32 %v465_v53, 0.0  ;;  %v275_v18 = vld [vmem:[%s993_s21 + $0xd4] sm:$0x7] }
  0x3f   : > { %v530_v43 = vmax.f32 %v466_v54, 0.0  ;;  %v531_v36 = vmax.f32 %v467_v55, 0.0  ;;  %v536_v44 = vmax.f32 %v472_v56, 0.0  ;;  %v537_v46 = vmax.f32 %v473_v57, 0.0  ;;  %v276_v54 = vld [vmem:[%s993_s21 + $0xd8] sm:$0x7] }
  0x40   : > { %v538_v63 = vmax.f32 %v474_v41, 0.0  ;;  %v539_v2 = vmax.f32 %v475_v29, 0.0  ;;  %592 = vst [vmem:[%s1100_s29 + $0x120] sm:$0x1f] %v528_v30  ;;  %593 = vst [vmem:[%s1100_s29 + $0x128] sm:$0x1f] %v529_v31  ;;  %v318_v9 = vunpack.c.l.bf16 %v254_v27  ;;  %v319_v10 = vunpack.c.l.bf16 %v255_v28 }
  0x41   : > { %v640_v16 = vmax.f32 %v528_v30, %v536_v44  ;;  %v641_v21 = vmax.f32 %v529_v31, %v537_v46  ;;  %594 = vst [vmem:[%s1100_s29 + $0x130] sm:$0x1f] %v530_v43  ;;  %595 = vst [vmem:[%s1100_s29 + $0x138] sm:$0x1f] %v531_v36  ;;  %v320_v22 = vunpack.c.l.bf16 %v256_v38  ;;  %v321_v23 = vunpack.c.l.bf16 %v257_v35  ;;  %v277_v55 = vld [vmem:[%s993_s21 + $0xdc] sm:$0x7] }
  0x42   : > { %600 = vst [vmem:[%s1100_s29 + $0x160] sm:$0x1f] %v536_v44  ;;  %601 = vst [vmem:[%s1100_s29 + $0x168] sm:$0x1f] %v537_v46  ;;  %v642_v24 = vmax.f32 %v530_v43, %v538_v63  ;;  %v643_v25 = vmax.f32 %v531_v36, %v539_v2  ;;  %v326_v32 = vunpack.c.l.bf16 %v262_v42  ;;  %v327_v33 = vunpack.c.l.bf16 %v263_v58  ;;  %v282_v56 = vld [vmem:[%s993_s21 + $0xf0] sm:$0x7] }
  0x43   : > { %602 = vst [vmem:[%s1100_s29 + $0x170] sm:$0x1f] %v538_v63  ;;  %603 = vst [vmem:[%s1100_s29 + $0x178] sm:$0x1f] %v539_v2  ;;  %v1319_v34 = vmax.f32 %v640_v16, %v641_v21  ;;  %v328_v39 = vunpack.c.l.bf16 %v264_v3  ;;  %v329_v40 = vunpack.c.l.bf16 %v265_v8  ;;  %v389_v45 = vmul.f32 %v998_v0, %v318_v9  ;;  %v283_v41 = vld [vmem:[%s993_s21 + $0xf4] sm:$0x7] }
  0x44   : > { %v1322_v47 = vmax.f32 %v642_v24, %v643_v25  ;;  %v390_v11 = vmul.f32 %v998_v0, %v319_v10  ;;  %v391_v48 = vmul.f32 %v998_v0, %v320_v22  ;;  %v392_v49 = vmul.f32 %v998_v0, %v321_v23  ;;  %v284_v42 = vld [vmem:[%s993_s21 + $0xf8] sm:$0x7]  ;;  %v285_v36 = vld [vmem:[%s993_s21 + $0xfc] sm:$0x7] }
  0x45   : > { %v397_v59 = vmul.f32 %v998_v0, %v326_v32  ;;  %v398_v61 = vmul.f32 %v998_v0, %v327_v33  ;;  %v399_v62 = vmul.f32 %v998_v0, %v328_v39  ;;  %v400_v12 = vmul.f32 %v998_v0, %v329_v40 }
  0x46   : > { %v930_v5 = vpack.i.bf16 %v1322_v47, %v1319_v34  ;;  %v460_v6 = vadd.f32 %v1011_v15, %v389_v45  ;;  %v461_v14 = vadd.f32 %v1011_v15, %v390_v11  ;;  %v462_v7 = vadd.f32 %v1011_v15, %v391_v48 }
  0x47   : > { %v463_v19 = vadd.f32 %v1011_v15, %v392_v49  ;;  %v468_v20 = vadd.f32 %v1011_v15, %v397_v59  ;;  %v469_v52 = vadd.f32 %v1011_v15, %v398_v61  ;;  %v470_v53 = vadd.f32 %v1011_v15, %v399_v62 }
  0x48   : > { %931 = vrot.lane.b32.xlu1 %v930_v5, %s953_s30  ;;  %v471_v57 = vadd.f32 %v1011_v15, %v400_v12  ;;  %v524_v27 = vmax.f32 %v460_v6, 0.0  ;;  %v525_v28 = vmax.f32 %v461_v14, 0.0  ;;  %v526_v38 = vmax.f32 %v462_v7, 0.0  ;;  %v270_v5 = vld [vmem:[%s993_s21 + $0xc0] sm:$0x7] }
  0x49   : > { %v527_v29 = vmax.f32 %v463_v19, 0.0  ;;  %v532_v30 = vmax.f32 %v468_v20, 0.0  ;;  %v533_v31 = vmax.f32 %v469_v52, 0.0  ;;  %v534_v35 = vmax.f32 %v470_v53, 0.0  ;;  %v271_v6 = vld [vmem:[%s993_s21 + $0xc4] sm:$0x7] }
  0x4a   : > { %v535_v43 = vmax.f32 %v471_v57, 0.0  ;;  %589 = vst [vmem:[%s1100_s29 + $0x108] sm:$0x1f] %v525_v28  ;;  %590 = vst [vmem:[%s1100_s29 + $0x110] sm:$0x1f] %v526_v38  ;;  %v338_v44 = vunpack.c.l.bf16 %v274_v17  ;;  %v339_v46 = vunpack.c.l.bf16 %v275_v18  ;;  %v340_v58 = vunpack.c.l.bf16 %v276_v54 }
  0x4b   : > { %588 = vst [vmem:[%s1100_s29 + $0x100] sm:$0x1f] %v524_v27  ;;  %v636_v63 = vmax.f32 %v524_v27, %v532_v30  ;;  %v637_v2 = vmax.f32 %v525_v28, %v533_v31  ;;  %v638_v3 = vmax.f32 %v526_v38, %v534_v35  ;;  %591 = vst [vmem:[%s1100_s29 + $0x118] sm:$0x1f] %v527_v29  ;;  %v341_v8 = vunpack.c.l.bf16 %v277_v55  ;;  %v272_v14 = vld [vmem:[%s993_s21 + $0xc8] sm:$0x7] }
  0x4c   : > { %596 = vst [vmem:[%s1100_s29 + $0x140] sm:$0x1f] %v532_v30  ;;  %597 = vst [vmem:[%s1100_s29 + $0x148] sm:$0x1f] %v533_v31  ;;  %v639_v9 = vmax.f32 %v527_v29, %v535_v43  ;;  %v346_v10 = vunpack.c.l.bf16 %v282_v56  ;;  %v347_v16 = vunpack.c.l.bf16 %v283_v41  ;;  %v348_v21 = vunpack.c.l.bf16 %v284_v42  ;;  %v273_v20 = vld [vmem:[%s993_s21 + $0xcc] sm:$0x7] }
  0x4d   : > { %598 = vst [vmem:[%s1100_s29 + $0x150] sm:$0x1f] %v534_v35  ;;  %599 = vst [vmem:[%s1100_s29 + $0x158] sm:$0x1f] %v535_v43  ;;  %v1358_v22 = vmax.f32 %v636_v63, %v637_v2  ;;  %v349_v23 = vunpack.c.l.bf16 %v285_v36  ;;  %v409_v24 = vmul.f32 %v998_v0, %v338_v44  ;;  %v410_v25 = vmul.f32 %v998_v0, %v339_v46  ;;  %v278_v52 = vld [vmem:[%s993_s21 + $0xe0] sm:$0x7] }
  0x4e   : > { %v1362_v32 = vmax.f32 %v638_v3, %v639_v9  ;;  %v411_v33 = vmul.f32 %v998_v0, %v340_v58  ;;  %v412_v39 = vmul.f32 %v998_v0, %v341_v8  ;;  %v417_v40 = vmul.f32 %v998_v0, %v346_v10  ;;  %v279_v53 = vld [vmem:[%s993_s21 + $0xe4] sm:$0x7]  ;;  %v280_v27 = vld [vmem:[%s993_s21 + $0xe8] sm:$0x7]  ;;  %v281_v30 = vld [vmem:[%s993_s21 + $0xec] sm:$0x7] }
  0x4f   : > { %v418_v45 = vmul.f32 %v998_v0, %v347_v16  ;;  %v419_v11 = vmul.f32 %v998_v0, %v348_v21  ;;  %v420_v48 = vmul.f32 %v998_v0, %v349_v23  ;;  %v480_v49 = vadd.f32 %v1011_v15, %v409_v24 }
  0x50   : > { %v925_v59 = vpack.i.bf16 %v1362_v32, %v1358_v22  ;;  %v481_v61 = vadd.f32 %v1011_v15, %v410_v25  ;;  %v482_v62 = vadd.f32 %v1011_v15, %v411_v33  ;;  %v483_v12 = vadd.f32 %v1011_v15, %v412_v39 }
  0x51   : > { %v488_v7 = vadd.f32 %v1011_v15, %v417_v40  ;;  %v489_v17 = vadd.f32 %v1011_v15, %v418_v45  ;;  %v490_v18 = vadd.f32 %v1011_v15, %v419_v11  ;;  %v491_v19 = vadd.f32 %v1011_v15, %v420_v48 }
  0x52   : > { %926 = vrot.lane.b32.xlu0 %v925_v59, %s953_s30  ;;  %v544_v54 = vmax.f32 %v480_v49, 0.0  ;;  %v545_v55 = vmax.f32 %v481_v61, 0.0  ;;  %v546_v56 = vmax.f32 %v482_v62, 0.0  ;;  %v547_v57 = vmax.f32 %v483_v12, 0.0 }
  0x53   : > { %v552_v28 = vmax.f32 %v488_v7, 0.0  ;;  %v553_v38 = vmax.f32 %v489_v17, 0.0  ;;  %v554_v41 = vmax.f32 %v490_v18, 0.0  ;;  %v555_v29 = vmax.f32 %v491_v19, 0.0 }
  0x54   : > { %608 = vst [vmem:[%s1100_s29 + $0x1a0] sm:$0x1f] %v544_v54  ;;  %609 = vst [vmem:[%s1100_s29 + $0x1a8] sm:$0x1f] %v545_v55  ;;  %v334_v31 = vunpack.c.l.bf16 %v270_v5  ;;  %v335_v35 = vunpack.c.l.bf16 %v271_v6  ;;  %v336_v42 = vunpack.c.l.bf16 %v272_v14  ;;  %v337_v43 = vunpack.c.l.bf16 %v273_v20 }
  0x55   : > { %610 = vst [vmem:[%s1100_s29 + $0x1b0] sm:$0x1f] %v546_v56  ;;  %611 = vst [vmem:[%s1100_s29 + $0x1b8] sm:$0x1f] %v547_v57  ;;  %v648_v36 = vmax.f32 %v544_v54, %v552_v28  ;;  %v649_v44 = vmax.f32 %v545_v55, %v553_v38  ;;  %v650_v46 = vmax.f32 %v546_v56, %v554_v41  ;;  %v342_v63 = vunpack.c.l.bf16 %v278_v52 }
  0x56   : > { %v651_v58 = vmax.f32 %v547_v57, %v555_v29  ;;  %616 = vst [vmem:[%s1100_s29 + $0x1e0] sm:$0x1f] %v552_v28  ;;  %617 = vst [vmem:[%s1100_s29 + $0x1e8] sm:$0x1f] %v553_v38  ;;  %v343_v2 = vunpack.c.l.bf16 %v279_v53  ;;  %v344_v3 = vunpack.c.l.bf16 %v280_v27  ;;  %v345_v8 = vunpack.c.l.bf16 %v281_v30 }
  0x57   : > { %618 = vst [vmem:[%s1100_s29 + $0x1f0] sm:$0x1f] %v554_v41  ;;  %619 = vst [vmem:[%s1100_s29 + $0x1f8] sm:$0x1f] %v555_v29  ;;  %v1397_v9 = vmax.f32 %v648_v36, %v649_v44  ;;  %v405_v16 = vmul.f32 %v998_v0, %v334_v31  ;;  %v406_v21 = vmul.f32 %v998_v0, %v335_v35 }
  0x58   : > { %v1399_v10 = vmax.f32 %v650_v46, %v651_v58  ;;  %v407_v23 = vmul.f32 %v998_v0, %v336_v42  ;;  %v408_v24 = vmul.f32 %v998_v0, %v337_v43  ;;  %v413_v25 = vmul.f32 %v998_v0, %v342_v63 }
  0x59   : > { %v414_v33 = vmul.f32 %v998_v0, %v343_v2  ;;  %v415_v40 = vmul.f32 %v998_v0, %v344_v3  ;;  %v416_v45 = vmul.f32 %v998_v0, %v345_v8  ;;  %v476_v11 = vadd.f32 %v1011_v15, %v405_v16 }
  0x5a   : > { %v940_v39 = vpack.i.bf16 %v1399_v10, %v1397_v9  ;;  %v477_v48 = vadd.f32 %v1011_v15, %v406_v21  ;;  %v478_v49 = vadd.f32 %v1011_v15, %v407_v23  ;;  %v479_v59 = vadd.f32 %v1011_v15, %v408_v24 }
  0x5b   : > { %v484_v61 = vadd.f32 %v1011_v15, %v413_v25  ;;  %v485_v62 = vadd.f32 %v1011_v15, %v414_v33  ;;  %v486_v0 = vadd.f32 %v1011_v15, %v415_v40  ;;  %v487_v12 = vadd.f32 %v1011_v15, %v416_v45 }
  0x5c   : > { %941 = vrot.lane.b32.xlu1 %v940_v39, %s953_s30  ;;  %v540_v5 = vmax.f32 %v476_v11, 0.0  ;;  %v541_v6 = vmax.f32 %v477_v48, 0.0  ;;  %v542_v14 = vmax.f32 %v478_v49, 0.0  ;;  %v543_v7 = vmax.f32 %v479_v59, 0.0 }
  0x5d   : > { %v548_v17 = vmax.f32 %v484_v61, 0.0  ;;  %v549_v18 = vmax.f32 %v485_v62, 0.0  ;;  %v550_v19 = vmax.f32 %v486_v0, 0.0  ;;  %v551_v20 = vmax.f32 %v487_v12, 0.0 }
  0x5e   : > { %604 = vst [vmem:[%s1100_s29 + $0x180] sm:$0x1f] %v540_v5  ;;  %605 = vst [vmem:[%s1100_s29 + $0x188] sm:$0x1f] %v541_v6 }
  0x5f   : > { %v644_v52 = vmax.f32 %v540_v5, %v548_v17  ;;  %606 = vst [vmem:[%s1100_s29 + $0x190] sm:$0x1f] %v542_v14  ;;  %607 = vst [vmem:[%s1100_s29 + $0x198] sm:$0x1f] %v543_v7  ;;  %v645_v53 = vmax.f32 %v541_v6, %v549_v18  ;;  %v646_v15 = vmax.f32 %v542_v14, %v550_v19 }
  0x60   : > { %612 = vst [vmem:[%s1100_s29 + $0x1c0] sm:$0x1f] %v548_v17  ;;  %v647_v54 = vmax.f32 %v543_v7, %v551_v20  ;;  %613 = vst [vmem:[%s1100_s29 + $0x1c8] sm:$0x1f] %v549_v18 }
  0x61   : > { %614 = vst [vmem:[%s1100_s29 + $0x1d0] sm:$0x1f] %v550_v19  ;;  %615 = vst [vmem:[%s1100_s29 + $0x1d8] sm:$0x1f] %v551_v20  ;;  %v1428_v55 = vmax.f32 %v644_v52, %v645_v53 }
  0x62   : > { %v1430_v56 = vmax.f32 %v646_v15, %v647_v54 }
  0x64   : > { %v935_v57 = vpack.i.bf16 %v1430_v56, %v1428_v55 }
  0x66   : > { %936 = vrot.lane.b32.xlu0 %v935_v57, %s953_s30 }
  0x93   : > { %v917_v27 = vpop.permute.xlu1 %916 }
  0x94   : > { %v919_v28 = vunpack.i.h.bf16 %v917_v27  ;;  %v918_v38 = vunpack.i.l.bf16 %v917_v27 }
  0x96   : > { %v737_v41 = vmax.f32 %v1080_v1, %v919_v28  ;;  %v736_v29 = vmax.f32 %v1077_v60, %v918_v38 }
  0x98   : > { %v753_v36 = vpack.c.bf16 %v737_v41, %v737_v41  ;;  %v752_v44 = vpack.c.bf16 %v736_v29, %v736_v29 }
  0x9a   : > { %770 = vst.msk [vmem:[%s1443_s8 + $0xa] sm:$0x3] %vm764_vm0, %v753_v36  ;;  %769 = vst.msk [vmem:[%s1443_s8 + $0x8] sm:$0x3] %vm764_vm0, %v752_v44 }
  0x9d   : > { %v907_v30 = vpop.permute.xlu0 %906 }
  0x9e   : > { %v909_v31 = vunpack.i.h.bf16 %v907_v30  ;;  %v908_v35 = vunpack.i.l.bf16 %v907_v30 }
  0xa0   : > { %v733_v42 = vmax.f32 %v1150_v37, %v909_v31  ;;  %v732_v43 = vmax.f32 %v1146_v26, %v908_v35 }
  0xa2   : > { %v749_v60 = vpack.c.bf16 %v733_v42, %v733_v42  ;;  %v748_v1 = vpack.c.bf16 %v732_v43, %v732_v43 }
  0xa4   : > { %766 = vst.msk [vmem:[%s1443_s8 + $0x2] sm:$0x3] %vm764_vm0, %v749_v60  ;;  %765 = vst.msk [vmem:[%s1443_s8] sm:$0x3] %vm764_vm0, %v748_v1 }
  0xa6   : > { %v922_v26 = vpop.permute.xlu1 %921 }
  0xa7   : > { %v924_v37 = vunpack.i.h.bf16 %v922_v26  ;;  %v923_v46 = vunpack.i.l.bf16 %v922_v26 }
  0xa9   : > { %v739_v58 = vmax.f32 %v1219_v51, %v924_v37  ;;  %v738_v63 = vmax.f32 %v1217_v50, %v923_v46 }
  0xab   : > { %v755_v23 = vpack.c.bf16 %v739_v58, %v739_v58  ;;  %v754_v24 = vpack.c.bf16 %v738_v63, %v738_v63 }
  0xad   : > { %772 = vst.msk [vmem:[%s1443_s8 + $0xe] sm:$0x3] %vm764_vm0, %v755_v23  ;;  %771 = vst.msk [vmem:[%s1443_s8 + $0xc] sm:$0x3] %vm764_vm0, %v754_v24 }
  0xb0   : > { %v912_v2 = vpop.permute.xlu0 %911 }
  0xb1   : > { %v914_v3 = vunpack.i.h.bf16 %v912_v2  ;;  %v913_v8 = vunpack.i.l.bf16 %v912_v2 }
  0xb3   : > { %v735_v16 = vmax.f32 %v1283_v13, %v914_v3  ;;  %v734_v21 = vmax.f32 %v1281_v4, %v913_v8 }
  0xb5   : > { %v751_v25 = vpack.c.bf16 %v735_v16, %v735_v16  ;;  %v750_v33 = vpack.c.bf16 %v734_v21, %v734_v21 }
  0xb7   : > { %768 = vst.msk [vmem:[%s1443_s8 + $0x6] sm:$0x3] %vm764_vm0, %v751_v25  ;;  %767 = vst.msk [vmem:[%s1443_s8 + $0x4] sm:$0x3] %vm764_vm0, %v750_v33 }
  0xba   : > { %v932_v50 = vpop.permute.xlu1 %931 }
  0xbb   : > { %v934_v51 = vunpack.i.h.bf16 %v932_v50  ;;  %v933_v13 = vunpack.i.l.bf16 %v932_v50 }
  0xbd   : > { %v743_v4 = vmax.f32 %v1322_v47, %v934_v51  ;;  %v742_v39 = vmax.f32 %v1319_v34, %v933_v13 }
  0xbf   : > { %v759_v40 = vpack.c.bf16 %v743_v4, %v743_v4  ;;  %v758_v45 = vpack.c.bf16 %v742_v39, %v742_v39 }
  0xc1   : > { %775 = vst.msk [vmem:[%s1443_s8 + $0x14] sm:$0x3] %vm764_vm0, %v758_v45  ;;  %776 = vst.msk [vmem:[%s1443_s8 + $0x16] sm:$0x3] %vm764_vm0, %v759_v40 }
  0xc4   : > { %v927_v11 = vpop.permute.xlu0 %926 }
  0xc5   : > { %v929_v48 = vunpack.i.h.bf16 %v927_v11  ;;  %v928_v49 = vunpack.i.l.bf16 %v927_v11 }
  0xc7   : > { %v741_v59 = vmax.f32 %v1362_v32, %v929_v48  ;;  %v740_v61 = vmax.f32 %v1358_v22, %v928_v49 }
  0xc9   : > { %v757_v62 = vpack.c.bf16 %v741_v59, %v741_v59  ;;  %v756_v0 = vpack.c.bf16 %v740_v61, %v740_v61 }
  0xcb   : > { %773 = vst.msk [vmem:[%s1443_s8 + $0x10] sm:$0x3] %vm764_vm0, %v756_v0  ;;  %774 = vst.msk [vmem:[%s1443_s8 + $0x12] sm:$0x3] %vm764_vm0, %v757_v62 }
  0xce   : > { %v942_v34 = vpop.permute.xlu1 %941 }
  0xcf   : > { %v944_v47 = vunpack.i.h.bf16 %v942_v34  ;;  %v943_v12 = vunpack.i.l.bf16 %v942_v34 }
  0xd1   : > { %v747_v5 = vmax.f32 %v1399_v10, %v944_v47  ;;  %v746_v6 = vmax.f32 %v1397_v9, %v943_v12 }
  0xd3   : > { %v763_v14 = vpack.c.bf16 %v747_v5, %v747_v5  ;;  %v762_v7 = vpack.c.bf16 %v746_v6, %v746_v6 }
  0xd5   : > { %779 = vst.msk [vmem:[%s1443_s8 + $0x1c] sm:$0x3] %vm764_vm0, %v762_v7  ;;  %780 = vst.msk [vmem:[%s1443_s8 + $0x1e] sm:$0x3] %vm764_vm0, %v763_v14 }
  0xd8   : > { %v937_v22 = vpop.permute.xlu0 %936 }
  0xd9   : > { %v939_v32 = vunpack.i.h.bf16 %v937_v22  ;;  %v938_v17 = vunpack.i.l.bf16 %v937_v22 }
  0xdb   : > { %v745_v18 = vmax.f32 %v1430_v56, %v939_v32  ;;  %v744_v19 = vmax.f32 %v1428_v55, %v938_v17 }
  0xdd   : > { %v761_v20 = vpack.c.bf16 %v745_v18, %v745_v18  ;;  %v760_v52 = vpack.c.bf16 %v744_v19, %v744_v19 }
  0xdf   : > { %777 = vst.msk [vmem:[%s1443_s8 + $0x18] sm:$0x3] %vm764_vm0, %v760_v52  ;;  %778 = vst.msk [vmem:[%s1443_s8 + $0x1a] sm:$0x3] %vm764_vm0, %v761_v20 }
  0xe0 PF: > { %s15_s15 = sadd.s32 1, %s951_s15  }
  0xe1   : > { %p12_p4 = scmp.ge.s32.totalorder %s15_s15, 4  }
  0xe3   :  { %14 = sbr.rel (!%p12_p4) target bundleno = 1 (0x1), region = 74 }

// kernel: unet_encoder3d.9
= control target key start
LH: loop header
LB: loop body
LE: loop exit
PB: predicated region body
PF: predicated region fallthrough
CT: control target
= control target key end

     0   :  { %s2205_s30 = smov 0   ;;  %s2207_s3 = smov 0   ;;  %s2434_s0 = inlined_call_operand.vmem [shape: bf16[2,6,42,64], index: 0, kind: input, shape index: {}]   ;;  %s2435_s1 = inlined_call_operand.vmem [shape: bf16[27,64,128], index: 1, kind: input, shape index: {}]   ;;  %s2436_s2 = inlined_call_operand.vmem [shape: f32[1,128], index: 2, kind: input, shape index: {}]   ;;  %s2437_s3 = inlined_call_operand.vmem [shape: f32[1,64], index: 3, kind: input, shape index: {}]   ;;  %s2438_s4 = inlined_call_operand.vmem [shape: f32[1,64], index: 4, kind: input, shape index: {}]   ;;  %s2439_s5 = inlined_call_operand.vmem [shape: f32[42,1], index: 5, kind: input, shape index: {}]   ;;  %s2440_s6 = inlined_call_operand.vmem [shape: f32[24,1], index: 6, kind: input, shape index: {}]   ;;  %s2441_s7 = inlined_call_operand.vmem [shape: bf16[2,4,24,128], index: 7, kind: output, shape index: {0}]   ;;  %s2442_s8 = inlined_call_operand.vmem [shape: f32[2,4,8,128], index: 8, kind: output, shape index: {1}]   ;;  %s2443_s9 = inlined_call_operand.vmem [shape: f32[2,4,8,128], index: 9, kind: output, shape index: {2}]  }
   0x1   :  { %s2209_s4 = smov 0   ;;  %s2211_s10 = smov 0  }
   0x2   :  { %s2213_s5 = smov 0   ;;  %s2215_s11 = smov 0  }
   0x3   :  { %s2217_s12 = smov 0  }
   0x4 LB: > { %2447 = sst [smem:[#allocation3_spill]] %s2139_s10  ;;  %s32_s13 = sadd.s32 1, %s2139_s10  ;;  %s2151_s12 = sphi %s2217_s12, %s20_s12   ;;  %s2147_s11 = sphi %s2215_s11, %s2458_s11   ;;  %s2143_s5 = sphi %s2213_s5, %s2457_s5   ;;  %s2139_s10 = sphi %s2211_s10, %s2456_s10   ;;  %s2135_s4 = sphi %s2209_s4, %s2455_s4   ;;  %s2131_s3 = sphi %s2207_s3, %s2454_s3   ;;  %s2127_s30 = sphi %s2205_s30, %s2453_s30  }
   0x5   : > { %2448 = sst [smem:[#allocation4_spill]] %s2143_s5  ;;  %p33_p0 = scmp.ge.s32.totalorder %s32_s13, 3 }
   0x6   : > { %2449 = sst [smem:[#allocation5_spill]] %s2147_s11  ;;  %s35_s14 = sadd.s32 1, %s2143_s5 }
   0x7   : > { %p1671_p1 = scmp.ge.s32.totalorder %s2151_s12, 1  ;;  %p327_p2 = scmp.lt.s32.totalorder %s2151_s12, 25 }
   0x8   : > { %s2460_s13 = smov (%p33_p0, %s32_s13), 0  ;;  %s2462_s14 = smov (!%p33_p0, %s35_s14), %s2143_s5 }
   0x9   : > { %2450 = sst [smem:[#allocation6_spill]] %s2460_s13  ;;  %p328_p3 = pnand %p1671_p1, %p327_p2 }
   0xa   : > { %p37_p4 = scmp.ge.s32.totalorder %s2462_s14, 4  ;;  %s39_s15 = sadd.s32 1, %s2147_s11 }
   0xb   : > { %331 = sbr.rel (%p328_p3) target bundleno = 519 (0x207), region = 48  ;;  %s2253_s16 = sadd.s32 (!%p328_p3), %s2127_s30, %s2131_s3 }
   0xc   : > { %s2464_s14 = smov (%p37_p4, %s2462_s14), 0  ;;  %s2466_s15 = smov (!%p37_p4, %s39_s15), %s2147_s11 }
   0xd   : > { %2451 = sst [smem:[#allocation7_spill]] %s2464_s14  ;;  %p41_p5 = scmp.ge.s32.totalorder %s2466_s15, 2 }
   0xe   : > { %p389_p6 = scmp.lt.s32.totalorder (!%p328_p3), %s2135_s4, 1  ;;  %p391_p7 = scmp.lt.s32.totalorder (!%p328_p3), %s2253_s16, 5 }
   0xf   : > { %s2468_s15 = smov (%p41_p5, %s2466_s15), 0  ;;  %p401_p8 = scmp.lt.s32.totalorder (!%p328_p3), %s2131_s3, 3 }
  0x10   : > { %2452 = sst [smem:[#allocation8_spill]] %s2468_s15  ;;  %p1678_p9 = scmp.ne.s32.totalorder (!%p328_p3), %s2127_s30, 0 }
  0x12   : > { %s2470_s4 = smov (!%p389_p6, %s2135_s4), 1  ;;  %s2472_s3 = smov (!%p401_p8, %s2131_s3), 3 }
  0x13   : > { %s392_s17 = scalar_select %p391_p7, %s2253_s16, 5 }
  0x14   : > { %s1992_s18 = smul.u32 36, %s2470_s4  ;;  %s1674_s20 = sshll.u32 %s2470_s4, 2  ;;  %v2153_v0 = vmov (!%p1678_p9), 0.0  }
  0x15   : > { %s1991_s19 = smul.u32 6, %s392_s17  ;;  %s413_s28 = sadd.s32 %s1674_s20, %s2472_s3  ;;  %429 = vst [vmem:[#allocation2] sm:$0xff] (!%p1678_p9), %v2153_v0  ;;  %430 = vst [vmem:[#allocation2 + $0x8] sm:$0xff] (!%p1678_p9), %v2153_v0 }
  0x16   : > { %s1994_s22 = smul.u32 12, %s2470_s4  ;;  %s1675_s15 = sshll.u32 %s413_s28, 3  ;;  %431 = vst [vmem:[#allocation2 + $0x10] sm:$0xff] (!%p1678_p9), %v2153_v0 }
  0x17   : > { %s395_s21 = sadd.s32 %s1992_s18, %s1991_s19  ;;  %s1993_s24 = smul.u32 3, %s2472_s3 }
  0x18   : > { %s1672_s23 = sshll.u32 %s395_s21, 2  ;;  %s2267_s5 = scalar_lea.vmem %s2442_s8, %s1675_s15 }
  0x19   : > { %s2262_s27 = scalar_lea.vmem %s2434_s0, %s1672_s23  ;;  %s405_s29 = sadd.s32 %s1994_s22, %s1993_s24 }
  0x1a   : > { %s1673_s14 = sshll.u32 %s405_s29, 2  ;;  %s2277_s21 = scalar_lea.vmem %s2443_s9, %s1675_s15 }
  0x1b   : > { %s2272_s4 = scalar_lea.vmem %s2441_s7, %s1673_s14  ;;  %428 = sbr.rel (%p1678_p9) target bundleno = 34 (0x22), region = 52 }
  0x22 PF: > { %p433_p10 = scmp.ge.s32.totalorder %s2253_s16, 1  ;;  %p434_p11 = scmp.le.s32.totalorder %s2253_s16, 4 }
  0x24   : > { %p435_p12 = pnand %p434_p11, %p433_p10 }
  0x25   : > { %s1820_s3 = smul.u32 (!%p435_p12), 288, %s2127_s30  ;;  %v439_v1 = vld [vmem:[%s2262_s27] sm:$0xf] (!%p435_p12)  ;;  %v2285_v2 = vld [vmem:[%s2262_s27 + $0x4] sm:$0xf] (!%p435_p12)  ;;  %vm516_vm0 = vcmask (!%p435_p12), 523264  }
  0x26   : > { %438 = sbr.rel (%p435_p12) target bundleno = 341 (0x155), region = 56  ;;  %v2288_v3 = vld [vmem:[%s2262_s27 + $0x8] sm:$0xf] (!%p435_p12)  ;;  %v2291_v4 = vld [vmem:[%s2262_s27 + $0xc] sm:$0xf] (!%p435_p12)  ;;  %v2294_v5 = vcombine.low (!%p435_p12), %v439_v1, %v2285_v2  ;;  %vm662_vm2 = vcmask (!%p435_p12), 1046528  }
  0x27   : > { %s2299_s13 = scalar_lea.vmem (!%p435_p12), %s2435_s1, %s1820_s3  ;;  %v2303_v6 = vcombine.low (!%p435_p12), %v2288_v3, %v2291_v4  ;;  %vm476_vm1 = vsmask.f32 (!%p435_p12), 7424  ;;  %v1682_v28 = vcombine.low (!%p435_p12), %v2288_v3, %v2288_v3  ;;  %vm759_vm3 = vcmask (!%p435_p12), 1044480   ;;  %v443_v47 = vld [vmem:[%s2262_s27 + $0x10] sm:$0xf] (!%p435_p12) }
  0x28   : > { %v2053_v7 = vld [vmem:[%s2299_s13 + $0x20] sm:$0xff] (!%p435_p12)   ;;  %v478_v8 = vshrl.u32 (!%p435_p12), %v2294_v5, 16  ;;  %1903 = vmatprep.mubr.msk.bf16.mxu1 (!%p435_p12), %vm516_vm0, %v2294_v5  ;;  %v480_v10 = vshll.u32 (!%p435_p12), %v2294_v5, 16  ;;  %v2055_v11 = vld [vmem:[%s2299_s13 + $0x28] sm:$0xff] (!%p435_p12)   ;;  %v2057_v15 = vld [vmem:[%s2299_s13 + $0x30] sm:$0xff] (!%p435_p12)   ;;  %v663_v26 = vrot.slane (!%p435_p12), %v2294_v5, 1  ;;  %v2352_v51 = vcombine.low (!%p435_p12), %v2285_v2, %v2288_v3 }
  0x29   : > { %v2054_v9 = vld [vmem:[%s2299_s13] sm:$0xff] (!%p435_p12)   ;;  %1883 = vmatprep.subr.bf16.mxu0 (!%p435_p12), %v2053_v7  ;;  %v485_v12 = vshll.u32 (!%p435_p12), %v2303_v6, 16  ;;  %v2056_v13 = vld [vmem:[%s2299_s13 + $0x8] sm:$0xff] (!%p435_p12)   ;;  %v2058_v17 = vld [vmem:[%s2299_s13 + $0x10] sm:$0xff] (!%p435_p12)   ;;  %v489_v22 = vshrl.u32 (!%p435_p12), %v2303_v6, 16  ;;  %v664_v27 = vrot.slane (!%p435_p12), %v2303_v6, 1  ;;  %v2356_v52 = vcombine.low (!%p435_p12), %v2291_v4, %v443_v47 }
  0x2a   : > { %1895 = vmatprep.subr.bf16.mxu1 (!%p435_p12), %v2054_v9  ;;  %1884 = vmatpush3.bf16.msra.mxu0 (!%p435_p12), %v2053_v7  ;;  %v482_v14 = vrot.slane (!%p435_p12), %v480_v10, 1  ;;  %v2059_v20 = vld [vmem:[%s2299_s13 + $0x38] sm:$0xff] (!%p435_p12)   ;;  %v2064_v23 = vld [vmem:[%s2299_s13 + $0x40] sm:$0xff] (!%p435_p12)   ;;  %v760_v29 = vrot.slane (!%p435_p12), %v2294_v5, 3  ;;  %v761_v30 = vrot.slane (!%p435_p12), %v2303_v6, 3  ;;  %v2066_v31 = vld [vmem:[%s2299_s13 + $0x48] sm:$0xff] (!%p435_p12)   ;;  %v1760_v6 = vcombine.low (!%p435_p12), %v2291_v4, %v2291_v4 }
  0x2b   : > { %1896 = vmatpush3.bf16.msra.mxu1 (!%p435_p12), %v2054_v9  ;;  %1885 = vmatprep.subr.bf16.mxu0 (!%p435_p12), %v2055_v11  ;;  %v487_v16 = vrot.slane (!%p435_p12), %v485_v12, 1  ;;  %v2060_v21 = vld [vmem:[%s2299_s13 + $0x18] sm:$0xff] (!%p435_p12)   ;;  %v2065_v24 = vld [vmem:[%s2299_s13 + $0x60] sm:$0xff] (!%p435_p12)   ;;  %v2067_v32 = vld [vmem:[%s2299_s13 + $0x68] sm:$0xff] (!%p435_p12)   ;;  %v665_v33 = vsel (!%p435_p12), %vm662_vm2, %v663_v26, %v664_v27  ;;  %v857_v37 = vrot.slane (!%p435_p12), %v478_v8, 3  ;;  %v861_v39 = vrot.slane (!%p435_p12), %v485_v12, 4 }
  0x2c   : > { %1897 = vmatprep.subr.bf16.mxu1 (!%p435_p12), %v2056_v13  ;;  %v483_v18 = vor.u32 (!%p435_p12), %v482_v14, %v478_v8  ;;  %v762_v34 = vsel (!%p435_p12), %vm759_vm3, %v760_v29, %v761_v30  ;;  %v2068_v35 = vld [vmem:[%s2299_s13 + $0x50] sm:$0xff] (!%p435_p12)   ;;  %v2070_v38 = vld [vmem:[%s2299_s13 + $0x58] sm:$0xff] (!%p435_p12)   ;;  %v858_v41 = vrot.slane (!%p435_p12), %v480_v10, 4  ;;  %v860_v42 = vrot.slane (!%p435_p12), %v489_v22, 3  ;;  %v2072_v43 = vld [vmem:[%s2299_s13 + $0x80] sm:$0xff] (!%p435_p12)  }
  0x2d   : > { %v491_v25 = vor.u32 %v489_v22, %v487_v16  ;;  %v2069_v36 = vld [vmem:[%s2299_s13 + $0x70] sm:$0xff]   ;;  %v2071_v40 = vld [vmem:[%s2299_s13 + $0x78] sm:$0xff]   ;;  %v2073_v44 = vld [vmem:[%s2299_s13 + $0xa0] sm:$0xff]   ;;  %vm856_vm4 = vsmask.f32 4352  ;;  %v1153_v55 = vshrl.u32 %v2352_v51, 16 }
  0x2e   : > { %1886 = vmatpush3.bf16.msra.mxu0 %v2055_v11  ;;  %v488_v19 = vsel %vm476_vm1, %v483_v18, %v487_v16  ;;  %v859_v45 = vor.u32 %v858_v41, %v857_v37  ;;  %v862_v46 = vor.u32 %v861_v39, %v860_v42  ;;  %v2074_v48 = vld [vmem:[%s2299_s13 + $0x88] sm:$0xff]   ;;  %v2076_v53 = vld [vmem:[%s2299_s13 + $0x90] sm:$0xff]   ;;  %v1156_v56 = vshll.u32 %v2352_v51, 16  ;;  %v2078_v59 = vld [vmem:[%s2299_s13 + $0x98] sm:$0xff]  }
  0x2f   : > { %1898 = vmatpush3.bf16.msra.mxu1 %v2056_v13  ;;  %1887 = vmatprep.subr.bf16.mxu0 %v2057_v15  ;;  %v2075_v49 = vld [vmem:[%s2299_s13 + $0xa8] sm:$0xff]   ;;  %v2077_v54 = vld [vmem:[%s2299_s13 + $0xb0] sm:$0xff]   ;;  %v1161_v57 = vshrl.u32 %v2356_v52, 16  ;;  %v1164_v58 = vshll.u32 %v2356_v52, 16  ;;  %v2079_v60 = vld [vmem:[%s2299_s13 + $0xb8] sm:$0xff]   ;;  %v1155_v61 = vrot.slane %v1153_v55, 2 }
  0x30   : > { %1899 = vmatprep.subr.bf16.mxu1 %v2058_v17  ;;  %1891 = vmatprep.mubr.msk.bf16.mxu0 %vm516_vm0, %v488_v19  ;;  %v863_v50 = vsel %vm856_vm4, %v859_v45, %v862_v46  ;;  %v1158_v62 = vrot.slane %v1156_v56, 3  ;;  %v2080_v1 = vld [vmem:[%s2299_s13 + $0xc0] sm:$0xff]   ;;  %v1056_v3 = vrot.slane %v2352_v51, 2  ;;  %v1057_v5 = vrot.slane %v2356_v52, 2  ;;  %v2084_v9 = vld [vmem:[%s2299_s13 + $0xc8] sm:$0xff]   ;;  %v2086_v12 = vld [vmem:[%s2299_s13 + $0xd0] sm:$0xff]  }
  0x31   : > { %v1163_v63 = vrot.slane %v1161_v57, 2  ;;  %v1166_v0 = vrot.slane %v1164_v58, 3  ;;  %v2083_v2 = vld [vmem:[%s2299_s13 + $0xe0] sm:$0xff]   ;;  %vm1055_vm5 = vcmask 1045504   ;;  %vm1152_vm6 = vsmask.f32 5376 }
  0x32   : > { %1888 = vmatpush3.bf16.msra.mxu0 %v2057_v15  ;;  %v1159_v7 = vor.u32 %v1158_v62, %v1155_v61  ;;  %v2085_v10 = vld [vmem:[%s2299_s13 + $0xe8] sm:$0xff]   ;;  %v1058_v11 = vsel %vm1055_vm5, %v1056_v3, %v1057_v5  ;;  %v2087_v13 = vld [vmem:[%s2299_s13 + $0xf0] sm:$0xff]   ;;  %v2088_v14 = vld [vmem:[%s2299_s13 + $0xd8] sm:$0xff]   ;;  %v1263_v18 = vrot.slane %v2356_v52, 3 }
  0x33   : > { %1900 = vmatpush3.bf16.msra.mxu1 %v2058_v17  ;;  %1889 = vmatprep.subr.bf16.mxu0 %v2059_v20  ;;  %v1167_v8 = vor.u32 %v1166_v0, %v1163_v63  ;;  %v2089_v15 = vld [vmem:[%s2299_s13 + $0xf8] sm:$0xff]   ;;  %v2091_v16 = vld [vmem:[%s2299_s13 + $0x100] sm:$0xff]   ;;  %v1262_v17 = vrot.slane %v2352_v51, 3  ;;  %v2092_v19 = vld [vmem:[%s2299_s13 + $0x108] sm:$0xff]  }
  0x34   : > { %1901 = vmatprep.subr.bf16.mxu1 %v2060_v21  ;;  %v2094_v22 = vld [vmem:[%s2299_s13 + $0x118] sm:$0xff]  }
  0x35   : > { %v1168_v4 = vsel %vm1152_vm6, %v1159_v7, %v1167_v8 }
  0x36   : > { %1890 = vmatpush3.bf16.msra.mxu0 %v2059_v20  ;;  %v1264_v20 = vsel %vm759_vm3, %v1262_v17, %v1263_v18 }
  0x37   : > { %1902 = vmatpush3.bf16.msra.mxu1 %v2060_v21  ;;  %1907 = vmatprep.subr.bf16.mxu0 %v2064_v23  ;;  %v2093_v21 = vld [vmem:[%s2299_s13 + $0x110] sm:$0xff]  }
  0x38   : > { %1919 = vmatprep.subr.bf16.mxu1 %v2065_v24 }
  0x39   : > { %1892 = vmatmul.mubr.msk.bf16.vlgmr.msra.gmra.mrb[0].mxu0 %vm516_vm0, %v491_v25 }
  0x3a   : > { %1904 = vmatmul.mubr.msk.bf16.vlgmr.msra.gmra.mrb[0].mxu1 %vm516_vm0, %v1682_v28  ;;  %1908 = vmatpush3.bf16.msra.mxu0 %v2064_v23 }
  0x3b   : > { %1920 = vmatpush3.bf16.msra.mxu1 %v2065_v24  ;;  %1909 = vmatprep.subr.bf16.mxu0 %v2066_v31 }
  0x3c   : > { %1921 = vmatprep.subr.bf16.mxu1 %v2067_v32  ;;  %1915 = vmatprep.mubr.msk.bf16.mxu0 %vm516_vm0, %v665_v33 }
  0x3d   : > { %1927 = vmatprep.mubr.msk.bf16.mxu1 %vm516_vm0, %v762_v34 }
  0x3e   : > { %1910 = vmatpush3.bf16.msra.mxu0 %v2066_v31 }
  0x3f   : > { %1922 = vmatpush3.bf16.msra.mxu1 %v2067_v32  ;;  %1911 = vmatprep.subr.bf16.mxu0 %v2068_v35 }
  0x40   : > { %1923 = vmatprep.subr.bf16.mxu1 %v2069_v36 }
  0x42   : > { %1912 = vmatpush3.bf16.msra.mxu0 %v2068_v35 }
  0x43   : > { %1924 = vmatpush3.bf16.msra.mxu1 %v2069_v36  ;;  %1913 = vmatprep.subr.bf16.mxu0 %v2070_v38 }
  0x44   : > { %1925 = vmatprep.subr.bf16.mxu1 %v2071_v40 }
  0x46   : > { %1914 = vmatpush3.bf16.msra.mxu0 %v2070_v38 }
  0x47   : > { %1926 = vmatpush3.bf16.msra.mxu1 %v2071_v40  ;;  %1931 = vmatprep.subr.bf16.mxu0 %v2072_v43 }
  0x48   : > { %1943 = vmatprep.subr.bf16.mxu1 %v2073_v44 }
  0x49   : > { %1916 = vmatmul.mubr.msk.bf16.vlgmr.msra.gmra.mrb[4].mxu0 %vm516_vm0, %v664_v27 }
  0x4a   : > { %1932 = vmatpush3.bf16.msra.mxu0 %v2072_v43  ;;  %1928 = vmatmul.mubr.msk.bf16.vlgmr.msra.gmra.mrb[4].mxu1 %vm516_vm0, %v761_v30 }
  0x4b   : > { %1944 = vmatpush3.bf16.msra.mxu1 %v2073_v44  ;;  %1933 = vmatprep.subr.bf16.mxu0 %v2074_v48 }
  0x4c   : > { %1945 = vmatprep.subr.bf16.mxu1 %v2075_v49  ;;  %1939 = vmatprep.mubr.msk.bf16.mxu0 %vm516_vm0, %v863_v50 }
  0x4d   : > { %1951 = vmatprep.mubr.msk.bf16.mxu1 %vm516_vm0, %v2352_v51 }
  0x4e   : > { %1934 = vmatpush3.bf16.msra.mxu0 %v2074_v48 }
  0x4f   : > { %1946 = vmatpush3.bf16.msra.mxu1 %v2075_v49  ;;  %1935 = vmatprep.subr.bf16.mxu0 %v2076_v53 }
  0x50   : > { %1947 = vmatprep.subr.bf16.mxu1 %v2077_v54 }
  0x52   : > { %1936 = vmatpush3.bf16.msra.mxu0 %v2076_v53 }
  0x53   : > { %1948 = vmatpush3.bf16.msra.mxu1 %v2077_v54  ;;  %1937 = vmatprep.subr.bf16.mxu0 %v2078_v59 }
  0x54   : > { %1949 = vmatprep.subr.bf16.mxu1 %v2079_v60 }
  0x56   : > { %1938 = vmatpush3.bf16.msra.mxu0 %v2078_v59 }
  0x57   : > { %1950 = vmatpush3.bf16.msra.mxu1 %v2079_v60  ;;  %1955 = vmatprep.subr.bf16.mxu0 %v2080_v1 }
  0x58   : > { %1967 = vmatprep.subr.bf16.mxu1 %v2083_v2 }
  0x59   : > { %1940 = vmatmul.mubr.msk.bf16.vlgmr.msra.gmra.mrb[8].mxu0 %vm516_vm0, %v862_v46 }
  0x5a   : > { %1956 = vmatpush3.bf16.msra.mxu0 %v2080_v1  ;;  %1952 = vmatmul.mubr.msk.bf16.vlgmr.msra.gmra.mrb[8].mxu1 %vm516_vm0, %v1760_v6 }
  0x5b   : > { %1968 = vmatpush3.bf16.msra.mxu1 %v2083_v2  ;;  %1957 = vmatprep.subr.bf16.mxu0 %v2084_v9 }
  0x5c   : > { %1969 = vmatprep.subr.bf16.mxu1 %v2085_v10  ;;  %1963 = vmatprep.mubr.msk.bf16.mxu0 %vm516_vm0, %v1058_v11 }
  0x5d   : > { %1975 = vmatprep.mubr.msk.bf16.mxu1 %vm516_vm0, %v1168_v4 }
  0x5e   : > { %1958 = vmatpush3.bf16.msra.mxu0 %v2084_v9 }
  0x5f   : > { %1970 = vmatpush3.bf16.msra.mxu1 %v2085_v10  ;;  %1959 = vmatprep.subr.bf16.mxu0 %v2086_v12 }
  0x60   : > { %1971 = vmatprep.subr.bf16.mxu1 %v2087_v13 }
  0x62   : > { %1960 = vmatpush3.bf16.msra.mxu0 %v2086_v12 }
  0x63   : > { %1972 = vmatpush3.bf16.msra.mxu1 %v2087_v13  ;;  %1961 = vmatprep.subr.bf16.mxu0 %v2088_v14  ;;  %v1348_v13 = vld [vmem:[#allocation2 + $0x10] sm:$0xff] }
  0x64   : > { %1973 = vmatprep.subr.bf16.mxu1 %v2089_v15 }
  0x66   : > { %1962 = vmatpush3.bf16.msra.mxu0 %v2088_v14 }
  0x67   : > { %1974 = vmatpush3.bf16.msra.mxu1 %v2089_v15  ;;  %1979 = vmatprep.subr.bf16.mxu0 %v2091_v16 }
  0x69   : > { %1964 = vmatmul.mubr.msk.bf16.vlgmr.msra.gmra.mrb[12].mxu0 %vm516_vm0, %v1057_v5 }
  0x6a   : > { %1980 = vmatpush3.bf16.msra.mxu0 %v2091_v16  ;;  %1976 = vmatmul.mubr.msk.bf16.vlgmr.msra.gmra.mrb[12].mxu1 %vm516_vm0, %v1167_v8  ;;  %v1346_v16 = vld [vmem:[#allocation2] sm:$0xff] }
  0x6b   : > { %1981 = vmatprep.subr.bf16.mxu0 %v2092_v19  ;;  %1987 = vmatprep.mubr.msk.bf16.mxu0 %vm516_vm0, %v1264_v20 }
  0x6e   : > { %1982 = vmatpush3.bf16.msra.mxu0 %v2092_v19 }
  0x6f   : > { %1983 = vmatprep.subr.bf16.mxu0 %v2093_v21 }
  0x72   : > { %1984 = vmatpush3.bf16.msra.mxu0 %v2093_v21  ;;  %v1347_v21 = vld [vmem:[#allocation2 + $0x8] sm:$0xff] }
  0x73   : > { %1985 = vmatprep.subr.bf16.mxu0 %v2094_v22 }
  0x76   : > { %1986 = vmatpush3.bf16.msra.mxu0 %v2094_v22 }
  0x79   : > { %1988 = vmatmul.mubr.msk.bf16.vlgmr.msra.gmra.mrb[16].mxu0 %vm516_vm0, %v1263_v18 }
 0x10c   : > { %v1893_v23 = vpop.f32.mrb[0].mxu0 }
 0x10d   : > { %v1905_v24 = vpop.f32.mrb[0].mxu1  ;;  %v557_v25 = vpop.f32.mrb[1].mxu0 }
 0x10e   : > { %v643_v26 = vadd.f32 %v1905_v24, %v1893_v23  ;;  %v634_v27 = vpop.f32.mrb[1].mxu1  ;;  %v1894_v28 = vpop.f32.mrb[2].mxu0 }
 0x10f   : > { %v635_v29 = vadd.f32 %v634_v27, %v557_v25  ;;  %v1906_v30 = vpop.f32.mrb[2].mxu1  ;;  %v560_v31 = vpop.f32.mrb[3].mxu0 }
 0x110   : > { %v637_v32 = vpop.f32.mrb[3].mxu1 }
 0x111   : > { %v638_v33 = vadd.f32 %v637_v32, %v560_v31 }
 0x11c   : > { %v1917_v34 = vpop.f32.mrb[4].mxu0 }
 0x11d   : > { %v746_v35 = vadd.f32 %v1917_v34, %v643_v26  ;;  %v730_v36 = vpop.f32.mrb[5].mxu0  ;;  %v1929_v37 = vpop.f32.mrb[4].mxu1 }
 0x11e   : > { %v744_v38 = vadd.f32 %v730_v36, %v635_v29  ;;  %v1918_v39 = vpop.f32.mrb[6].mxu0  ;;  %v827_v40 = vpop.f32.mrb[5].mxu1 }
 0x11f   : > { %v843_v41 = vadd.f32 %v1929_v37, %v746_v35  ;;  %v733_v42 = vpop.f32.mrb[7].mxu0  ;;  %v1930_v43 = vpop.f32.mrb[6].mxu1 }
 0x120   : > { %v745_v44 = vadd.f32 %v733_v42, %v638_v33  ;;  %v841_v45 = vadd.f32 %v827_v40, %v744_v38  ;;  %v830_v46 = vpop.f32.mrb[7].mxu1 }
 0x122   : > { %v842_v47 = vadd.f32 %v830_v46, %v745_v44 }
 0x12c   : > { %v1941_v48 = vpop.f32.mrb[8].mxu0 }
 0x12d   : > { %v944_v49 = vadd.f32 %v1941_v48, %v843_v41  ;;  %v928_v50 = vpop.f32.mrb[9].mxu0  ;;  %v1953_v51 = vpop.f32.mrb[8].mxu1 }
 0x12e   : > { %v942_v52 = vadd.f32 %v928_v50, %v841_v45  ;;  %v1942_v53 = vpop.f32.mrb[10].mxu0  ;;  %v1023_v54 = vpop.f32.mrb[9].mxu1 }
 0x12f   : > { %v1039_v55 = vadd.f32 %v1953_v51, %v944_v49  ;;  %v931_v56 = vpop.f32.mrb[11].mxu0  ;;  %v1954_v57 = vpop.f32.mrb[10].mxu1 }
 0x130   : > { %v943_v58 = vadd.f32 %v931_v56, %v842_v47  ;;  %v1037_v59 = vadd.f32 %v1023_v54, %v942_v52  ;;  %v1026_v60 = vpop.f32.mrb[11].mxu1 }
 0x132   : > { %v1038_v61 = vadd.f32 %v1026_v60, %v943_v58 }
 0x13c   : > { %v1965_v62 = vpop.f32.mrb[12].mxu0 }
 0x13d   : > { %v1139_v63 = vadd.f32 %v1965_v62, %v1039_v55  ;;  %v1123_v0 = vpop.f32.mrb[13].mxu0  ;;  %v1977_v1 = vpop.f32.mrb[12].mxu1 }
 0x13e   : > { %v1137_v2 = vadd.f32 %v1123_v0, %v1037_v59  ;;  %v1966_v3 = vpop.f32.mrb[14].mxu0  ;;  %v1233_v5 = vpop.f32.mrb[13].mxu1 }
 0x13f   : > { %v1249_v6 = vadd.f32 %v1977_v1, %v1139_v63  ;;  %v1126_v7 = vpop.f32.mrb[15].mxu0  ;;  %v1978_v8 = vpop.f32.mrb[14].mxu1 }
 0x140   : > { %v1138_v9 = vadd.f32 %v1126_v7, %v1038_v61  ;;  %v1247_v10 = vadd.f32 %v1233_v5, %v1137_v2  ;;  %v1236_v11 = vpop.f32.mrb[15].mxu1 }
 0x142   : > { %v1248_v4 = vadd.f32 %v1236_v11, %v1138_v9 }
 0x14c   : > { %v1989_v12 = vpop.f32.mrb[16].mxu0 }
 0x14d   : > { %v1345_v14 = vadd.f32 %v1989_v12, %v1249_v6  ;;  %v1329_v15 = vpop.f32.mrb[17].mxu0 }
 0x14e   : > { %v1343_v17 = vadd.f32 %v1329_v15, %v1247_v10  ;;  %v1990_v18 = vpop.f32.mrb[18].mxu0 }
 0x14f   : > { %v1351_v19 = vadd.f32 %v1348_v13, %v1345_v14  ;;  %v1332_v20 = vpop.f32.mrb[19].mxu0 }
 0x150   : > { %v1349_v22 = vadd.f32 %v1346_v16, %v1343_v17  ;;  %v1344_v23 = vadd.f32 %v1332_v20, %v1248_v4 }
 0x151   : > { %1354 = vst [vmem:[#allocation2 + $0x10] sm:$0xff] %v1351_v19 }
 0x152   : > { %1352 = vst [vmem:[#allocation2] sm:$0xff] %v1349_v22  ;;  %v1350_v24 = vadd.f32 %v1347_v21, %v1344_v23 }
 0x154   : > { %1353 = vst [vmem:[#allocation2 + $0x8] sm:$0xff] %v1350_v24 }
 0x155 PF: > { %p1813_p13 = scmp.ne.s32.totalorder %s2127_s30, 2 }
 0x156   : > { %v1359_v25 = vld [vmem:[%s2440_s6] sm:$0xff] (!%p1813_p13)  ;;  %v1361_v26 = vld [vmem:[%s2440_s6 + $0x10] sm:$0xff] (!%p1813_p13)  ;;  %v2154_v27 = vmov (!%p1813_p13), 0   ;;  %v1360_v28 = vld [vmem:[%s2440_s6 + $0x8] sm:$0xff] (!%p1813_p13) }
 0x157   : > { %1358 = sbr.rel (%p1813_p13) target bundleno = 519 (0x207), region = 60  ;;  %2095 = vset.pattern.permute.xlu0 (!%p1813_p13), %v2154_v27  ;;  %2096 = vset.pattern.permute.xlu1 (!%p1813_p13), %v2154_v27  ;;  %v1814_v30 = vld [vmem:[%s2436_s2] ss:$0 sm:$0xff] (!%p1813_p13) }
 0x158   : > { %1377 = vperm.xlu0 (!%p1813_p13), %2095, %v1359_v25   ;;  %1387 = vperm.xlu1 (!%p1813_p13), %2096, %v1361_v26   ;;  %v1364_v29 = vld [vmem:[#allocation2 + $0x10] sm:$0xff] (!%p1813_p13) }
 0x159   : > { %v1374_v31 = vadd.f32 (!%p1813_p13), %v1814_v30, %v1364_v29  ;;  %v1362_v32 = vld [vmem:[#allocation2] sm:$0xff] (!%p1813_p13) }
 0x15a   : > { %v1372_v36 = vadd.f32 (!%p1813_p13), %v1814_v30, %v1362_v32 }
 0x15b   : > { %v1363_v33 = vld [vmem:[#allocation2 + $0x8] sm:$0xff] (!%p1813_p13) }
 0x15c   : > { %1382 = vperm.xlu0 (!%p1813_p13), %2095, %v1360_v28   ;;  %v1373_v37 = vadd.f32 (!%p1813_p13), %v1814_v30, %v1363_v33 }
 0x1d7   : > { %v1378_v34 = vpop.permute.xlu0 %1377  ;;  %v1388_v35 = vpop.permute.xlu1 %1387 }
 0x1d8   : > { %v1392_v38 = vmul.f32 %v1388_v35, %v1374_v31  ;;  %v1390_v41 = vmul.f32 %v1378_v34, %v1372_v36 }
 0x1da   : > { %v1823_v39 = vpack.c.bf16 %v1392_v38, %v1392_v38 }
 0x1db   : > { %v1383_v40 = vpop.permute.xlu0 %1382 }
 0x1dc   : > { %v1391_v42 = vmul.f32 %v1383_v40, %v1373_v37  ;;  %1437 = vst [vmem:[%s2272_s4 + $0x8] sm:$0xf] %v1823_v39 }
 0x1de   : > { %v1393_v43 = vadd.f32 %v1391_v42, %v1390_v41  ;;  %v1827_v44 = vpack.c.bf16 %v1391_v42, %v1390_v41 }
 0x1e0   : > { %1828 = vst [vmem:[%s2272_s4] sm:$0xff] %v1827_v44   ;;  %v1394_v45 = vadd.f32 %v1393_v43, %v1392_v38 }
 0x1e2   : > { %v1395_v46 = vrot.slane %v1394_v45, 4 }
 0x1e4   : > { %v1396_v47 = vadd.f32 %v1395_v46, %v1394_v45 }
 0x1e6   : > { %v1397_v48 = vrot.slane %v1396_v47, 2 }
 0x1e8   : > { %v1398_v49 = vadd.f32 %v1397_v48, %v1396_v47 }
 0x1ea   : > { %v1399_v50 = vrot.slane %v1398_v49, 1 }
 0x1ec   : > { %v1400_v51 = vadd.f32 %v1399_v50, %v1398_v49 }
 0x1ee   : > { %v1402_v52 = vmul.f32 0.0625, %v1400_v51  ;;  %1420 = vst [vmem:[%s2267_s5] sm:$0xff] %v1400_v51 }
 0x1f0   : > { %v1403_v53 = vsub.f32 %v1390_v41, %v1402_v52  ;;  %v1404_v54 = vsub.f32 %v1391_v42, %v1402_v52  ;;  %v1405_v55 = vsub.f32 %v1392_v38, %v1402_v52 }
 0x1f2   : > { %v1406_v56 = vmul.f32 %v1403_v53, %v1378_v34  ;;  %v1407_v57 = vmul.f32 %v1404_v54, %v1383_v40  ;;  %v1408_v58 = vmul.f32 %v1405_v55, %v1388_v35 }
 0x1f4   : > { %v1409_v59 = vmul.f32 %v1406_v56, %v1406_v56  ;;  %v1410_v60 = vmul.f32 %v1407_v57, %v1407_v57  ;;  %v1411_v61 = vmul.f32 %v1408_v58, %v1408_v58 }
 0x1f6   : > { %v1412_v62 = vadd.f32 %v1410_v60, %v1409_v59 }
 0x1f8   : > { %v1413_v63 = vadd.f32 %v1412_v62, %v1411_v61 }
 0x1fa   : > { %v1414_v0 = vrot.slane %v1413_v63, 4 }
 0x1fc   : > { %v1415_v1 = vadd.f32 %v1414_v0, %v1413_v63 }
 0x1fe   : > { %v1416_v2 = vrot.slane %v1415_v1, 2 }
 0x200   : > { %v1417_v3 = vadd.f32 %v1416_v2, %v1415_v1 }
 0x202   : > { %v1418_v5 = vrot.slane %v1417_v3, 1 }
 0x204   : > { %v1419_v6 = vadd.f32 %v1418_v5, %v1417_v3 }
 0x206   : > { %1421 = vst [vmem:[%s2277_s21] sm:$0xff] %v1419_v6 }
 0x207 PF: > { %s20_s12 = sadd.s32 1, %s2151_s12   ;;  %s2453_s30 = sld [smem:[#allocation3_spill]] }
 0x208   : > { %p17_p0 = scmp.ge.s32.totalorder %s20_s12, 26   ;;  %s2454_s3 = sld [smem:[#allocation4_spill]] }
 0x209   : > { %s2455_s4 = sld [smem:[#allocation5_spill]]  ;;  %s2456_s10 = sld [smem:[#allocation6_spill]] }
 0x20a   : > { %s2457_s5 = sld [smem:[#allocation7_spill]]  ;;  %s2458_s11 = sld [smem:[#allocation8_spill]] }
 0x20b   :  { %19 = sbr.rel (!%p17_p0) target bundleno = 4 (0x4), region = 123 }

// kernel: tile.38
= control target key start
LH: loop header
LB: loop body
LE: loop exit
PB: predicated region body
PF: predicated region fallthrough
CT: control target
= control target key end

     0   :  { %s22_s0 = inlined_call_operand.vmem [shape: f32[128], index: 0, kind: input, shape index: {}]   ;;  %s23_s1 = inlined_call_operand.vmem [shape: f32[2,128], index: 1, kind: output, shape index: {}]  }
   0x1   :  { %v4_v0 = vld [vmem:[%s22_s0] ss:$0 sm:$0xff] }
   0x2   :  { %5 = vst [vmem:[%s23_s1] sm:$0x3] %v4_v0 }

// kernel: unet_encoder3d.11
= control target key start
LH: loop header
LB: loop body
LE: loop exit
PB: predicated region body
PF: predicated region fallthrough
CT: control target
= control target key end

     0   :  { %s565_s15 = smov 0   ;;  %s666_s0 = inlined_call_operand.vmem [shape: bf16[4,2,4,3,256], index: 0, kind: input, shape index: {}]   ;;  %s667_s1 = inlined_call_operand.vmem [shape: f32[1,256], index: 1, kind: input, shape index: {}]   ;;  %s668_s2 = inlined_call_operand.vmem [shape: f32[1,256], index: 2, kind: input, shape index: {}]   ;;  %s669_s3 = inlined_call_operand.vmem [shape: f32[4,2,4,3,256], index: 3, kind: output, shape index: {0}]   ;;  %s670_s4 = inlined_call_operand.vmem [shape: bf16[4,2,2,128], index: 4, kind: output, shape index: {1}]  }
   0x1 LB: > { %s468_s16 = sadd.s32 4294967295, %s538_s15   ;;  %p472_p0 = scmp.ge.s32.totalorder %s538_s15, 1  ;;  %s538_s15 = sphi %s565_s15, %s15_s15  }
   0x2   : > { %p167_p1 = scmp.lt.s32.totalorder %s538_s15, 3 }
   0x4   : > { %p168_p2 = pnand %p472_p0, %p167_p1 }
   0x5   : > { %s473_s17 = sshll.u32 (!%p168_p2), %s468_s16, 1  ;;  %v254_v0 = vlaneseq (!%p168_p2)  ;;  %v252_v2 = vld [vmem:[%s667_s1] sm:$0x3] (!%p168_p2) }
   0x6   : > { %171 = sbr.rel (%p168_p2) target bundleno = 52 (0x34), region = 32  ;;  %p201_p3 = scmp.lt.s32.totalorder (!%p168_p2), %s473_s17, 3  ;;  %v280_v3 = vld [vmem:[%s668_s2] sm:$0x3] (!%p168_p2) }
   0x7   : > { %v255_v1 = vshrl.u32 (!%p168_p2), %v254_v0, 7 }
   0x9   : > { %v256_v4 = vsub.s32 (!%p168_p2), 0, %v255_v1  ;;  %v260_v5 = vsub.s32 (!%p168_p2), 1, %v255_v1 }
   0xb   : > { %v257_v6 = vrot.slane (!%p168_p2), %v252_v2, %v256_v4  ;;  %v261_v7 = vrot.slane (!%p168_p2), %v252_v2, %v260_v5  ;;  %v285_v8 = vrot.slane (!%p168_p2), %v280_v3, %v256_v4  ;;  %v289_v9 = vrot.slane (!%p168_p2), %v280_v3, %v260_v5 }
   0xd   : > { %s672_s17 = smov (!%p201_p3, %s473_s17), 3  ;;  %v590_v14 = vcombine.low %v257_v6, %v261_v7  ;;  %v592_v15 = vcombine.low %v285_v8, %v289_v9 }
   0xe   : > { %s483_s22 = sshll.u32 %s672_s17, 5  ;;  %s484_s26 = sshll.u32 %s672_s17, 6 }
   0xf   : > { %s585_s25 = scalar_lea.vmem %s666_s0, %s483_s22  ;;  %s609_s29 = scalar_lea.vmem %s669_s3, %s484_s26 }
  0x10   : > { %v486_v10 = vld [vmem:[%s585_s25] sm:$0xff]   ;;  %v517_v11 = vld [vmem:[%s585_s25 + $0x8] sm:$0xff]   ;;  %v518_v12 = vld [vmem:[%s585_s25 + $0x10] sm:$0xff]   ;;  %s480_s30 = sshll.u32 %s672_s17, 1 }
  0x11   : > { %v487_v13 = vunpack.c.l.bf16 %v486_v10  ;;  %v488_v16 = vunpack.c.h.bf16 %v486_v10  ;;  %v519_v17 = vld [vmem:[%s585_s25 + $0x18] sm:$0xff]   ;;  %v491_v18 = vunpack.c.l.bf16 %v517_v11  ;;  %v492_v19 = vunpack.c.h.bf16 %v517_v11  ;;  %v520_v38 = vld [vmem:[%s585_s25 + $0x20] sm:$0xff]   ;;  %v521_v43 = vld [vmem:[%s585_s25 + $0x28] sm:$0xff]   ;;  %s644_s7 = scalar_lea.vmem %s670_s4, %s480_s30 }
  0x12   : > { %v495_v20 = vunpack.c.l.bf16 %v518_v12  ;;  %v496_v21 = vunpack.c.h.bf16 %v518_v12  ;;  %v499_v24 = vunpack.c.l.bf16 %v519_v17  ;;  %v500_v25 = vunpack.c.h.bf16 %v519_v17  ;;  %v522_v52 = vld [vmem:[%s585_s25 + $0x30] sm:$0xff]   ;;  %v523_v9 = vld [vmem:[%s585_s25 + $0x38] sm:$0xff]  }
  0x13   : > { %v264_v22 = vmul.f32 %v487_v13, %v590_v14  ;;  %v265_v23 = vmul.f32 %v488_v16, %v590_v14  ;;  %v266_v26 = vmul.f32 %v491_v18, %v590_v14  ;;  %v267_v27 = vmul.f32 %v492_v19, %v590_v14 }
  0x14   : > { %v268_v28 = vmul.f32 %v495_v20, %v590_v14  ;;  %v269_v29 = vmul.f32 %v496_v21, %v590_v14  ;;  %v270_v32 = vmul.f32 %v499_v24, %v590_v14  ;;  %v271_v33 = vmul.f32 %v500_v25, %v590_v14 }
  0x15   : > { %v292_v30 = vadd.f32 %v592_v15, %v264_v22  ;;  %v293_v31 = vadd.f32 %v592_v15, %v265_v23  ;;  %v294_v34 = vadd.f32 %v592_v15, %v266_v26  ;;  %v295_v35 = vadd.f32 %v592_v15, %v267_v27 }
  0x16   : > { %v296_v36 = vadd.f32 %v592_v15, %v268_v28  ;;  %v297_v37 = vadd.f32 %v592_v15, %v269_v29  ;;  %v298_v41 = vadd.f32 %v592_v15, %v270_v32  ;;  %v299_v42 = vadd.f32 %v592_v15, %v271_v33 }
  0x17   : > { %v308_v39 = vmax.f32 %v292_v30, 0.0  ;;  %v309_v40 = vmax.f32 %v293_v31, 0.0  ;;  %v310_v44 = vmax.f32 %v294_v34, 0.0  ;;  %v311_v45 = vmax.f32 %v295_v35, 0.0 }
  0x18   : > { %v312_v46 = vmax.f32 %v296_v36, 0.0  ;;  %v313_v47 = vmax.f32 %v297_v37, 0.0  ;;  %v314_v48 = vmax.f32 %v298_v41, 0.0  ;;  %v315_v49 = vmax.f32 %v299_v42, 0.0 }
  0x19   : > { %324 = vst [vmem:[%s609_s29] sm:$0x77] %v308_v39  ;;  %325 = vst [vmem:[%s609_s29 + $0x8] sm:$0x77] %v309_v40  ;;  %v503_v50 = vunpack.c.l.bf16 %v520_v38  ;;  %v504_v51 = vunpack.c.h.bf16 %v520_v38  ;;  %v507_v55 = vunpack.c.l.bf16 %v521_v43  ;;  %v508_v56 = vunpack.c.h.bf16 %v521_v43 }
  0x1a   : > { %326 = vst [vmem:[%s609_s29 + $0x10] sm:$0x77] %v310_v44  ;;  %327 = vst [vmem:[%s609_s29 + $0x18] sm:$0x77] %v311_v45  ;;  %v340_v53 = vmax.f32 %v308_v39, %v312_v46  ;;  %v341_v54 = vmax.f32 %v309_v40, %v313_v47  ;;  %v342_v57 = vmax.f32 %v310_v44, %v314_v48  ;;  %v511_v0 = vunpack.c.l.bf16 %v522_v52 }
  0x1b   : > { %328 = vst [vmem:[%s609_s29 + $0x20] sm:$0x77] %v312_v46  ;;  %329 = vst [vmem:[%s609_s29 + $0x28] sm:$0x77] %v313_v47  ;;  %v343_v58 = vmax.f32 %v311_v45, %v315_v49  ;;  %v272_v59 = vmul.f32 %v503_v50, %v590_v14  ;;  %v273_v60 = vmul.f32 %v504_v51, %v590_v14  ;;  %v512_v4 = vunpack.c.h.bf16 %v522_v52 }
  0x1c   : > { %330 = vst [vmem:[%s609_s29 + $0x30] sm:$0x77] %v314_v48  ;;  %331 = vst [vmem:[%s609_s29 + $0x38] sm:$0x77] %v315_v49  ;;  %v348_v61 = vmax.f32 %v340_v53, %v341_v54  ;;  %v274_v62 = vmul.f32 %v507_v55, %v590_v14  ;;  %v275_v63 = vmul.f32 %v508_v56, %v590_v14  ;;  %v515_v22 = vunpack.c.l.bf16 %v523_v9 }
  0x1d   : > { %v349_v1 = vmax.f32 %v342_v57, %v343_v58  ;;  %v300_v2 = vadd.f32 %v592_v15, %v272_v59  ;;  %v301_v3 = vadd.f32 %v592_v15, %v273_v60  ;;  %v276_v8 = vmul.f32 %v511_v0, %v590_v14 }
  0x1e   : > { %v356_v5 = vrot.slane %v348_v61, 4  ;;  %v302_v6 = vadd.f32 %v592_v15, %v274_v62  ;;  %v303_v7 = vadd.f32 %v592_v15, %v275_v63  ;;  %v277_v13 = vmul.f32 %v512_v4, %v590_v14 }
  0x1f   : > { %v357_v10 = vrot.slane %v349_v1, 4  ;;  %v316_v11 = vmax.f32 %v300_v2, 0.0  ;;  %v317_v12 = vmax.f32 %v301_v3, 0.0  ;;  %v304_v19 = vadd.f32 %v592_v15, %v276_v8 }
  0x20   : > { %v364_v16 = vmax.f32 %v348_v61, %v356_v5  ;;  %v318_v17 = vmax.f32 %v302_v6, 0.0  ;;  %v319_v18 = vmax.f32 %v303_v7, 0.0  ;;  %v305_v21 = vadd.f32 %v592_v15, %v277_v13 }
  0x21   : > { %v365_v20 = vmax.f32 %v349_v1, %v357_v10  ;;  %332 = vst [vmem:[%s609_s29 + $0x40] sm:$0x77] %v316_v11  ;;  %333 = vst [vmem:[%s609_s29 + $0x48] sm:$0x77] %v317_v12  ;;  %v516_v23 = vunpack.c.h.bf16 %v523_v9  ;;  %v320_v25 = vmax.f32 %v304_v19, 0.0  ;;  %v278_v28 = vmul.f32 %v515_v22, %v590_v14 }
  0x22   : > { %v368_v24 = vpack.c.bf16 %v364_v16, %v364_v16  ;;  %334 = vst [vmem:[%s609_s29 + $0x50] sm:$0x77] %v318_v17  ;;  %335 = vst [vmem:[%s609_s29 + $0x58] sm:$0x77] %v319_v18  ;;  %v321_v27 = vmax.f32 %v305_v21, 0.0 }
  0x23   : > { %v369_v26 = vpack.c.bf16 %v365_v20, %v365_v20  ;;  %v279_v29 = vmul.f32 %v516_v23, %v590_v14  ;;  %336 = vst [vmem:[%s609_s29 + $0x60] sm:$0x77] %v320_v25  ;;  %v344_v30 = vmax.f32 %v316_v11, %v320_v25  ;;  %v306_v32 = vadd.f32 %v592_v15, %v278_v28 }
  0x24   : > { %372 = vst [vmem:[%s644_s7] sm:$0x1] %v368_v24  ;;  %337 = vst [vmem:[%s609_s29 + $0x68] sm:$0x77] %v321_v27  ;;  %v345_v31 = vmax.f32 %v317_v12, %v321_v27 }
  0x25   : > { %373 = vst [vmem:[%s644_s7 + $0x1] sm:$0x1] %v369_v26  ;;  %v307_v33 = vadd.f32 %v592_v15, %v279_v29  ;;  %v322_v34 = vmax.f32 %v306_v32, 0.0 }
  0x26   : > { %v350_v36 = vmax.f32 %v344_v30, %v345_v31 }
  0x27   : > { %v323_v35 = vmax.f32 %v307_v33, 0.0  ;;  %338 = vst [vmem:[%s609_s29 + $0x70] sm:$0x77] %v322_v34  ;;  %v346_v37 = vmax.f32 %v318_v17, %v322_v34 }
  0x28   : > { %v358_v14 = vrot.slane %v350_v36, 4 }
  0x29   : > { %339 = vst [vmem:[%s609_s29 + $0x78] sm:$0x77] %v323_v35  ;;  %v347_v38 = vmax.f32 %v319_v18, %v323_v35 }
  0x2a   : > { %v366_v39 = vmax.f32 %v350_v36, %v358_v14 }
  0x2b   : > { %v351_v40 = vmax.f32 %v346_v37, %v347_v38 }
  0x2c   : > { %v370_v41 = vpack.c.bf16 %v366_v39, %v366_v39 }
  0x2d   : > { %v359_v42 = vrot.slane %v351_v40, 4 }
  0x2e   : > { %374 = vst [vmem:[%s644_s7 + $0x2] sm:$0x1] %v370_v41 }
  0x2f   : > { %v367_v43 = vmax.f32 %v351_v40, %v359_v42 }
  0x31   : > { %v371_v44 = vpack.c.bf16 %v367_v43, %v367_v43 }
  0x33   : > { %375 = vst [vmem:[%s644_s7 + $0x3] sm:$0x1] %v371_v44 }
  0x34 PF: > { %s15_s15 = sadd.s32 1, %s538_s15  }
  0x35   : > { %p12_p4 = scmp.ge.s32.totalorder %s15_s15, 4  }
  0x37   :  { %14 = sbr.rel (!%p12_p4) target bundleno = 1 (0x1), region = 74 }

// kernel: unet_encoder3d.10
= control target key start
LH: loop header
LB: loop body
LE: loop exit
PB: predicated region body
PF: predicated region fallthrough
CT: control target
= control target key end

     0   :  { %s2204_s30 = smov 0   ;;  %s2206_s10 = smov 0   ;;  %s2481_s0 = inlined_call_operand.vmem [shape: bf16[2,6,42,128], index: 0, kind: input, shape index: {}]   ;;  %s2482_s1 = inlined_call_operand.vmem [shape: bf16[3,1152,128], index: 1, kind: input, shape index: {}]   ;;  %s2483_s2 = inlined_call_operand.vmem [shape: f32[1,128], index: 2, kind: input, shape index: {}]   ;;  %s2484_s3 = inlined_call_operand.vmem [shape: f32[1,128], index: 3, kind: input, shape index: {}]   ;;  %s2485_s4 = inlined_call_operand.vmem [shape: f32[1,128], index: 4, kind: input, shape index: {}]   ;;  %s2486_s5 = inlined_call_operand.vmem [shape: f32[42,1], index: 5, kind: input, shape index: {}]   ;;  %s2487_s6 = inlined_call_operand.vmem [shape: f32[24,1], index: 6, kind: input, shape index: {}]   ;;  %s2488_s7 = inlined_call_operand.vmem [shape: bf16[2,4,24,128], index: 7, kind: output, shape index: {0}]   ;;  %s2489_s8 = inlined_call_operand.vmem [shape: f32[2,4,8,128], index: 8, kind: output, shape index: {1}]   ;;  %s2490_s9 = inlined_call_operand.vmem [shape: f32[2,4,8,128], index: 9, kind: output, shape index: {2}]  }
   0x1   :  { %2496 = sst [smem:[#allocation10_spill]] %s2483_s2  ;;  %s2208_s11 = smov 0  }
   0x2   :  { %2497 = sst [smem:[#allocation11_spill]] %s2487_s6  ;;  %s2210_s12 = smov 0  }
   0x3   :  { %s2212_s13 = smov 0   ;;  %s2214_s14 = smov 0  }
   0x4   :  { %s2216_s15 = smov 0  }
   0x5 LB: > { %2498 = sst [smem:[#allocation3_spill]] %s2137_s12  ;;  %s32_s16 = sadd.s32 1, %s2137_s12  ;;  %s2149_s15 = sphi %s2216_s15, %s20_s15   ;;  %s2145_s14 = sphi %s2214_s14, %s2514_s14   ;;  %s2141_s13 = sphi %s2212_s13, %s2513_s13   ;;  %s2137_s12 = sphi %s2210_s12, %s2512_s12   ;;  %s2133_s11 = sphi %s2208_s11, %s2511_s11   ;;  %s2129_s10 = sphi %s2206_s10, %s2510_s10   ;;  %s2125_s30 = sphi %s2204_s30, %s2509_s30  }
   0x6   : > { %2499 = sst [smem:[#allocation4_spill]] %s2141_s13  ;;  %p33_p0 = scmp.ge.s32.totalorder %s32_s16, 3 }
   0x7   : > { %2500 = sst [smem:[#allocation5_spill]] %s2145_s14  ;;  %s35_s17 = sadd.s32 1, %s2141_s13 }
   0x8   : > { %2501 = sst [smem:[#allocation6_spill]] %s2149_s15  ;;  %p1706_p1 = scmp.ge.s32.totalorder %s2149_s15, 1 }
   0x9   : > { %p327_p2 = scmp.lt.s32.totalorder %s2149_s15, 25  ;;  %s2516_s16 = smov (%p33_p0, %s32_s16), 0 }
   0xa   : > { %2502 = sst [smem:[#allocation7_spill]] %s2516_s16  ;;  %s2518_s17 = smov (!%p33_p0, %s35_s17), %s2141_s13 }
   0xb   : > { %p328_p3 = pnand %p1706_p1, %p327_p2  ;;  %p37_p4 = scmp.ge.s32.totalorder %s2518_s17, 4 }
   0xc   : > { %s39_s18 = sadd.s32 1, %s2145_s14  ;;  %s2252_s19 = sadd.s32 (!%p328_p3), %s2125_s30, %s2129_s10 }
   0xd   : > { %s2520_s17 = smov (%p37_p4, %s2518_s17), 0  ;;  %s2522_s18 = smov (!%p37_p4, %s39_s18), %s2145_s14 }
   0xe   : > { %2503 = sst [smem:[#allocation8_spill]] %s2520_s17  ;;  %p41_p5 = scmp.ge.s32.totalorder %s2522_s18, 2 }
   0xf   : > { %331 = sbr.rel (%p328_p3) target bundleno = 655 (0x28f), region = 48  ;;  %p389_p6 = scmp.lt.s32.totalorder (!%p328_p3), %s2133_s11, 1 }
  0x10   : > { %s2524_s18 = smov (%p41_p5, %s2522_s18), 0  ;;  %p391_p7 = scmp.lt.s32.totalorder (!%p328_p3), %s2252_s19, 5 }
  0x11   : > { %2504 = sst [smem:[#allocation9_spill]] %s2524_s18  ;;  %p401_p8 = scmp.lt.s32.totalorder (!%p328_p3), %s2129_s10, 3 }
  0x12   : > { %p1713_p9 = scmp.ne.s32.totalorder (!%p328_p3), %s2125_s30, 0 }
  0x16   : > { %s2526_s11 = smov (!%p389_p6, %s2133_s11), 1  ;;  %s2528_s10 = smov (!%p401_p8, %s2129_s10), 3 }
  0x17   : > { %s392_s20 = scalar_select %p391_p7, %s2252_s19, 5 }
  0x18   : > { %s1957_s21 = smul.u32 36, %s2526_s11  ;;  %s1709_s23 = sshll.u32 %s2526_s11, 2  ;;  %v2151_v0 = vmov (!%p1713_p9), 0.0  }
  0x19   : > { %s1956_s22 = smul.u32 6, %s392_s20  ;;  %s413_s17 = sadd.s32 %s1709_s23, %s2528_s10  ;;  %429 = vst [vmem:[#allocation2] sm:$0xff] (!%p1713_p9), %v2151_v0  ;;  %430 = vst [vmem:[#allocation2 + $0x8] sm:$0xff] (!%p1713_p9), %v2151_v0 }
  0x1a   : > { %s1959_s25 = smul.u32 12, %s2526_s11  ;;  %s1710_s14 = sshll.u32 %s413_s17, 3  ;;  %431 = vst [vmem:[#allocation2 + $0x10] sm:$0xff] (!%p1713_p9), %v2151_v0 }
  0x1b   : > { %s395_s24 = sadd.s32 %s1957_s21, %s1956_s22  ;;  %s1958_s27 = smul.u32 3, %s2528_s10 }
  0x1c   : > { %s1707_s26 = sshll.u32 %s395_s24, 2  ;;  %s2266_s2 = scalar_lea.vmem %s2489_s8, %s1710_s14 }
  0x1d   : > { %s2261_s18 = scalar_lea.vmem %s2481_s0, %s1707_s26  ;;  %s405_s16 = sadd.s32 %s1959_s25, %s1958_s27 }
  0x1e   : > { %s1708_s13 = sshll.u32 %s405_s16, 2  ;;  %s2276_s24 = scalar_lea.vmem %s2490_s9, %s1710_s14 }
  0x1f   : > { %s2271_s11 = scalar_lea.vmem %s2488_s7, %s1708_s13  ;;  %428 = sbr.rel (%p1713_p9) target bundleno = 38 (0x26), region = 52 }
  0x26 PF: > { %p433_p10 = scmp.ge.s32.totalorder %s2252_s19, 1  ;;  %p434_p11 = scmp.le.s32.totalorder %s2252_s19, 4 }
  0x28   : > { %p435_p12 = pnand %p434_p11, %p433_p10 }
  0x29   : > { %v480_v1 = vld [vmem:[%s2486_s5 + $0x10] sm:$0xff] (!%p435_p12)  ;;  %v478_v2 = vld [vmem:[%s2486_s5] sm:$0xff] (!%p435_p12)  ;;  %s1796_s14 = smul.u32 (!%p435_p12), 576, %s2125_s30  ;;  %v2152_v3 = vmov (!%p435_p12), 0   ;;  %v481_v4 = vld [vmem:[%s2486_s5 + $0x18] sm:$0xff] (!%p435_p12)  ;;  %vm545_vm0 = vcmask (!%p435_p12), 1044480  }
  0x2a   : > { %438 = sbr.rel (%p435_p12) target bundleno = 472 (0x1d8), region = 56  ;;  %2020 = vset.pattern.permute.xlu1 (!%p435_p12), %v2152_v3  ;;  %2019 = vset.pattern.permute.xlu0 (!%p435_p12), %v2152_v3  ;;  %v479_v5 = vld [vmem:[%s2486_s5 + $0x8] sm:$0xff] (!%p435_p12)  ;;  %v482_v8 = vld [vmem:[%s2486_s5 + $0x20] sm:$0xff] (!%p435_p12)  ;;  %v443_v47 = vld [vmem:[%s2261_s18 + $0x10] sm:$0xf] (!%p435_p12)  ;;  %vm539_vm1 = vcmask (!%p435_p12), 1046528  }
  0x2b   : > { %495 = vperm.xlu1 (!%p435_p12), %2020, %v480_v1   ;;  %485 = vperm.xlu0 (!%p435_p12), %2019, %v478_v2   ;;  %s2297_s26 = scalar_lea.vmem (!%p435_p12), %s2482_s1, %s1796_s14  ;;  %v1813_v41 = vld [vmem:[%s2261_s18 + $0x8] sm:$0xff] (!%p435_p12)   ;;  %v1801_v42 = vld [vmem:[%s2261_s18] sm:$0xff] (!%p435_p12)   ;;  %v448_v49 = vunpack.c.l.bf16 (!%p435_p12), %v443_v47  ;;  %vm519_vm2 = vsmask.f32 (!%p435_p12), 7424  ;;  %vm569_vm3 = vsmask.f32 (!%p435_p12), 5376 }
  0x2c   : > { %v2021_v6 = vld [vmem:[%s2297_s26 + $0xc0] sm:$0xff] (!%p435_p12)   ;;  %v2024_v10 = vld [vmem:[%s2297_s26 + $0xc8] sm:$0xff] (!%p435_p12)   ;;  %v2028_v14 = vld [vmem:[%s2297_s26 + $0xd0] sm:$0xff] (!%p435_p12)   ;;  %v1806_v43 = vunpack.c.l.bf16 (!%p435_p12), %v1813_v41  ;;  %v1802_v44 = vunpack.c.l.bf16 (!%p435_p12), %v1801_v42  ;;  %v1807_v45 = vunpack.c.h.bf16 (!%p435_p12), %v1813_v41  ;;  %v1803_v46 = vunpack.c.h.bf16 (!%p435_p12), %v1801_v42 }
  0x2d   : > { %v2022_v7 = vld [vmem:[%s2297_s26 + $0x80] sm:$0xff] (!%p435_p12)   ;;  %1842 = vmatprep.subr.bf16.mxu1 (!%p435_p12), %v2021_v6  ;;  %v2026_v12 = vld [vmem:[%s2297_s26 + $0x88] sm:$0xff] (!%p435_p12)   ;;  %v2030_v16 = vld [vmem:[%s2297_s26 + $0x90] sm:$0xff] (!%p435_p12)   ;;  %vm563_vm4 = vcmask (!%p435_p12), 1045504   ;;  %vm551_vm5 = vsmask.f32 (!%p435_p12), 4352 }
  0x2e   : > { %v2023_v9 = vld [vmem:[%s2297_s26 + $0x40] sm:$0xff] (!%p435_p12)   ;;  %1843 = vmatpush3.bf16.msra.mxu1 (!%p435_p12), %v2022_v7  ;;  %v2027_v13 = vld [vmem:[%s2297_s26 + $0x48] sm:$0xff] (!%p435_p12)   ;;  %v2031_v17 = vld [vmem:[%s2297_s26 + $0x50] sm:$0xff] (!%p435_p12)  }
  0x2f   : > { %500 = vperm.xlu1 (!%p435_p12), %2020, %v481_v4   ;;  %490 = vperm.xlu0 (!%p435_p12), %2019, %v479_v5   ;;  %v2025_v11 = vld [vmem:[%s2297_s26] sm:$0xff] (!%p435_p12)   ;;  %v2029_v15 = vld [vmem:[%s2297_s26 + $0x8] sm:$0xff] (!%p435_p12)   ;;  %v2032_v18 = vld [vmem:[%s2297_s26 + $0xd8] sm:$0xff] (!%p435_p12)  }
  0x30   : > { %1814 = vmatprep.subr.bf16.mxu0 (!%p435_p12), %v2023_v9  ;;  %1844 = vmatprep.subr.bf16.mxu1 (!%p435_p12), %v2024_v10  ;;  %v2033_v19 = vld [vmem:[%s2297_s26 + $0x10] sm:$0xff] (!%p435_p12)   ;;  %v2034_v20 = vld [vmem:[%s2297_s26 + $0x98] sm:$0xff] (!%p435_p12)   ;;  %v2036_v22 = vld [vmem:[%s2297_s26 + $0xe0] sm:$0xff] (!%p435_p12)  }
  0x31   : > { %1815 = vmatpush3.bf16.msra.mxu0 %v2025_v11  ;;  %v2035_v21 = vld [vmem:[%s2297_s26 + $0x58] sm:$0xff]   ;;  %v2038_v24 = vld [vmem:[%s2297_s26 + $0xa0] sm:$0xff]   ;;  %v2040_v26 = vld [vmem:[%s2297_s26 + $0xe8] sm:$0xff]  }
  0x32   : > { %1845 = vmatpush3.bf16.msra.mxu1 %v2026_v12  ;;  %1816 = vmatprep.subr.bf16.mxu0 %v2027_v13  ;;  %v2037_v23 = vld [vmem:[%s2297_s26 + $0x18] sm:$0xff]   ;;  %v2039_v25 = vld [vmem:[%s2297_s26 + $0x60] sm:$0xff]   ;;  %v2042_v28 = vld [vmem:[%s2297_s26 + $0xa8] sm:$0xff]  }
  0x33   : > { %505 = vperm.xlu0 %2019, %v482_v8   ;;  %1846 = vmatprep.subr.bf16.mxu1 %v2028_v14  ;;  %v2041_v27 = vld [vmem:[%s2297_s26 + $0x20] sm:$0xff]   ;;  %v2043_v29 = vld [vmem:[%s2297_s26 + $0x68] sm:$0xff]   ;;  %v2044_v30 = vld [vmem:[%s2297_s26 + $0xf0] sm:$0xff]  }
  0x34   : > { %v2045_v31 = vld [vmem:[%s2297_s26 + $0x28] sm:$0xff]   ;;  %v2046_v32 = vld [vmem:[%s2297_s26 + $0xb0] sm:$0xff]   ;;  %v2048_v34 = vld [vmem:[%s2297_s26 + $0xf8] sm:$0xff]  }
  0x35   : > { %1817 = vmatpush3.bf16.msra.mxu0 %v2029_v15  ;;  %v2047_v33 = vld [vmem:[%s2297_s26 + $0x70] sm:$0xff]   ;;  %v2050_v36 = vld [vmem:[%s2297_s26 + $0xb8] sm:$0xff]   ;;  %v2052_v38 = vld [vmem:[%s2297_s26 + $0x1c0] sm:$0xff]  }
  0x36   : > { %1847 = vmatpush3.bf16.msra.mxu1 %v2030_v16  ;;  %1818 = vmatprep.subr.bf16.mxu0 %v2031_v17  ;;  %v2049_v35 = vld [vmem:[%s2297_s26 + $0x30] sm:$0xff]   ;;  %v2051_v37 = vld [vmem:[%s2297_s26 + $0x78] sm:$0xff]   ;;  %v2055_v40 = vld [vmem:[%s2297_s26 + $0x140] sm:$0xff]  }
  0x37   : > { %1848 = vmatprep.subr.bf16.mxu1 %v2032_v18  ;;  %v2053_v39 = vld [vmem:[%s2297_s26 + $0x38] sm:$0xff]   ;;  %v1714_v48 = vld [vmem:[%s2484_s3] ss:$0 sm:$0xff] }
  0x38   : > { %v458_v50 = vmul.f32 %v1806_v43, %v1714_v48  ;;  %v456_v51 = vmul.f32 %v1802_v44, %v1714_v48  ;;  %v459_v52 = vmul.f32 %v1807_v45, %v1714_v48  ;;  %v457_v53 = vmul.f32 %v1803_v46, %v1714_v48  ;;  %v1715_v54 = vld [vmem:[%s2485_s4] ss:$0 sm:$0xff]  ;;  %v2062_v45 = vld [vmem:[%s2297_s26 + $0x190] sm:$0xff]   ;;  %v2061_v46 = vld [vmem:[%s2297_s26 + $0x108] sm:$0xff]  }
  0x39   : > { %1819 = vmatpush3.bf16.msra.mxu0 %v2033_v19  ;;  %v460_v55 = vmul.f32 %v1714_v48, %v448_v49  ;;  %v2054_v19 = vld [vmem:[%s2297_s26 + $0x180] sm:$0xff]   ;;  %v2064_v49 = vld [vmem:[%s2297_s26 + $0x1d8] sm:$0xff]  }
  0x3a   : > { %1849 = vmatpush3.bf16.msra.mxu1 %v2034_v20  ;;  %1820 = vmatprep.subr.bf16.mxu0 %v2035_v21  ;;  %v470_v56 = vadd.f32 %v1715_v54, %v458_v50  ;;  %v468_v57 = vadd.f32 %v1715_v54, %v456_v51  ;;  %v471_v58 = vadd.f32 %v1715_v54, %v459_v52  ;;  %v2063_v50 = vld [vmem:[%s2297_s26 + $0x150] sm:$0xff]   ;;  %v2066_v52 = vld [vmem:[%s2297_s26 + $0x198] sm:$0xff]  }
  0x3b   : > { %1850 = vmatprep.subr.bf16.mxu1 %v2036_v22  ;;  %v469_v59 = vadd.f32 %v1715_v54, %v457_v53  ;;  %v472_v62 = vadd.f32 %v1715_v54, %v460_v55  ;;  %v2065_v53 = vld [vmem:[%s2297_s26 + $0x110] sm:$0xff]   ;;  %v2067_v55 = vld [vmem:[%s2297_s26 + $0x158] sm:$0xff]  }
  0x3c   : > { %v475_v63 = vmax.f32 %v470_v56, 0.0  ;;  %v473_v0 = vmax.f32 %v468_v57, 0.0  ;;  %v476_v1 = vmax.f32 %v471_v58, 0.0  ;;  %v2068_v56 = vld [vmem:[%s2297_s26 + $0x1e0] sm:$0xff]   ;;  %v2069_v58 = vld [vmem:[%s2297_s26 + $0x118] sm:$0xff]  }
  0x3d   : > { %1821 = vmatpush3.bf16.msra.mxu0 %v2037_v23  ;;  %v474_v2 = vmax.f32 %v469_v59, 0.0  ;;  %v477_v5 = vmax.f32 %v472_v62, 0.0  ;;  %v2070_v57 = vld [vmem:[%s2297_s26 + $0x1a0] sm:$0xff]   ;;  %v2072_v59 = vld [vmem:[%s2297_s26 + $0x1e8] sm:$0xff]  }
  0x3e   : > { %1851 = vmatpush3.bf16.msra.mxu1 %v2038_v24  ;;  %1822 = vmatprep.subr.bf16.mxu0 %v2039_v25  ;;  %v2056_v24 = vld [vmem:[%s2297_s26 + $0x1c8] sm:$0xff]   ;;  %v2073_v62 = vld [vmem:[%s2297_s26 + $0x120] sm:$0xff]  }
  0x3f   : > { %1852 = vmatprep.subr.bf16.mxu1 %v2040_v26 }
  0x41   : > { %1823 = vmatpush3.bf16.msra.mxu0 %v2041_v27 }
  0x42   : > { %1853 = vmatpush3.bf16.msra.mxu1 %v2042_v28  ;;  %1824 = vmatprep.subr.bf16.mxu0 %v2043_v29 }
  0x43   : > { %1854 = vmatprep.subr.bf16.mxu1 %v2044_v30 }
  0x45   : > { %1825 = vmatpush3.bf16.msra.mxu0 %v2045_v31  ;;  %v2058_v31 = vld [vmem:[%s2297_s26 + $0x188] sm:$0xff]  }
  0x46   : > { %1855 = vmatpush3.bf16.msra.mxu1 %v2046_v32  ;;  %1826 = vmatprep.subr.bf16.mxu0 %v2047_v33 }
  0x47   : > { %1856 = vmatprep.subr.bf16.mxu1 %v2048_v34  ;;  %v2057_v34 = vld [vmem:[%s2297_s26 + $0x100] sm:$0xff]  }
  0x49   : > { %1827 = vmatpush3.bf16.msra.mxu0 %v2049_v35 }
  0x4a   : > { %1857 = vmatpush3.bf16.msra.mxu1 %v2050_v36  ;;  %1828 = vmatprep.subr.bf16.mxu0 %v2051_v37 }
  0x4b   : > { %1898 = vmatprep.subr.bf16.mxu1 %v2052_v38 }
  0x4d   : > { %1829 = vmatpush3.bf16.msra.mxu0 %v2053_v39  ;;  %v2059_v39 = vld [vmem:[%s2297_s26 + $0x148] sm:$0xff]  }
  0x4e   : > { %1870 = vmatprep.subr.bf16.mxu0 %v2055_v40  ;;  %v2060_v40 = vld [vmem:[%s2297_s26 + $0x1d0] sm:$0xff]  }
  0xaa   : > { %v496_v60 = vpop.permute.xlu1 %495  ;;  %v486_v61 = vpop.permute.xlu0 %485 }
  0xab   : > { %v2345_v6 = vmul.f32 %v496_v60, %v475_v63  ;;  %v508_v7 = vmul.f32 %v486_v61, %v473_v0  ;;  %v2071_v60 = vld [vmem:[%s2297_s26 + $0x160] sm:$0xff]   ;;  %v2074_v61 = vld [vmem:[%s2297_s26 + $0x1a8] sm:$0xff]   ;;  %v2076_v63 = vld [vmem:[%s2297_s26 + $0x1f0] sm:$0xff]  }
  0xac   : > { %v2075_v0 = vld [vmem:[%s2297_s26 + $0x168] sm:$0xff]  }
  0xad   : > { %v514_v54 = vpack.c.bf16 %v2345_v6, %v2345_v6 }
  0xae   : > { %v501_v3 = vpop.permute.xlu1 %500  ;;  %v491_v4 = vpop.permute.xlu0 %490 }
  0xaf   : > { %v2347_v8 = vmul.f32 %v501_v3, %v476_v1  ;;  %v509_v9 = vmul.f32 %v491_v4, %v474_v2  ;;  %v2078_v1 = vld [vmem:[%s2297_s26 + $0x1b0] sm:$0xff]   ;;  %v2077_v2 = vld [vmem:[%s2297_s26 + $0x128] sm:$0xff]   ;;  %v2080_v3 = vld [vmem:[%s2297_s26 + $0x1f8] sm:$0xff]  }
  0xb0   : > { %v2079_v4 = vld [vmem:[%s2297_s26 + $0x170] sm:$0xff]  }
  0xb1   : > { %v2351_v10 = vpack.c.bf16 %v2347_v8, %v2345_v6  ;;  %v2353_v11 = vpack.c.bf16 %v509_v9, %v508_v7  ;;  %v2356_v12 = vpack.c.bf16 %v2345_v6, %v509_v9  ;;  %v2081_v6 = vld [vmem:[%s2297_s26 + $0x130] sm:$0xff]   ;;  %v2083_v7 = vld [vmem:[%s2297_s26 + $0x178] sm:$0xff]  }
  0xb2   : > { %v506_v13 = vpop.permute.xlu0 %505 }
  0xb3   : > { %v512_v14 = vmul.f32 %v506_v13, %v477_v5  ;;  %v546_v15 = vrot.slane %v2353_v11, 3  ;;  %v547_v16 = vrot.slane %v2351_v10, 3  ;;  %v540_v17 = vrot.slane %v2353_v11, 1  ;;  %v2082_v5 = vld [vmem:[%s2297_s26 + $0x1b8] sm:$0xff]  }
  0xb4   : > { %v541_v18 = vrot.slane %v2351_v10, 1  ;;  %v523_v20 = vshll.u32 %v2353_v11, 16  ;;  %v528_v21 = vshll.u32 %v2351_v10, 16  ;;  %v571_v25 = vshrl.u32 %v2356_v12, 16 }
  0xb5   : > { %v2366_v22 = vpack.c.bf16 %v512_v14, %v2347_v8  ;;  %v548_v23 = vsel %vm545_vm0, %v546_v15, %v547_v16  ;;  %v521_v27 = vshrl.u32 %v2353_v11, 16  ;;  %v574_v32 = vshll.u32 %v2356_v12, 16 }
  0xb6   : > { %1256 = vmatprep.mubr.bf16.mxu1 %v548_v23  ;;  %v542_v26 = vsel %vm539_vm1, %v540_v17, %v541_v18  ;;  %v525_v28 = vrot.slane %v523_v20, 1  ;;  %v530_v29 = vrot.slane %v528_v21, 1  ;;  %v532_v35 = vshrl.u32 %v2351_v10, 16  ;;  %v2085_v23 = vld [vmem:[%s2297_s26 + $0x200] sm:$0xff]   ;;  %v2086_v10 = vld [vmem:[%s2297_s26 + $0x208] sm:$0xff]  }
  0xb7   : > { %1257 = vmatmul.mubr.bf16.vlgmr.msra.gmra.mrb[0].mxu1 %v542_v26  ;;  %v579_v33 = vshrl.u32 %v2366_v22, 16  ;;  %v573_v36 = vrot.slane %v571_v25, 2  ;;  %v582_v37 = vshll.u32 %v2366_v22, 16  ;;  %v576_v41 = vrot.slane %v574_v32, 3  ;;  %v2087_v25 = vld [vmem:[%s2297_s26 + $0x210] sm:$0xff]  }
  0xb8   : > { %1899 = vmatpush3.bf16.msra.mxu1 %v2054_v19  ;;  %1264 = vmatprep.mubr.bf16.mxu1 %v547_v16  ;;  %v526_v30 = vor.u32 %v525_v28, %v521_v27  ;;  %v534_v43 = vor.u32 %v532_v35, %v530_v29  ;;  %v565_v9 = vrot.slane %v2366_v22, 2  ;;  %v552_v13 = vrot.slane %v521_v27, 3  ;;  %v2088_v28 = vld [vmem:[%s2297_s26 + $0x218] sm:$0xff]  }
  0xb9   : > { %1900 = vmatprep.subr.bf16.mxu1 %v2056_v24  ;;  %v581_v42 = vrot.slane %v579_v33, 2  ;;  %v584_v44 = vrot.slane %v582_v37, 3  ;;  %v577_v47 = vor.u32 %v576_v41, %v573_v36  ;;  %v553_v14 = vrot.slane %v523_v20, 4 }
  0xba   : > { %v531_v38 = vsel %vm519_vm2, %v526_v30, %v530_v29  ;;  %v556_v15 = vrot.slane %v528_v21, 4  ;;  %v555_v16 = vrot.slane %v532_v35, 3  ;;  %v564_v17 = vrot.slane %v2356_v12, 2  ;;  %v2089_v29 = vld [vmem:[%s2297_s26 + $0x220] sm:$0xff]   ;;  %v2090_v30 = vld [vmem:[%s2297_s26 + $0x228] sm:$0xff]  }
  0xbb   : > { %1208 = vmatprep.mubr.bf16.mxu0 %v531_v38  ;;  %v2391_v48 = vor.u32 %v584_v44, %v581_v42  ;;  %v517_v21 = vpack.c.bf16 %v2347_v8, %v2347_v8  ;;  %v590_v26 = vrot.slane %v2366_v22, 3  ;;  %v589_v27 = vrot.slane %v2356_v12, 3  ;;  %v2091_v22 = vld [vmem:[%s2297_s26 + $0x230] sm:$0xff]  }
  0xbc   : > { %1209 = vmatmul.mubr.bf16.vlgmr.msra.gmra.mrb[0].mxu0 %v2353_v11  ;;  %1901 = vmatpush3.bf16.msra.mxu1 %v2058_v31  ;;  %v566_v19 = vsel %vm563_vm4, %v564_v17, %v565_v9  ;;  %v557_v24 = vor.u32 %v556_v15, %v555_v16  ;;  %v554_v11 = vor.u32 %v553_v14, %v552_v13  ;;  %v2092_v31 = vld [vmem:[%s2297_s26 + $0x238] sm:$0xff]  }
  0xbd   : > { %1871 = vmatpush3.bf16.msra.mxu0 %v2057_v34  ;;  %1216 = vmatprep.mubr.bf16.mxu0 %v534_v43  ;;  %v586_v51 = vsel %vm569_vm3, %v577_v47, %v2391_v48  ;;  %v591_v8 = vsel %vm545_vm0, %v589_v27, %v590_v26 }
  0xbe   : > { %1872 = vmatprep.subr.bf16.mxu0 %v2059_v39  ;;  %1902 = vmatprep.subr.bf16.mxu1 %v2060_v40  ;;  %v558_v20 = vsel %vm551_vm5, %v554_v11, %v557_v24 }
  0xbf   : > { %1265 = vmatmul.mubr.bf16.gmra.mrb[4].mxu1 %v541_v18  ;;  %v2084_v18 = vld [vmem:[%s2297_s26 + $0x138] sm:$0xff]  }
  0xc0   : > { %1903 = vmatpush3.bf16.msra.mxu1 %v2062_v45  ;;  %1352 = vmatprep.mubr.bf16.mxu1 %v586_v51 }
  0xc1   : > { %1873 = vmatpush3.bf16.msra.mxu0 %v2061_v46  ;;  %1904 = vmatprep.subr.bf16.mxu1 %v2064_v49 }
  0xc2   : > { %1874 = vmatprep.subr.bf16.mxu0 %v2063_v50 }
  0xc4   : > { %1217 = vmatmul.mubr.bf16.gmra.mrb[4].mxu0 %v514_v54  ;;  %1905 = vmatpush3.bf16.msra.mxu1 %v2066_v52 }
  0xc5   : > { %1875 = vmatpush3.bf16.msra.mxu0 %v2065_v53  ;;  %1304 = vmatprep.mubr.bf16.mxu0 %v2356_v12 }
  0xc6   : > { %1876 = vmatprep.subr.bf16.mxu0 %v2067_v55  ;;  %1906 = vmatprep.subr.bf16.mxu1 %v2068_v56 }
  0xc8   : > { %1907 = vmatpush3.bf16.msra.mxu1 %v2070_v57 }
  0xc9   : > { %1877 = vmatpush3.bf16.msra.mxu0 %v2069_v58  ;;  %1908 = vmatprep.subr.bf16.mxu1 %v2072_v59 }
  0xca   : > { %1878 = vmatprep.subr.bf16.mxu0 %v2071_v60 }
  0xcc   : > { %1909 = vmatpush3.bf16.msra.mxu1 %v2074_v61 }
  0xcd   : > { %1879 = vmatpush3.bf16.msra.mxu0 %v2073_v62  ;;  %1910 = vmatprep.subr.bf16.mxu1 %v2076_v63 }
  0xce   : > { %1880 = vmatprep.subr.bf16.mxu0 %v2075_v0 }
  0xd0   : > { %1911 = vmatpush3.bf16.msra.mxu1 %v2078_v1 }
  0xd1   : > { %1881 = vmatpush3.bf16.msra.mxu0 %v2077_v2  ;;  %1912 = vmatprep.subr.bf16.mxu1 %v2080_v3 }
  0xd2   : > { %1882 = vmatprep.subr.bf16.mxu0 %v2079_v4 }
  0xd4   : > { %1913 = vmatpush3.bf16.msra.mxu1 %v2082_v5 }
  0xd5   : > { %1883 = vmatpush3.bf16.msra.mxu0 %v2081_v6 }
  0xd6   : > { %1884 = vmatprep.subr.bf16.mxu0 %v2083_v7 }
  0xd7   : > { %1353 = vmatmul.mubr.bf16.vlgmr.msra.gmra.mrb[8].mxu1 %v566_v19 }
  0xd8   : > { %1360 = vmatprep.mubr.bf16.mxu1 %v2391_v48 }
  0xd9   : > { %1885 = vmatpush3.bf16.msra.mxu0 %v2084_v18 }
  0xda   : > { %1936 = vmatprep.subr.bf16.mxu0 %v2085_v23 }
  0xdc   : > { %1305 = vmatmul.mubr.bf16.vlgmr.msra.gmra.mrb[8].mxu0 %v558_v20  ;;  %v743_v20 = vld [vmem:[#allocation2 + $0x10] sm:$0xff] }
  0xdd   : > { %1312 = vmatprep.mubr.bf16.mxu0 %v517_v21  ;;  %1937 = vmatpush3.bf16.msra.mxu0 %v2085_v23 }
  0xde   : > { %1938 = vmatprep.subr.bf16.mxu0 %v2086_v10 }
  0xdf   : > { %1361 = vmatmul.mubr.bf16.gmra.mrb[12].mxu1 %v565_v9 }
  0xe1   : > { %1939 = vmatpush3.bf16.msra.mxu0 %v2086_v10 }
  0xe2   : > { %1940 = vmatprep.subr.bf16.mxu0 %v2087_v25 }
  0xe4   : > { %1313 = vmatmul.mubr.bf16.gmra.mrb[12].mxu0 %v557_v24 }
  0xe5   : > { %1941 = vmatpush3.bf16.msra.mxu0 %v2087_v25  ;;  %1952 = vmatprep.mubr.bf16.mxu0 %v591_v8 }
  0xe6   : > { %1942 = vmatprep.subr.bf16.mxu0 %v2088_v28 }
  0xe9   : > { %1943 = vmatpush3.bf16.msra.mxu0 %v2088_v28 }
  0xea   : > { %1944 = vmatprep.subr.bf16.mxu0 %v2089_v29 }
  0xed   : > { %1945 = vmatpush3.bf16.msra.mxu0 %v2089_v29 }
  0xee   : > { %1946 = vmatprep.subr.bf16.mxu0 %v2090_v30 }
  0xf1   : > { %1947 = vmatpush3.bf16.msra.mxu0 %v2090_v30  ;;  %v742_v30 = vld [vmem:[#allocation2 + $0x8] sm:$0xff] }
  0xf2   : > { %1948 = vmatprep.subr.bf16.mxu0 %v2091_v22 }
  0xf5   : > { %1949 = vmatpush3.bf16.msra.mxu0 %v2091_v22 }
  0xf6   : > { %1950 = vmatprep.subr.bf16.mxu0 %v2092_v31 }
  0xf9   : > { %1951 = vmatpush3.bf16.msra.mxu0 %v2092_v31 }
  0xfc   : > { %1953 = vmatmul.mubr.bf16.vlgmr.msra.gmra.mrb[16].mxu0 %v590_v26  ;;  %v741_v26 = vld [vmem:[#allocation2] sm:$0xff] }
 0x18a   : > { %v1858_v12 = vpop.f32.mrb[0].mxu1 }
 0x18b   : > { %v1859_v32 = vpop.f32.mrb[1].mxu1 }
 0x18c   : > { %v1860_v33 = vadd.f32 %v1859_v32, %v1858_v12  ;;  %v1861_v34 = vpop.f32.mrb[2].mxu1 }
 0x18d   : > { %v1862_v35 = vpop.f32.mrb[3].mxu1 }
 0x18e   : > { %v1863_v36 = vadd.f32 %v1862_v35, %v1861_v34 }
 0x18f   : > { %v1830_v37 = vpop.f32.mrb[0].mxu0 }
 0x190   : > { %v1831_v38 = vpop.f32.mrb[1].mxu0 }
 0x191   : > { %v1832_v39 = vadd.f32 %v1831_v38, %v1830_v37  ;;  %v1833_v40 = vpop.f32.mrb[2].mxu0 }
 0x192   : > { %v1834_v41 = vpop.f32.mrb[3].mxu0  ;;  %v1864_v42 = vpop.f32.mrb[4].mxu1 }
 0x193   : > { %v1259_v43 = vadd.f32 %v1860_v33, %v1832_v39  ;;  %v1835_v44 = vadd.f32 %v1834_v41, %v1833_v40  ;;  %v1865_v45 = vpop.f32.mrb[5].mxu1 }
 0x194   : > { %v1866_v46 = vadd.f32 %v1865_v45, %v1864_v42  ;;  %v1867_v47 = vpop.f32.mrb[6].mxu1 }
 0x195   : > { %v1262_v48 = vadd.f32 %v1863_v36, %v1835_v44  ;;  %v1868_v49 = vpop.f32.mrb[7].mxu1 }
 0x197   : > { %v1836_v50 = vpop.f32.mrb[4].mxu0 }
 0x198   : > { %v1837_v51 = vpop.f32.mrb[5].mxu0 }
 0x199   : > { %v1838_v52 = vadd.f32 %v1837_v51, %v1836_v50  ;;  %v1839_v53 = vpop.f32.mrb[6].mxu0 }
 0x19a   : > { %v1840_v54 = vpop.f32.mrb[7].mxu0 }
 0x19b   : > { %v1267_v55 = vadd.f32 %v1866_v46, %v1838_v52 }
 0x1aa   : > { %v1914_v56 = vpop.f32.mrb[8].mxu1 }
 0x1ab   : > { %v1915_v57 = vpop.f32.mrb[9].mxu1 }
 0x1ac   : > { %v1916_v58 = vadd.f32 %v1915_v57, %v1914_v56  ;;  %v1917_v59 = vpop.f32.mrb[10].mxu1 }
 0x1ad   : > { %v1918_v60 = vpop.f32.mrb[11].mxu1 }
 0x1ae   : > { %v1919_v61 = vadd.f32 %v1918_v60, %v1917_v59 }
 0x1af   : > { %v1886_v62 = vpop.f32.mrb[8].mxu0 }
 0x1b0   : > { %v1887_v63 = vpop.f32.mrb[9].mxu0 }
 0x1b1   : > { %v1888_v0 = vadd.f32 %v1887_v63, %v1886_v62  ;;  %v1889_v1 = vpop.f32.mrb[10].mxu0 }
 0x1b2   : > { %v1890_v2 = vpop.f32.mrb[11].mxu0  ;;  %v1920_v3 = vpop.f32.mrb[12].mxu1 }
 0x1b3   : > { %v1307_v4 = vadd.f32 %v1888_v0, %v1259_v43  ;;  %v1891_v5 = vadd.f32 %v1890_v2, %v1889_v1  ;;  %v1921_v6 = vpop.f32.mrb[13].mxu1 }
 0x1b4   : > { %v1922_v7 = vadd.f32 %v1921_v6, %v1920_v3  ;;  %v1923_v9 = vpop.f32.mrb[14].mxu1 }
 0x1b5   : > { %v1310_v13 = vadd.f32 %v1891_v5, %v1262_v48  ;;  %v1924_v14 = vpop.f32.mrb[15].mxu1  ;;  %v1355_v15 = vadd.f32 %v1916_v58, %v1307_v4 }
 0x1b7   : > { %v1892_v16 = vpop.f32.mrb[12].mxu0  ;;  %v1358_v17 = vadd.f32 %v1919_v61, %v1310_v13 }
 0x1b8   : > { %v1893_v18 = vpop.f32.mrb[13].mxu0 }
 0x1b9   : > { %v1894_v19 = vadd.f32 %v1893_v18, %v1892_v16  ;;  %v1895_v23 = vpop.f32.mrb[14].mxu0 }
 0x1ba   : > { %v1896_v24 = vpop.f32.mrb[15].mxu0 }
 0x1bb   : > { %v1315_v11 = vadd.f32 %v1894_v19, %v1267_v55 }
 0x1bd   : > { %v1363_v10 = vadd.f32 %v1922_v7, %v1315_v11 }
 0x1cf   : > { %v1954_v21 = vpop.f32.mrb[16].mxu0 }
 0x1d0   : > { %v1411_v25 = vadd.f32 %v1954_v21, %v1363_v10  ;;  %v1402_v27 = vpop.f32.mrb[17].mxu0 }
 0x1d1   : > { %v1403_v28 = vadd.f32 %v1402_v27, %v1355_v15  ;;  %v1955_v8 = vpop.f32.mrb[18].mxu0 }
 0x1d2   : > { %v1418_v29 = vadd.f32 %v1411_v25, %v743_v20  ;;  %v1405_v22 = vpop.f32.mrb[19].mxu0 }
 0x1d3   : > { %v1416_v31 = vadd.f32 %v1403_v28, %v741_v26  ;;  %v1406_v12 = vadd.f32 %v1405_v22, %v1358_v17 }
 0x1d4   : > { %1421 = vst [vmem:[#allocation2 + $0x10] sm:$0xff] %v1418_v29 }
 0x1d5   : > { %1419 = vst [vmem:[#allocation2] sm:$0xff] %v1416_v31  ;;  %v1417_v32 = vadd.f32 %v1406_v12, %v742_v30 }
 0x1d7   : > { %1420 = vst [vmem:[#allocation2 + $0x8] sm:$0xff] %v1417_v32 }
 0x1d8 PF: > { %p1789_p13 = scmp.ne.s32.totalorder %s2125_s30, 2 }
 0x1d9   : > { %s2505_s10 = sld [smem:[#allocation11_spill]] (!%p1789_p13)  ;;  %v2153_v35 = vmov (!%p1789_p13), 0   ;;  %s2507_s19 = sld [smem:[#allocation10_spill]] (!%p1789_p13) }
 0x1da   : > { %1425 = sbr.rel (%p1789_p13) target bundleno = 655 (0x28f), region = 60  ;;  %2093 = vset.pattern.permute.xlu0 (!%p1789_p13), %v2153_v35  ;;  %2094 = vset.pattern.permute.xlu1 (!%p1789_p13), %v2153_v35 }
 0x1db   : > { %v1431_v37 = vld [vmem:[#allocation2 + $0x10] sm:$0xff] (!%p1789_p13) }
 0x1dc   : > { %v1429_v40 = vld [vmem:[#allocation2] sm:$0xff] (!%p1789_p13) }
 0x1de   : > { %v1430_v41 = vld [vmem:[#allocation2 + $0x8] sm:$0xff] (!%p1789_p13) }
 0x1df   : > { %s2506_s16 = smov (!%p1789_p13), %s2505_s10  ;;  %v1426_v33 = vld [vmem:[%s2505_s10] sm:$0xff] (!%p1789_p13) }
 0x1e0   : > { %v1428_v34 = vld [vmem:[%s2506_s16 + $0x10] sm:$0xff] (!%p1789_p13)  ;;  %1444 = vperm.xlu0 (!%p1789_p13), %2093, %v1426_v33   ;;  %v1427_v36 = vld [vmem:[%s2506_s16 + $0x8] sm:$0xff] (!%p1789_p13)  ;;  %v1790_v38 = vld [vmem:[%s2507_s19] ss:$0 sm:$0xff] (!%p1789_p13) }
 0x1e1   : > { %1454 = vperm.xlu1 %2094, %v1428_v34   ;;  %v1441_v39 = vadd.f32 %v1790_v38, %v1431_v37  ;;  %v1439_v44 = vadd.f32 %v1790_v38, %v1429_v40  ;;  %v1440_v45 = vadd.f32 %v1790_v38, %v1430_v41 }
 0x1e4   : > { %1449 = vperm.xlu0 %2093, %v1427_v36  }
 0x25f   : > { %v1445_v42 = vpop.permute.xlu0 %1444 }
 0x260   : > { %v1455_v43 = vpop.permute.xlu1 %1454  ;;  %v1457_v49 = vmul.f32 %v1445_v42, %v1439_v44 }
 0x261   : > { %v1459_v46 = vmul.f32 %v1455_v43, %v1441_v39 }
 0x263   : > { %v1799_v47 = vpack.c.bf16 %v1459_v46, %v1459_v46  ;;  %v1450_v48 = vpop.permute.xlu0 %1449 }
 0x264   : > { %v1458_v50 = vmul.f32 %v1450_v48, %v1440_v45 }
 0x265   : > { %1504 = vst [vmem:[%s2271_s11 + $0x8] sm:$0xf] %v1799_v47 }
 0x266   : > { %v1460_v51 = vadd.f32 %v1458_v50, %v1457_v49  ;;  %v1811_v52 = vpack.c.bf16 %v1458_v50, %v1457_v49 }
 0x268   : > { %1812 = vst [vmem:[%s2271_s11] sm:$0xff] %v1811_v52   ;;  %v1461_v53 = vadd.f32 %v1460_v51, %v1459_v46 }
 0x26a   : > { %v1462_v54 = vrot.slane %v1461_v53, 4 }
 0x26c   : > { %v1463_v55 = vadd.f32 %v1462_v54, %v1461_v53 }
 0x26e   : > { %v1464_v56 = vrot.slane %v1463_v55, 2 }
 0x270   : > { %v1465_v57 = vadd.f32 %v1464_v56, %v1463_v55 }
 0x272   : > { %v1466_v58 = vrot.slane %v1465_v57, 1 }
 0x274   : > { %v1467_v59 = vadd.f32 %v1466_v58, %v1465_v57 }
 0x276   : > { %v1469_v60 = vmul.f32 0.0625, %v1467_v59  ;;  %1487 = vst [vmem:[%s2266_s2] sm:$0xff] %v1467_v59 }
 0x278   : > { %v1470_v61 = vsub.f32 %v1457_v49, %v1469_v60  ;;  %v1471_v62 = vsub.f32 %v1458_v50, %v1469_v60  ;;  %v1472_v63 = vsub.f32 %v1459_v46, %v1469_v60 }
 0x27a   : > { %v1473_v0 = vmul.f32 %v1470_v61, %v1445_v42  ;;  %v1474_v1 = vmul.f32 %v1471_v62, %v1450_v48  ;;  %v1475_v2 = vmul.f32 %v1472_v63, %v1455_v43 }
 0x27c   : > { %v1476_v3 = vmul.f32 %v1473_v0, %v1473_v0  ;;  %v1477_v4 = vmul.f32 %v1474_v1, %v1474_v1  ;;  %v1478_v5 = vmul.f32 %v1475_v2, %v1475_v2 }
 0x27e   : > { %v1479_v6 = vadd.f32 %v1477_v4, %v1476_v3 }
 0x280   : > { %v1480_v7 = vadd.f32 %v1479_v6, %v1478_v5 }
 0x282   : > { %v1481_v9 = vrot.slane %v1480_v7, 4 }
 0x284   : > { %v1482_v13 = vadd.f32 %v1481_v9, %v1480_v7 }
 0x286   : > { %v1483_v14 = vrot.slane %v1482_v13, 2 }
 0x288   : > { %v1484_v15 = vadd.f32 %v1483_v14, %v1482_v13 }
 0x28a   : > { %v1485_v16 = vrot.slane %v1484_v15, 1 }
 0x28c   : > { %v1486_v17 = vadd.f32 %v1485_v16, %v1484_v15 }
 0x28e   : > { %1488 = vst [vmem:[%s2276_s24] sm:$0xff] %v1486_v17 }
 0x28f PF: > { %s2508_s2 = sld [smem:[#allocation6_spill]]  ;;  %s2509_s30 = sld [smem:[#allocation3_spill]] }
 0x290   : > { %s2510_s10 = sld [smem:[#allocation4_spill]]  ;;  %s2511_s11 = sld [smem:[#allocation5_spill]] }
 0x291   : > { %s2512_s12 = sld [smem:[#allocation7_spill]]  ;;  %s2513_s13 = sld [smem:[#allocation8_spill]] }
 0x292   : > { %s2514_s14 = sld [smem:[#allocation9_spill]] }
 0x295   : > { %s20_s15 = sadd.s32 1, %s2508_s2  }
 0x296   : > { %p17_p0 = scmp.ge.s32.totalorder %s20_s15, 26  }
 0x298   :  { %19 = sbr.rel (!%p17_p0) target bundleno = 5 (0x5), region = 115 }

</bundles_post_ra>
